<compile_context>
chip_gen: v7x
topology: tpu7x:2x2x1
jax: 0.10.0
libtpu: 0.0.40
codegen_flags: <defaults>
</compile_context>

<pallas_src>
import numpy as np

import jax
import jax.numpy as jnp
from jax.experimental import pallas as pl
from jax.experimental.pallas import tpu as pltpu


# Fixed layer geometry (module input is 3x32x32).
_H1, _H2, _H3 = 32, 16, 8          # per-image row stride of conv input slabs
_K1, _K2, _K3 = 5, 5, 3            # conv kernel sizes
_KP1, _KP2, _KP3 = 128, 256, 256   # lane-padded slab widths (W*Cin -> x128)
_NM = 512                          # merged even|odd conv output width (2x256)


# ----------------------------------------------------------------------------
# Fused kernel: TB images per grid step, whole network
# ----------------------------------------------------------------------------
def _build_kernel(tb):
    m1_rows, m2_rows, m3_rows = tb * _H1, tb * _H2, tb * _H3

    def kernel(x_ref, m1_ref, b1_ref, m2_ref, b2_ref, m3_ref, b3_ref,
               p1e_ref, p1o_ref, p2e_ref, p2o_ref, p3e_ref, p3o_ref,
               wl_ref, bl_ref, wf_ref, bf_ref, out_ref,
               xs_ref, s2_ref, s3_ref):
        f32, bf16 = jnp.float32, jnp.bfloat16

        def leaky(v):                                  # LeakyReLU, slope 0.01
            return jnp.where(v > 0, v, 0.01 * v)

        def conv_band(slab_ref, m_ref, b_ref, k, rows):
            # Stacked banded conv: acc[r] = sum_kh slab[r+kh] @ m[kh].
            # Rows that cross image boundaries are finite garbage and are
            # never selected by the pooling matrices.
            acc = jnp.zeros((rows, _NM), f32)
            for kh in range(k):
                src = slab_ref[kh:kh + rows, :].astype(bf16)
                acc = acc + jnp.dot(src, m_ref[kh], preferred_element_type=f32)
            y = leaky(acc + b_ref[...])
            # W-direction 2x pool: elementwise max of even/odd column halves.
            return jnp.maximum(y[:, :256], y[:, 256:])

        def pool_rows(y, pe_ref, po_ref):
            # H-direction 2x pool + restack + zero H-pad via selection matmuls.
            yb = y.astype(bf16)
            return jnp.maximum(
                jnp.dot(pe_ref[...], yb, preferred_element_type=f32),
                jnp.dot(po_ref[...], yb, preferred_element_type=f32))

        # Stage the TB images into a slab with zeroed tail rows so the band
        # slices [kh : kh+rows] never read uninitialized VMEM (NaN safety).
        xs_ref[0:m1_rows, :] = x_ref[...]
        xs_ref[m1_rows:m1_rows + 8, :] = jnp.zeros((8, _KP1), f32)

        # conv1 (5x5) + bias + LeakyReLU + 2x2 maxpool : 32x32x3 -> 14x14x16
        y1 = conv_band(xs_ref, m1_ref, b1_ref, _K1, m1_rows)
        s2_ref[0:m2_rows, :] = pool_rows(y1, p1e_ref, p1o_ref)
        s2_ref[m2_rows:m2_rows + 8, :] = jnp.zeros((8, _KP2), f32)

        # conv2 (5x5, pad 1) : 14x14x16 -> 6x6x32
        y2 = conv_band(s2_ref, m2_ref, b2_ref, _K2, m2_rows)
        s3_ref[0:m3_rows, :] = pool_rows(y2, p2e_ref, p2o_ref)
        s3_ref[m3_rows:m3_rows + 8, :] = jnp.zeros((8, _KP3), f32)

        # conv3 (3x3, pad 1) : 6x6x32 -> 3x3x64
        y3 = conv_band(s3_ref, m3_ref, b3_ref, _K3, m3_rows)
        f3 = pool_rows(y3, p3e_ref, p3o_ref)          # (3*tb, 256): row h*tb+i

        # linear 576->128 + LeakyReLU (NCHW flatten folded into wl); M = tb.
        acc = jnp.zeros((tb, 128), f32)
        for h in range(3):
            acc = acc + jnp.dot(f3[h * tb:(h + 1) * tb, :].astype(bf16),
                                wl_ref[h], preferred_element_type=f32)
        feat = leaky(acc + bl_ref[...])

        # fc 128 -> num_classes (lane-padded to 128)
        out_ref[...] = jnp.dot(feat.astype(bf16), wf_ref[...],
                               preferred_element_type=f32) + bf_ref[...]
        # TODO(synk): return_feat / softmax branches are trivial host-side ops
        # on `feat` / logits and are not kernelized (default path = logits).

    return kernel


# ----------------------------------------------------------------------------
# Host-side weight / selection-matrix packing (once, outside the hot path)
# ----------------------------------------------------------------------------
def pack_params(params, tb=8):
    f32np = np.float32

    def banded_merged(w_oihw, wp, pad, kpad):
        # Banded conv weights in (H, W*Cin) layout, even/odd ow parities merged
        # along N (each half 256-lane padded); W zero-padding folded in.
        w = np.asarray(w_oihw, f32np)                  # (Cout, Cin, kH, kW)
        cout, cin, k, _ = w.shape
        ow = wp + 2 * pad - k + 1
        owh = ow // 2
        m = np.zeros((k, kpad, _NM), f32np)
        for par in range(2):
            for kh in range(k):
                for j in range(owh):
                    ow_i = 2 * j + par
                    for kw in range(k):
                        wc = ow_i + kw - pad           # real input column
                        if 0 <= wc < wp:
                            r0 = wc * cin
                            c0 = par * 256 + j * cout
                            m[kh, r0:r0 + cin, c0:c0 + cout] = w[:, :, kh, kw].T
        return jnp.asarray(m, jnp.bfloat16)

    def bias_merged(b, owh):
        b = np.asarray(b, f32np)
        cout = b.shape[0]
        out = np.zeros((1, _NM), f32np)
        t = np.tile(b, owh)
        out[0, :owh * cout] = t
        out[0, 256:256 + owh * cout] = t
        return jnp.asarray(out)

    def pool_sel_pad(in_stride, out_stride, n_pairs):
        # Pool rows (2j, 2j+1) of every image into next-slab row i*out_stride+1+j;
        # rows 0 and out_stride-1 stay zero (conv H-padding).
        pe = np.zeros((tb * out_stride, tb * in_stride), f32np)
        po = np.zeros_like(pe)
        for i in range(tb):
            for j in range(n_pairs):
                pe[i * out_stride + 1 + j, i * in_stride + 2 * j] = 1.0
                po[i * out_stride + 1 + j, i * in_stride + 2 * j + 1] = 1.0
        return jnp.asarray(pe, jnp.bfloat16), jnp.asarray(po, jnp.bfloat16)

    def pool_sel_feat(in_stride, n_pairs):
        # Final pool: output row h*tb + i  <-  act row i*in_stride + 2h (+1).
        pe = np.zeros((n_pairs * tb, tb * in_stride), f32np)
        po = np.zeros_like(pe)
        for i in range(tb):
            for h in range(n_pairs):
                pe[h * tb + i, i * in_stride + 2 * h] = 1.0
                po[h * tb + i, i * in_stride + 2 * h + 1] = 1.0
        return jnp.asarray(pe, jnp.bfloat16), jnp.asarray(po, jnp.bfloat16)

    p1e, p1o = pool_sel_pad(_H1, _H2, 14)
    p2e, p2o = pool_sel_pad(_H2, _H3, 6)
    p3e, p3o = pool_sel_feat(_H3, 3)

    # linear: fold PyTorch NCHW flatten (c*9 + h*3 + w) into the weight so the
    # kernel consumes the (h, w*64 + c) layout directly; K padded to 256.
    wl = np.asarray(params['linear_w'], f32np)                     # (128, 576)
    wl_r = wl.reshape(128, 64, 3, 3).transpose(2, 3, 1, 0).reshape(3, 192, 128)
    wl_p = np.zeros((3, 256, 128), f32np)
    wl_p[:, :192, :] = wl_r

    nc = np.asarray(params['fc_w']).shape[0]
    wf_p = np.zeros((128, 128), f32np)
    wf_p[:, :nc] = np.asarray(params['fc_w'], f32np).T
    bf_p = np.zeros((1, 128), f32np)
    bf_p[0, :nc] = np.asarray(params['fc_b'], f32np)

    return {
        'm1': banded_merged(params['conv1_w'], 32, 0, _KP1),   # (5,128,512)
        'b1': bias_merged(params['conv1_b'], 14),              # (1,512)
        'm2': banded_merged(params['conv2_w'], 14, 1, _KP2),   # (5,256,512)
        'b2': bias_merged(params['conv2_b'], 6),
        'm3': banded_merged(params['conv3_w'], 6, 1, _KP3),    # (3,256,512)
        'b3': bias_merged(params['conv3_b'], 3),
        'p1e': p1e, 'p1o': p1o, 'p2e': p2e, 'p2o': p2o, 'p3e': p3e, 'p3o': p3o,
        'wl': jnp.asarray(wl_p, jnp.bfloat16),                 # (3,256,128)
        'bl': jnp.asarray(np.asarray(params['linear_b'], f32np)[None, :]),
        'wf': jnp.asarray(wf_p, jnp.bfloat16),                 # (128,128)
        'bf': jnp.asarray(bf_p),                               # (1,128)
    }


# ----------------------------------------------------------------------------
# Forward wrapper
# ----------------------------------------------------------------------------
def cifarnet_forward(x_nchw, packed, num_classes=10):
    """x_nchw: (B, 3, 32, 32) f32 -> logits (B, num_classes) f32."""
    B = x_nchw.shape[0]
    tb = packed['p1e'].shape[0] // _H2             # images per grid step
    bp = ((B + tb - 1) // tb) * tb                 # batch padded to tb

    # NCHW -> lane-dense per-image (H, W*C) layout, 96->128 lane pad, stacked
    # over the batch along sublanes.
    x2d = jnp.transpose(x_nchw, (0, 2, 3, 1)).reshape(B, _H1, 96)
    x2d = jnp.pad(x2d, ((0, bp - B), (0, 0), (0, _KP1 - 96)))
    x2d = x2d.reshape(bp * _H1, _KP1)

    full2 = lambda b: (0, 0)
    full3 = lambda b: (0, 0, 0)

    cost = pl.CostEstimate(
        flops=int(bp * 5.5e7), transcendentals=0,
        bytes_accessed=int(bp * (_H1 * _KP1 * 4 + 512) + 3_600_000))

    out = pl.pallas_call(
        _build_kernel(tb),
        out_shape=jax.ShapeDtypeStruct((bp, 128), jnp.float32),
        grid=(bp // tb,),
        in_specs=[
            pl.BlockSpec((tb * _H1, _KP1), lambda b: (b, 0)),   # images
            pl.BlockSpec((_K1, _KP1, _NM), full3),              # m1 (resident)
            pl.BlockSpec((1, _NM), full2),                      # b1
            pl.BlockSpec((_K2, _KP2, _NM), full3),              # m2
            pl.BlockSpec((1, _NM), full2),                      # b2
            pl.BlockSpec((_K3, _KP3, _NM), full3),              # m3
            pl.BlockSpec((1, _NM), full2),                      # b3
            pl.BlockSpec((tb * _H2, tb * _H1), full2),          # p1e
            pl.BlockSpec((tb * _H2, tb * _H1), full2),          # p1o
            pl.BlockSpec((tb * _H3, tb * _H2), full2),          # p2e
            pl.BlockSpec((tb * _H3, tb * _H2), full2),          # p2o
            pl.BlockSpec((3 * tb, tb * _H3), full2),            # p3e
            pl.BlockSpec((3 * tb, tb * _H3), full2),            # p3o
            pl.BlockSpec((3, 256, 128), full3),                 # linear w
            pl.BlockSpec((1, 128), full2),                      # linear b
            pl.BlockSpec((128, 128), full2),                    # fc w (padded)
            pl.BlockSpec((1, 128), full2),                      # fc b (padded)
        ],
        out_specs=pl.BlockSpec((tb, 128), lambda b: (b, 0)),
        scratch_shapes=[
            pltpu.VMEM((tb * _H1 + 8, _KP1), jnp.float32),      # conv1 slab
            pltpu.VMEM((tb * _H2 + 8, _KP2), jnp.float32),      # conv2 slab
            pltpu.VMEM((tb * _H3 + 8, _KP3), jnp.float32),      # conv3 slab
        ],
        compiler_params=pltpu.CompilerParams(
            dimension_semantics=("parallel",),
            vmem_limit_bytes=32 * 1024 * 1024),
        cost_estimate=cost,
    )(x2d, packed['m1'], packed['b1'], packed['m2'], packed['b2'],
      packed['m3'], packed['b3'],
      packed['p1e'], packed['p1o'], packed['p2e'], packed['p2o'],
      packed['p3e'], packed['p3o'],
      packed['wl'], packed['bl'], packed['wf'], packed['bf'])

    return out[:B, :num_classes]


# ----------------------------------------------------------------------------
# Parameter init (matches the PyTorch module's shapes)
# ----------------------------------------------------------------------------
def init_params(key, num_classes=10, in_channels=3):
    ks = jax.random.split(key, 10)

    def w(k, shape, scale=0.05):
        return scale * jax.random.normal(k, shape, dtype=jnp.float32)

    return {
        'conv1_w': w(ks[0], (16, in_channels, 5, 5)),
        'conv1_b': w(ks[1], (16,)),
        'conv2_w': w(ks[2], (32, 16, 5, 5)),
        'conv2_b': w(ks[3], (32,)),
        'conv3_w': w(ks[4], (64, 32, 3, 3)),
        'conv3_b': w(ks[5], (64,)),
        'linear_w': w(ks[6], (128, 64 * 3 * 3)),
        'linear_b': w(ks[7], (128,)),
        'fc_w': w(ks[8], (num_classes, 128)),
        'fc_b': w(ks[9], (num_classes,)),
    }


# ----------------------------------------------------------------------------
# Pure-JAX reference (correctness check only)
# ----------------------------------------------------------------------------
def reference_forward(x_nchw, params):
    def conv(x, w, b, pad):
        y = jax.lax.conv_general_dilated(
            x, w, window_strides=(1, 1), padding=[(pad, pad), (pad, pad)],
            dimension_numbers=('NCHW', 'OIHW', 'NCHW'))
        return y + b[None, :, None, None]

    def lrelu(x):
        return jnp.where(x > 0, x, 0.01 * x)

    def pool(x):
        return jax.lax.reduce_window(x, -jnp.inf, jax.lax.max,
                                     (1, 1, 2, 2), (1, 1, 2, 2), 'VALID')

    x = pool(lrelu(conv(x_nchw, params['conv1_w'], params['conv1_b'], 0)))
    x = pool(lrelu(conv(x, params['conv2_w'], params['conv2_b'], 1)))
    x = pool(lrelu(conv(x, params['conv3_w'], params['conv3_b'], 1)))
    feat = x.reshape(x.shape[0], -1)
    feat = lrelu(feat @ params['linear_w'].T + params['linear_b'])
    return feat @ params['fc_w'].T + params['fc_b']


if __name__ == "__main__":
    key = jax.random.PRNGKey(0)
    kp, kx = jax.random.split(key)
    params = init_params(kp)
    packed = pack_params(params, tb=8)

    # channels/spatial fixed by the module (3x32x32); batch = 2 grid steps.
    x = jax.random.normal(kx, (16, 3, 32, 32), dtype=jnp.float32)

    fwd = jax.jit(cifarnet_forward, static_argnames=("num_classes",))
    out = jax.block_until_ready(fwd(x, packed))
    assert out.shape == (16, 10), out.shape

    ref = reference_forward(x, params)
    # bf16 MXU matmuls with f32 accumulation vs f32 XLA conv reference.
    assert jnp.allclose(out, ref, rtol=5e-2, atol=5e-2), (out, ref)

    print("KERNEL_OK")
</pallas_src>

<mosaic_0001>
module attributes {stable_mosaic.version = 11 : i64} {
  func.func @kernel(%arg0: i32, %arg1: memref<256x128xf32, #tpu.memory_space<vmem>>, %arg2: memref<5x128x512xbf16, #tpu.memory_space<vmem>>, %arg3: memref<1x512xf32, #tpu.memory_space<vmem>>, %arg4: memref<5x256x512xbf16, #tpu.memory_space<vmem>>, %arg5: memref<1x512xf32, #tpu.memory_space<vmem>>, %arg6: memref<3x256x512xbf16, #tpu.memory_space<vmem>>, %arg7: memref<1x512xf32, #tpu.memory_space<vmem>>, %arg8: memref<128x256xbf16, #tpu.memory_space<vmem>>, %arg9: memref<128x256xbf16, #tpu.memory_space<vmem>>, %arg10: memref<64x128xbf16, #tpu.memory_space<vmem>>, %arg11: memref<64x128xbf16, #tpu.memory_space<vmem>>, %arg12: memref<24x64xbf16, #tpu.memory_space<vmem>>, %arg13: memref<24x64xbf16, #tpu.memory_space<vmem>>, %arg14: memref<3x256x128xbf16, #tpu.memory_space<vmem>>, %arg15: memref<1x128xf32, #tpu.memory_space<vmem>>, %arg16: memref<128x128xbf16, #tpu.memory_space<vmem>>, %arg17: memref<1x128xf32, #tpu.memory_space<vmem>>, %arg18: memref<8x128xf32, #tpu.memory_space<vmem>>, %arg19: memref<264x128xf32, #tpu.memory_space<vmem>>, %arg20: memref<136x256xf32, #tpu.memory_space<vmem>>, %arg21: memref<72x256xf32, #tpu.memory_space<vmem>>) attributes {dimension_semantics = [#tpu.dimension_semantics<parallel>], iteration_bounds = array<i64: 2>, scalar_prefetch = 0 : i64, scratch_operands = 3 : i64, tpu.core_type = #tpu.core_type<tc>, window_params = [{transform_indices = @transform_0, window_bounds = array<i64: 256, 128>}, {pipeline_mode = #tpu.pipeline_mode<synchronous>, transform_indices = @transform_1, window_bounds = array<i64: 5, 128, 512>}, {pipeline_mode = #tpu.pipeline_mode<synchronous>, transform_indices = @transform_2, window_bounds = array<i64: 1, 512>}, {pipeline_mode = #tpu.pipeline_mode<synchronous>, transform_indices = @transform_3, window_bounds = array<i64: 5, 256, 512>}, {pipeline_mode = #tpu.pipeline_mode<synchronous>, transform_indices = @transform_4, window_bounds = array<i64: 1, 512>}, {pipeline_mode = #tpu.pipeline_mode<synchronous>, transform_indices = @transform_5, window_bounds = array<i64: 3, 256, 512>}, {pipeline_mode = #tpu.pipeline_mode<synchronous>, transform_indices = @transform_6, window_bounds = array<i64: 1, 512>}, {pipeline_mode = #tpu.pipeline_mode<synchronous>, transform_indices = @transform_7, window_bounds = array<i64: 128, 256>}, {pipeline_mode = #tpu.pipeline_mode<synchronous>, transform_indices = @transform_8, window_bounds = array<i64: 128, 256>}, {pipeline_mode = #tpu.pipeline_mode<synchronous>, transform_indices = @transform_9, window_bounds = array<i64: 64, 128>}, {pipeline_mode = #tpu.pipeline_mode<synchronous>, transform_indices = @transform_10, window_bounds = array<i64: 64, 128>}, {pipeline_mode = #tpu.pipeline_mode<synchronous>, transform_indices = @transform_11, window_bounds = array<i64: 24, 64>}, {pipeline_mode = #tpu.pipeline_mode<synchronous>, transform_indices = @transform_12, window_bounds = array<i64: 24, 64>}, {pipeline_mode = #tpu.pipeline_mode<synchronous>, transform_indices = @transform_13, window_bounds = array<i64: 3, 256, 128>}, {pipeline_mode = #tpu.pipeline_mode<synchronous>, transform_indices = @transform_14, window_bounds = array<i64: 1, 128>}, {pipeline_mode = #tpu.pipeline_mode<synchronous>, transform_indices = @transform_15, window_bounds = array<i64: 128, 128>}, {pipeline_mode = #tpu.pipeline_mode<synchronous>, transform_indices = @transform_16, window_bounds = array<i64: 1, 128>}, {transform_indices = @transform_17, window_bounds = array<i64: 8, 128>}]} {
    %c0 = arith.constant 0 : index
    %c0_0 = arith.constant 0 : index
    %0 = vector.load %arg1[%c0, %c0_0] : memref<256x128xf32, #tpu.memory_space<vmem>>, vector<256x128xf32>
    %c0_1 = arith.constant 0 : index
    %c0_2 = arith.constant 0 : index
    %1 = vector.load %arg19[%c0_1, %c0_2] : memref<264x128xf32, #tpu.memory_space<vmem>>, vector<256x128xf32>
    tpu.vector_store %arg19[%c0_1, %c0_2], %0 {strides = array<i32>} : memref<264x128xf32, #tpu.memory_space<vmem>>, vector<256x128xf32>,
    %cst = arith.constant 0.000000e+00 : f32
    %2 = vector.broadcast %cst : f32 to vector<8x128xf32>
    %c256 = arith.constant 256 : index
    %c0_3 = arith.constant 0 : index
    %3 = vector.load %arg19[%c256, %c0_3] : memref<264x128xf32, #tpu.memory_space<vmem>>, vector<8x128xf32>
    tpu.vector_store %arg19[%c256, %c0_3], %2 {strides = array<i32>} : memref<264x128xf32, #tpu.memory_space<vmem>>, vector<8x128xf32>,
    %cst_4 = arith.constant 0.000000e+00 : f32
    %4 = vector.broadcast %cst_4 : f32 to vector<256x512xf32>
    %c0_5 = arith.constant 0 : index
    %c0_6 = arith.constant 0 : index
    %5 = vector.load %arg19[%c0_5, %c0_6] : memref<264x128xf32, #tpu.memory_space<vmem>>, vector<256x128xf32>
    %6 = arith.truncf %5 : vector<256x128xf32> to vector<256x128xbf16>
    %c0_7 = arith.constant 0 : index
    %c0_8 = arith.constant 0 : index
    %c0_9 = arith.constant 0 : index
    %7 = vector.load %arg2[%c0_7, %c0_8, %c0_9] : memref<5x128x512xbf16, #tpu.memory_space<vmem>>, vector<1x128x512xbf16>
    %8 = vector.shape_cast %7 : vector<1x128x512xbf16> to vector<128x512xbf16>
    %cst_10 = arith.constant dense<0.000000e+00> : vector<256x512xf32>
    %9 = tpu.matmul %6, %8, %cst_10 {dimension_numbers = #tpu.dot_dimension_numbers<[1], [0], [0], [1], [0, 0, 1, 1], [], []>} : vector<256x128xbf16>, vector<128x512xbf16>, vector<256x512xf32> -> vector<256x512xf32>
    %10 = arith.addf %4, %9 : vector<256x512xf32>
    %c1 = arith.constant 1 : index
    %c0_11 = arith.constant 0 : index
    %11 = vector.load %arg19[%c1, %c0_11] : memref<264x128xf32, #tpu.memory_space<vmem>>, vector<256x128xf32>
    %12 = arith.truncf %11 : vector<256x128xf32> to vector<256x128xbf16>
    %c1_12 = arith.constant 1 : index
    %c0_13 = arith.constant 0 : index
    %c0_14 = arith.constant 0 : index
    %13 = vector.load %arg2[%c1_12, %c0_13, %c0_14] : memref<5x128x512xbf16, #tpu.memory_space<vmem>>, vector<1x128x512xbf16>
    %14 = vector.shape_cast %13 : vector<1x128x512xbf16> to vector<128x512xbf16>
    %cst_15 = arith.constant dense<0.000000e+00> : vector<256x512xf32>
    %15 = tpu.matmul %12, %14, %cst_15 {dimension_numbers = #tpu.dot_dimension_numbers<[1], [0], [0], [1], [0, 0, 1, 1], [], []>} : vector<256x128xbf16>, vector<128x512xbf16>, vector<256x512xf32> -> vector<256x512xf32>
    %16 = arith.addf %10, %15 : vector<256x512xf32>
    %c2 = arith.constant 2 : index
    %c0_16 = arith.constant 0 : index
    %17 = vector.load %arg19[%c2, %c0_16] : memref<264x128xf32, #tpu.memory_space<vmem>>, vector<256x128xf32>
    %18 = arith.truncf %17 : vector<256x128xf32> to vector<256x128xbf16>
    %c2_17 = arith.constant 2 : index
    %c0_18 = arith.constant 0 : index
    %c0_19 = arith.constant 0 : index
    %19 = vector.load %arg2[%c2_17, %c0_18, %c0_19] : memref<5x128x512xbf16, #tpu.memory_space<vmem>>, vector<1x128x512xbf16>
    %20 = vector.shape_cast %19 : vector<1x128x512xbf16> to vector<128x512xbf16>
    %cst_20 = arith.constant dense<0.000000e+00> : vector<256x512xf32>
    %21 = tpu.matmul %18, %20, %cst_20 {dimension_numbers = #tpu.dot_dimension_numbers<[1], [0], [0], [1], [0, 0, 1, 1], [], []>} : vector<256x128xbf16>, vector<128x512xbf16>, vector<256x512xf32> -> vector<256x512xf32>
    %22 = arith.addf %16, %21 : vector<256x512xf32>
    %c3 = arith.constant 3 : index
    %c0_21 = arith.constant 0 : index
    %23 = vector.load %arg19[%c3, %c0_21] : memref<264x128xf32, #tpu.memory_space<vmem>>, vector<256x128xf32>
    %24 = arith.truncf %23 : vector<256x128xf32> to vector<256x128xbf16>
    %c3_22 = arith.constant 3 : index
    %c0_23 = arith.constant 0 : index
    %c0_24 = arith.constant 0 : index
    %25 = vector.load %arg2[%c3_22, %c0_23, %c0_24] : memref<5x128x512xbf16, #tpu.memory_space<vmem>>, vector<1x128x512xbf16>
    %26 = vector.shape_cast %25 : vector<1x128x512xbf16> to vector<128x512xbf16>
    %cst_25 = arith.constant dense<0.000000e+00> : vector<256x512xf32>
    %27 = tpu.matmul %24, %26, %cst_25 {dimension_numbers = #tpu.dot_dimension_numbers<[1], [0], [0], [1], [0, 0, 1, 1], [], []>} : vector<256x128xbf16>, vector<128x512xbf16>, vector<256x512xf32> -> vector<256x512xf32>
    %28 = arith.addf %22, %27 : vector<256x512xf32>
    %c4 = arith.constant 4 : index
    %c0_26 = arith.constant 0 : index
    %29 = vector.load %arg19[%c4, %c0_26] : memref<264x128xf32, #tpu.memory_space<vmem>>, vector<256x128xf32>
    %30 = arith.truncf %29 : vector<256x128xf32> to vector<256x128xbf16>
    %c4_27 = arith.constant 4 : index
    %c0_28 = arith.constant 0 : index
    %c0_29 = arith.constant 0 : index
    %31 = vector.load %arg2[%c4_27, %c0_28, %c0_29] : memref<5x128x512xbf16, #tpu.memory_space<vmem>>, vector<1x128x512xbf16>
    %32 = vector.shape_cast %31 : vector<1x128x512xbf16> to vector<128x512xbf16>
    %cst_30 = arith.constant dense<0.000000e+00> : vector<256x512xf32>
    %33 = tpu.matmul %30, %32, %cst_30 {dimension_numbers = #tpu.dot_dimension_numbers<[1], [0], [0], [1], [0, 0, 1, 1], [], []>} : vector<256x128xbf16>, vector<128x512xbf16>, vector<256x512xf32> -> vector<256x512xf32>
    %34 = arith.addf %28, %33 : vector<256x512xf32>
    %c0_31 = arith.constant 0 : index
    %c0_32 = arith.constant 0 : index
    %35 = vector.load %arg3[%c0_31, %c0_32] : memref<1x512xf32, #tpu.memory_space<vmem>>, vector<1x512xf32>
    %36 = vector.broadcast %35 : vector<1x512xf32> to vector<256x512xf32>
    %37 = arith.addf %34, %36 : vector<256x512xf32>
    %cst_33 = arith.constant 0.000000e+00 : f32
    %38 = vector.broadcast %cst_33 : f32 to vector<256x512xf32>
    %39 = arith.cmpf ogt, %37, %38 : vector<256x512xf32>
    %cst_34 = arith.constant 0.00999999977 : f32
    %40 = vector.broadcast %cst_34 : f32 to vector<256x512xf32>
    %41 = arith.mulf %40, %37 : vector<256x512xf32>
    %42 = arith.select %39, %37, %41 : vector<256x512xi1>, vector<256x512xf32>
    %43 = vector.extract_strided_slice %42 {offsets = [0, 0], sizes = [256, 256], strides = [1, 1]} : vector<256x512xf32> to vector<256x256xf32>
    %44 = vector.extract_strided_slice %42 {offsets = [0, 256], sizes = [256, 256], strides = [1, 1]} : vector<256x512xf32> to vector<256x256xf32>
    %45 = arith.maximumf %43, %44 : vector<256x256xf32>
    %46 = arith.truncf %45 : vector<256x256xf32> to vector<256x256xbf16>
    %c0_35 = arith.constant 0 : index
    %c0_36 = arith.constant 0 : index
    %47 = vector.load %arg8[%c0_35, %c0_36] : memref<128x256xbf16, #tpu.memory_space<vmem>>, vector<128x256xbf16>
    %cst_37 = arith.constant dense<0.000000e+00> : vector<128x256xf32>
    %48 = tpu.matmul %47, %46, %cst_37 {dimension_numbers = #tpu.dot_dimension_numbers<[1], [0], [0], [1], [0, 0, 1, 1], [], []>} : vector<128x256xbf16>, vector<256x256xbf16>, vector<128x256xf32> -> vector<128x256xf32>
    %c0_38 = arith.constant 0 : index
    %c0_39 = arith.constant 0 : index
    %49 = vector.load %arg9[%c0_38, %c0_39] : memref<128x256xbf16, #tpu.memory_space<vmem>>, vector<128x256xbf16>
    %cst_40 = arith.constant dense<0.000000e+00> : vector<128x256xf32>
    %50 = tpu.matmul %49, %46, %cst_40 {dimension_numbers = #tpu.dot_dimension_numbers<[1], [0], [0], [1], [0, 0, 1, 1], [], []>} : vector<128x256xbf16>, vector<256x256xbf16>, vector<128x256xf32> -> vector<128x256xf32>
    %51 = arith.maximumf %48, %50 : vector<128x256xf32>
    %c0_41 = arith.constant 0 : index
    %c0_42 = arith.constant 0 : index
    %52 = vector.load %arg20[%c0_41, %c0_42] : memref<136x256xf32, #tpu.memory_space<vmem>>, vector<128x256xf32>
    tpu.vector_store %arg20[%c0_41, %c0_42], %51 {strides = array<i32>} : memref<136x256xf32, #tpu.memory_space<vmem>>, vector<128x256xf32>,
    %cst_43 = arith.constant 0.000000e+00 : f32
    %53 = vector.broadcast %cst_43 : f32 to vector<8x256xf32>
    %c128 = arith.constant 128 : index
    %c0_44 = arith.constant 0 : index
    %54 = vector.load %arg20[%c128, %c0_44] : memref<136x256xf32, #tpu.memory_space<vmem>>, vector<8x256xf32>
    tpu.vector_store %arg20[%c128, %c0_44], %53 {strides = array<i32>} : memref<136x256xf32, #tpu.memory_space<vmem>>, vector<8x256xf32>,
    %cst_45 = arith.constant 0.000000e+00 : f32
    %55 = vector.broadcast %cst_45 : f32 to vector<128x512xf32>
    %c0_46 = arith.constant 0 : index
    %c0_47 = arith.constant 0 : index
    %56 = vector.load %arg20[%c0_46, %c0_47] : memref<136x256xf32, #tpu.memory_space<vmem>>, vector<128x256xf32>
    %57 = arith.truncf %56 : vector<128x256xf32> to vector<128x256xbf16>
    %c0_48 = arith.constant 0 : index
    %c0_49 = arith.constant 0 : index
    %c0_50 = arith.constant 0 : index
    %58 = vector.load %arg4[%c0_48, %c0_49, %c0_50] : memref<5x256x512xbf16, #tpu.memory_space<vmem>>, vector<1x256x512xbf16>
    %59 = vector.shape_cast %58 : vector<1x256x512xbf16> to vector<256x512xbf16>
    %cst_51 = arith.constant dense<0.000000e+00> : vector<128x512xf32>
    %60 = tpu.matmul %57, %59, %cst_51 {dimension_numbers = #tpu.dot_dimension_numbers<[1], [0], [0], [1], [0, 0, 1, 1], [], []>} : vector<128x256xbf16>, vector<256x512xbf16>, vector<128x512xf32> -> vector<128x512xf32>
    %61 = arith.addf %55, %60 : vector<128x512xf32>
    %c1_52 = arith.constant 1 : index
    %c0_53 = arith.constant 0 : index
    %62 = vector.load %arg20[%c1_52, %c0_53] : memref<136x256xf32, #tpu.memory_space<vmem>>, vector<128x256xf32>
    %63 = arith.truncf %62 : vector<128x256xf32> to vector<128x256xbf16>
    %c1_54 = arith.constant 1 : index
    %c0_55 = arith.constant 0 : index
    %c0_56 = arith.constant 0 : index
    %64 = vector.load %arg4[%c1_54, %c0_55, %c0_56] : memref<5x256x512xbf16, #tpu.memory_space<vmem>>, vector<1x256x512xbf16>
    %65 = vector.shape_cast %64 : vector<1x256x512xbf16> to vector<256x512xbf16>
    %cst_57 = arith.constant dense<0.000000e+00> : vector<128x512xf32>
    %66 = tpu.matmul %63, %65, %cst_57 {dimension_numbers = #tpu.dot_dimension_numbers<[1], [0], [0], [1], [0, 0, 1, 1], [], []>} : vector<128x256xbf16>, vector<256x512xbf16>, vector<128x512xf32> -> vector<128x512xf32>
    %67 = arith.addf %61, %66 : vector<128x512xf32>
    %c2_58 = arith.constant 2 : index
    %c0_59 = arith.constant 0 : index
    %68 = vector.load %arg20[%c2_58, %c0_59] : memref<136x256xf32, #tpu.memory_space<vmem>>, vector<128x256xf32>
    %69 = arith.truncf %68 : vector<128x256xf32> to vector<128x256xbf16>
    %c2_60 = arith.constant 2 : index
    %c0_61 = arith.constant 0 : index
    %c0_62 = arith.constant 0 : index
    %70 = vector.load %arg4[%c2_60, %c0_61, %c0_62] : memref<5x256x512xbf16, #tpu.memory_space<vmem>>, vector<1x256x512xbf16>
    %71 = vector.shape_cast %70 : vector<1x256x512xbf16> to vector<256x512xbf16>
    %cst_63 = arith.constant dense<0.000000e+00> : vector<128x512xf32>
    %72 = tpu.matmul %69, %71, %cst_63 {dimension_numbers = #tpu.dot_dimension_numbers<[1], [0], [0], [1], [0, 0, 1, 1], [], []>} : vector<128x256xbf16>, vector<256x512xbf16>, vector<128x512xf32> -> vector<128x512xf32>
    %73 = arith.addf %67, %72 : vector<128x512xf32>
    %c3_64 = arith.constant 3 : index
    %c0_65 = arith.constant 0 : index
    %74 = vector.load %arg20[%c3_64, %c0_65] : memref<136x256xf32, #tpu.memory_space<vmem>>, vector<128x256xf32>
    %75 = arith.truncf %74 : vector<128x256xf32> to vector<128x256xbf16>
    %c3_66 = arith.constant 3 : index
    %c0_67 = arith.constant 0 : index
    %c0_68 = arith.constant 0 : index
    %76 = vector.load %arg4[%c3_66, %c0_67, %c0_68] : memref<5x256x512xbf16, #tpu.memory_space<vmem>>, vector<1x256x512xbf16>
    %77 = vector.shape_cast %76 : vector<1x256x512xbf16> to vector<256x512xbf16>
    %cst_69 = arith.constant dense<0.000000e+00> : vector<128x512xf32>
    %78 = tpu.matmul %75, %77, %cst_69 {dimension_numbers = #tpu.dot_dimension_numbers<[1], [0], [0], [1], [0, 0, 1, 1], [], []>} : vector<128x256xbf16>, vector<256x512xbf16>, vector<128x512xf32> -> vector<128x512xf32>
    %79 = arith.addf %73, %78 : vector<128x512xf32>
    %c4_70 = arith.constant 4 : index
    %c0_71 = arith.constant 0 : index
    %80 = vector.load %arg20[%c4_70, %c0_71] : memref<136x256xf32, #tpu.memory_space<vmem>>, vector<128x256xf32>
    %81 = arith.truncf %80 : vector<128x256xf32> to vector<128x256xbf16>
    %c4_72 = arith.constant 4 : index
    %c0_73 = arith.constant 0 : index
    %c0_74 = arith.constant 0 : index
    %82 = vector.load %arg4[%c4_72, %c0_73, %c0_74] : memref<5x256x512xbf16, #tpu.memory_space<vmem>>, vector<1x256x512xbf16>
    %83 = vector.shape_cast %82 : vector<1x256x512xbf16> to vector<256x512xbf16>
    %cst_75 = arith.constant dense<0.000000e+00> : vector<128x512xf32>
    %84 = tpu.matmul %81, %83, %cst_75 {dimension_numbers = #tpu.dot_dimension_numbers<[1], [0], [0], [1], [0, 0, 1, 1], [], []>} : vector<128x256xbf16>, vector<256x512xbf16>, vector<128x512xf32> -> vector<128x512xf32>
    %85 = arith.addf %79, %84 : vector<128x512xf32>
    %c0_76 = arith.constant 0 : index
    %c0_77 = arith.constant 0 : index
    %86 = vector.load %arg5[%c0_76, %c0_77] : memref<1x512xf32, #tpu.memory_space<vmem>>, vector<1x512xf32>
    %87 = vector.broadcast %86 : vector<1x512xf32> to vector<128x512xf32>
    %88 = arith.addf %85, %87 : vector<128x512xf32>
    %cst_78 = arith.constant 0.000000e+00 : f32
    %89 = vector.broadcast %cst_78 : f32 to vector<128x512xf32>
    %90 = arith.cmpf ogt, %88, %89 : vector<128x512xf32>
    %cst_79 = arith.constant 0.00999999977 : f32
    %91 = vector.broadcast %cst_79 : f32 to vector<128x512xf32>
    %92 = arith.mulf %91, %88 : vector<128x512xf32>
    %93 = arith.select %90, %88, %92 : vector<128x512xi1>, vector<128x512xf32>
    %94 = vector.extract_strided_slice %93 {offsets = [0, 0], sizes = [128, 256], strides = [1, 1]} : vector<128x512xf32> to vector<128x256xf32>
    %95 = vector.extract_strided_slice %93 {offsets = [0, 256], sizes = [128, 256], strides = [1, 1]} : vector<128x512xf32> to vector<128x256xf32>
    %96 = arith.maximumf %94, %95 : vector<128x256xf32>
    %97 = arith.truncf %96 : vector<128x256xf32> to vector<128x256xbf16>
    %c0_80 = arith.constant 0 : index
    %c0_81 = arith.constant 0 : index
    %98 = vector.load %arg10[%c0_80, %c0_81] : memref<64x128xbf16, #tpu.memory_space<vmem>>, vector<64x128xbf16>
    %cst_82 = arith.constant dense<0.000000e+00> : vector<64x256xf32>
    %99 = tpu.matmul %98, %97, %cst_82 {dimension_numbers = #tpu.dot_dimension_numbers<[1], [0], [0], [1], [0, 0, 1, 1], [], []>} : vector<64x128xbf16>, vector<128x256xbf16>, vector<64x256xf32> -> vector<64x256xf32>
    %c0_83 = arith.constant 0 : index
    %c0_84 = arith.constant 0 : index
    %100 = vector.load %arg11[%c0_83, %c0_84] : memref<64x128xbf16, #tpu.memory_space<vmem>>, vector<64x128xbf16>
    %cst_85 = arith.constant dense<0.000000e+00> : vector<64x256xf32>
    %101 = tpu.matmul %100, %97, %cst_85 {dimension_numbers = #tpu.dot_dimension_numbers<[1], [0], [0], [1], [0, 0, 1, 1], [], []>} : vector<64x128xbf16>, vector<128x256xbf16>, vector<64x256xf32> -> vector<64x256xf32>
    %102 = arith.maximumf %99, %101 : vector<64x256xf32>
    %c0_86 = arith.constant 0 : index
    %c0_87 = arith.constant 0 : index
    %103 = vector.load %arg21[%c0_86, %c0_87] : memref<72x256xf32, #tpu.memory_space<vmem>>, vector<64x256xf32>
    tpu.vector_store %arg21[%c0_86, %c0_87], %102 {strides = array<i32>} : memref<72x256xf32, #tpu.memory_space<vmem>>, vector<64x256xf32>,
    %cst_88 = arith.constant 0.000000e+00 : f32
    %104 = vector.broadcast %cst_88 : f32 to vector<8x256xf32>
    %c64 = arith.constant 64 : index
    %c0_89 = arith.constant 0 : index
    %105 = vector.load %arg21[%c64, %c0_89] : memref<72x256xf32, #tpu.memory_space<vmem>>, vector<8x256xf32>
    tpu.vector_store %arg21[%c64, %c0_89], %104 {strides = array<i32>} : memref<72x256xf32, #tpu.memory_space<vmem>>, vector<8x256xf32>,
    %cst_90 = arith.constant 0.000000e+00 : f32
    %106 = vector.broadcast %cst_90 : f32 to vector<64x512xf32>
    %c0_91 = arith.constant 0 : index
    %c0_92 = arith.constant 0 : index
    %107 = vector.load %arg21[%c0_91, %c0_92] : memref<72x256xf32, #tpu.memory_space<vmem>>, vector<64x256xf32>
    %108 = arith.truncf %107 : vector<64x256xf32> to vector<64x256xbf16>
    %c0_93 = arith.constant 0 : index
    %c0_94 = arith.constant 0 : index
    %c0_95 = arith.constant 0 : index
    %109 = vector.load %arg6[%c0_93, %c0_94, %c0_95] : memref<3x256x512xbf16, #tpu.memory_space<vmem>>, vector<1x256x512xbf16>
    %110 = vector.shape_cast %109 : vector<1x256x512xbf16> to vector<256x512xbf16>
    %cst_96 = arith.constant dense<0.000000e+00> : vector<64x512xf32>
    %111 = tpu.matmul %108, %110, %cst_96 {dimension_numbers = #tpu.dot_dimension_numbers<[1], [0], [0], [1], [0, 0, 1, 1], [], []>} : vector<64x256xbf16>, vector<256x512xbf16>, vector<64x512xf32> -> vector<64x512xf32>
    %112 = arith.addf %106, %111 : vector<64x512xf32>
    %c1_97 = arith.constant 1 : index
    %c0_98 = arith.constant 0 : index
    %113 = vector.load %arg21[%c1_97, %c0_98] : memref<72x256xf32, #tpu.memory_space<vmem>>, vector<64x256xf32>
    %114 = arith.truncf %113 : vector<64x256xf32> to vector<64x256xbf16>
    %c1_99 = arith.constant 1 : index
    %c0_100 = arith.constant 0 : index
    %c0_101 = arith.constant 0 : index
    %115 = vector.load %arg6[%c1_99, %c0_100, %c0_101] : memref<3x256x512xbf16, #tpu.memory_space<vmem>>, vector<1x256x512xbf16>
    %116 = vector.shape_cast %115 : vector<1x256x512xbf16> to vector<256x512xbf16>
    %cst_102 = arith.constant dense<0.000000e+00> : vector<64x512xf32>
    %117 = tpu.matmul %114, %116, %cst_102 {dimension_numbers = #tpu.dot_dimension_numbers<[1], [0], [0], [1], [0, 0, 1, 1], [], []>} : vector<64x256xbf16>, vector<256x512xbf16>, vector<64x512xf32> -> vector<64x512xf32>
    %118 = arith.addf %112, %117 : vector<64x512xf32>
    %c2_103 = arith.constant 2 : index
    %c0_104 = arith.constant 0 : index
    %119 = vector.load %arg21[%c2_103, %c0_104] : memref<72x256xf32, #tpu.memory_space<vmem>>, vector<64x256xf32>
    %120 = arith.truncf %119 : vector<64x256xf32> to vector<64x256xbf16>
    %c2_105 = arith.constant 2 : index
    %c0_106 = arith.constant 0 : index
    %c0_107 = arith.constant 0 : index
    %121 = vector.load %arg6[%c2_105, %c0_106, %c0_107] : memref<3x256x512xbf16, #tpu.memory_space<vmem>>, vector<1x256x512xbf16>
    %122 = vector.shape_cast %121 : vector<1x256x512xbf16> to vector<256x512xbf16>
    %cst_108 = arith.constant dense<0.000000e+00> : vector<64x512xf32>
    %123 = tpu.matmul %120, %122, %cst_108 {dimension_numbers = #tpu.dot_dimension_numbers<[1], [0], [0], [1], [0, 0, 1, 1], [], []>} : vector<64x256xbf16>, vector<256x512xbf16>, vector<64x512xf32> -> vector<64x512xf32>
    %124 = arith.addf %118, %123 : vector<64x512xf32>
    %c0_109 = arith.constant 0 : index
    %c0_110 = arith.constant 0 : index
    %125 = vector.load %arg7[%c0_109, %c0_110] : memref<1x512xf32, #tpu.memory_space<vmem>>, vector<1x512xf32>
    %126 = vector.broadcast %125 : vector<1x512xf32> to vector<64x512xf32>
    %127 = arith.addf %124, %126 : vector<64x512xf32>
    %cst_111 = arith.constant 0.000000e+00 : f32
    %128 = vector.broadcast %cst_111 : f32 to vector<64x512xf32>
    %129 = arith.cmpf ogt, %127, %128 : vector<64x512xf32>
    %cst_112 = arith.constant 0.00999999977 : f32
    %130 = vector.broadcast %cst_112 : f32 to vector<64x512xf32>
    %131 = arith.mulf %130, %127 : vector<64x512xf32>
    %132 = arith.select %129, %127, %131 : vector<64x512xi1>, vector<64x512xf32>
    %133 = vector.extract_strided_slice %132 {offsets = [0, 0], sizes = [64, 256], strides = [1, 1]} : vector<64x512xf32> to vector<64x256xf32>
    %134 = vector.extract_strided_slice %132 {offsets = [0, 256], sizes = [64, 256], strides = [1, 1]} : vector<64x512xf32> to vector<64x256xf32>
    %135 = arith.maximumf %133, %134 : vector<64x256xf32>
    %136 = arith.truncf %135 : vector<64x256xf32> to vector<64x256xbf16>
    %c0_113 = arith.constant 0 : index
    %c0_114 = arith.constant 0 : index
    %137 = vector.load %arg12[%c0_113, %c0_114] : memref<24x64xbf16, #tpu.memory_space<vmem>>, vector<24x64xbf16>
    %cst_115 = arith.constant dense<0.000000e+00> : vector<24x256xf32>
    %138 = tpu.matmul %137, %136, %cst_115 {dimension_numbers = #tpu.dot_dimension_numbers<[1], [0], [0], [1], [0, 0, 1, 1], [], []>} : vector<24x64xbf16>, vector<64x256xbf16>, vector<24x256xf32> -> vector<24x256xf32>
    %c0_116 = arith.constant 0 : index
    %c0_117 = arith.constant 0 : index
    %139 = vector.load %arg13[%c0_116, %c0_117] : memref<24x64xbf16, #tpu.memory_space<vmem>>, vector<24x64xbf16>
    %cst_118 = arith.constant dense<0.000000e+00> : vector<24x256xf32>
    %140 = tpu.matmul %139, %136, %cst_118 {dimension_numbers = #tpu.dot_dimension_numbers<[1], [0], [0], [1], [0, 0, 1, 1], [], []>} : vector<24x64xbf16>, vector<64x256xbf16>, vector<24x256xf32> -> vector<24x256xf32>
    %141 = arith.maximumf %138, %140 : vector<24x256xf32>
    %cst_119 = arith.constant 0.000000e+00 : f32
    %142 = vector.broadcast %cst_119 : f32 to vector<8x128xf32>
    %143 = vector.extract_strided_slice %141 {offsets = [0, 0], sizes = [8, 256], strides = [1, 1]} : vector<24x256xf32> to vector<8x256xf32>
    %144 = arith.truncf %143 : vector<8x256xf32> to vector<8x256xbf16>
    %c0_120 = arith.constant 0 : index
    %c0_121 = arith.constant 0 : index
    %c0_122 = arith.constant 0 : index
    %145 = vector.load %arg14[%c0_120, %c0_121, %c0_122] : memref<3x256x128xbf16, #tpu.memory_space<vmem>>, vector<1x256x128xbf16>
    %146 = vector.shape_cast %145 : vector<1x256x128xbf16> to vector<256x128xbf16>
    %cst_123 = arith.constant dense<0.000000e+00> : vector<8x128xf32>
    %147 = tpu.matmul %144, %146, %cst_123 {dimension_numbers = #tpu.dot_dimension_numbers<[1], [0], [0], [1], [0, 0, 1, 1], [], []>} : vector<8x256xbf16>, vector<256x128xbf16>, vector<8x128xf32> -> vector<8x128xf32>
    %148 = arith.addf %142, %147 : vector<8x128xf32>
    %149 = vector.extract_strided_slice %141 {offsets = [8, 0], sizes = [8, 256], strides = [1, 1]} : vector<24x256xf32> to vector<8x256xf32>
    %150 = arith.truncf %149 : vector<8x256xf32> to vector<8x256xbf16>
    %c1_124 = arith.constant 1 : index
    %c0_125 = arith.constant 0 : index
    %c0_126 = arith.constant 0 : index
    %151 = vector.load %arg14[%c1_124, %c0_125, %c0_126] : memref<3x256x128xbf16, #tpu.memory_space<vmem>>, vector<1x256x128xbf16>
    %152 = vector.shape_cast %151 : vector<1x256x128xbf16> to vector<256x128xbf16>
    %cst_127 = arith.constant dense<0.000000e+00> : vector<8x128xf32>
    %153 = tpu.matmul %150, %152, %cst_127 {dimension_numbers = #tpu.dot_dimension_numbers<[1], [0], [0], [1], [0, 0, 1, 1], [], []>} : vector<8x256xbf16>, vector<256x128xbf16>, vector<8x128xf32> -> vector<8x128xf32>
    %154 = arith.addf %148, %153 : vector<8x128xf32>
    %155 = vector.extract_strided_slice %141 {offsets = [16, 0], sizes = [8, 256], strides = [1, 1]} : vector<24x256xf32> to vector<8x256xf32>
    %156 = arith.truncf %155 : vector<8x256xf32> to vector<8x256xbf16>
    %c2_128 = arith.constant 2 : index
    %c0_129 = arith.constant 0 : index
    %c0_130 = arith.constant 0 : index
    %157 = vector.load %arg14[%c2_128, %c0_129, %c0_130] : memref<3x256x128xbf16, #tpu.memory_space<vmem>>, vector<1x256x128xbf16>
    %158 = vector.shape_cast %157 : vector<1x256x128xbf16> to vector<256x128xbf16>
    %cst_131 = arith.constant dense<0.000000e+00> : vector<8x128xf32>
    %159 = tpu.matmul %156, %158, %cst_131 {dimension_numbers = #tpu.dot_dimension_numbers<[1], [0], [0], [1], [0, 0, 1, 1], [], []>} : vector<8x256xbf16>, vector<256x128xbf16>, vector<8x128xf32> -> vector<8x128xf32>
    %160 = arith.addf %154, %159 : vector<8x128xf32>
    %c0_132 = arith.constant 0 : index
    %c0_133 = arith.constant 0 : index
    %161 = vector.load %arg15[%c0_132, %c0_133] : memref<1x128xf32, #tpu.memory_space<vmem>>, vector<1x128xf32>
    %162 = vector.broadcast %161 : vector<1x128xf32> to vector<8x128xf32>
    %163 = arith.addf %160, %162 : vector<8x128xf32>
    %cst_134 = arith.constant 0.000000e+00 : f32
    %164 = vector.broadcast %cst_134 : f32 to vector<8x128xf32>
    %165 = arith.cmpf ogt, %163, %164 : vector<8x128xf32>
    %cst_135 = arith.constant 0.00999999977 : f32
    %166 = vector.broadcast %cst_135 : f32 to vector<8x128xf32>
    %167 = arith.mulf %166, %163 : vector<8x128xf32>
    %168 = arith.select %165, %163, %167 : vector<8x128xi1>, vector<8x128xf32>
    %169 = arith.truncf %168 : vector<8x128xf32> to vector<8x128xbf16>
    %c0_136 = arith.constant 0 : index
    %c0_137 = arith.constant 0 : index
    %170 = vector.load %arg16[%c0_136, %c0_137] : memref<128x128xbf16, #tpu.memory_space<vmem>>, vector<128x128xbf16>
    %cst_138 = arith.constant dense<0.000000e+00> : vector<8x128xf32>
    %171 = tpu.matmul %169, %170, %cst_138 {dimension_numbers = #tpu.dot_dimension_numbers<[1], [0], [0], [1], [0, 0, 1, 1], [], []>} : vector<8x128xbf16>, vector<128x128xbf16>, vector<8x128xf32> -> vector<8x128xf32>
    %c0_139 = arith.constant 0 : index
    %c0_140 = arith.constant 0 : index
    %172 = vector.load %arg17[%c0_139, %c0_140] : memref<1x128xf32, #tpu.memory_space<vmem>>, vector<1x128xf32>
    %173 = vector.broadcast %172 : vector<1x128xf32> to vector<8x128xf32>
    %174 = arith.addf %171, %173 : vector<8x128xf32>
    %c0_141 = arith.constant 0 : index
    %c0_142 = arith.constant 0 : index
    %175 = vector.load %arg18[%c0_141, %c0_142] : memref<8x128xf32, #tpu.memory_space<vmem>>, vector<8x128xf32>
    tpu.vector_store %arg18[%c0_141, %c0_142], %174 {strides = array<i32>} : memref<8x128xf32, #tpu.memory_space<vmem>>, vector<8x128xf32>,
    return
  }
  func.func @transform_0(%arg0: i32) -> (i32, i32) {
    %c0_i32 = arith.constant 0 : i32
    %c0_i32_0 = arith.constant 0 : i32
    return %arg0, %c0_i32 : i32, i32
  }
  func.func @transform_1(%arg0: i32) -> (i32, i32, i32) {
    %c0_i32 = arith.constant 0 : i32
    %c0_i32_0 = arith.constant 0 : i32
    %c0_i32_1 = arith.constant 0 : i32
    %c0_i32_2 = arith.constant 0 : i32
    return %c0_i32, %c0_i32_0, %c0_i32_1 : i32, i32, i32
  }
  func.func @transform_2(%arg0: i32) -> (i32, i32) {
    %c0_i32 = arith.constant 0 : i32
    %c0_i32_0 = arith.constant 0 : i32
    %c0_i32_1 = arith.constant 0 : i32
    return %c0_i32, %c0_i32_0 : i32, i32
  }
  func.func @transform_3(%arg0: i32) -> (i32, i32, i32) {
    %c0_i32 = arith.constant 0 : i32
    %c0_i32_0 = arith.constant 0 : i32
    %c0_i32_1 = arith.constant 0 : i32
    %c0_i32_2 = arith.constant 0 : i32
    return %c0_i32, %c0_i32_0, %c0_i32_1 : i32, i32, i32
  }
  func.func @transform_4(%arg0: i32) -> (i32, i32) {
    %c0_i32 = arith.constant 0 : i32
    %c0_i32_0 = arith.constant 0 : i32
    %c0_i32_1 = arith.constant 0 : i32
    return %c0_i32, %c0_i32_0 : i32, i32
  }
  func.func @transform_5(%arg0: i32) -> (i32, i32, i32) {
    %c0_i32 = arith.constant 0 : i32
    %c0_i32_0 = arith.constant 0 : i32
    %c0_i32_1 = arith.constant 0 : i32
    %c0_i32_2 = arith.constant 0 : i32
    return %c0_i32, %c0_i32_0, %c0_i32_1 : i32, i32, i32
  }
  func.func @transform_6(%arg0: i32) -> (i32, i32) {
    %c0_i32 = arith.constant 0 : i32
    %c0_i32_0 = arith.constant 0 : i32
    %c0_i32_1 = arith.constant 0 : i32
    return %c0_i32, %c0_i32_0 : i32, i32
  }
  func.func @transform_7(%arg0: i32) -> (i32, i32) {
    %c0_i32 = arith.constant 0 : i32
    %c0_i32_0 = arith.constant 0 : i32
    %c0_i32_1 = arith.constant 0 : i32
    return %c0_i32, %c0_i32_0 : i32, i32
  }
  func.func @transform_8(%arg0: i32) -> (i32, i32) {
    %c0_i32 = arith.constant 0 : i32
    %c0_i32_0 = arith.constant 0 : i32
    %c0_i32_1 = arith.constant 0 : i32
    return %c0_i32, %c0_i32_0 : i32, i32
  }
  func.func @transform_9(%arg0: i32) -> (i32, i32) {
    %c0_i32 = arith.constant 0 : i32
    %c0_i32_0 = arith.constant 0 : i32
    %c0_i32_1 = arith.constant 0 : i32
    return %c0_i32, %c0_i32_0 : i32, i32
  }
  func.func @transform_10(%arg0: i32) -> (i32, i32) {
    %c0_i32 = arith.constant 0 : i32
    %c0_i32_0 = arith.constant 0 : i32
    %c0_i32_1 = arith.constant 0 : i32
    return %c0_i32, %c0_i32_0 : i32, i32
  }
  func.func @transform_11(%arg0: i32) -> (i32, i32) {
    %c0_i32 = arith.constant 0 : i32
    %c0_i32_0 = arith.constant 0 : i32
    %c0_i32_1 = arith.constant 0 : i32
    return %c0_i32, %c0_i32_0 : i32, i32
  }
  func.func @transform_12(%arg0: i32) -> (i32, i32) {
    %c0_i32 = arith.constant 0 : i32
    %c0_i32_0 = arith.constant 0 : i32
    %c0_i32_1 = arith.constant 0 : i32
    return %c0_i32, %c0_i32_0 : i32, i32
  }
  func.func @transform_13(%arg0: i32) -> (i32, i32, i32) {
    %c0_i32 = arith.constant 0 : i32
    %c0_i32_0 = arith.constant 0 : i32
    %c0_i32_1 = arith.constant 0 : i32
    %c0_i32_2 = arith.constant 0 : i32
    return %c0_i32, %c0_i32_0, %c0_i32_1 : i32, i32, i32
  }
  func.func @transform_14(%arg0: i32) -> (i32, i32) {
    %c0_i32 = arith.constant 0 : i32
    %c0_i32_0 = arith.constant 0 : i32
    %c0_i32_1 = arith.constant 0 : i32
    return %c0_i32, %c0_i32_0 : i32, i32
  }
  func.func @transform_15(%arg0: i32) -> (i32, i32) {
    %c0_i32 = arith.constant 0 : i32
    %c0_i32_0 = arith.constant 0 : i32
    %c0_i32_1 = arith.constant 0 : i32
    return %c0_i32, %c0_i32_0 : i32, i32
  }
  func.func @transform_16(%arg0: i32) -> (i32, i32) {
    %c0_i32 = arith.constant 0 : i32
    %c0_i32_0 = arith.constant 0 : i32
    %c0_i32_1 = arith.constant 0 : i32
    return %c0_i32, %c0_i32_0 : i32, i32
  }
  func.func @transform_17(%arg0: i32) -> (i32, i32) {
    %c0_i32 = arith.constant 0 : i32
    %c0_i32_0 = arith.constant 0 : i32
    return %arg0, %c0_i32 : i32, i32
  }
}

</mosaic_0001>

<bundles_post_ra>
// kernel: cifarnet_forward.1
= control target key start
LH: loop header
LB: loop body
LE: loop exit
PB: predicated region body
PF: predicated region fallthrough
CT: control target
= control target key end

     0   :  { %s20607_s0 = inlined_call_operand.vmem [shape: f32[512,128], index: 0, kind: input, shape index: {}]   ;;  %s20608_s1 = inlined_call_operand.vmem [shape: bf16[5,128,512], index: 1, kind: input, shape index: {}]   ;;  %s20609_s2 = inlined_call_operand.vmem [shape: f32[1,512], index: 2, kind: input, shape index: {}]   ;;  %s20610_s3 = inlined_call_operand.vmem [shape: bf16[5,256,512], index: 3, kind: input, shape index: {}]   ;;  %s20611_s4 = inlined_call_operand.hbm [shape: f32[1,512], index: 4, kind: input, shape index: {}]   ;;  %s20612_s5 = inlined_call_operand.vmem [shape: bf16[3,256,512], index: 5, kind: input, shape index: {}]   ;;  %s20613_s6 = inlined_call_operand.hbm [shape: f32[1,512], index: 6, kind: input, shape index: {}]   ;;  %s20614_s7 = inlined_call_operand.vmem [shape: bf16[128,256], index: 7, kind: input, shape index: {}]   ;;  %s20615_s8 = inlined_call_operand.vmem [shape: bf16[128,256], index: 8, kind: input, shape index: {}]   ;;  %s20616_s9 = inlined_call_operand.vmem [shape: bf16[64,128], index: 9, kind: input, shape index: {}]   ;;  %s20617_s10 = inlined_call_operand.vmem [shape: bf16[64,128], index: 10, kind: input, shape index: {}]   ;;  %s20618_s11 = inlined_call_operand.vmem [shape: bf16[24,64], index: 11, kind: input, shape index: {}]   ;;  %s20619_s12 = inlined_call_operand.hbm [shape: bf16[24,64], index: 12, kind: input, shape index: {}]   ;;  %s20620_s13 = inlined_call_operand.vmem [shape: bf16[3,256,128], index: 13, kind: input, shape index: {}]   ;;  %s20621_s14 = inlined_call_operand.hbm [shape: f32[1,128], index: 14, kind: input, shape index: {}]   ;;  %s20622_s15 = inlined_call_operand.vmem [shape: bf16[128,128], index: 15, kind: input, shape index: {}]   ;;  %s20623_s16 = inlined_call_operand.hbm [shape: f32[1,128], index: 16, kind: input, shape index: {}]   ;;  %s20624_s17 = inlined_call_operand.hbm [shape: f32[16,128], index: 17, kind: output, shape index: {}]  }
   0x1   :  { %20655 = sst [smem:[#allocation31_spill]] %s20607_s0 }
   0x2   :  { %20656 = sst [smem:[#allocation32_spill]] %s20608_s1 }
   0x3   :  { %20657 = sst [smem:[#allocation33_spill]] %s20611_s4 }
   0x4   :  { %20658 = sst [smem:[#allocation34_spill]] %s20613_s6 }
   0x5   :  { %20659 = sst [smem:[#allocation35_spill]] %s20624_s17 }
   0x6   :  { %22 = vsyncpa [#allocation6], 0 }
   0x7   :  { %23 = vsyncpa [#allocation9], 0 }
   0x8   :  { %24 = vsyncpa [#allocation12], 0 }
   0x9   :  { %25 = vsyncpa [#allocation7], 0 }
   0xa   :  { %27 = vsyncpa [#allocation7 + $0x1], 0  ;;  %s16362_s24 = smov 0   ;;  %s16364_s25 = smov 0  }
   0xb   :  { %s16366_s26 = smov 0   ;;  %s16368_s27 = smov 0  }
   0xc LB: > { %20660 = sst [smem:[#allocation19_spill]] %s16247_s24  ;;  %s16383_s28 = sadd.s32 4294967295, %s16259_s27   ;;  %s16259_s27 = sphi %s16368_s27, %s20709_s27   ;;  %s16255_s26 = sphi %s16366_s26, %s20712_s26   ;;  %s16251_s25 = sphi %s16364_s25, %s20711_s25   ;;  %s16247_s24 = sphi %s16362_s24, %s20710_s24  }
   0xd   : > { %20661 = sst [smem:[#allocation20_spill]] %s16251_s25  ;;  %s12513_s29 = sadd.s32 4294967294, %s16259_s27  }
   0xe   : > { %20662 = sst [smem:[#allocation21_spill]] %s16255_s26  ;;  %s16387_s0 = sadd.s32 1, %s16259_s27  }
   0xf   : > { %20663 = sst [smem:[#allocation22_spill]] %s16259_s27  ;;  %s402_s30 = sadd.s32 1, %s16255_s26 }
  0x10   : > { %20664 = sst [smem:[#allocation23_spill]] %s16387_s0  ;;  %s399_s18 = ssub.s32 %s16259_s27, %s16387_s0 }
  0x11   : > { %p412_p0 = scmp.ne.s32.totalorder %s16255_s26, %s16251_s25  ;;  %p400_p1 = scmp.eq.s32.totalorder %s399_s18, 0 }
  0x12   : > { %p413_p2 = scmp.eq.s32.totalorder %s16383_s28, 1  ;;  %p418_p3 = scmp.ne.s32.totalorder %s16251_s25, %s16247_s24 }
  0x13   : > { %p419_p4 = scmp.eq.s32.totalorder %s12513_s29, 1  ;;  %p12514_p7 = scmp.ge.s32.totalorder %s16259_s27, 1 }
  0x14   : > { %s16398_s19 = scalar_select %p400_p1, %s16255_s26, %s402_s30  }
  0x15   : > { %p16400_p5 = por %p413_p2, %p412_p0  ;;  %p16404_p6 = por %p419_p4, %p418_p3 }
  0x16   : > { %20665 = sst [smem:[#allocation24_spill]] %s16398_s19  ;;  %p426_p8 = scmp.lt.s32.totalorder %s16259_s27, 3 }
  0x17   : > { %s20666_s1 = scalar_select %p16400_p5, 1, 0 }
  0x18   : > { %s20668_s20 = scalar_select %p16404_p6, 1, 0 }
  0x19   : > { %20667 = sst [smem:[#allocation25_spill]] %s20666_s1  ;;  %p20633_p9 = scmp.eq.s32.totalorder %s16383_s28, 0 }
  0x1a   : > { %20669 = sst [smem:[#allocation26_spill]] %s20668_s20  ;;  %p16411_p10 = pnand %p12514_p7, %p426_p8 }
  0x1b   : > { %s16261_s22 = smov [#allocation8]   ;;  %s16262_s29 = smov [#allocation11]  }
  0x1c   : > { %s20670_s21 = scalar_select %p16411_p10, 1, 0 }
  0x1d   : > { %s462_s23 = sshll.u32 %s16261_s22, 4  ;;  %p14837_p11 = pneg %p16411_p10  ;;  %s463_s23 = int_to_ptr.vmem [resolvable:$true] %s462_s23 }
  0x1e   : > { %s504_s30 = sshll.u32 %s16262_s29, 4  ;;  %s16263_s19 = smov [#allocation5]   ;;  %s16423_s30 = int_to_ptr.vmem [resolvable:$true] %s504_s30 }
  0x1f   : > { %p16419_p12 = pnand %p20633_p9, %p14837_p11  ;;  %s448_s26 = sshll.u32 %s16263_s19, 4  ;;  %s16425_s26 = int_to_ptr.vmem [resolvable:$true] %s448_s26 }
  0x20   : > { %s20672_s6 = sld [smem:[#allocation34_spill]] }
  0x21   : > { %p16435_p0 = pneg %p16419_p12 }
  0x26   : > { %s16045_s22 = scalar_lea.hbm %s20672_s6, 64 }
  0x27   : > { %p16046_p13 = scmp.ne.s32.totalorder %s20672_s6, %s16045_s22  ;;  %p16052_p3 = scmp.lt.u32.totalorder %s16045_s22, %s20672_s6 }
  0x29   : > { %p16048_p1 = pnand %p16435_p0, %p16046_p13 }
  0x2b   : > { %p16049_p2 = pneg %p16048_p1 }
  0x2d   : > { %p16054_p4 = pnand %p16052_p3, %p16049_p2 }
  0x2f   : > { %16057 = shalt.err (!%p16054_p4)
}
  0x30   : > { %s16058_s0 = scalar_lea.vmem %s463_s23, 64  ;;  %p16066_p9 = scmp.lt.s32.totalorder %s463_s23, %s463_s23 }
  0x31   : > { %p16059_p7 = scmp.ne.s32.totalorder %s463_s23, %s16058_s0  ;;  %p16067_p6 = scmp.lt.s32.totalorder %s16058_s0, %s16058_s0 }
  0x33   : > { %p16061_p8 = pnand %p16059_p7, %p16435_p0  ;;  %p16068_p5 = por %p16067_p6, %p16066_p9 }
  0x35   : > { %p16062_p11 = pneg %p16061_p8 }
  0x37   : > { %p16069_p10 = pnand %p16068_p5, %p16062_p11 }
  0x39   : > { %16072 = shalt.err (!%p16069_p10)
}
  0x3a   : > { %14843 = dma.hbm_to_vmem [thread:$0]  (!%p16419_p12), %s20672_s6, 64, %s463_s23, [#allocation9]  }
  0x3b   : > { %s16073_s22 = scalar_lea.hbm %s20621_s14, 16 }
  0x3c   : > { %p16074_p13 = scmp.ne.s32.totalorder %s20621_s14, %s16073_s22  ;;  %p16080_p5 = scmp.lt.u32.totalorder %s16073_s22, %s20621_s14 }
  0x3e   : > { %p16076_p1 = pnand %p16074_p13, %p16435_p0 }
  0x40   : > { %p16077_p6 = pneg %p16076_p1 }
  0x42   : > { %p16082_p9 = pnand %p16080_p5, %p16077_p6 }
  0x44   : > { %16085 = shalt.err (!%p16082_p9)
}
  0x45   : > { %s16086_s23 = scalar_lea.vmem %s16423_s30, 16  ;;  %s16093_s1 = scalar_lea.vmem %s16423_s30, 32 }
  0x46   : > { %p16087_p10 = scmp.ne.s32.totalorder %s16423_s30, %s16086_s23  ;;  %p16094_p4 = scmp.lt.s32.totalorder %s16423_s30, %s16423_s30 }
  0x47   : > { %p16095_p7 = scmp.lt.s32.totalorder %s16093_s1, %s16086_s23 }
  0x48   : > { %p16089_p2 = pnand %p16087_p10, %p16435_p0 }
  0x49   : > { %p16096_p8 = por %p16095_p7, %p16094_p4 }
  0x4a   : > { %p16090_p3 = pneg %p16089_p2 }
  0x4c   : > { %p16097_p11 = pnand %p16096_p8, %p16090_p3 }
  0x4e   : > { %16100 = shalt.err (!%p16097_p11)
}
  0x4f   : > { %14849 = dma.hbm_to_vmem [thread:$0]  (!%p16419_p12), %s20621_s14, 16, %s16423_s30, [#allocation12]  }
  0x50   : > { %s20674_s4 = sld [smem:[#allocation33_spill]] }
  0x56   : > { %s16101_s20 = scalar_lea.hbm %s20674_s4, 64 }
  0x57   : > { %p16102_p13 = scmp.ne.s32.totalorder %s20674_s4, %s16101_s20  ;;  %p16108_p5 = scmp.lt.u32.totalorder %s16101_s20, %s20674_s4 }
  0x59   : > { %p16104_p1 = pnand %p16102_p13, %p16435_p0 }
  0x5b   : > { %p16105_p6 = pneg %p16104_p1 }
  0x5d   : > { %p16110_p9 = pnand %p16108_p5, %p16105_p6 }
  0x5f   : > { %16113 = shalt.err (!%p16110_p9)
}
  0x60   : > { %s16114_s30 = scalar_lea.vmem %s16425_s26, 64  ;;  %p16122_p4 = scmp.lt.s32.totalorder %s16425_s26, %s16425_s26 }
  0x61   : > { %p16115_p10 = scmp.ne.s32.totalorder %s16425_s26, %s16114_s30  ;;  %p16123_p7 = scmp.lt.s32.totalorder %s16114_s30, %s16114_s30 }
  0x63   : > { %p16117_p2 = pnand %p16115_p10, %p16435_p0  ;;  %p16124_p8 = por %p16123_p7, %p16122_p4 }
  0x65   : > { %p16118_p3 = pneg %p16117_p2 }
  0x67   : > { %p16125_p11 = pnand %p16124_p8, %p16118_p3 }
  0x69   : > { %16128 = shalt.err (!%p16125_p11)
}
  0x6a   : > { %14840 = dma.hbm_to_vmem [thread:$0]  (!%p16419_p12), %s20674_s4, 64, %s16425_s26, [#allocation6]  }
  0x6b   : > { %s16264_s24 = smov [#allocation10]   ;;  %s16129_s22 = scalar_lea.hbm %s20619_s12, 192 }
  0x6c   : > { %s487_s27 = sshll.u32 %s16264_s24, 4  ;;  %p16130_p13 = scmp.ne.s32.totalorder %s20619_s12, %s16129_s22  ;;  %s488_s27 = int_to_ptr.vmem [resolvable:$true] %s487_s27 }
  0x6d   : > { %p16136_p5 = scmp.lt.u32.totalorder %s16129_s22, %s20619_s12 }
  0x6e   : > { %p16132_p1 = pnand %p16130_p13, %p16435_p0 }
  0x70   : > { %p16133_p6 = pneg %p16132_p1 }
  0x72   : > { %p16138_p9 = pnand %p16136_p5, %p16133_p6 }
  0x74   : > { %16141 = shalt.err (!%p16138_p9)
}
  0x75   : > { %s16142_s26 = scalar_lea.vmem %s488_s27, 192  ;;  %p16150_p4 = scmp.lt.s32.totalorder %s488_s27, %s488_s27 }
  0x76   : > { %p16143_p10 = scmp.ne.s32.totalorder %s488_s27, %s16142_s26  ;;  %p16151_p7 = scmp.lt.s32.totalorder %s16142_s26, %s16142_s26 }
  0x78   : > { %p16145_p2 = pnand %p16143_p10, %p16435_p0  ;;  %p16152_p8 = por %p16151_p7, %p16150_p4 }
  0x7a   : > { %p16146_p3 = pneg %p16145_p2 }
  0x7c   : > { %p16153_p11 = pnand %p16152_p8, %p16146_p3 }
  0x7e   : > { %16156 = shalt.err (!%p16153_p11)
}
  0x7f   : > { %s16265_s1 = smov 64   ;;  %s16266_s25 = smov 4  }
  0x80   : > { %14846 = dma.hbm_to_vmem [thread:$0]  (!%p16419_p12), %s20619_s12, 192, %s488_s27, [#allocation9], %s16265_s1, %s16265_s1, %s16266_s25  }
  0x81   : > { %s16267_s20 = smov [#allocation13]   ;;  %s16157_s23 = scalar_lea.hbm %s20623_s16, 16 }
  0x82   : > { %s518_s22 = sshll.u32 %s16267_s20, 4  ;;  %p16158_p13 = scmp.ne.s32.totalorder %s20623_s16, %s16157_s23  ;;  %s519_s22 = int_to_ptr.vmem [resolvable:$true] %s518_s22 }
  0x83   : > { %p16164_p5 = scmp.lt.u32.totalorder %s16157_s23, %s20623_s16 }
  0x84   : > { %p16160_p1 = pnand %p16158_p13, %p16435_p0 }
  0x86   : > { %p16161_p6 = pneg %p16160_p1 }
  0x88   : > { %p16166_p9 = pnand %p16164_p5, %p16161_p6 }
  0x8a   : > { %16169 = shalt.err (!%p16166_p9)
}
  0x8b   : > { %s16170_s27 = scalar_lea.vmem %s519_s22, 16  ;;  %s16177_s1 = scalar_lea.vmem %s519_s22, 32 }
  0x8c   : > { %p16171_p10 = scmp.ne.s32.totalorder %s519_s22, %s16170_s27  ;;  %p16178_p4 = scmp.lt.s32.totalorder %s519_s22, %s519_s22 }
  0x8d   : > { %p16179_p7 = scmp.lt.s32.totalorder %s16177_s1, %s16170_s27 }
  0x8e   : > { %p16173_p2 = pnand %p16171_p10, %p16435_p0 }
  0x8f   : > { %p16180_p8 = por %p16179_p7, %p16178_p4 }
  0x90   : > { %p16174_p3 = pneg %p16173_p2 }
  0x92   : > { %p16181_p11 = pnand %p16180_p8, %p16174_p3 }
  0x94   : > { %16184 = shalt.err (!%p16181_p11)
}
  0x95   : > { %14852 = dma.hbm_to_vmem [thread:$0]  (!%p16419_p12), %s20623_s16, 16, %s519_s22, [#allocation12]  }
  0x96   : > { %p20675_p13 = scmp.ne.s32.totalorder %s20670_s21, 0 }
  0x98   : > { %540 = sbr.rel (%p20675_p13) target bundleno = 3211 (0xc8b), region = 88 }
  0x9f   : > { %p20676_p1 = scmp.eq.s32.totalorder %s16383_s28, 0 }
  0xa1   : > { %16230 = dma.done.wait (%p20676_p1), [#allocation6], 64   ;;  %p20677_p0 = pmov %p20676_p1 }
  0xa3   : > { %16232 = vsyncadd (%p20677_p0), [#allocation6], 4294967232  ;;  %p20678_p6 = pmov %p20677_p0 }
  0xa4   : > { %p20679_p5 = pmov %p20677_p0 }
  0xa5   : > { %16234 = dma.done.wait (%p20678_p6), [#allocation9], 256  }
  0xa6   : > { %16236 = vsyncadd (%p20679_p5), [#allocation9], 4294967040  ;;  %p20680_p9 = pmov %p20677_p0 }
  0xa7   : > { %p20681_p12 = pmov %p20677_p0 }
  0xa8   : > { %16238 = dma.done.wait (%p20680_p9), [#allocation12], 32  }
  0xa9   : > { %16240 = vsyncadd (%p20681_p12), [#allocation12], 4294967264  ;;  %v20639_v0 = vmov 0   ;;  %s20682_s21 = sld [smem:[#allocation32_spill]]  ;;  %s12528_s30 = sshll.u32 %s16383_s28, 5  ;;  %v16269_v23 = vmov 0.0  }
  0xaa   : > { %1033 = vmatprep.mubr.bf16.mxu0 %v20639_v0  ;;  %1226 = vmatprep.mubr.bf16.mxu1 %v20639_v0  ;;  %p609_p10 = scmp.lt.s32.totalorder %s12528_s30, 63  ;;  %679 = vst [vmem:[#allocation2 + $0x100] sm:$0xff] %v16269_v23  ;;  %5310 = vst [vmem:[#allocation3 + $0x100] sm:$0xff] %v16269_v23  ;;  %s20683_s6 = sld [smem:[#allocation31_spill]] }
  0xab   : > { %5311 = vst [vmem:[#allocation3 + $0x108] sm:$0xff] %v16269_v23  ;;  %9634 = vst [vmem:[#allocation4 + $0x80] sm:$0xff] %v16269_v23  ;;  %s20701_s20 = sld [smem:[#allocation25_spill]]  ;;  %s13885_s22 = sshll.u32 %s16383_s28, 7 }
  0xac   : > { %s20714_s30 = smov (!%p609_p10, %s12528_s30), 63  ;;  %9635 = vst [vmem:[#allocation4 + $0x88] sm:$0xff] %v16269_v23  ;;  %s20702_s27 = sld [smem:[#allocation35_spill]] }
  0xad   : > { %s12529_s26 = sshll.u32 %s20714_s30, 3  ;;  %s16271_s4 = smov [#allocation14]  }
  0xaf   : > { %v14910_v1 = vld [vmem:[%s20682_s21 + $0x104] ss:$16 sps:$4 sm:$0xff]   ;;  %v14912_v2 = vld [vmem:[%s20682_s21 + $0x10c] ss:$16 sps:$4 sm:$0xff]   ;;  %v14914_v3 = vld [vmem:[%s20682_s21 + $0x100] ss:$16 sps:$4 sm:$0xff]  }
  0xb0   : > { %1001 = vmatprep.subr.bf16.mxu0 %v14910_v1  ;;  %v14915_v4 = vld [vmem:[%s20682_s21 + $0x108] ss:$16 sps:$4 sm:$0xff]   ;;  %1194 = vmatprep.subr.bf16.mxu1 %v14912_v2  ;;  %v14916_v5 = vld [vmem:[%s20682_s21 + $0x124] ss:$16 sps:$4 sm:$0xff]   ;;  %v14918_v6 = vld [vmem:[%s20682_s21 + $0x12c] ss:$16 sps:$4 sm:$0xff]   ;;  %s16620_s18 = scalar_lea.vmem %s20683_s6, %s12529_s26 }
  0xb1   : > { %1002 = vmatpush1.bf16.msra.mxu0 %v14914_v3  ;;  %1195 = vmatpush1.bf16.msra.mxu1 %v14915_v4  ;;  %v14920_v7 = vld [vmem:[%s20682_s21 + $0x120] ss:$16 sps:$4 sm:$0xff]   ;;  %v14921_v8 = vld [vmem:[%s20682_s21 + $0x128] ss:$16 sps:$4 sm:$0xff]   ;;  %v14922_v9 = vld [vmem:[%s20682_s21 + $0x144] ss:$16 sps:$4 sm:$0xff]  }
  0xb2   : > { %1003 = vmatprep.subr.bf16.mxu0 %v14916_v5  ;;  %1196 = vmatprep.subr.bf16.mxu1 %v14918_v6  ;;  %v14924_v10 = vld [vmem:[%s20682_s21 + $0x14c] ss:$16 sps:$4 sm:$0xff]   ;;  %v14926_v11 = vld [vmem:[%s20682_s21 + $0x140] ss:$16 sps:$4 sm:$0xff]   ;;  %v14927_v12 = vld [vmem:[%s20682_s21 + $0x148] ss:$16 sps:$4 sm:$0xff]   ;;  %s20703_s1 = smov %s20702_s27  ;;  %s20565_s25 = scalar_lea.hbm %s20702_s27, %s13885_s22 }
  0xb3   : > { %v14928_v13 = vld [vmem:[%s20682_s21 + $0x164] ss:$16 sps:$4 sm:$0xff]   ;;  %v14930_v14 = vld [vmem:[%s20682_s21 + $0x16c] ss:$16 sps:$4 sm:$0xff]   ;;  %v14932_v15 = vld [vmem:[%s20682_s21 + $0x160] ss:$16 sps:$4 sm:$0xff]  }
  0xb4   : > { %v14933_v16 = vld [vmem:[%s20682_s21 + $0x168] ss:$16 sps:$4 sm:$0xff]   ;;  %v14934_v17 = vld [vmem:[%s20682_s21 + $0x184] ss:$16 sps:$4 sm:$0xff]   ;;  %v14936_v18 = vld [vmem:[%s20682_s21 + $0x18c] ss:$16 sps:$4 sm:$0xff]  }
  0xb5   : > { %1004 = vmatpush1.bf16.msra.mxu0 %v14920_v7  ;;  %1197 = vmatpush1.bf16.msra.mxu1 %v14921_v8  ;;  %v14938_v19 = vld [vmem:[%s20682_s21 + $0x180] ss:$16 sps:$4 sm:$0xff]   ;;  %v14939_v20 = vld [vmem:[%s20682_s21 + $0x188] ss:$16 sps:$4 sm:$0xff]   ;;  %v14940_v21 = vld [vmem:[%s20682_s21 + $0x1a4] ss:$16 sps:$4 sm:$0xff]  }
  0xb6   : > { %1005 = vmatprep.subr.bf16.mxu0 %v14922_v9  ;;  %1198 = vmatprep.subr.bf16.mxu1 %v14924_v10  ;;  %v14942_v22 = vld [vmem:[%s20682_s21 + $0x1ac] ss:$16 sps:$4 sm:$0xff]   ;;  %v14944_v24 = vld [vmem:[%s20682_s21 + $0x1a0] ss:$16 sps:$4 sm:$0xff]   ;;  %v14945_v25 = vld [vmem:[%s20682_s21 + $0x1a8] ss:$16 sps:$4 sm:$0xff]  }
  0xb7   : > { %v14946_v26 = vld [vmem:[%s20682_s21 + $0x1c4] ss:$16 sps:$4 sm:$0xff]   ;;  %v14948_v27 = vld [vmem:[%s20682_s21 + $0x1cc] ss:$16 sps:$4 sm:$0xff]   ;;  %v14950_v31 = vld [vmem:[%s20682_s21 + $0x1c0] ss:$16 sps:$4 sm:$0xff]  }
  0xb8   : > { %v615_v28 = vld [vmem:[%s16620_s18] sm:$0xff]  ;;  %v616_v29 = vld [vmem:[%s16620_s18 + $0x8] sm:$0xff]  ;;  %v16637_v30 = vld [vmem:[%s16620_s18 + $0x10] sm:$0xff]  ;;  %s20700_s6 = sld [smem:[#allocation20_spill]]  ;;  %p20704_p3 = scmp.ne.s32.totalorder %s20701_s20, 0 }
  0xb9   : > { %1006 = vmatpush1.bf16.msra.mxu0 %v14926_v11  ;;  %1199 = vmatpush1.bf16.msra.mxu1 %v14927_v12  ;;  %647 = vst [vmem:[#allocation2] sm:$0xff] %v615_v28  ;;  %648 = vst [vmem:[#allocation2 + $0x8] sm:$0xff] %v616_v29  ;;  %v14951_v32 = vld [vmem:[%s20682_s21 + $0x1c8] ss:$16 sps:$4 sm:$0xff]   ;;  %v14952_v33 = vld [vmem:[%s20682_s21 + $0x1e4] ss:$16 sps:$4 sm:$0xff]   ;;  %v16677_v43 = vpack.c.bf16 %v616_v29, %v615_v28 }
  0xba   : > { %1007 = vmatprep.subr.bf16.mxu0 %v14928_v13  ;;  %1200 = vmatprep.subr.bf16.mxu1 %v14930_v14  ;;  %649 = vst [vmem:[#allocation2 + $0x10] sm:$0xff] %v16637_v30  ;;  %v14954_v34 = vld [vmem:[%s20682_s21 + $0x1ec] ss:$16 sps:$4 sm:$0xff]   ;;  %v16654_v36 = vld [vmem:[%s16620_s18 + $0x20] sm:$0xff]  ;;  %v16661_v38 = vld [vmem:[%s16620_s18 + $0x30] sm:$0xff] }
  0xbb   : > { %v618_v35 = vld [vmem:[%s16620_s18 + $0x18] sm:$0xff]  ;;  %v16657_v37 = vld [vmem:[%s16620_s18 + $0x28] sm:$0xff]  ;;  %651 = vst [vmem:[#allocation2 + $0x20] sm:$0xff] %v16654_v36  ;;  %v14956_v39 = vld [vmem:[%s20682_s21 + $0x1e0] ss:$16 sps:$4 sm:$0xff]  }
  0xbc   : > { %650 = vst [vmem:[#allocation2 + $0x18] sm:$0xff] %v618_v35  ;;  %652 = vst [vmem:[#allocation2 + $0x28] sm:$0xff] %v16657_v37  ;;  %v14957_v40 = vld [vmem:[%s20682_s21 + $0x1e8] ss:$16 sps:$4 sm:$0xff]   ;;  %v14960_v41 = vld [vmem:[%s20682_s21 + $0x4] ss:$16 sps:$4 sm:$0xff]   ;;  %v16738_v2 = vpack.c.bf16 %v618_v35, %v16637_v30 }
  0xbd   : > { %1008 = vmatpush1.bf16.msra.mxu0 %v14932_v15  ;;  %1201 = vmatpush1.bf16.msra.mxu1 %v14933_v16  ;;  %653 = vst [vmem:[#allocation2 + $0x30] sm:$0xff] %v16661_v38  ;;  %v14963_v42 = vld [vmem:[%s20682_s21 + $0xc] ss:$16 sps:$4 sm:$0xff]   ;;  %v16683_v46 = vld [vmem:[%s16620_s18 + $0x40] sm:$0xff]  ;;  %v16691_v49 = vld [vmem:[%s16620_s18 + $0x50] sm:$0xff]  ;;  %v16778_v16 = vpack.c.bf16 %v16657_v37, %v16654_v36 }
  0xbe   : > { %1009 = vmatprep.subr.bf16.mxu0 %v14934_v17  ;;  %1202 = vmatprep.subr.bf16.mxu1 %v14936_v18  ;;  %v16680_v45 = vld [vmem:[%s16620_s18 + $0x38] sm:$0xff]  ;;  %655 = vst [vmem:[#allocation2 + $0x40] sm:$0xff] %v16683_v46  ;;  %v16688_v48 = vld [vmem:[%s16620_s18 + $0x48] sm:$0xff]  ;;  %v14958_v51 = vld [vmem:[%s20682_s21] ss:$16 sps:$4 sm:$0xff]   ;;  %s605_s29 = sand.u32 1, %s20700_s6  }
  0xbf   : > { %654 = vst [vmem:[#allocation2 + $0x38] sm:$0xff] %v16680_v45  ;;  %656 = vst [vmem:[#allocation2 + $0x48] sm:$0xff] %v16688_v48  ;;  %v14961_v52 = vld [vmem:[%s20682_s21 + $0x8] ss:$16 sps:$4 sm:$0xff]   ;;  %v14966_v53 = vld [vmem:[%s20682_s21 + $0x24] ss:$16 sps:$4 sm:$0xff]  }
  0xc0   : > { %v760_v44 = vld [vmem:[#allocation2 + $0x1] sm:$0xff]  ;;  %657 = vst [vmem:[#allocation2 + $0x50] sm:$0xff] %v16691_v49  ;;  %v14969_v58 = vld [vmem:[%s20682_s21 + $0x2c] ss:$16 sps:$4 sm:$0xff]   ;;  %v16725_v62 = vld [vmem:[%s16620_s18 + $0x70] sm:$0xff]  ;;  %s12527_s17 = sshll.u32 %s605_s29, 3 }
  0xc1   : > { %1010 = vmatpush1.bf16.msra.mxu0 %v14938_v19  ;;  %1203 = vmatpush1.bf16.msra.mxu1 %v14939_v20  ;;  %v761_v47 = vld [vmem:[#allocation2 + $0x9] sm:$0xff]  ;;  %v16714_v59 = vld [vmem:[%s16620_s18 + $0x58] sm:$0xff]  ;;  %v16717_v60 = vld [vmem:[%s16620_s18 + $0x60] sm:$0xff]  ;;  %661 = vst [vmem:[#allocation2 + $0x70] sm:$0xff] %v16725_v62  ;;  %s607_s19 = scalar_lea.vmem [#allocation14], %s12527_s17  ;;  %s12391_s24 = scalar_lea.sflag [#allocation7], %s605_s29 }
  0xc2   : > { %1011 = vmatprep.subr.bf16.mxu0 %v14940_v21  ;;  %1204 = vmatprep.subr.bf16.mxu1 %v14942_v22  ;;  %v792_v50 = vpack.c.bf16 %v761_v47, %v760_v44  ;;  %v14964_v56 = vld [vmem:[%s20682_s21 + $0x20] ss:$16 sps:$4 sm:$0xff]   ;;  %v14967_v57 = vld [vmem:[%s20682_s21 + $0x28] ss:$16 sps:$4 sm:$0xff]   ;;  %658 = vst [vmem:[#allocation2 + $0x58] sm:$0xff] %v16714_v59  ;;  %659 = vst [vmem:[#allocation2 + $0x60] sm:$0xff] %v16717_v60 }
  0xc3   : > { %v762_v54 = vld [vmem:[#allocation2 + $0x11] sm:$0xff]  ;;  %v763_v55 = vld [vmem:[#allocation2 + $0x19] sm:$0xff]  ;;  %v16720_v61 = vld [vmem:[%s16620_s18 + $0x68] sm:$0xff]  ;;  %s12404_s0 = sshll.u32 %s607_s19, 4  ;;  %s20567_s0 = int_to_ptr.vmem [resolvable:$true] %s12404_s0 }
  0xc4   : > { %660 = vst [vmem:[#allocation2 + $0x68] sm:$0xff] %v16720_v61  ;;  %v14972_v63 = vld [vmem:[%s20682_s21 + $0x44] ss:$16 sps:$4 sm:$0xff]   ;;  %v14975_v1 = vld [vmem:[%s20682_s21 + $0x4c] ss:$16 sps:$4 sm:$0xff]   ;;  %v793_v3 = vpack.c.bf16 %v763_v55, %v762_v54  ;;  %v16853_v54 = vpack.c.bf16 %v16688_v48, %v16683_v46  ;;  %s16185_s28 = scalar_lea.vmem %s20567_s0, 128 }
  0xc5   : > { %1012 = vmatpush1.bf16.msra.mxu0 %v14944_v24  ;;  %1205 = vmatpush1.bf16.msra.mxu1 %v14945_v25  ;;  %v14970_v4 = vld [vmem:[%s20682_s21 + $0x40] ss:$16 sps:$4 sm:$0xff]   ;;  %v14973_v5 = vld [vmem:[%s20682_s21 + $0x48] ss:$16 sps:$4 sm:$0xff]   ;;  %v14978_v10 = vld [vmem:[%s20682_s21 + $0x64] ss:$16 sps:$4 sm:$0xff]   ;;  %p16186_p2 = scmp.ne.s32.totalorder %s20567_s0, %s16185_s28 }
  0xc6   : > { %1013 = vmatprep.subr.bf16.mxu0 %v14946_v26  ;;  %1206 = vmatprep.subr.bf16.mxu1 %v14948_v27  ;;  %v16747_v6 = vld [vmem:[%s16620_s18 + $0x78] sm:$0xff]  ;;  %v16750_v7 = vld [vmem:[%s16620_s18 + $0x80] sm:$0xff]  ;;  %v16755_v8 = vld [vmem:[%s16620_s18 + $0x88] sm:$0xff] }
  0xc7   : > { %662 = vst [vmem:[#allocation2 + $0x78] sm:$0xff] %v16747_v6  ;;  %663 = vst [vmem:[#allocation2 + $0x80] sm:$0xff] %v16750_v7  ;;  %v16758_v9 = vld [vmem:[%s16620_s18 + $0x90] sm:$0xff]  ;;  %v14981_v11 = vld [vmem:[%s20682_s21 + $0x6c] ss:$16 sps:$4 sm:$0xff]   ;;  %p16187_p4 = pnand %p16186_p2, %p20704_p3 }
  0xc8   : > { %664 = vst [vmem:[#allocation2 + $0x88] sm:$0xff] %v16755_v8  ;;  %665 = vst [vmem:[#allocation2 + $0x90] sm:$0xff] %v16758_v9  ;;  %v764_v12 = vld [vmem:[#allocation2 + $0x21] sm:$0xff]  ;;  %v765_v13 = vld [vmem:[#allocation2 + $0x29] sm:$0xff] }
  0xc9   : > { %1014 = vmatpush1.bf16.msra.mxu0 %v14950_v31  ;;  %1207 = vmatpush1.bf16.msra.mxu1 %v14951_v32  ;;  %v14976_v14 = vld [vmem:[%s20682_s21 + $0x60] ss:$16 sps:$4 sm:$0xff]   ;;  %v14979_v15 = vld [vmem:[%s20682_s21 + $0x68] ss:$16 sps:$4 sm:$0xff]   ;;  %v14984_v17 = vld [vmem:[%s20682_s21 + $0x84] ss:$16 sps:$4 sm:$0xff]   ;;  %v794_v23 = vpack.c.bf16 %v765_v13, %v764_v12  ;;  %p16188_p7 = pneg %p16187_p4 }
  0xca   : > { %1015 = vmatprep.subr.bf16.mxu0 %v14952_v33  ;;  %1208 = vmatprep.subr.bf16.mxu1 %v14954_v34  ;;  %v14987_v18 = vld [vmem:[%s20682_s21 + $0x8c] ss:$16 sps:$4 sm:$0xff]   ;;  %v16790_v20 = vld [vmem:[%s16620_s18 + $0xa0] sm:$0xff]  ;;  %v637_v22 = vld [vmem:[%s16620_s18 + $0xb0] sm:$0xff]  ;;  %v16819_v34 = vpack.c.bf16 %v16680_v45, %v16661_v38 }
  0xcb   : > { %v16787_v19 = vld [vmem:[%s16620_s18 + $0x98] sm:$0xff]  ;;  %v16794_v21 = vld [vmem:[%s16620_s18 + $0xa8] sm:$0xff]  ;;  %667 = vst [vmem:[#allocation2 + $0xa0] sm:$0xff] %v16790_v20  ;;  %669 = vst [vmem:[#allocation2 + $0xb0] sm:$0xff] %v637_v22 }
  0xcc   : > { %666 = vst [vmem:[#allocation2 + $0x98] sm:$0xff] %v16787_v19  ;;  %668 = vst [vmem:[#allocation2 + $0xa8] sm:$0xff] %v16794_v21  ;;  %v14982_v24 = vld [vmem:[%s20682_s21 + $0x80] ss:$16 sps:$4 sm:$0xff]   ;;  %v14985_v25 = vld [vmem:[%s20682_s21 + $0x88] ss:$16 sps:$4 sm:$0xff]  }
  0xcd   : > { %1016 = vmatpush1.bf16.msra.mxu0 %v14956_v39  ;;  %1209 = vmatpush1.bf16.msra.mxu1 %v14957_v40  ;;  %v766_v26 = vld [vmem:[#allocation2 + $0x31] sm:$0xff]  ;;  %v767_v27 = vld [vmem:[#allocation2 + $0x39] sm:$0xff]  ;;  %v640_v32 = vld [vmem:[%s16620_s18 + $0xc8] sm:$0xff] }
  0xce   : > { %1547 = vmatprep.subr.bf16.mxu0 %v14960_v41  ;;  %1740 = vmatprep.subr.bf16.mxu1 %v14963_v42  ;;  %v14990_v28 = vld [vmem:[%s20682_s21 + $0xa4] ss:$16 sps:$4 sm:$0xff]   ;;  %v14993_v29 = vld [vmem:[%s20682_s21 + $0xac] ss:$16 sps:$4 sm:$0xff]   ;;  %672 = vst [vmem:[#allocation2 + $0xc8] sm:$0xff] %v640_v32  ;;  %v795_v38 = vpack.c.bf16 %v767_v27, %v766_v26 }
  0xcf   : > { %v638_v30 = vld [vmem:[%s16620_s18 + $0xb8] sm:$0xff]  ;;  %v639_v31 = vld [vmem:[%s16620_s18 + $0xc0] sm:$0xff]  ;;  %v641_v33 = vld [vmem:[%s16620_s18 + $0xd0] sm:$0xff] }
  0xd0   : > { %1034 = vmatmul.mubr.bf16.vlgmr.msra.gmra.mrb[0].mxu0 %v792_v50  ;;  %1227 = vmatmul.mubr.bf16.vlgmr.msra.gmra.mrb[0].mxu1 %v792_v50  ;;  %670 = vst [vmem:[#allocation2 + $0xb8] sm:$0xff] %v638_v30  ;;  %671 = vst [vmem:[#allocation2 + $0xc0] sm:$0xff] %v639_v31  ;;  %v14988_v35 = vld [vmem:[%s20682_s21 + $0xa0] ss:$16 sps:$4 sm:$0xff]   ;;  %v14991_v36 = vld [vmem:[%s20682_s21 + $0xa8] ss:$16 sps:$4 sm:$0xff]  }
  0xd1   : > { %1548 = vmatpush1.bf16.msra.mxu0 %v14958_v51  ;;  %1741 = vmatpush1.bf16.msra.mxu1 %v14961_v52  ;;  %673 = vst [vmem:[#allocation2 + $0xd0] sm:$0xff] %v641_v33  ;;  %v14996_v37 = vld [vmem:[%s20682_s21 + $0xc4] ss:$16 sps:$4 sm:$0xff]   ;;  %v14994_v39 = vld [vmem:[%s20682_s21 + $0xc0] ss:$16 sps:$4 sm:$0xff]   ;;  %v642_v42 = vld [vmem:[%s16620_s18 + $0xd8] sm:$0xff] }
  0xd2   : > { %1043 = vmatprep.mubr.bf16.mxu0 %v20639_v0  ;;  %1236 = vmatprep.mubr.bf16.mxu1 %v20639_v0  ;;  %v14997_v40 = vld [vmem:[%s20682_s21 + $0xc8] ss:$16 sps:$4 sm:$0xff]   ;;  %v14999_v41 = vld [vmem:[%s20682_s21 + $0xcc] ss:$16 sps:$4 sm:$0xff]   ;;  %v643_v44 = vld [vmem:[%s16620_s18 + $0xe0] sm:$0xff]  ;;  %674 = vst [vmem:[#allocation2 + $0xd8] sm:$0xff] %v642_v42 }
  0xd3   : > { %1549 = vmatprep.subr.bf16.mxu0 %v14966_v53  ;;  %1742 = vmatprep.subr.bf16.mxu1 %v14969_v58  ;;  %675 = vst [vmem:[#allocation2 + $0xe0] sm:$0xff] %v643_v44  ;;  %v644_v45 = vld [vmem:[%s16620_s18 + $0xe8] sm:$0xff]  ;;  %v645_v47 = vld [vmem:[%s16620_s18 + $0xf0] sm:$0xff] }
  0xd4   : > { %676 = vst [vmem:[#allocation2 + $0xe8] sm:$0xff] %v644_v45  ;;  %677 = vst [vmem:[#allocation2 + $0xf0] sm:$0xff] %v645_v47  ;;  %v15002_v50 = vld [vmem:[%s20682_s21 + $0xe4] ss:$16 sps:$4 sm:$0xff]   ;;  %v769_v52 = vld [vmem:[#allocation2 + $0x49] sm:$0xff] }
  0xd5   : > { %1550 = vmatpush1.bf16.msra.mxu0 %v14964_v56  ;;  %1743 = vmatpush1.bf16.msra.mxu1 %v14967_v57  ;;  %v768_v51 = vld [vmem:[#allocation2 + $0x41] sm:$0xff]  ;;  %v15005_v56 = vld [vmem:[%s20682_s21 + $0xec] ss:$16 sps:$4 sm:$0xff]   ;;  %v774_v13 = vld [vmem:[#allocation2 + $0x71] sm:$0xff] }
  0xd6   : > { %1551 = vmatprep.subr.bf16.mxu0 %v14972_v63  ;;  %1744 = vmatprep.subr.bf16.mxu1 %v14975_v1  ;;  %v15000_v53 = vld [vmem:[%s20682_s21 + $0xe0] ss:$16 sps:$4 sm:$0xff]   ;;  %v15003_v55 = vld [vmem:[%s20682_s21 + $0xe8] ss:$16 sps:$4 sm:$0xff]   ;;  %v796_v58 = vpack.c.bf16 %v769_v52, %v768_v51  ;;  %v15008_v46 = vld [vmem:[%s20682_s21 + $0x204] ss:$16 sps:$4 sm:$0xff]  }
  0xd7   : > { %v646_v57 = vld [vmem:[%s16620_s18 + $0xf8] sm:$0xff]  ;;  %v784_v26 = vld [vmem:[#allocation2 + $0xc1] sm:$0xff]  ;;  %s16189_s18 = sshll.u32 %s16271_s4, 4  ;;  %s16190_s18 = int_to_ptr.vmem [resolvable:$false] %s16189_s18 }
  0xd8   : > { %1044 = vmatmul.mubr.bf16.gmra.mrb[4].mxu0 %v793_v3  ;;  %1237 = vmatmul.mubr.bf16.gmra.mrb[4].mxu1 %v793_v3  ;;  %678 = vst [vmem:[#allocation2 + $0xf8] sm:$0xff] %v646_v57  ;;  %v15011_v48 = vld [vmem:[%s20682_s21 + $0x20c] ss:$16 sps:$4 sm:$0xff]   ;;  %v770_v63 = vld [vmem:[#allocation2 + $0x51] sm:$0xff]  ;;  %v16872_v3 = vpack.c.bf16 %v16714_v59, %v16691_v49  ;;  %v16884_v59 = vpack.c.bf16 %v16747_v6, %v16725_v62  ;;  %s16191_s30 = scalar_lea.vmem %s16190_s18, 256  ;;  %p16192_p8 = scmp.lt.s32.totalorder %s20567_s0, %s16190_s18 }
  0xd9   : > { %1053 = vmatprep.mubr.bf16.mxu0 %v20639_v0  ;;  %1246 = vmatprep.mubr.bf16.mxu1 %v20639_v0  ;;  %v771_v1 = vld [vmem:[#allocation2 + $0x59] sm:$0xff]  ;;  %v16896_v6 = vpack.c.bf16 %v16787_v19, %v16758_v9  ;;  %v785_v27 = vld [vmem:[#allocation2 + $0xc9] sm:$0xff]  ;;  %v15020_v44 = vld [vmem:[%s20682_s21 + $0x244] ss:$16 sps:$4 sm:$0xff]   ;;  %p16193_p11 = scmp.lt.s32.totalorder %s16191_s30, %s16185_s28 }
  0xda   : > { %1552 = vmatpush1.bf16.msra.mxu0 %v14970_v4  ;;  %1745 = vmatpush1.bf16.msra.mxu1 %v14973_v5  ;;  %v797_v4 = vpack.c.bf16 %v771_v1, %v770_v63  ;;  %v772_v5 = vld [vmem:[#allocation2 + $0x61] sm:$0xff]  ;;  %v775_v49 = vld [vmem:[#allocation2 + $0x79] sm:$0xff] }
  0xdb   : > { %1553 = vmatprep.subr.bf16.mxu0 %v14978_v10  ;;  %1746 = vmatprep.subr.bf16.mxu1 %v14981_v11  ;;  %v773_v10 = vld [vmem:[#allocation2 + $0x69] sm:$0xff]  ;;  %v16878_v11 = vpack.c.bf16 %v16720_v61, %v16717_v60  ;;  %v16890_v60 = vpack.c.bf16 %v16755_v8, %v16750_v7  ;;  %v779_v62 = vld [vmem:[#allocation2 + $0x99] sm:$0xff]  ;;  %v16902_v7 = vpack.c.bf16 %v16794_v21, %v16790_v20  ;;  %v786_v21 = vld [vmem:[#allocation2 + $0xd1] sm:$0xff]  ;;  %p16194_p13 = por %p16193_p11, %p16192_p8 }
  0xdc   : > { %v798_v12 = vpack.c.bf16 %v773_v10, %v772_v5  ;;  %v783_v9 = vld [vmem:[#allocation2 + $0xb9] sm:$0xff]  ;;  %v804_v20 = vpack.c.bf16 %v785_v27, %v784_v26  ;;  %v788_v30 = vld [vmem:[#allocation2 + $0xe1] sm:$0xff]  ;;  %v789_v31 = vld [vmem:[#allocation2 + $0xe9] sm:$0xff] }
  0xdd   : > { %v806_v32 = vpack.c.bf16 %v789_v31, %v788_v30  ;;  %v15015_v42 = vld [vmem:[%s20682_s21 + $0x228] ss:$16 sps:$4 sm:$0xff]   ;;  %v15018_v45 = vld [vmem:[%s20682_s21 + $0x240] ss:$16 sps:$4 sm:$0xff]   ;;  %v15029_v51 = vld [vmem:[%s20682_s21 + $0x26c] ss:$16 sps:$4 sm:$0xff]   ;;  %p16195_p1 = pnand %p16194_p13, %p16188_p7 }
  0xde   : > { %1554 = vmatpush1.bf16.msra.mxu0 %v14976_v14  ;;  %1747 = vmatpush1.bf16.msra.mxu1 %v14979_v15  ;;  %v799_v14 = vpack.c.bf16 %v775_v49, %v774_v13  ;;  %v776_v15 = vld [vmem:[#allocation2 + $0x81] sm:$0xff] }
  0xdf   : > { %1555 = vmatprep.subr.bf16.mxu0 %v14984_v17  ;;  %1748 = vmatprep.subr.bf16.mxu1 %v14987_v18  ;;  %v777_v17 = vld [vmem:[#allocation2 + $0x89] sm:$0xff]  ;;  %v778_v18 = vld [vmem:[#allocation2 + $0x91] sm:$0xff] }
  0xe0   : > { %1054 = vmatmul.mubr.bf16.gmra.mrb[8].mxu0 %v794_v23  ;;  %1247 = vmatmul.mubr.bf16.gmra.mrb[8].mxu1 %v794_v23  ;;  %v800_v61 = vpack.c.bf16 %v777_v17, %v776_v15  ;;  %v801_v22 = vpack.c.bf16 %v779_v62, %v778_v18  ;;  %v780_v23 = vld [vmem:[#allocation2 + $0xa1] sm:$0xff]  ;;  %v790_v33 = vld [vmem:[#allocation2 + $0xf1] sm:$0xff] }
  0xe1   : > { %1063 = vmatprep.mubr.bf16.mxu0 %v20639_v0  ;;  %1256 = vmatprep.mubr.bf16.mxu1 %v20639_v0  ;;  %v15021_v47 = vld [vmem:[%s20682_s21 + $0x248] ss:$16 sps:$4 sm:$0xff]   ;;  %v15024_v52 = vld [vmem:[%s20682_s21 + $0x260] ss:$16 sps:$4 sm:$0xff]   ;;  %v15044_v1 = vld [vmem:[%s20682_s21 + $0x2c4] ss:$16 sps:$4 sm:$0xff]  }
  0xe2   : > { %1556 = vmatpush1.bf16.msra.mxu0 %v14982_v24  ;;  %1749 = vmatpush1.bf16.msra.mxu1 %v14985_v25  ;;  %v781_v24 = vld [vmem:[#allocation2 + $0xa9] sm:$0xff]  ;;  %v782_v25 = vld [vmem:[#allocation2 + $0xb1] sm:$0xff]  ;;  %v16040_v62 = vld [vmem:[#allocation2 + $0xe0] sm:$0xff] }
  0xe3   : > { %1557 = vmatprep.subr.bf16.mxu0 %v14990_v28  ;;  %1750 = vmatprep.subr.bf16.mxu1 %v14993_v29  ;;  %v802_v8 = vpack.c.bf16 %v781_v24, %v780_v23  ;;  %v803_v19 = vpack.c.bf16 %v783_v9, %v782_v25  ;;  %v787_v28 = vld [vmem:[#allocation2 + $0xd9] sm:$0xff]  ;;  %v15050_v10 = vld [vmem:[%s20682_s21 + $0x2e4] ss:$16 sps:$4 sm:$0xff]   ;;  %v16037_v15 = vld [vmem:[#allocation2 + $0xc8] sm:$0xff] }
  0xe4   : > { %v805_v29 = vpack.c.bf16 %v787_v28, %v786_v21  ;;  %v15033_v57 = vld [vmem:[%s20682_s21 + $0x288] ss:$16 sps:$4 sm:$0xff]   ;;  %v15048_v13 = vld [vmem:[%s20682_s21 + $0x2e0] ss:$16 sps:$4 sm:$0xff]   ;;  %v15062_v27 = vld [vmem:[%s20682_s21 + $0x324] ss:$16 sps:$4 sm:$0xff]  }
  0xe5   : > { %v15039_v63 = vld [vmem:[%s20682_s21 + $0x2a8] ss:$16 sps:$4 sm:$0xff]   ;;  %v16042_v23 = vld [vmem:[#allocation2 + $0xf0] sm:$0xff] }
  0xe6   : > { %1558 = vmatpush1.bf16.msra.mxu0 %v14988_v35  ;;  %1751 = vmatpush1.bf16.msra.mxu1 %v14991_v36  ;;  %v791_v35 = vld [vmem:[#allocation2 + $0xf9] sm:$0xff]  ;;  %v1934_v25 = vld [vmem:[#allocation2 + $0xa] sm:$0xff]  ;;  %v15068_v31 = vld [vmem:[%s20682_s21 + $0x344] ss:$16 sps:$4 sm:$0xff]  }
  0xe7   : > { %1559 = vmatprep.subr.bf16.mxu0 %v14996_v37  ;;  %1752 = vmatprep.subr.bf16.mxu1 %v14999_v41  ;;  %v807_v36 = vpack.c.bf16 %v791_v35, %v790_v33  ;;  %v15006_v37 = vld [vmem:[%s20682_s21 + $0x200] ss:$16 sps:$4 sm:$0xff]   ;;  %v15045_v5 = vld [vmem:[%s20682_s21 + $0x2c8] ss:$16 sps:$4 sm:$0xff]  }
  0xe8   : > { %1064 = vmatmul.mubr.bf16.gmra.mrb[12].mxu0 %v795_v38  ;;  %1257 = vmatmul.mubr.bf16.gmra.mrb[12].mxu1 %v795_v38  ;;  %v15009_v38 = vld [vmem:[%s20682_s21 + $0x208] ss:$16 sps:$4 sm:$0xff]   ;;  %v15012_v41 = vld [vmem:[%s20682_s21 + $0x220] ss:$16 sps:$4 sm:$0xff]  }
  0xe9   : > { %1073 = vmatprep.mubr.bf16.mxu0 %v20639_v0  ;;  %1266 = vmatprep.mubr.bf16.mxu1 %v20639_v0  ;;  %v15051_v49 = vld [vmem:[%s20682_s21 + $0x2e8] ss:$16 sps:$4 sm:$0xff]   ;;  %v15054_v9 = vld [vmem:[%s20682_s21 + $0x300] ss:$16 sps:$4 sm:$0xff]  }
  0xea   : > { %1560 = vmatpush1.bf16.msra.mxu0 %v14994_v39  ;;  %1753 = vmatpush1.bf16.msra.mxu1 %v14997_v40  ;;  %v15014_v39 = vld [vmem:[%s20682_s21 + $0x224] ss:$16 sps:$4 sm:$0xff]   ;;  %v15017_v40 = vld [vmem:[%s20682_s21 + $0x22c] ss:$16 sps:$4 sm:$0xff]   ;;  %v15063_v30 = vld [vmem:[%s20682_s21 + $0x328] ss:$16 sps:$4 sm:$0xff]  }
  0xeb   : > { %1561 = vmatprep.subr.bf16.mxu0 %v15002_v50  ;;  %1754 = vmatprep.subr.bf16.mxu1 %v15005_v56  ;;  %v15026_v50 = vld [vmem:[%s20682_s21 + $0x264] ss:$16 sps:$4 sm:$0xff]   ;;  %v15030_v56 = vld [vmem:[%s20682_s21 + $0x280] ss:$16 sps:$4 sm:$0xff]   ;;  %v16043_v24 = vld [vmem:[#allocation2 + $0xf8] sm:$0xff] }
  0xec   : > { %v1935_v21 = vld [vmem:[#allocation2 + $0x12] sm:$0xff]  ;;  %v1936_v28 = vld [vmem:[#allocation2 + $0x1a] sm:$0xff] }
  0xed   : > { %v1966_v33 = vpack.c.bf16 %v1936_v28, %v1935_v21  ;;  %v15066_v35 = vld [vmem:[%s20682_s21 + $0x340] ss:$16 sps:$4 sm:$0xff]  }
  0xee   : > { %1562 = vmatpush1.bf16.msra.mxu0 %v15000_v53  ;;  %1755 = vmatpush1.bf16.msra.mxu1 %v15003_v55  ;;  %v15027_v53 = vld [vmem:[%s20682_s21 + $0x268] ss:$16 sps:$4 sm:$0xff]   ;;  %v15032_v55 = vld [vmem:[%s20682_s21 + $0x284] ss:$16 sps:$4 sm:$0xff]  }
  0xef   : > { %2174 = vmatprep.subr.bf16.mxu0 %v15008_v46  ;;  %2367 = vmatprep.subr.bf16.mxu1 %v15011_v48  ;;  %v15041_v46 = vld [vmem:[%s20682_s21 + $0x2ac] ss:$16 sps:$4 sm:$0xff]   ;;  %v15036_v48 = vld [vmem:[%s20682_s21 + $0x2a0] ss:$16 sps:$4 sm:$0xff]  }
  0xf0   : > { %1074 = vmatmul.mubr.bf16.gmra.mrb[16].mxu0 %v796_v58  ;;  %1267 = vmatmul.mubr.bf16.gmra.mrb[16].mxu1 %v796_v58  ;;  %v15038_v58 = vld [vmem:[%s20682_s21 + $0x2a4] ss:$16 sps:$4 sm:$0xff]  }
  0xf1   : > { %1083 = vmatprep.mubr.bf16.mxu0 %v20639_v0  ;;  %1276 = vmatprep.mubr.bf16.mxu1 %v20639_v0  ;;  %v1959_v28 = vld [vmem:[#allocation2 + $0xd2] sm:$0xff] }
  0xf8   : > { %1084 = vmatmul.mubr.bf16.gmra.mrb[20].mxu0 %v797_v4  ;;  %1277 = vmatmul.mubr.bf16.gmra.mrb[20].mxu1 %v797_v4  ;;  %v15042_v4 = vld [vmem:[%s20682_s21 + $0x2c0] ss:$16 sps:$4 sm:$0xff]  }
  0xf9   : > { %1093 = vmatprep.mubr.bf16.mxu0 %v20639_v0  ;;  %1286 = vmatprep.mubr.bf16.mxu1 %v20639_v0 }
 0x100   : > { %1094 = vmatmul.mubr.bf16.gmra.mrb[24].mxu0 %v798_v12  ;;  %1287 = vmatmul.mubr.bf16.gmra.mrb[24].mxu1 %v798_v12  ;;  %v15053_v12 = vld [vmem:[%s20682_s21 + $0x2ec] ss:$16 sps:$4 sm:$0xff]  }
 0x101   : > { %1103 = vmatprep.mubr.bf16.mxu0 %v20639_v0  ;;  %1296 = vmatprep.mubr.bf16.mxu1 %v20639_v0 }
 0x108   : > { %1104 = vmatmul.mubr.bf16.gmra.mrb[28].mxu0 %v799_v14  ;;  %1297 = vmatmul.mubr.bf16.gmra.mrb[28].mxu1 %v799_v14  ;;  %v15056_v14 = vld [vmem:[%s20682_s21 + $0x304] ss:$16 sps:$4 sm:$0xff]  }
 0x109   : > { %1113 = vmatprep.mubr.bf16.mxu0 %v20639_v0  ;;  %1306 = vmatprep.mubr.bf16.mxu1 %v20639_v0 }
 0x110   : > { %1114 = vmatmul.mubr.bf16.gmra.mrb[32].mxu0 %v800_v61  ;;  %1307 = vmatmul.mubr.bf16.gmra.mrb[32].mxu1 %v800_v61  ;;  %v16039_v61 = vld [vmem:[#allocation2 + $0xd8] sm:$0xff] }
 0x111   : > { %1123 = vmatprep.mubr.bf16.mxu0 %v20639_v0  ;;  %1316 = vmatprep.mubr.bf16.mxu1 %v20639_v0 }
 0x118   : > { %1124 = vmatmul.mubr.bf16.gmra.mrb[36].mxu0 %v801_v22  ;;  %1317 = vmatmul.mubr.bf16.gmra.mrb[36].mxu1 %v801_v22 }
 0x119   : > { %1133 = vmatprep.mubr.bf16.mxu0 %v20639_v0  ;;  %1326 = vmatprep.mubr.bf16.mxu1 %v20639_v0 }
 0x120   : > { %1134 = vmatmul.mubr.bf16.gmra.mrb[40].mxu0 %v802_v8  ;;  %1327 = vmatmul.mubr.bf16.gmra.mrb[40].mxu1 %v802_v8  ;;  %v1933_v8 = vld [vmem:[#allocation2 + $0x2] sm:$0xff] }
 0x121   : > { %1143 = vmatprep.mubr.bf16.mxu0 %v20639_v0  ;;  %1336 = vmatprep.mubr.bf16.mxu1 %v20639_v0  ;;  %v1965_v26 = vpack.c.bf16 %v1934_v25, %v1933_v8  ;;  %v1954_v8 = vld [vmem:[#allocation2 + $0xaa] sm:$0xff] }
 0x128   : > { %1144 = vmatmul.mubr.bf16.gmra.mrb[44].mxu0 %v803_v19  ;;  %1337 = vmatmul.mubr.bf16.gmra.mrb[44].mxu1 %v803_v19  ;;  %v15057_v19 = vld [vmem:[%s20682_s21 + $0x308] ss:$16 sps:$4 sm:$0xff]  }
 0x129   : > { %1153 = vmatprep.mubr.bf16.mxu0 %v20639_v0  ;;  %1346 = vmatprep.mubr.bf16.mxu1 %v20639_v0 }
 0x130   : > { %1154 = vmatmul.mubr.bf16.gmra.mrb[48].mxu0 %v804_v20  ;;  %1347 = vmatmul.mubr.bf16.gmra.mrb[48].mxu1 %v804_v20  ;;  %v15065_v20 = vld [vmem:[%s20682_s21 + $0x32c] ss:$16 sps:$4 sm:$0xff]  }
 0x131   : > { %1163 = vmatprep.mubr.bf16.mxu0 %v20639_v0  ;;  %1356 = vmatprep.mubr.bf16.mxu1 %v20639_v0 }
 0x138   : > { %1164 = vmatmul.mubr.bf16.gmra.mrb[52].mxu0 %v805_v29  ;;  %1357 = vmatmul.mubr.bf16.gmra.mrb[52].mxu1 %v805_v29  ;;  %v15060_v29 = vld [vmem:[%s20682_s21 + $0x320] ss:$16 sps:$4 sm:$0xff]  }
 0x139   : > { %1173 = vmatprep.mubr.bf16.mxu0 %v20639_v0  ;;  %1366 = vmatprep.mubr.bf16.mxu1 %v20639_v0 }
 0x140   : > { %1174 = vmatmul.mubr.bf16.gmra.mrb[56].mxu0 %v806_v32  ;;  %1367 = vmatmul.mubr.bf16.gmra.mrb[56].mxu1 %v806_v32  ;;  %v15071_v32 = vld [vmem:[%s20682_s21 + $0x34c] ss:$16 sps:$4 sm:$0xff]  }
 0x141   : > { %1183 = vmatprep.mubr.bf16.mxu0 %v20639_v0  ;;  %1376 = vmatprep.mubr.bf16.mxu1 %v20639_v0 }
 0x148   : > { %1184 = vmatmul.mubr.bf16.gmra.mrb[60].mxu0 %v807_v36  ;;  %1377 = vmatmul.mubr.bf16.gmra.mrb[60].mxu1 %v807_v36  ;;  %v15069_v36 = vld [vmem:[%s20682_s21 + $0x348] ss:$16 sps:$4 sm:$0xff]  }
 0x149   : > { %1579 = vmatprep.mubr.bf16.mxu0 %v20639_v0  ;;  %1772 = vmatprep.mubr.bf16.mxu1 %v20639_v0 }
 0x150   : > { %1580 = vmatmul.mubr.bf16.vlgmr.msra.gmra.mrb[0].mxu0 %v16677_v43  ;;  %1773 = vmatmul.mubr.bf16.vlgmr.msra.gmra.mrb[0].mxu1 %v16677_v43  ;;  %v15023_v43 = vld [vmem:[%s20682_s21 + $0x24c] ss:$16 sps:$4 sm:$0xff]  }
 0x151   : > { %2175 = vmatpush1.bf16.msra.mxu0 %v15006_v37  ;;  %2368 = vmatpush1.bf16.msra.mxu1 %v15009_v38  ;;  %v15074_v37 = vld [vmem:[%s20682_s21 + $0x364] ss:$16 sps:$4 sm:$0xff]   ;;  %v15077_v38 = vld [vmem:[%s20682_s21 + $0x36c] ss:$16 sps:$4 sm:$0xff]  }
 0x152   : > { %1589 = vmatprep.mubr.bf16.mxu0 %v20639_v0  ;;  %1782 = vmatprep.mubr.bf16.mxu1 %v20639_v0 }
 0x153   : > { %2176 = vmatprep.subr.bf16.mxu0 %v15014_v39  ;;  %2369 = vmatprep.subr.bf16.mxu1 %v15017_v40  ;;  %v1937_v39 = vld [vmem:[#allocation2 + $0x22] sm:$0xff]  ;;  %v1938_v40 = vld [vmem:[#allocation2 + $0x2a] sm:$0xff] }
 0x155   : > { %2177 = vmatpush1.bf16.msra.mxu0 %v15012_v41  ;;  %2370 = vmatpush1.bf16.msra.mxu1 %v15015_v42  ;;  %v15072_v41 = vld [vmem:[%s20682_s21 + $0x360] ss:$16 sps:$4 sm:$0xff]   ;;  %v15075_v42 = vld [vmem:[%s20682_s21 + $0x368] ss:$16 sps:$4 sm:$0xff]  }
 0x156   : > { %2178 = vmatprep.subr.bf16.mxu0 %v15020_v44  ;;  %2371 = vmatprep.subr.bf16.mxu1 %v15023_v43  ;;  %v15080_v44 = vld [vmem:[%s20682_s21 + $0x384] ss:$16 sps:$4 sm:$0xff]   ;;  %v15083_v43 = vld [vmem:[%s20682_s21 + $0x38c] ss:$16 sps:$4 sm:$0xff]  }
 0x158   : > { %1590 = vmatmul.mubr.bf16.gmra.mrb[4].mxu0 %v16738_v2  ;;  %1783 = vmatmul.mubr.bf16.gmra.mrb[4].mxu1 %v16738_v2  ;;  %v15035_v2 = vld [vmem:[%s20682_s21 + $0x28c] ss:$16 sps:$4 sm:$0xff]  }
 0x159   : > { %1599 = vmatprep.mubr.bf16.mxu0 %v20639_v0  ;;  %1792 = vmatprep.mubr.bf16.mxu1 %v20639_v0 }
 0x15a   : > { %2179 = vmatpush1.bf16.msra.mxu0 %v15018_v45  ;;  %2372 = vmatpush1.bf16.msra.mxu1 %v15021_v47  ;;  %v1967_v45 = vpack.c.bf16 %v1938_v40, %v1937_v39  ;;  %v15078_v47 = vld [vmem:[%s20682_s21 + $0x380] ss:$16 sps:$4 sm:$0xff]  }
 0x15b   : > { %2180 = vmatprep.subr.bf16.mxu0 %v15026_v50  ;;  %2373 = vmatprep.subr.bf16.mxu1 %v15029_v51  ;;  %v15081_v50 = vld [vmem:[%s20682_s21 + $0x388] ss:$16 sps:$4 sm:$0xff]   ;;  %v15086_v51 = vld [vmem:[%s20682_s21 + $0x3a4] ss:$16 sps:$4 sm:$0xff]  }
 0x15c   : > { %v2689_v39 = vld [vmem:[#allocation2 + $0xb] sm:$0xff] }
 0x15e   : > { %2181 = vmatpush1.bf16.msra.mxu0 %v15024_v52  ;;  %2374 = vmatpush1.bf16.msra.mxu1 %v15027_v53  ;;  %v15089_v52 = vld [vmem:[%s20682_s21 + $0x3ac] ss:$16 sps:$4 sm:$0xff]   ;;  %v1939_v53 = vld [vmem:[#allocation2 + $0x32] sm:$0xff] }
 0x15f   : > { %2182 = vmatprep.subr.bf16.mxu0 %v15032_v55  ;;  %2375 = vmatprep.subr.bf16.mxu1 %v15035_v2  ;;  %v1940_v55 = vld [vmem:[#allocation2 + $0x3a] sm:$0xff] }
 0x160   : > { %1600 = vmatmul.mubr.bf16.gmra.mrb[8].mxu0 %v16778_v16  ;;  %1793 = vmatmul.mubr.bf16.gmra.mrb[8].mxu1 %v16778_v16  ;;  %v15047_v16 = vld [vmem:[%s20682_s21 + $0x2cc] ss:$16 sps:$4 sm:$0xff]   ;;  %v15084_v2 = vld [vmem:[%s20682_s21 + $0x3a0] ss:$16 sps:$4 sm:$0xff]  }
 0x161   : > { %1609 = vmatprep.mubr.bf16.mxu0 %v20639_v0  ;;  %1802 = vmatprep.mubr.bf16.mxu1 %v20639_v0 }
 0x162   : > { %2183 = vmatpush1.bf16.msra.mxu0 %v15030_v56  ;;  %2376 = vmatpush1.bf16.msra.mxu1 %v15033_v57  ;;  %v15087_v56 = vld [vmem:[%s20682_s21 + $0x3a8] ss:$16 sps:$4 sm:$0xff]   ;;  %v15092_v57 = vld [vmem:[%s20682_s21 + $0x3c4] ss:$16 sps:$4 sm:$0xff]  }
 0x163   : > { %2184 = vmatprep.subr.bf16.mxu0 %v15038_v58  ;;  %2377 = vmatprep.subr.bf16.mxu1 %v15041_v46  ;;  %v15095_v58 = vld [vmem:[%s20682_s21 + $0x3cc] ss:$16 sps:$4 sm:$0xff]   ;;  %v1968_v46 = vpack.c.bf16 %v1940_v55, %v1939_v53 }
 0x164   : > { %v15119_v53 = vld [vmem:[%s20682_s21 + $0x44c] ss:$16 sps:$4 sm:$0xff]  }
 0x166   : > { %2185 = vmatpush1.bf16.msra.mxu0 %v15036_v48  ;;  %2378 = vmatpush1.bf16.msra.mxu1 %v15039_v63  ;;  %v15090_v48 = vld [vmem:[%s20682_s21 + $0x3c0] ss:$16 sps:$4 sm:$0xff]   ;;  %v15093_v63 = vld [vmem:[%s20682_s21 + $0x3c8] ss:$16 sps:$4 sm:$0xff]  }
 0x167   : > { %2186 = vmatprep.subr.bf16.mxu0 %v15044_v1  ;;  %2379 = vmatprep.subr.bf16.mxu1 %v15047_v16  ;;  %v15098_v1 = vld [vmem:[%s20682_s21 + $0x3e4] ss:$16 sps:$4 sm:$0xff]   ;;  %v15101_v16 = vld [vmem:[%s20682_s21 + $0x3ec] ss:$16 sps:$4 sm:$0xff]  }
 0x168   : > { %1610 = vmatmul.mubr.bf16.gmra.mrb[12].mxu0 %v16819_v34  ;;  %1803 = vmatmul.mubr.bf16.gmra.mrb[12].mxu1 %v16819_v34  ;;  %v15059_v34 = vld [vmem:[%s20682_s21 + $0x30c] ss:$16 sps:$4 sm:$0xff]  }
 0x169   : > { %1619 = vmatprep.mubr.bf16.mxu0 %v20639_v0  ;;  %1812 = vmatprep.mubr.bf16.mxu1 %v20639_v0 }
 0x16a   : > { %2187 = vmatpush1.bf16.msra.mxu0 %v15042_v4  ;;  %2380 = vmatpush1.bf16.msra.mxu1 %v15045_v5  ;;  %v1941_v4 = vld [vmem:[#allocation2 + $0x42] sm:$0xff]  ;;  %v1942_v5 = vld [vmem:[#allocation2 + $0x4a] sm:$0xff] }
 0x16b   : > { %2188 = vmatprep.subr.bf16.mxu0 %v15050_v10  ;;  %2381 = vmatprep.subr.bf16.mxu1 %v15053_v12  ;;  %v15096_v10 = vld [vmem:[%s20682_s21 + $0x3e0] ss:$16 sps:$4 sm:$0xff]   ;;  %v15099_v12 = vld [vmem:[%s20682_s21 + $0x3e8] ss:$16 sps:$4 sm:$0xff]  }
 0x16e   : > { %2189 = vmatpush1.bf16.msra.mxu0 %v15048_v13  ;;  %2382 = vmatpush1.bf16.msra.mxu1 %v15051_v49  ;;  %v15104_v13 = vld [vmem:[%s20682_s21 + $0x404] ss:$16 sps:$4 sm:$0xff]   ;;  %v15107_v49 = vld [vmem:[%s20682_s21 + $0x40c] ss:$16 sps:$4 sm:$0xff]  }
 0x16f   : > { %2929 = vmatprep.subr.bf16.mxu0 %v15056_v14  ;;  %3122 = vmatprep.subr.bf16.mxu1 %v15059_v34  ;;  %v1969_v14 = vpack.c.bf16 %v1942_v5, %v1941_v4  ;;  %v1943_v34 = vld [vmem:[#allocation2 + $0x52] sm:$0xff]  ;;  %v15131_v4 = vld [vmem:[%s20682_s21 + $0x48c] ss:$16 sps:$4 sm:$0xff]  }
 0x170   : > { %1620 = vmatmul.mubr.bf16.gmra.mrb[16].mxu0 %v16853_v54  ;;  %1813 = vmatmul.mubr.bf16.gmra.mrb[16].mxu1 %v16853_v54  ;;  %v16034_v54 = vld [vmem:[#allocation2 + $0xb0] sm:$0xff] }
 0x171   : > { %1629 = vmatprep.mubr.bf16.mxu0 %v20639_v0  ;;  %1822 = vmatprep.mubr.bf16.mxu1 %v20639_v0 }
 0x178   : > { %1630 = vmatmul.mubr.bf16.gmra.mrb[20].mxu0 %v16872_v3  ;;  %1823 = vmatmul.mubr.bf16.gmra.mrb[20].mxu1 %v16872_v3  ;;  %v16035_v3 = vld [vmem:[#allocation2 + $0xb8] sm:$0xff] }
 0x179   : > { %1639 = vmatprep.mubr.bf16.mxu0 %v20639_v0  ;;  %1832 = vmatprep.mubr.bf16.mxu1 %v20639_v0 }
 0x180   : > { %1640 = vmatmul.mubr.bf16.gmra.mrb[24].mxu0 %v16878_v11  ;;  %1833 = vmatmul.mubr.bf16.gmra.mrb[24].mxu1 %v16878_v11  ;;  %v723_v11 = vpack.c.bf16 %v16035_v3, %v16034_v54  ;;  %v1944_v54 = vld [vmem:[#allocation2 + $0x5a] sm:$0xff] }
 0x181   : > { %1649 = vmatprep.mubr.bf16.mxu0 %v20639_v0  ;;  %1842 = vmatprep.mubr.bf16.mxu1 %v20639_v0  ;;  %v1970_v3 = vpack.c.bf16 %v1944_v54, %v1943_v34  ;;  %v2695_v34 = vld [vmem:[#allocation2 + $0x3b] sm:$0xff] }
 0x182   : > { %v15132_v54 = vld [vmem:[%s20682_s21 + $0x4a0] ss:$16 sps:$4 sm:$0xff]  }
 0x188   : > { %1650 = vmatmul.mubr.bf16.gmra.mrb[28].mxu0 %v16884_v59  ;;  %1843 = vmatmul.mubr.bf16.gmra.mrb[28].mxu1 %v16884_v59  ;;  %v16036_v59 = vld [vmem:[#allocation2 + $0xc0] sm:$0xff] }
 0x189   : > { %1659 = vmatprep.mubr.bf16.mxu0 %v20639_v0  ;;  %1852 = vmatprep.mubr.bf16.mxu1 %v20639_v0  ;;  %v724_v17 = vpack.c.bf16 %v16037_v15, %v16036_v59  ;;  %v1946_v59 = vld [vmem:[#allocation2 + $0x6a] sm:$0xff] }
 0x190   : > { %1660 = vmatmul.mubr.bf16.gmra.mrb[32].mxu0 %v16890_v60  ;;  %1853 = vmatmul.mubr.bf16.gmra.mrb[32].mxu1 %v16890_v60  ;;  %v16038_v60 = vld [vmem:[#allocation2 + $0xd0] sm:$0xff] }
 0x191   : > { %1669 = vmatprep.mubr.bf16.mxu0 %v20639_v0  ;;  %1862 = vmatprep.mubr.bf16.mxu1 %v20639_v0  ;;  %v725_v18 = vpack.c.bf16 %v16039_v61, %v16038_v60  ;;  %v1948_v60 = vld [vmem:[#allocation2 + $0x7a] sm:$0xff] }
 0x198   : > { %1670 = vmatmul.mubr.bf16.gmra.mrb[36].mxu0 %v16896_v6  ;;  %1863 = vmatmul.mubr.bf16.gmra.mrb[36].mxu1 %v16896_v6  ;;  %v16041_v6 = vld [vmem:[#allocation2 + $0xe8] sm:$0xff] }
 0x199   : > { %1679 = vmatprep.mubr.bf16.mxu0 %v20639_v0  ;;  %1872 = vmatprep.mubr.bf16.mxu1 %v20639_v0  ;;  %v726_v22 = vpack.c.bf16 %v16041_v6, %v16040_v62  ;;  %v1950_v62 = vld [vmem:[#allocation2 + $0x8a] sm:$0xff] }
 0x1a0   : > { %1680 = vmatmul.mubr.bf16.gmra.mrb[40].mxu0 %v16902_v7  ;;  %1873 = vmatmul.mubr.bf16.gmra.mrb[40].mxu1 %v16902_v7  ;;  %v727_v7 = vpack.c.bf16 %v16043_v24, %v16042_v23  ;;  %v1952_v23 = vld [vmem:[#allocation2 + $0x9a] sm:$0xff] }
 0x1a1   : > { %1689 = vmatprep.mubr.bf16.mxu0 %v20639_v0  ;;  %1882 = vmatprep.mubr.bf16.mxu1 %v20639_v0 }
 0x1a8   : > { %1690 = vmatmul.mubr.bf16.gmra.mrb[44].mxu0 %v723_v11  ;;  %1883 = vmatmul.mubr.bf16.gmra.mrb[44].mxu1 %v723_v11  ;;  %v1945_v11 = vld [vmem:[#allocation2 + $0x62] sm:$0xff] }
 0x1a9   : > { %1699 = vmatprep.mubr.bf16.mxu0 %v20639_v0  ;;  %1892 = vmatprep.mubr.bf16.mxu1 %v20639_v0  ;;  %v1971_v15 = vpack.c.bf16 %v1946_v59, %v1945_v11  ;;  %v15140_v11 = vld [vmem:[%s20682_s21 + $0x4c4] ss:$16 sps:$4 sm:$0xff]   ;;  %v15143_v59 = vld [vmem:[%s20682_s21 + $0x4cc] ss:$16 sps:$4 sm:$0xff]  }
 0x1b0   : > { %1700 = vmatmul.mubr.bf16.gmra.mrb[48].mxu0 %v724_v17  ;;  %1893 = vmatmul.mubr.bf16.gmra.mrb[48].mxu1 %v724_v17  ;;  %v1947_v17 = vld [vmem:[#allocation2 + $0x72] sm:$0xff] }
 0x1b1   : > { %1709 = vmatprep.mubr.bf16.mxu0 %v20639_v0  ;;  %1902 = vmatprep.mubr.bf16.mxu1 %v20639_v0  ;;  %v1972_v61 = vpack.c.bf16 %v1948_v60, %v1947_v17  ;;  %v15138_v17 = vld [vmem:[%s20682_s21 + $0x4c0] ss:$16 sps:$4 sm:$0xff]   ;;  %v15141_v60 = vld [vmem:[%s20682_s21 + $0x4c8] ss:$16 sps:$4 sm:$0xff]  }
 0x1b8   : > { %1710 = vmatmul.mubr.bf16.gmra.mrb[52].mxu0 %v725_v18  ;;  %1903 = vmatmul.mubr.bf16.gmra.mrb[52].mxu1 %v725_v18  ;;  %v1949_v18 = vld [vmem:[#allocation2 + $0x82] sm:$0xff] }
 0x1b9   : > { %1719 = vmatprep.mubr.bf16.mxu0 %v20639_v0  ;;  %1912 = vmatprep.mubr.bf16.mxu1 %v20639_v0  ;;  %v1973_v6 = vpack.c.bf16 %v1950_v62, %v1949_v18  ;;  %v15149_v18 = vld [vmem:[%s20682_s21 + $0x4ec] ss:$16 sps:$4 sm:$0xff]   ;;  %v2696_v62 = vld [vmem:[#allocation2 + $0x43] sm:$0xff] }
 0x1c0   : > { %1720 = vmatmul.mubr.bf16.gmra.mrb[56].mxu0 %v726_v22  ;;  %1913 = vmatmul.mubr.bf16.gmra.mrb[56].mxu1 %v726_v22  ;;  %v1951_v22 = vld [vmem:[#allocation2 + $0x92] sm:$0xff] }
 0x1c1   : > { %1729 = vmatprep.mubr.bf16.mxu0 %v20639_v0  ;;  %1922 = vmatprep.mubr.bf16.mxu1 %v20639_v0  ;;  %v1974_v24 = vpack.c.bf16 %v1952_v23, %v1951_v22  ;;  %v15144_v22 = vld [vmem:[%s20682_s21 + $0x4e0] ss:$16 sps:$4 sm:$0xff]   ;;  %v15147_v23 = vld [vmem:[%s20682_s21 + $0x4e8] ss:$16 sps:$4 sm:$0xff]  }
 0x1c8   : > { %1730 = vmatmul.mubr.bf16.gmra.mrb[60].mxu0 %v727_v7  ;;  %1923 = vmatmul.mubr.bf16.gmra.mrb[60].mxu1 %v727_v7  ;;  %v1953_v7 = vld [vmem:[#allocation2 + $0xa2] sm:$0xff] }
 0x1c9   : > { %2206 = vmatprep.mubr.bf16.mxu0 %v20639_v0  ;;  %2399 = vmatprep.mubr.bf16.mxu1 %v20639_v0  ;;  %v1975_v25 = vpack.c.bf16 %v1954_v8, %v1953_v7  ;;  %v2698_v7 = vld [vmem:[#allocation2 + $0x53] sm:$0xff]  ;;  %v2699_v8 = vld [vmem:[#allocation2 + $0x5b] sm:$0xff] }
 0x1d0   : > { %2207 = vmatmul.mubr.bf16.vlgmr.msra.gmra.mrb[0].mxu0 %v1965_v26  ;;  %2400 = vmatmul.mubr.bf16.vlgmr.msra.gmra.mrb[0].mxu1 %v1965_v26 }
 0x1d1   : > { %2930 = vmatpush1.bf16.msra.mxu0 %v15054_v9  ;;  %3123 = vmatpush1.bf16.msra.mxu1 %v15057_v19  ;;  %v1955_v9 = vld [vmem:[#allocation2 + $0xb2] sm:$0xff]  ;;  %v1956_v19 = vld [vmem:[#allocation2 + $0xba] sm:$0xff] }
 0x1d2   : > { %2216 = vmatprep.mubr.bf16.mxu0 %v20639_v0  ;;  %2409 = vmatprep.mubr.bf16.mxu1 %v20639_v0  ;;  %v1976_v26 = vpack.c.bf16 %v1956_v19, %v1955_v9  ;;  %v2700_v9 = vld [vmem:[#allocation2 + $0x63] sm:$0xff]  ;;  %v2701_v19 = vld [vmem:[#allocation2 + $0x6b] sm:$0xff] }
 0x1d3   : > { %2931 = vmatprep.subr.bf16.mxu0 %v15062_v27  ;;  %3124 = vmatprep.subr.bf16.mxu1 %v15065_v20  ;;  %v1957_v27 = vld [vmem:[#allocation2 + $0xc2] sm:$0xff]  ;;  %v1958_v20 = vld [vmem:[#allocation2 + $0xca] sm:$0xff] }
 0x1d4   : > { %v1977_v21 = vpack.c.bf16 %v1958_v20, %v1957_v27  ;;  %v2702_v27 = vld [vmem:[#allocation2 + $0x73] sm:$0xff]  ;;  %v2703_v20 = vld [vmem:[#allocation2 + $0x7b] sm:$0xff] }
 0x1d5   : > { %2932 = vmatpush1.bf16.msra.mxu0 %v15060_v29  ;;  %3125 = vmatpush1.bf16.msra.mxu1 %v15063_v30  ;;  %v1960_v29 = vld [vmem:[#allocation2 + $0xda] sm:$0xff] }
 0x1d6   : > { %2933 = vmatprep.subr.bf16.mxu0 %v15068_v31  ;;  %3126 = vmatprep.subr.bf16.mxu1 %v15071_v32  ;;  %v1978_v30 = vpack.c.bf16 %v1960_v29, %v1959_v28  ;;  %v1961_v31 = vld [vmem:[#allocation2 + $0xe2] sm:$0xff]  ;;  %v1962_v32 = vld [vmem:[#allocation2 + $0xea] sm:$0xff] }
 0x1d7   : > { %v2704_v28 = vld [vmem:[#allocation2 + $0x83] sm:$0xff]  ;;  %v2705_v29 = vld [vmem:[#allocation2 + $0x8b] sm:$0xff] }
 0x1d8   : > { %2217 = vmatmul.mubr.bf16.gmra.mrb[4].mxu0 %v1966_v33  ;;  %2410 = vmatmul.mubr.bf16.gmra.mrb[4].mxu1 %v1966_v33  ;;  %v1979_v33 = vpack.c.bf16 %v1962_v32, %v1961_v31  ;;  %v2706_v31 = vld [vmem:[#allocation2 + $0x93] sm:$0xff]  ;;  %v2707_v32 = vld [vmem:[#allocation2 + $0x9b] sm:$0xff] }
 0x1d9   : > { %2226 = vmatprep.mubr.bf16.mxu0 %v20639_v0  ;;  %2419 = vmatprep.mubr.bf16.mxu1 %v20639_v0 }
 0x1da   : > { %2934 = vmatpush1.bf16.msra.mxu0 %v15066_v35  ;;  %3127 = vmatpush1.bf16.msra.mxu1 %v15069_v36  ;;  %v1963_v35 = vld [vmem:[#allocation2 + $0xf2] sm:$0xff]  ;;  %v1964_v36 = vld [vmem:[#allocation2 + $0xfa] sm:$0xff] }
 0x1db   : > { %2935 = vmatprep.subr.bf16.mxu0 %v15074_v37  ;;  %3128 = vmatprep.subr.bf16.mxu1 %v15077_v38  ;;  %v1980_v37 = vpack.c.bf16 %v1964_v36, %v1963_v35  ;;  %v2688_v38 = vld [vmem:[#allocation2 + $0x3] sm:$0xff]  ;;  %v2709_v36 = vld [vmem:[#allocation2 + $0xab] sm:$0xff] }
 0x1dc   : > { %v2720_v40 = vpack.c.bf16 %v2689_v39, %v2688_v38  ;;  %v2708_v35 = vld [vmem:[#allocation2 + $0xa3] sm:$0xff]  ;;  %v2710_v38 = vld [vmem:[#allocation2 + $0xb3] sm:$0xff]  ;;  %v2711_v39 = vld [vmem:[#allocation2 + $0xbb] sm:$0xff] }
 0x1de   : > { %2936 = vmatpush1.bf16.msra.mxu0 %v15072_v41  ;;  %3129 = vmatpush1.bf16.msra.mxu1 %v15075_v42  ;;  %v15102_v41 = vld [vmem:[%s20682_s21 + $0x400] ss:$16 sps:$4 sm:$0xff]   ;;  %v15105_v42 = vld [vmem:[%s20682_s21 + $0x408] ss:$16 sps:$4 sm:$0xff]  }
 0x1df   : > { %2937 = vmatprep.subr.bf16.mxu0 %v15080_v44  ;;  %3130 = vmatprep.subr.bf16.mxu1 %v15083_v43  ;;  %v15110_v44 = vld [vmem:[%s20682_s21 + $0x424] ss:$16 sps:$4 sm:$0xff]   ;;  %v15113_v43 = vld [vmem:[%s20682_s21 + $0x42c] ss:$16 sps:$4 sm:$0xff]  }
 0x1e0   : > { %2227 = vmatmul.mubr.bf16.gmra.mrb[8].mxu0 %v1967_v45  ;;  %2420 = vmatmul.mubr.bf16.gmra.mrb[8].mxu1 %v1967_v45  ;;  %v2690_v45 = vld [vmem:[#allocation2 + $0x13] sm:$0xff] }
 0x1e1   : > { %2236 = vmatprep.mubr.bf16.mxu0 %v20639_v0  ;;  %2429 = vmatprep.mubr.bf16.mxu1 %v20639_v0 }
 0x1e2   : > { %2938 = vmatpush1.bf16.msra.mxu0 %v15078_v47  ;;  %3131 = vmatpush1.bf16.msra.mxu1 %v15081_v50  ;;  %v2691_v47 = vld [vmem:[#allocation2 + $0x1b] sm:$0xff] }
 0x1e3   : > { %2939 = vmatprep.subr.bf16.mxu0 %v15086_v51  ;;  %3132 = vmatprep.subr.bf16.mxu1 %v15089_v52  ;;  %v15108_v50 = vld [vmem:[%s20682_s21 + $0x420] ss:$16 sps:$4 sm:$0xff]   ;;  %v15111_v51 = vld [vmem:[%s20682_s21 + $0x428] ss:$16 sps:$4 sm:$0xff]   ;;  %v15116_v52 = vld [vmem:[%s20682_s21 + $0x444] ss:$16 sps:$4 sm:$0xff]   ;;  %v2721_v55 = vpack.c.bf16 %v2691_v47, %v2690_v45 }
 0x1e4   : > { %v2715_v45 = vld [vmem:[#allocation2 + $0xdb] sm:$0xff] }
 0x1e6   : > { %2940 = vmatpush1.bf16.msra.mxu0 %v15084_v2  ;;  %3133 = vmatpush1.bf16.msra.mxu1 %v15087_v56  ;;  %v15114_v2 = vld [vmem:[%s20682_s21 + $0x440] ss:$16 sps:$4 sm:$0xff]   ;;  %v15117_v56 = vld [vmem:[%s20682_s21 + $0x448] ss:$16 sps:$4 sm:$0xff]  }
 0x1e7   : > { %2941 = vmatprep.subr.bf16.mxu0 %v15092_v57  ;;  %3134 = vmatprep.subr.bf16.mxu1 %v15095_v58  ;;  %v15122_v57 = vld [vmem:[%s20682_s21 + $0x464] ss:$16 sps:$4 sm:$0xff]   ;;  %v15125_v58 = vld [vmem:[%s20682_s21 + $0x46c] ss:$16 sps:$4 sm:$0xff]  }
 0x1e8   : > { %2237 = vmatmul.mubr.bf16.gmra.mrb[12].mxu0 %v1968_v46  ;;  %2430 = vmatmul.mubr.bf16.gmra.mrb[12].mxu1 %v1968_v46  ;;  %v2692_v46 = vld [vmem:[#allocation2 + $0x23] sm:$0xff] }
 0x1e9   : > { %2246 = vmatprep.mubr.bf16.mxu0 %v20639_v0  ;;  %2439 = vmatprep.mubr.bf16.mxu1 %v20639_v0 }
 0x1ea   : > { %2942 = vmatpush1.bf16.msra.mxu0 %v15090_v48  ;;  %3135 = vmatpush1.bf16.msra.mxu1 %v15093_v63  ;;  %v2693_v48 = vld [vmem:[#allocation2 + $0x2b] sm:$0xff] }
 0x1eb   : > { %2943 = vmatprep.subr.bf16.mxu0 %v15098_v1  ;;  %3136 = vmatprep.subr.bf16.mxu1 %v15101_v16  ;;  %v15120_v63 = vld [vmem:[%s20682_s21 + $0x460] ss:$16 sps:$4 sm:$0xff]   ;;  %v15123_v1 = vld [vmem:[%s20682_s21 + $0x468] ss:$16 sps:$4 sm:$0xff]   ;;  %v15128_v16 = vld [vmem:[%s20682_s21 + $0x484] ss:$16 sps:$4 sm:$0xff]   ;;  %v2722_v5 = vpack.c.bf16 %v2693_v48, %v2692_v46 }
 0x1ec   : > { %v3445_v46 = vld [vmem:[#allocation2 + $0x14] sm:$0xff]  ;;  %v3446_v48 = vld [vmem:[#allocation2 + $0x1c] sm:$0xff] }
 0x1ee   : > { %2944 = vmatpush1.bf16.msra.mxu0 %v15096_v10  ;;  %3137 = vmatpush1.bf16.msra.mxu1 %v15099_v12  ;;  %v15126_v10 = vld [vmem:[%s20682_s21 + $0x480] ss:$16 sps:$4 sm:$0xff]   ;;  %v15129_v12 = vld [vmem:[%s20682_s21 + $0x488] ss:$16 sps:$4 sm:$0xff]  }
 0x1ef   : > { %3684 = vmatprep.subr.bf16.mxu0 %v15104_v13  ;;  %3877 = vmatprep.subr.bf16.mxu1 %v15107_v49  ;;  %v15134_v13 = vld [vmem:[%s20682_s21 + $0x4a4] ss:$16 sps:$4 sm:$0xff]   ;;  %v15137_v49 = vld [vmem:[%s20682_s21 + $0x4ac] ss:$16 sps:$4 sm:$0xff]  }
 0x1f0   : > { %2247 = vmatmul.mubr.bf16.gmra.mrb[16].mxu0 %v1969_v14  ;;  %2440 = vmatmul.mubr.bf16.gmra.mrb[16].mxu1 %v1969_v14  ;;  %v2694_v14 = vld [vmem:[#allocation2 + $0x33] sm:$0xff] }
 0x1f1   : > { %2256 = vmatprep.mubr.bf16.mxu0 %v20639_v0  ;;  %2449 = vmatprep.mubr.bf16.mxu1 %v20639_v0 }
 0x1f8   : > { %2257 = vmatmul.mubr.bf16.gmra.mrb[20].mxu0 %v1970_v3  ;;  %2450 = vmatmul.mubr.bf16.gmra.mrb[20].mxu1 %v1970_v3  ;;  %v15135_v3 = vld [vmem:[%s20682_s21 + $0x4a8] ss:$16 sps:$4 sm:$0xff]  }
 0x1f9   : > { %2266 = vmatprep.mubr.bf16.mxu0 %v20639_v0  ;;  %2459 = vmatprep.mubr.bf16.mxu1 %v20639_v0 }
 0x200   : > { %2267 = vmatmul.mubr.bf16.gmra.mrb[24].mxu0 %v1971_v15  ;;  %2460 = vmatmul.mubr.bf16.gmra.mrb[24].mxu1 %v1971_v15  ;;  %v2723_v15 = vpack.c.bf16 %v2695_v34, %v2694_v14  ;;  %v3453_v34 = vld [vmem:[#allocation2 + $0x54] sm:$0xff] }
 0x201   : > { %2276 = vmatprep.mubr.bf16.mxu0 %v20639_v0  ;;  %2469 = vmatprep.mubr.bf16.mxu1 %v20639_v0 }
 0x208   : > { %2277 = vmatmul.mubr.bf16.gmra.mrb[28].mxu0 %v1972_v61  ;;  %2470 = vmatmul.mubr.bf16.gmra.mrb[28].mxu1 %v1972_v61  ;;  %v15146_v61 = vld [vmem:[%s20682_s21 + $0x4e4] ss:$16 sps:$4 sm:$0xff]  }
 0x209   : > { %2286 = vmatprep.mubr.bf16.mxu0 %v20639_v0  ;;  %2479 = vmatprep.mubr.bf16.mxu1 %v20639_v0 }
 0x210   : > { %2287 = vmatmul.mubr.bf16.gmra.mrb[32].mxu0 %v1973_v6  ;;  %2480 = vmatmul.mubr.bf16.gmra.mrb[32].mxu1 %v1973_v6  ;;  %v2697_v6 = vld [vmem:[#allocation2 + $0x4b] sm:$0xff] }
 0x211   : > { %2296 = vmatprep.mubr.bf16.mxu0 %v20639_v0  ;;  %2489 = vmatprep.mubr.bf16.mxu1 %v20639_v0 }
 0x218   : > { %2297 = vmatmul.mubr.bf16.gmra.mrb[36].mxu0 %v1974_v24  ;;  %2490 = vmatmul.mubr.bf16.gmra.mrb[36].mxu1 %v1974_v24  ;;  %v2724_v24 = vpack.c.bf16 %v2697_v6, %v2696_v62  ;;  %v3460_v62 = vld [vmem:[#allocation2 + $0x8c] sm:$0xff] }
 0x219   : > { %2306 = vmatprep.mubr.bf16.mxu0 %v20639_v0  ;;  %2499 = vmatprep.mubr.bf16.mxu1 %v20639_v0 }
 0x220   : > { %2307 = vmatmul.mubr.bf16.gmra.mrb[40].mxu0 %v1975_v25  ;;  %2500 = vmatmul.mubr.bf16.gmra.mrb[40].mxu1 %v1975_v25  ;;  %v2725_v25 = vpack.c.bf16 %v2699_v8, %v2698_v7  ;;  %v3463_v7 = vld [vmem:[#allocation2 + $0xa4] sm:$0xff]  ;;  %v3464_v8 = vld [vmem:[#allocation2 + $0xac] sm:$0xff] }
 0x221   : > { %2316 = vmatprep.mubr.bf16.mxu0 %v20639_v0  ;;  %2509 = vmatprep.mubr.bf16.mxu1 %v20639_v0 }
 0x228   : > { %2317 = vmatmul.mubr.bf16.gmra.mrb[44].mxu0 %v1976_v26  ;;  %2510 = vmatmul.mubr.bf16.gmra.mrb[44].mxu1 %v1976_v26  ;;  %v2726_v26 = vpack.c.bf16 %v2701_v19, %v2700_v9  ;;  %v3465_v9 = vld [vmem:[#allocation2 + $0xb4] sm:$0xff]  ;;  %v3466_v19 = vld [vmem:[#allocation2 + $0xbc] sm:$0xff] }
 0x229   : > { %2326 = vmatprep.mubr.bf16.mxu0 %v20639_v0  ;;  %2519 = vmatprep.mubr.bf16.mxu1 %v20639_v0 }
 0x230   : > { %2327 = vmatmul.mubr.bf16.gmra.mrb[48].mxu0 %v1977_v21  ;;  %2520 = vmatmul.mubr.bf16.gmra.mrb[48].mxu1 %v1977_v21  ;;  %v2727_v21 = vpack.c.bf16 %v2703_v20, %v2702_v27  ;;  %v3467_v27 = vld [vmem:[#allocation2 + $0xc4] sm:$0xff]  ;;  %v3468_v20 = vld [vmem:[#allocation2 + $0xcc] sm:$0xff] }
 0x231   : > { %2336 = vmatprep.mubr.bf16.mxu0 %v20639_v0  ;;  %2529 = vmatprep.mubr.bf16.mxu1 %v20639_v0 }
 0x238   : > { %2337 = vmatmul.mubr.bf16.gmra.mrb[52].mxu0 %v1978_v30  ;;  %2530 = vmatmul.mubr.bf16.gmra.mrb[52].mxu1 %v1978_v30  ;;  %v2728_v30 = vpack.c.bf16 %v2705_v29, %v2704_v28  ;;  %v3469_v28 = vld [vmem:[#allocation2 + $0xd4] sm:$0xff]  ;;  %v3470_v29 = vld [vmem:[#allocation2 + $0xdc] sm:$0xff] }
 0x239   : > { %2346 = vmatprep.mubr.bf16.mxu0 %v20639_v0  ;;  %2539 = vmatprep.mubr.bf16.mxu1 %v20639_v0 }
 0x240   : > { %2347 = vmatmul.mubr.bf16.gmra.mrb[56].mxu0 %v1979_v33  ;;  %2540 = vmatmul.mubr.bf16.gmra.mrb[56].mxu1 %v1979_v33  ;;  %v2729_v33 = vpack.c.bf16 %v2707_v32, %v2706_v31  ;;  %v3471_v31 = vld [vmem:[#allocation2 + $0xe4] sm:$0xff]  ;;  %v3472_v32 = vld [vmem:[#allocation2 + $0xec] sm:$0xff] }
 0x241   : > { %2356 = vmatprep.mubr.bf16.mxu0 %v20639_v0  ;;  %2549 = vmatprep.mubr.bf16.mxu1 %v20639_v0 }
 0x248   : > { %2357 = vmatmul.mubr.bf16.gmra.mrb[60].mxu0 %v1980_v37  ;;  %2550 = vmatmul.mubr.bf16.gmra.mrb[60].mxu1 %v1980_v37  ;;  %v2730_v37 = vpack.c.bf16 %v2709_v36, %v2708_v35  ;;  %v3473_v35 = vld [vmem:[#allocation2 + $0xf4] sm:$0xff]  ;;  %v3474_v36 = vld [vmem:[#allocation2 + $0xfc] sm:$0xff] }
 0x249   : > { %2961 = vmatprep.mubr.bf16.mxu0 %v20639_v0  ;;  %3154 = vmatprep.mubr.bf16.mxu1 %v20639_v0 }
 0x250   : > { %2962 = vmatmul.mubr.bf16.vlgmr.msra.gmra.mrb[0].mxu0 %v2720_v40  ;;  %3155 = vmatmul.mubr.bf16.vlgmr.msra.gmra.mrb[0].mxu1 %v2720_v40  ;;  %v2731_v40 = vpack.c.bf16 %v2711_v39, %v2710_v38  ;;  %v4200_v38 = vlaneseq }
 0x251   : > { %3685 = vmatpush1.bf16.msra.mxu0 %v15102_v41  ;;  %3878 = vmatpush1.bf16.msra.mxu1 %v15105_v42  ;;  %v2712_v41 = vld [vmem:[#allocation2 + $0xc3] sm:$0xff]  ;;  %v2713_v42 = vld [vmem:[#allocation2 + $0xcb] sm:$0xff] }
 0x252   : > { %2971 = vmatprep.mubr.bf16.mxu0 %v20639_v0  ;;  %3164 = vmatprep.mubr.bf16.mxu1 %v20639_v0  ;;  %v4201_v39 = vshrl.u32 %v4200_v38, 7 }
 0x253   : > { %3686 = vmatprep.subr.bf16.mxu0 %v15110_v44  ;;  %3879 = vmatprep.subr.bf16.mxu1 %v15113_v43  ;;  %v2732_v44 = vpack.c.bf16 %v2713_v42, %v2712_v41  ;;  %v2714_v43 = vld [vmem:[#allocation2 + $0xd3] sm:$0xff]  ;;  %v4198_v42 = vld [vmem:[%s20609_s2] sm:$0xf] }
 0x254   : > { %v2733_v47 = vpack.c.bf16 %v2715_v45, %v2714_v43  ;;  %v17348_v41 = vsub.s32 2, %v4201_v39  ;;  %v17355_v43 = vsub.s32 3, %v4201_v39 }
 0x255   : > { %3687 = vmatpush1.bf16.msra.mxu0 %v15108_v50  ;;  %3880 = vmatpush1.bf16.msra.mxu1 %v15111_v51  ;;  %v2716_v50 = vld [vmem:[#allocation2 + $0xe3] sm:$0xff]  ;;  %v2717_v51 = vld [vmem:[#allocation2 + $0xeb] sm:$0xff] }
 0x256   : > { %3688 = vmatprep.subr.bf16.mxu0 %v15116_v52  ;;  %3881 = vmatprep.subr.bf16.mxu1 %v15119_v53  ;;  %v2734_v52 = vpack.c.bf16 %v2717_v51, %v2716_v50  ;;  %v2718_v53 = vld [vmem:[#allocation2 + $0xf3] sm:$0xff]  ;;  %20685 = vst [vmem:[#allocation28_spill] sm:$0xff] %v17348_v41  ;;  %20687 = vst [vmem:[#allocation30_spill] sm:$0xff] %v17355_v43  ;;  %v17367_v51 = vrot.slane %v4198_v42, %v17355_v43 }
 0x258   : > { %2972 = vmatmul.mubr.bf16.gmra.mrb[4].mxu0 %v2721_v55  ;;  %3165 = vmatmul.mubr.bf16.gmra.mrb[4].mxu1 %v2721_v55  ;;  %v2719_v55 = vld [vmem:[#allocation2 + $0xfb] sm:$0xff] }
 0x259   : > { %2981 = vmatprep.mubr.bf16.mxu0 %v20639_v0  ;;  %3174 = vmatprep.mubr.bf16.mxu1 %v20639_v0 }
 0x25a   : > { %3689 = vmatpush1.bf16.msra.mxu0 %v15114_v2  ;;  %3882 = vmatpush1.bf16.msra.mxu1 %v15117_v56  ;;  %v2735_v2 = vpack.c.bf16 %v2719_v55, %v2718_v53  ;;  %v3443_v56 = vld [vmem:[#allocation2 + $0x4] sm:$0xff] }
 0x25b   : > { %3690 = vmatprep.subr.bf16.mxu0 %v15122_v57  ;;  %3883 = vmatprep.subr.bf16.mxu1 %v15125_v58  ;;  %v3444_v57 = vld [vmem:[#allocation2 + $0xc] sm:$0xff] }
 0x25c   : > { %v3475_v58 = vpack.c.bf16 %v3444_v57, %v3443_v56 }
 0x25e   : > { %3691 = vmatpush1.bf16.msra.mxu0 %v15120_v63  ;;  %3884 = vmatpush1.bf16.msra.mxu1 %v15123_v1  ;;  %v3476_v63 = vpack.c.bf16 %v3446_v48, %v3445_v46  ;;  %v3447_v1 = vld [vmem:[#allocation2 + $0x24] sm:$0xff] }
 0x25f   : > { %3692 = vmatprep.subr.bf16.mxu0 %v15128_v16  ;;  %3885 = vmatprep.subr.bf16.mxu1 %v15131_v4  ;;  %v3448_v16 = vld [vmem:[#allocation2 + $0x2c] sm:$0xff] }
 0x260   : > { %2982 = vmatmul.mubr.bf16.gmra.mrb[8].mxu0 %v2722_v5  ;;  %3175 = vmatmul.mubr.bf16.gmra.mrb[8].mxu1 %v2722_v5  ;;  %v3477_v4 = vpack.c.bf16 %v3448_v16, %v3447_v1  ;;  %v3449_v5 = vld [vmem:[#allocation2 + $0x34] sm:$0xff] }
 0x261   : > { %2991 = vmatprep.mubr.bf16.mxu0 %v20639_v0  ;;  %3184 = vmatprep.mubr.bf16.mxu1 %v20639_v0 }
 0x262   : > { %3693 = vmatpush1.bf16.msra.mxu0 %v15126_v10  ;;  %3886 = vmatpush1.bf16.msra.mxu1 %v15129_v12  ;;  %v3450_v10 = vld [vmem:[#allocation2 + $0x3c] sm:$0xff] }
 0x263   : > { %3694 = vmatprep.subr.bf16.mxu0 %v15134_v13  ;;  %3887 = vmatprep.subr.bf16.mxu1 %v15137_v49  ;;  %v3478_v12 = vpack.c.bf16 %v3450_v10, %v3449_v5  ;;  %v3451_v13 = vld [vmem:[#allocation2 + $0x44] sm:$0xff]  ;;  %v3452_v49 = vld [vmem:[#allocation2 + $0x4c] sm:$0xff] }
 0x264   : > { %v3479_v14 = vpack.c.bf16 %v3452_v49, %v3451_v13 }
 0x266   : > { %3695 = vmatpush1.bf16.msra.mxu0 %v15132_v54  ;;  %3888 = vmatpush1.bf16.msra.mxu1 %v15135_v3  ;;  %v3454_v54 = vld [vmem:[#allocation2 + $0x5c] sm:$0xff] }
 0x267   : > { %3696 = vmatprep.subr.bf16.mxu0 %v15140_v11  ;;  %3889 = vmatprep.subr.bf16.mxu1 %v15143_v59  ;;  %v3480_v3 = vpack.c.bf16 %v3454_v54, %v3453_v34  ;;  %v3455_v11 = vld [vmem:[#allocation2 + $0x64] sm:$0xff]  ;;  %v3456_v59 = vld [vmem:[#allocation2 + $0x6c] sm:$0xff] }
 0x268   : > { %2992 = vmatmul.mubr.bf16.gmra.mrb[12].mxu0 %v2723_v15  ;;  %3185 = vmatmul.mubr.bf16.gmra.mrb[12].mxu1 %v2723_v15  ;;  %v3481_v15 = vpack.c.bf16 %v3456_v59, %v3455_v11 }
 0x269   : > { %3001 = vmatprep.mubr.bf16.mxu0 %v20639_v0  ;;  %3194 = vmatprep.mubr.bf16.mxu1 %v20639_v0 }
 0x26a   : > { %3697 = vmatpush1.bf16.msra.mxu0 %v15138_v17  ;;  %3890 = vmatpush1.bf16.msra.mxu1 %v15141_v60  ;;  %v3457_v17 = vld [vmem:[#allocation2 + $0x74] sm:$0xff]  ;;  %v3458_v60 = vld [vmem:[#allocation2 + $0x7c] sm:$0xff] }
 0x26b   : > { %3698 = vmatprep.subr.bf16.mxu0 %v15146_v61  ;;  %3891 = vmatprep.subr.bf16.mxu1 %v15149_v18  ;;  %v3482_v61 = vpack.c.bf16 %v3458_v60, %v3457_v17  ;;  %v3459_v18 = vld [vmem:[#allocation2 + $0x84] sm:$0xff] }
 0x26c   : > { %v3483_v6 = vpack.c.bf16 %v3460_v62, %v3459_v18 }
 0x26e   : > { %3699 = vmatpush1.bf16.msra.mxu0 %v15144_v22  ;;  %3892 = vmatpush1.bf16.msra.mxu1 %v15147_v23  ;;  %v3461_v22 = vld [vmem:[#allocation2 + $0x94] sm:$0xff]  ;;  %v3462_v23 = vld [vmem:[#allocation2 + $0x9c] sm:$0xff] }
 0x270   : > { %3002 = vmatmul.mubr.bf16.gmra.mrb[16].mxu0 %v2724_v24  ;;  %3195 = vmatmul.mubr.bf16.gmra.mrb[16].mxu1 %v2724_v24  ;;  %v3484_v24 = vpack.c.bf16 %v3462_v23, %v3461_v22 }
 0x271   : > { %3011 = vmatprep.mubr.bf16.mxu0 %v20639_v0  ;;  %3204 = vmatprep.mubr.bf16.mxu1 %v20639_v0 }
 0x278   : > { %3012 = vmatmul.mubr.bf16.gmra.mrb[20].mxu0 %v2725_v25  ;;  %3205 = vmatmul.mubr.bf16.gmra.mrb[20].mxu1 %v2725_v25  ;;  %v3485_v25 = vpack.c.bf16 %v3464_v8, %v3463_v7 }
 0x279   : > { %3021 = vmatprep.mubr.bf16.mxu0 %v20639_v0  ;;  %3214 = vmatprep.mubr.bf16.mxu1 %v20639_v0 }
 0x280   : > { %3022 = vmatmul.mubr.bf16.gmra.mrb[24].mxu0 %v2726_v26  ;;  %3215 = vmatmul.mubr.bf16.gmra.mrb[24].mxu1 %v2726_v26  ;;  %v3486_v26 = vpack.c.bf16 %v3466_v19, %v3465_v9 }
 0x281   : > { %3031 = vmatprep.mubr.bf16.mxu0 %v20639_v0  ;;  %3224 = vmatprep.mubr.bf16.mxu1 %v20639_v0 }
 0x288   : > { %3032 = vmatmul.mubr.bf16.gmra.mrb[28].mxu0 %v2727_v21  ;;  %3225 = vmatmul.mubr.bf16.gmra.mrb[28].mxu1 %v2727_v21  ;;  %v3487_v21 = vpack.c.bf16 %v3468_v20, %v3467_v27 }
 0x289   : > { %3041 = vmatprep.mubr.bf16.mxu0 %v20639_v0  ;;  %3234 = vmatprep.mubr.bf16.mxu1 %v20639_v0 }
 0x290   : > { %3042 = vmatmul.mubr.bf16.gmra.mrb[32].mxu0 %v2728_v30  ;;  %3235 = vmatmul.mubr.bf16.gmra.mrb[32].mxu1 %v2728_v30  ;;  %v3488_v30 = vpack.c.bf16 %v3470_v29, %v3469_v28 }
 0x291   : > { %3051 = vmatprep.mubr.bf16.mxu0 %v20639_v0  ;;  %3244 = vmatprep.mubr.bf16.mxu1 %v20639_v0 }
 0x298   : > { %3052 = vmatmul.mubr.bf16.gmra.mrb[36].mxu0 %v2729_v33  ;;  %3245 = vmatmul.mubr.bf16.gmra.mrb[36].mxu1 %v2729_v33  ;;  %v3489_v33 = vpack.c.bf16 %v3472_v32, %v3471_v31 }
 0x299   : > { %3061 = vmatprep.mubr.bf16.mxu0 %v20639_v0  ;;  %3254 = vmatprep.mubr.bf16.mxu1 %v20639_v0 }
 0x2a0   : > { %3062 = vmatmul.mubr.bf16.gmra.mrb[40].mxu0 %v2730_v37  ;;  %3255 = vmatmul.mubr.bf16.gmra.mrb[40].mxu1 %v2730_v37  ;;  %v3490_v37 = vpack.c.bf16 %v3474_v36, %v3473_v35 }
 0x2a1   : > { %3071 = vmatprep.mubr.bf16.mxu0 %v20639_v0  ;;  %3264 = vmatprep.mubr.bf16.mxu1 %v20639_v0 }
 0x2a8   : > { %3072 = vmatmul.mubr.bf16.gmra.mrb[44].mxu0 %v2731_v40  ;;  %3265 = vmatmul.mubr.bf16.gmra.mrb[44].mxu1 %v2731_v40  ;;  %v17346_v40 = vsub.s32 0, %v4201_v39 }
 0x2a9   : > { %3081 = vmatprep.mubr.bf16.mxu0 %v20639_v0  ;;  %3274 = vmatprep.mubr.bf16.mxu1 %v20639_v0 }
 0x2aa   : > { %20684 = vst [vmem:[#allocation27_spill] sm:$0xff] %v17346_v40  ;;  %v17358_v45 = vrot.slane %v4198_v42, %v17346_v40 }
 0x2b0   : > { %3082 = vmatmul.mubr.bf16.gmra.mrb[48].mxu0 %v2732_v44  ;;  %3275 = vmatmul.mubr.bf16.gmra.mrb[48].mxu1 %v2732_v44  ;;  %v17353_v44 = vsub.s32 1, %v4201_v39 }
 0x2b1   : > { %3091 = vmatprep.mubr.bf16.mxu0 %v20639_v0  ;;  %3284 = vmatprep.mubr.bf16.mxu1 %v20639_v0 }
 0x2b2   : > { %20686 = vst [vmem:[#allocation29_spill] sm:$0xff] %v17353_v44  ;;  %v17364_v50 = vrot.slane %v4198_v42, %v17353_v44 }
 0x2b8   : > { %3092 = vmatmul.mubr.bf16.gmra.mrb[52].mxu0 %v2733_v47  ;;  %3285 = vmatmul.mubr.bf16.gmra.mrb[52].mxu1 %v2733_v47  ;;  %v17361_v47 = vrot.slane %v4198_v42, %v17348_v41 }
 0x2b9   : > { %3101 = vmatprep.mubr.bf16.mxu0 %v20639_v0  ;;  %3294 = vmatprep.mubr.bf16.mxu1 %v20639_v0 }
 0x2c0   : > { %3102 = vmatmul.mubr.bf16.gmra.mrb[56].mxu0 %v2734_v52  ;;  %3295 = vmatmul.mubr.bf16.gmra.mrb[56].mxu1 %v2734_v52 }
 0x2c1   : > { %3111 = vmatprep.mubr.bf16.mxu0 %v20639_v0  ;;  %3304 = vmatprep.mubr.bf16.mxu1 %v20639_v0 }
 0x2c8   : > { %3112 = vmatmul.mubr.bf16.gmra.mrb[60].mxu0 %v2735_v2  ;;  %3305 = vmatmul.mubr.bf16.gmra.mrb[60].mxu1 %v2735_v2 }
 0x2c9   : > { %3716 = vmatprep.mubr.bf16.mxu0 %v20639_v0  ;;  %3909 = vmatprep.mubr.bf16.mxu1 %v20639_v0 }
 0x2d0   : > { %3717 = vmatmul.mubr.bf16.vlgmr.msra.gmra.mrb[0].mxu0 %v3475_v58  ;;  %3910 = vmatmul.mubr.bf16.vlgmr.msra.gmra.mrb[0].mxu1 %v3475_v58 }
 0x2d1   : > { %3726 = vmatprep.mubr.bf16.mxu0 %v20639_v0  ;;  %3919 = vmatprep.mubr.bf16.mxu1 %v20639_v0 }
 0x2d8   : > { %3727 = vmatmul.mubr.bf16.gmra.mrb[4].mxu0 %v3476_v63  ;;  %3920 = vmatmul.mubr.bf16.gmra.mrb[4].mxu1 %v3476_v63 }
 0x2d9   : > { %3736 = vmatprep.mubr.bf16.mxu0 %v20639_v0  ;;  %3929 = vmatprep.mubr.bf16.mxu1 %v20639_v0 }
 0x2e0   : > { %3737 = vmatmul.mubr.bf16.gmra.mrb[8].mxu0 %v3477_v4  ;;  %3930 = vmatmul.mubr.bf16.gmra.mrb[8].mxu1 %v3477_v4 }
 0x2e1   : > { %3746 = vmatprep.mubr.bf16.mxu0 %v20639_v0  ;;  %3939 = vmatprep.mubr.bf16.mxu1 %v20639_v0 }
 0x2e8   : > { %3747 = vmatmul.mubr.bf16.gmra.mrb[12].mxu0 %v3478_v12  ;;  %3940 = vmatmul.mubr.bf16.gmra.mrb[12].mxu1 %v3478_v12 }
 0x2e9   : > { %3756 = vmatprep.mubr.bf16.mxu0 %v20639_v0  ;;  %3949 = vmatprep.mubr.bf16.mxu1 %v20639_v0 }
 0x2f0   : > { %3757 = vmatmul.mubr.bf16.gmra.mrb[16].mxu0 %v3479_v14  ;;  %3950 = vmatmul.mubr.bf16.gmra.mrb[16].mxu1 %v3479_v14 }
 0x2f1   : > { %3766 = vmatprep.mubr.bf16.mxu0 %v20639_v0  ;;  %3959 = vmatprep.mubr.bf16.mxu1 %v20639_v0 }
 0x2f8   : > { %3767 = vmatmul.mubr.bf16.gmra.mrb[20].mxu0 %v3480_v3  ;;  %3960 = vmatmul.mubr.bf16.gmra.mrb[20].mxu1 %v3480_v3 }
 0x2f9   : > { %3776 = vmatprep.mubr.bf16.mxu0 %v20639_v0  ;;  %3969 = vmatprep.mubr.bf16.mxu1 %v20639_v0 }
 0x300   : > { %3777 = vmatmul.mubr.bf16.gmra.mrb[24].mxu0 %v3481_v15  ;;  %3970 = vmatmul.mubr.bf16.gmra.mrb[24].mxu1 %v3481_v15 }
 0x301   : > { %3786 = vmatprep.mubr.bf16.mxu0 %v20639_v0  ;;  %3979 = vmatprep.mubr.bf16.mxu1 %v20639_v0 }
 0x308   : > { %3787 = vmatmul.mubr.bf16.gmra.mrb[28].mxu0 %v3482_v61  ;;  %3980 = vmatmul.mubr.bf16.gmra.mrb[28].mxu1 %v3482_v61 }
 0x309   : > { %3796 = vmatprep.mubr.bf16.mxu0 %v20639_v0  ;;  %3989 = vmatprep.mubr.bf16.mxu1 %v20639_v0 }
 0x310   : > { %3797 = vmatmul.mubr.bf16.gmra.mrb[32].mxu0 %v3483_v6  ;;  %3990 = vmatmul.mubr.bf16.gmra.mrb[32].mxu1 %v3483_v6 }
 0x311   : > { %3806 = vmatprep.mubr.bf16.mxu0 %v20639_v0  ;;  %3999 = vmatprep.mubr.bf16.mxu1 %v20639_v0 }
 0x318   : > { %3807 = vmatmul.mubr.bf16.gmra.mrb[36].mxu0 %v3484_v24  ;;  %4000 = vmatmul.mubr.bf16.gmra.mrb[36].mxu1 %v3484_v24 }
 0x319   : > { %3816 = vmatprep.mubr.bf16.mxu0 %v20639_v0  ;;  %4009 = vmatprep.mubr.bf16.mxu1 %v20639_v0 }
 0x320   : > { %3817 = vmatmul.mubr.bf16.gmra.mrb[40].mxu0 %v3485_v25  ;;  %4010 = vmatmul.mubr.bf16.gmra.mrb[40].mxu1 %v3485_v25 }
 0x321   : > { %3826 = vmatprep.mubr.bf16.mxu0 %v20639_v0  ;;  %4019 = vmatprep.mubr.bf16.mxu1 %v20639_v0 }
 0x328   : > { %3827 = vmatmul.mubr.bf16.gmra.mrb[44].mxu0 %v3486_v26  ;;  %4020 = vmatmul.mubr.bf16.gmra.mrb[44].mxu1 %v3486_v26 }
 0x329   : > { %3836 = vmatprep.mubr.bf16.mxu0 %v20639_v0  ;;  %4029 = vmatprep.mubr.bf16.mxu1 %v20639_v0 }
 0x330   : > { %3837 = vmatmul.mubr.bf16.gmra.mrb[48].mxu0 %v3487_v21  ;;  %4030 = vmatmul.mubr.bf16.gmra.mrb[48].mxu1 %v3487_v21 }
 0x331   : > { %3846 = vmatprep.mubr.bf16.mxu0 %v20639_v0  ;;  %4039 = vmatprep.mubr.bf16.mxu1 %v20639_v0 }
 0x338   : > { %3847 = vmatmul.mubr.bf16.gmra.mrb[52].mxu0 %v3488_v30  ;;  %4040 = vmatmul.mubr.bf16.gmra.mrb[52].mxu1 %v3488_v30 }
 0x339   : > { %3856 = vmatprep.mubr.bf16.mxu0 %v20639_v0  ;;  %4049 = vmatprep.mubr.bf16.mxu1 %v20639_v0 }
 0x340   : > { %3857 = vmatmul.mubr.bf16.gmra.mrb[56].mxu0 %v3489_v33  ;;  %4050 = vmatmul.mubr.bf16.gmra.mrb[56].mxu1 %v3489_v33 }
 0x341   : > { %3866 = vmatprep.mubr.bf16.mxu0 %v20639_v0  ;;  %4059 = vmatprep.mubr.bf16.mxu1 %v20639_v0  ;;  %v15345_v0 = vld [vmem:[%s20610_s3 + $0x108] ss:$16 sps:$4 sm:$0xff]  }
 0x348   : > { %3867 = vmatmul.mubr.bf16.gmra.mrb[60].mxu0 %v3490_v37  ;;  %4060 = vmatmul.mubr.bf16.gmra.mrb[60].mxu1 %v3490_v37 }
 0x3a3   : > { %v3718_v52 = vpop.f32.mrb[0].mxu0  ;;  %v3911_v53 = vpop.f32.mrb[0].mxu1 }
 0x3a4   : > { %v4220_v55 = vadd.f32 %v17358_v45, %v3718_v52  ;;  %v4222_v2 = vadd.f32 %v17361_v47, %v3911_v53  ;;  %v3720_v56 = vpop.f32.mrb[1].mxu0  ;;  %v3913_v57 = vpop.f32.mrb[1].mxu1 }
 0x3a5   : > { %v4221_v58 = vadd.f32 %v17364_v50, %v3720_v56  ;;  %v4223_v46 = vadd.f32 %v17367_v51, %v3913_v57  ;;  %v3722_v48 = vpop.f32.mrb[2].mxu0  ;;  %v3915_v63 = vpop.f32.mrb[2].mxu1 }
 0x3a6   : > { %vm4348_vm0 = vcmp.gt.f32.partialorder %v4220_v55, 0.0  ;;  %v4476_v1 = vmul.f32 0.01, %v4220_v55  ;;  %vm4350_vm1 = vcmp.gt.f32.partialorder %v4222_v2, 0.0  ;;  %v4478_v16 = vmul.f32 0.01, %v4222_v2 }
 0x3a7   : > { %vm4349_vm2 = vcmp.gt.f32.partialorder %v4221_v58, 0.0  ;;  %v4477_v4 = vmul.f32 0.01, %v4221_v58  ;;  %vm4351_vm3 = vcmp.gt.f32.partialorder %v4223_v46, 0.0  ;;  %v4479_v5 = vmul.f32 0.01, %v4223_v46 }
 0x3a8   : > { %v17373_v10 = vsel %vm4348_vm0, %v4220_v55, %v4476_v1  ;;  %v17375_v12 = vsel %vm4350_vm1, %v4222_v2, %v4478_v16  ;;  %v4224_v13 = vadd.f32 %v17358_v45, %v3722_v48  ;;  %v4226_v49 = vadd.f32 %v17361_v47, %v3915_v63  ;;  %v3724_v14 = vpop.f32.mrb[3].mxu0  ;;  %v3917_v34 = vpop.f32.mrb[3].mxu1 }
 0x3a9   : > { %v4732_v54 = vmax.f32 %v17373_v10, %v17375_v12  ;;  %v17381_v3 = vsel %vm4349_vm2, %v4221_v58, %v4477_v4  ;;  %v17383_v11 = vsel %vm4351_vm3, %v4223_v46, %v4479_v5  ;;  %v4225_v59 = vadd.f32 %v17364_v50, %v3724_v14 }
 0x3aa   : > { %vm4352_vm4 = vcmp.gt.f32.partialorder %v4224_v13, 0.0  ;;  %v4480_v15 = vmul.f32 0.01, %v4224_v13  ;;  %vm4354_vm5 = vcmp.gt.f32.partialorder %v4226_v49, 0.0  ;;  %v4482_v17 = vmul.f32 0.01, %v4226_v49 }
 0x3ab   : > { %vm4353_vm6 = vcmp.gt.f32.partialorder %v4225_v59, 0.0  ;;  %v4481_v60 = vmul.f32 0.01, %v4225_v59  ;;  %v4227_v61 = vadd.f32 %v17367_v51, %v3917_v34  ;;  %v3728_v18 = vpop.f32.mrb[4].mxu0  ;;  %v3921_v62 = vpop.f32.mrb[4].mxu1  ;;  %v4733_v6 = vmax.f32 %v17381_v3, %v17383_v11 }
 0x3ac   : > { %v4608_v22 = vsel %vm4352_vm4, %v4224_v13, %v4480_v15  ;;  %v4610_v23 = vsel %vm4354_vm5, %v4226_v49, %v4482_v17  ;;  %v4228_v24 = vadd.f32 %v17358_v45, %v3728_v18  ;;  %v4230_v7 = vadd.f32 %v17361_v47, %v3921_v62  ;;  %v3730_v8 = vpop.f32.mrb[5].mxu0  ;;  %v3923_v25 = vpop.f32.mrb[5].mxu1 }
 0x3ad   : > { %v4734_v9 = vmax.f32 %v4608_v22, %v4610_v23  ;;  %v4609_v19 = vsel %vm4353_vm6, %v4225_v59, %v4481_v60  ;;  %vm4355_vm7 = vcmp.gt.f32.partialorder %v4227_v61, 0.0  ;;  %v4483_v26 = vmul.f32 0.01, %v4227_v61  ;;  %v3732_v27 = vpop.f32.mrb[6].mxu0  ;;  %v3925_v20 = vpop.f32.mrb[6].mxu1 }
 0x3ae   : > { %vm4356_vm8 = vcmp.gt.f32.partialorder %v4228_v24, 0.0  ;;  %v4484_v21 = vmul.f32 0.01, %v4228_v24  ;;  %vm4358_vm9 = vcmp.gt.f32.partialorder %v4230_v7, 0.0  ;;  %v4486_v28 = vmul.f32 0.01, %v4230_v7 }
 0x3af   : > { %v4611_v29 = vsel %vm4355_vm7, %v4227_v61, %v4483_v26  ;;  %v4229_v30 = vadd.f32 %v17364_v50, %v3730_v8  ;;  %v4231_v31 = vadd.f32 %v17367_v51, %v3923_v25  ;;  %v4232_v32 = vadd.f32 %v17358_v45, %v3732_v27  ;;  %v3734_v33 = vpop.f32.mrb[7].mxu0  ;;  %v3927_v35 = vpop.f32.mrb[7].mxu1 }
 0x3b0   : > { %v17394_v36 = vsel %vm4356_vm8, %v4228_v24, %v4484_v21  ;;  %v17396_v37 = vsel %vm4358_vm9, %v4230_v7, %v4486_v28  ;;  %v4234_v38 = vadd.f32 %v17361_v47, %v3925_v20  ;;  %v4233_v39 = vadd.f32 %v17364_v50, %v3734_v33 }
 0x3b1   : > { %v4736_v42 = vmax.f32 %v17394_v36, %v17396_v37  ;;  %vm4357_vm10 = vcmp.gt.f32.partialorder %v4229_v30, 0.0  ;;  %v4485_v52 = vmul.f32 0.01, %v4229_v30  ;;  %vm4359_vm11 = vcmp.gt.f32.partialorder %v4231_v31, 0.0 }
 0x3b2   : > { %v4487_v53 = vmul.f32 0.01, %v4231_v31  ;;  %vm4360_vm12 = vcmp.gt.f32.partialorder %v4232_v32, 0.0  ;;  %v4488_v55 = vmul.f32 0.01, %v4232_v32  ;;  %vm4362_vm13 = vcmp.gt.f32.partialorder %v4234_v38, 0.0 }
 0x3b3   : > { %v17402_v2 = vsel %vm4357_vm10, %v4229_v30, %v4485_v52  ;;  %v4490_v56 = vmul.f32 0.01, %v4234_v38  ;;  %vm4361_vm14 = vcmp.gt.f32.partialorder %v4233_v39, 0.0  ;;  %v4489_v57 = vmul.f32 0.01, %v4233_v39  ;;  %v3738_v58 = vpop.f32.mrb[8].mxu0 }
 0x3b4   : > { %v17404_v46 = vsel %vm4359_vm11, %v4231_v31, %v4487_v53  ;;  %v17406_v48 = vsel %vm4360_vm12, %v4232_v32, %v4488_v55  ;;  %v4235_v63 = vadd.f32 %v17367_v51, %v3927_v35  ;;  %v4735_v1 = vmax.f32 %v4609_v19, %v4611_v29  ;;  %v3931_v16 = vpop.f32.mrb[8].mxu1  ;;  %v3740_v4 = vpop.f32.mrb[9].mxu0 }
 0x3b5   : > { %v4618_v5 = vsel %vm4362_vm13, %v4234_v38, %v4490_v56  ;;  %v17409_v10 = vsel %vm4361_vm14, %v4233_v39, %v4489_v57  ;;  %v4796_v12 = vpack.c.bf16 %v4734_v9, %v4732_v54  ;;  %v4236_v13 = vadd.f32 %v17358_v45, %v3738_v58  ;;  %v3933_v49 = vpop.f32.mrb[9].mxu1  ;;  %v3742_v14 = vpop.f32.mrb[10].mxu0 }
 0x3b6   : > { %v4738_v34 = vmax.f32 %v17406_v48, %v4618_v5  ;;  %vm4363_vm15 = vcmp.gt.f32.partialorder %v4235_v63, 0.0  ;;  %v4491_v3 = vmul.f32 0.01, %v4235_v63  ;;  %v4797_v11 = vpack.c.bf16 %v4735_v1, %v4733_v6  ;;  %v3935_v59 = vpop.f32.mrb[10].mxu1  ;;  %v3744_v15 = vpop.f32.mrb[11].mxu0 }
 0x3b7   : > { %vm4364_vm0 = vcmp.gt.f32.partialorder %v4236_v13, 0.0  ;;  %v4492_v17 = vmul.f32 0.01, %v4236_v13  ;;  %v4238_v60 = vadd.f32 %v17361_v47, %v3931_v16  ;;  %v4237_v61 = vadd.f32 %v17364_v50, %v3740_v4  ;;  %v3937_v18 = vpop.f32.mrb[11].mxu1 }
 0x3b8   : > { %v4619_v62 = vsel %vm4363_vm15, %v4235_v63, %v4491_v3  ;;  %4924 = vmatprep.subr.bf16.mxu0 %v4797_v11  ;;  %5133 = vmatprep.subr.bf16.mxu1 %v4797_v11  ;;  %v4239_v54 = vadd.f32 %v17367_v51, %v3933_v49  ;;  %v4240_v22 = vadd.f32 %v17358_v45, %v3742_v14 }
 0x3b9   : > { %4925 = vmatpush1.bf16.msra.mxu0 %v4796_v12  ;;  %5134 = vmatpush1.bf16.msra.mxu1 %v4796_v12  ;;  %v17417_v23 = vsel %vm4364_vm0, %v4236_v13, %v4492_v17  ;;  %vm4366_vm1 = vcmp.gt.f32.partialorder %v4238_v60, 0.0  ;;  %v4494_v6 = vmul.f32 0.01, %v4238_v60  ;;  %vm4365_vm2 = vcmp.gt.f32.partialorder %v4237_v61, 0.0 }
 0x3ba   : > { %v4493_v24 = vmul.f32 0.01, %v4237_v61  ;;  %vm4367_vm3 = vcmp.gt.f32.partialorder %v4239_v54, 0.0  ;;  %v4495_v7 = vmul.f32 0.01, %v4239_v54  ;;  %vm4368_vm4 = vcmp.gt.f32.partialorder %v4240_v22, 0.0 }
 0x3bb   : > { %v17419_v8 = vsel %vm4366_vm1, %v4238_v60, %v4494_v6  ;;  %v4496_v25 = vmul.f32 0.01, %v4240_v22  ;;  %v4242_v9 = vadd.f32 %v17361_v47, %v3935_v59  ;;  %v4241_v19 = vadd.f32 %v17364_v50, %v3744_v15  ;;  %v3748_v26 = vpop.f32.mrb[12].mxu0  ;;  %v3941_v27 = vpop.f32.mrb[12].mxu1 }
 0x3bc   : > { %v4740_v20 = vmax.f32 %v17417_v23, %v17419_v8  ;;  %v17425_v21 = vsel %vm4365_vm2, %v4237_v61, %v4493_v24  ;;  %v17427_v28 = vsel %vm4367_vm3, %v4239_v54, %v4495_v7  ;;  %v4243_v29 = vadd.f32 %v17367_v51, %v3937_v18  ;;  %v3750_v30 = vpop.f32.mrb[13].mxu0  ;;  %v3943_v31 = vpop.f32.mrb[13].mxu1 }
 0x3bd   : > { %v4624_v32 = vsel %vm4368_vm4, %v4240_v22, %v4496_v25  ;;  %vm4370_vm5 = vcmp.gt.f32.partialorder %v4242_v9, 0.0  ;;  %v4498_v33 = vmul.f32 0.01, %v4242_v9  ;;  %vm4369_vm6 = vcmp.gt.f32.partialorder %v4241_v19, 0.0  ;;  %v3752_v35 = vpop.f32.mrb[14].mxu0  ;;  %v3945_v38 = vpop.f32.mrb[14].mxu1 }
 0x3be   : > { %v4497_v39 = vmul.f32 0.01, %v4241_v19  ;;  %vm4371_vm7 = vcmp.gt.f32.partialorder %v4243_v29, 0.0  ;;  %v4499_v52 = vmul.f32 0.01, %v4243_v29  ;;  %v4737_v53 = vmax.f32 %v17402_v2, %v17404_v46  ;;  %v3754_v55 = vpop.f32.mrb[15].mxu0 }
 0x3bf   : > { %v4626_v56 = vsel %vm4370_vm5, %v4242_v9, %v4498_v33  ;;  %v4739_v57 = vmax.f32 %v17409_v10, %v4619_v62  ;;  %v4798_v58 = vpack.c.bf16 %v4738_v34, %v4736_v42  ;;  %v4244_v48 = vadd.f32 %v17358_v45, %v3748_v26  ;;  %v3947_v63 = vpop.f32.mrb[15].mxu1 }
 0x3c0   : > { %v4742_v1 = vmax.f32 %v4624_v32, %v4626_v56  ;;  %v4625_v16 = vsel %vm4369_vm6, %v4241_v19, %v4497_v39  ;;  %v4627_v4 = vsel %vm4371_vm7, %v4243_v29, %v4499_v52  ;;  %v4246_v5 = vadd.f32 %v17361_v47, %v3941_v27  ;;  %v15152_v29 = vld [vmem:[%s20614_s7 + $0x4] ss:$8 sps:$4 sm:$0xff]  }
 0x3c1   : > { %v4799_v12 = vpack.c.bf16 %v4739_v57, %v4737_v53  ;;  %vm4372_vm8 = vcmp.gt.f32.partialorder %v4244_v48, 0.0  ;;  %v4500_v13 = vmul.f32 0.01, %v4244_v48  ;;  %v4245_v2 = vadd.f32 %v17364_v50, %v3750_v30  ;;  %v15155_v30 = vld [vmem:[%s20615_s8 + $0x4] ss:$8 sps:$4 sm:$0xff]   ;;  %4956 = vmatprep.mubr.bf16.mxu0 %v15152_v29 }
 0x3c2   : > { %vm4374_vm9 = vcmp.gt.f32.partialorder %v4246_v5, 0.0  ;;  %v4502_v46 = vmul.f32 0.01, %v4246_v5  ;;  %v4247_v10 = vadd.f32 %v17367_v51, %v3943_v31  ;;  %v4248_v36 = vadd.f32 %v17358_v45, %v3752_v35  ;;  %5165 = vmatprep.mubr.bf16.mxu1 %v15155_v30 }
 0x3c3   : > { %4926 = vmatprep.subr.bf16.mxu0 %v4799_v12  ;;  %5135 = vmatprep.subr.bf16.mxu1 %v4799_v12  ;;  %v17441_v37 = vsel %vm4372_vm8, %v4244_v48, %v4500_v13  ;;  %vm4373_vm10 = vcmp.gt.f32.partialorder %v4245_v2, 0.0  ;;  %v4501_v42 = vmul.f32 0.01, %v4245_v2  ;;  %v4250_v49 = vadd.f32 %v17361_v47, %v3945_v38  ;;  %v3758_v14 = vpop.f32.mrb[16].mxu0  ;;  %v3951_v34 = vpop.f32.mrb[16].mxu1 }
 0x3c4   : > { %4927 = vmatpush1.bf16.msra.mxu0 %v4798_v58  ;;  %5136 = vmatpush1.bf16.msra.mxu1 %v4798_v58  ;;  %v17444_v3 = vsel %vm4374_vm9, %v4246_v5, %v4502_v46  ;;  %vm4375_vm11 = vcmp.gt.f32.partialorder %v4247_v10, 0.0  ;;  %v4503_v11 = vmul.f32 0.01, %v4247_v10  ;;  %vm4376_vm12 = vcmp.gt.f32.partialorder %v4248_v36, 0.0  ;;  %v3760_v59 = vpop.f32.mrb[17].mxu0  ;;  %v3953_v15 = vpop.f32.mrb[17].mxu1 }
 0x3c5   : > { %v4744_v17 = vmax.f32 %v17441_v37, %v17444_v3  ;;  %v17448_v60 = vsel %vm4373_vm10, %v4245_v2, %v4501_v42  ;;  %v4504_v61 = vmul.f32 0.01, %v4248_v36  ;;  %vm4378_vm13 = vcmp.gt.f32.partialorder %v4250_v49, 0.0  ;;  %v3762_v18 = vpop.f32.mrb[18].mxu0  ;;  %v3955_v62 = vpop.f32.mrb[18].mxu1 }
 0x3c6   : > { %v17450_v54 = vsel %vm4375_vm11, %v4247_v10, %v4503_v11  ;;  %v4506_v22 = vmul.f32 0.01, %v4250_v49  ;;  %v4249_v6 = vadd.f32 %v17364_v50, %v3754_v55  ;;  %v4251_v24 = vadd.f32 %v17367_v51, %v3947_v63  ;;  %v3764_v7 = vpop.f32.mrb[19].mxu0  ;;  %v3957_v25 = vpop.f32.mrb[19].mxu1 }
 0x3c7   : > { %v17454_v9 = vsel %vm4376_vm12, %v4248_v36, %v4504_v61  ;;  %v4741_v19 = vmax.f32 %v17425_v21, %v17427_v28  ;;  %v4743_v26 = vmax.f32 %v4625_v16, %v4627_v4  ;;  %v4800_v27 = vpack.c.bf16 %v4742_v1, %v4740_v20 }
 0x3c8   : > { %v4634_v31 = vsel %vm4378_vm13, %v4250_v49, %v4506_v22  ;;  %vm4377_vm14 = vcmp.gt.f32.partialorder %v4249_v6, 0.0  ;;  %v4505_v32 = vmul.f32 0.01, %v4249_v6  ;;  %vm4379_vm15 = vcmp.gt.f32.partialorder %v4251_v24, 0.0 }
 0x3c9   : > { %v4746_v33 = vmax.f32 %v17454_v9, %v4634_v31  ;;  %v4507_v21 = vmul.f32 0.01, %v4251_v24  ;;  %v4801_v28 = vpack.c.bf16 %v4743_v26, %v4741_v19  ;;  %v4252_v35 = vadd.f32 %v17358_v45, %v3758_v14 }
 0x3ca   : > { %v4633_v23 = vsel %vm4377_vm14, %v4249_v6, %v4505_v32  ;;  %v4254_v8 = vadd.f32 %v17361_v47, %v3951_v34  ;;  %v4253_v20 = vadd.f32 %v17364_v50, %v3760_v59  ;;  %v4255_v38 = vadd.f32 %v17367_v51, %v3953_v15 }
 0x3cb   : > { %v4635_v39 = vsel %vm4379_vm15, %v4251_v24, %v4507_v21  ;;  %4928 = vmatprep.subr.bf16.mxu0 %v4801_v28  ;;  %5137 = vmatprep.subr.bf16.mxu1 %v4801_v28  ;;  %vm4380_vm0 = vcmp.gt.f32.partialorder %v4252_v35, 0.0  ;;  %v4508_v52 = vmul.f32 0.01, %v4252_v35  ;;  %v4256_v53 = vadd.f32 %v17358_v45, %v3762_v18  ;;  %v3768_v55 = vpop.f32.mrb[20].mxu0  ;;  %v3961_v56 = vpop.f32.mrb[20].mxu1 }
 0x3cc   : > { %4929 = vmatpush1.bf16.msra.mxu0 %v4800_v27  ;;  %5138 = vmatpush1.bf16.msra.mxu1 %v4800_v27  ;;  %vm4382_vm1 = vcmp.gt.f32.partialorder %v4254_v8, 0.0  ;;  %v4510_v57 = vmul.f32 0.01, %v4254_v8  ;;  %vm4381_vm2 = vcmp.gt.f32.partialorder %v4253_v20, 0.0  ;;  %v4509_v58 = vmul.f32 0.01, %v4253_v20 }
 0x3cd   : > { %v17473_v48 = vsel %vm4380_vm0, %v4252_v35, %v4508_v52  ;;  %vm4383_vm3 = vcmp.gt.f32.partialorder %v4255_v38, 0.0  ;;  %v4511_v63 = vmul.f32 0.01, %v4255_v38  ;;  %vm4384_vm4 = vcmp.gt.f32.partialorder %v4256_v53, 0.0  ;;  %v3770_v1 = vpop.f32.mrb[21].mxu0  ;;  %v3963_v16 = vpop.f32.mrb[21].mxu1 }
 0x3ce   : > { %v17475_v4 = vsel %vm4382_vm1, %v4254_v8, %v4510_v57  ;;  %v17477_v5 = vsel %vm4381_vm2, %v4253_v20, %v4509_v58  ;;  %v4512_v12 = vmul.f32 0.01, %v4256_v53  ;;  %v4258_v13 = vadd.f32 %v17361_v47, %v3955_v62  ;;  %v3772_v2 = vpop.f32.mrb[22].mxu0  ;;  %v3965_v46 = vpop.f32.mrb[22].mxu1 }
 0x3cf   : > { %v4748_v10 = vmax.f32 %v17473_v48, %v17475_v4  ;;  %v17482_v36 = vsel %vm4383_vm3, %v4255_v38, %v4511_v63  ;;  %v4257_v42 = vadd.f32 %v17364_v50, %v3764_v7  ;;  %v4259_v49 = vadd.f32 %v17367_v51, %v3957_v25  ;;  %v3774_v14 = vpop.f32.mrb[23].mxu0  ;;  %v3967_v34 = vpop.f32.mrb[23].mxu1 }
 0x3d0   : > { %v4640_v11 = vsel %vm4384_vm4, %v4256_v53, %v4512_v12  ;;  %vm4386_vm5 = vcmp.gt.f32.partialorder %v4258_v13, 0.0  ;;  %v4514_v59 = vmul.f32 0.01, %v4258_v13  ;;  %v4745_v15 = vmax.f32 %v17448_v60, %v17450_v54 }
 0x3d1   : > { %vm4385_vm6 = vcmp.gt.f32.partialorder %v4257_v42, 0.0  ;;  %v4513_v61 = vmul.f32 0.01, %v4257_v42  ;;  %vm4387_vm7 = vcmp.gt.f32.partialorder %v4259_v49, 0.0  ;;  %v4515_v18 = vmul.f32 0.01, %v4259_v49 }
 0x3d2   : > { %v4642_v62 = vsel %vm4386_vm5, %v4258_v13, %v4514_v59  ;;  %v4747_v22 = vmax.f32 %v4633_v23, %v4635_v39  ;;  %v4802_v6 = vpack.c.bf16 %v4746_v33, %v4744_v17  ;;  %v4260_v24 = vadd.f32 %v17358_v45, %v3768_v55 }
 0x3d3   : > { %v4750_v7 = vmax.f32 %v4640_v11, %v4642_v62  ;;  %v4641_v25 = vsel %vm4385_vm6, %v4257_v42, %v4513_v61  ;;  %v4643_v9 = vsel %vm4387_vm7, %v4259_v49, %v4515_v18  ;;  %v4262_v19 = vadd.f32 %v17361_v47, %v3961_v56  ;;  %v3778_v26 = vpop.f32.mrb[24].mxu0  ;;  %v3971_v27 = vpop.f32.mrb[24].mxu1 }
 0x3d4   : > { %v4803_v60 = vpack.c.bf16 %v4747_v22, %v4745_v15  ;;  %vm4388_vm8 = vcmp.gt.f32.partialorder %v4260_v24, 0.0  ;;  %v4516_v54 = vmul.f32 0.01, %v4260_v24  ;;  %v4261_v29 = vadd.f32 %v17364_v50, %v3770_v1  ;;  %v3780_v30 = vpop.f32.mrb[25].mxu0  ;;  %v3973_v31 = vpop.f32.mrb[25].mxu1 }
 0x3d5   : > { %vm4390_vm9 = vcmp.gt.f32.partialorder %v4262_v19, 0.0  ;;  %v4518_v32 = vmul.f32 0.01, %v4262_v19  ;;  %v4263_v37 = vadd.f32 %v17367_v51, %v3963_v16  ;;  %v4264_v3 = vadd.f32 %v17358_v45, %v3772_v2  ;;  %v3782_v17 = vpop.f32.mrb[26].mxu0  ;;  %v17496_v33 = vpop.f32.mrb[26].mxu1 }
 0x3d6   : > { %4930 = vmatprep.subr.bf16.mxu0 %v4803_v60  ;;  %5139 = vmatprep.subr.bf16.mxu1 %v4803_v60  ;;  %v17498_v21 = vsel %vm4388_vm8, %v4260_v24, %v4516_v54  ;;  %vm4389_vm10 = vcmp.gt.f32.partialorder %v4261_v29, 0.0  ;;  %v4517_v28 = vmul.f32 0.01, %v4261_v29  ;;  %v4266_v35 = vadd.f32 %v17361_v47, %v3965_v46  ;;  %v17501_v23 = vpop.f32.mrb[27].mxu0  ;;  %v3977_v8 = vpop.f32.mrb[27].mxu1 }
 0x3d7   : > { %4931 = vmatpush1.bf16.msra.mxu0 %v4802_v6  ;;  %5140 = vmatpush1.bf16.msra.mxu1 %v4802_v6  ;;  %v17504_v20 = vsel %vm4390_vm9, %v4262_v19, %v4518_v32  ;;  %vm4391_vm11 = vcmp.gt.f32.partialorder %v4263_v37, 0.0  ;;  %v4519_v38 = vmul.f32 0.01, %v4263_v37  ;;  %vm4392_vm12 = vcmp.gt.f32.partialorder %v4264_v3, 0.0 }
 0x3d8   : > { %v4752_v39 = vmax.f32 %v17498_v21, %v17504_v20  ;;  %v17508_v52 = vsel %vm4389_vm10, %v4261_v29, %v4517_v28  ;;  %v4520_v53 = vmul.f32 0.01, %v4264_v3  ;;  %vm4394_vm13 = vcmp.gt.f32.partialorder %v4266_v35, 0.0 }
 0x3d9   : > { %v17510_v55 = vsel %vm4391_vm11, %v4263_v37, %v4519_v38  ;;  %v4522_v56 = vmul.f32 0.01, %v4266_v35  ;;  %v4265_v57 = vadd.f32 %v17364_v50, %v3774_v14  ;;  %v4267_v58 = vadd.f32 %v17367_v51, %v3967_v34 }
 0x3da   : > { %v4648_v48 = vsel %vm4392_vm12, %v4264_v3, %v4520_v53  ;;  %v4749_v63 = vmax.f32 %v17477_v5, %v17482_v36  ;;  %v4751_v1 = vmax.f32 %v4641_v25, %v4643_v9  ;;  %v4804_v16 = vpack.c.bf16 %v4750_v7, %v4748_v10 }
 0x3db   : > { %v4650_v4 = vsel %vm4394_vm13, %v4266_v35, %v4522_v56  ;;  %vm4393_vm14 = vcmp.gt.f32.partialorder %v4265_v57, 0.0  ;;  %v4521_v12 = vmul.f32 0.01, %v4265_v57  ;;  %vm4395_vm15 = vcmp.gt.f32.partialorder %v4267_v58, 0.0  ;;  %v3788_v13 = vpop.f32.mrb[28].mxu0  ;;  %v3981_v2 = vpop.f32.mrb[28].mxu1 }
 0x3dc   : > { %v4754_v46 = vmax.f32 %v4648_v48, %v4650_v4  ;;  %v4523_v42 = vmul.f32 0.01, %v4267_v58  ;;  %v4805_v49 = vpack.c.bf16 %v4751_v1, %v4749_v63  ;;  %v4268_v11 = vadd.f32 %v17358_v45, %v3778_v26  ;;  %v3790_v14 = vpop.f32.mrb[29].mxu0  ;;  %v17517_v59 = vpop.f32.mrb[29].mxu1 }
 0x3dd   : > { %v4649_v34 = vsel %vm4393_vm14, %v4265_v57, %v4521_v12  ;;  %v4270_v15 = vadd.f32 %v17361_v47, %v3971_v27  ;;  %v4269_v5 = vadd.f32 %v17364_v50, %v3780_v30  ;;  %v4271_v10 = vadd.f32 %v17367_v51, %v3973_v31  ;;  %v3792_v36 = vpop.f32.mrb[30].mxu0  ;;  %v17522_v61 = vpop.f32.mrb[30].mxu1 }
 0x3de   : > { %v4651_v18 = vsel %vm4395_vm15, %v4267_v58, %v4523_v42  ;;  %4932 = vmatprep.subr.bf16.mxu0 %v4805_v49  ;;  %5141 = vmatprep.subr.bf16.mxu1 %v4805_v49  ;;  %vm4396_vm0 = vcmp.gt.f32.partialorder %v4268_v11, 0.0  ;;  %v4524_v62 = vmul.f32 0.01, %v4268_v11  ;;  %v4272_v22 = vadd.f32 %v17358_v45, %v3782_v17  ;;  %v17525_v6 = vpop.f32.mrb[31].mxu0  ;;  %v17527_v24 = vpop.f32.mrb[31].mxu1 }
 0x3df   : > { %4933 = vmatpush1.bf16.msra.mxu0 %v4804_v16  ;;  %5142 = vmatpush1.bf16.msra.mxu1 %v4804_v16  ;;  %vm4398_vm1 = vcmp.gt.f32.partialorder %v4270_v15, 0.0  ;;  %v4526_v7 = vmul.f32 0.01, %v4270_v15  ;;  %vm4397_vm2 = vcmp.gt.f32.partialorder %v4269_v5, 0.0  ;;  %v4525_v25 = vmul.f32 0.01, %v4269_v5 }
 0x3e0   : > { %v17529_v9 = vsel %vm4396_vm0, %v4268_v11, %v4524_v62  ;;  %vm4399_vm3 = vcmp.gt.f32.partialorder %v4271_v10, 0.0  ;;  %v4527_v19 = vmul.f32 0.01, %v4271_v10  ;;  %vm4400_vm4 = vcmp.gt.f32.partialorder %v4272_v22, 0.0 }
 0x3e1   : > { %v17531_v26 = vsel %vm4398_vm1, %v4270_v15, %v4526_v7  ;;  %v17533_v27 = vsel %vm4397_vm2, %v4269_v5, %v4525_v25  ;;  %v4528_v60 = vmul.f32 0.01, %v4272_v22  ;;  %v4274_v54 = vadd.f32 %v17361_v47, %v17496_v33 }
 0x3e2   : > { %v4756_v29 = vmax.f32 %v17529_v9, %v17531_v26  ;;  %v17539_v30 = vsel %vm4399_vm3, %v4271_v10, %v4527_v19  ;;  %v4273_v31 = vadd.f32 %v17364_v50, %v17501_v23  ;;  %v4275_v32 = vadd.f32 %v17367_v51, %v3977_v8 }
 0x3e3   : > { %v4656_v37 = vsel %vm4400_vm4, %v4272_v22, %v4528_v60  ;;  %vm4402_vm5 = vcmp.gt.f32.partialorder %v4274_v54, 0.0  ;;  %v4530_v3 = vmul.f32 0.01, %v4274_v54  ;;  %v4753_v17 = vmax.f32 %v17508_v52, %v17510_v55  ;;  %v17546_v28 = vpop.f32.mrb[32].mxu0  ;;  %v17548_v35 = vpop.f32.mrb[32].mxu1 }
 0x3e4   : > { %vm4401_vm6 = vcmp.gt.f32.partialorder %v4273_v31, 0.0  ;;  %v4529_v33 = vmul.f32 0.01, %v4273_v31  ;;  %vm4403_vm7 = vcmp.gt.f32.partialorder %v4275_v32, 0.0  ;;  %v4531_v38 = vmul.f32 0.01, %v4275_v32 }
 0x3e5   : > { %v4658_v53 = vsel %vm4402_vm5, %v4274_v54, %v4530_v3  ;;  %v4755_v56 = vmax.f32 %v4649_v34, %v4651_v18  ;;  %v4806_v23 = vpack.c.bf16 %v4754_v46, %v4752_v39  ;;  %v4276_v8 = vadd.f32 %v17358_v45, %v3788_v13  ;;  %v3800_v57 = vpop.f32.mrb[33].mxu0  ;;  %v3993_v58 = vpop.f32.mrb[33].mxu1 }
 0x3e6   : > { %v4758_v48 = vmax.f32 %v4656_v37, %v4658_v53  ;;  %v4657_v52 = vsel %vm4401_vm6, %v4273_v31, %v4529_v33  ;;  %v4659_v55 = vsel %vm4403_vm7, %v4275_v32, %v4531_v38  ;;  %v4278_v63 = vadd.f32 %v17361_v47, %v3981_v2  ;;  %v3802_v1 = vpop.f32.mrb[34].mxu0  ;;  %v17555_v16 = vpop.f32.mrb[34].mxu1 }
 0x3e7   : > { %v4807_v4 = vpack.c.bf16 %v4755_v56, %v4753_v17  ;;  %vm4404_vm8 = vcmp.gt.f32.partialorder %v4276_v8, 0.0  ;;  %v4532_v12 = vmul.f32 0.01, %v4276_v8  ;;  %v4277_v42 = vadd.f32 %v17364_v50, %v3790_v14  ;;  %v17558_v49 = vpop.f32.mrb[35].mxu0  ;;  %v17560_v21 = vpop.f32.mrb[35].mxu1 }
 0x3e8   : > { %vm4406_vm9 = vcmp.gt.f32.partialorder %v4278_v63, 0.0  ;;  %v4534_v20 = vmul.f32 0.01, %v4278_v63  ;;  %v4279_v39 = vadd.f32 %v17367_v51, %v17517_v59  ;;  %v4280_v13 = vadd.f32 %v17358_v45, %v3792_v36 }
 0x3e9   : > { %4934 = vmatprep.subr.bf16.mxu0 %v4807_v4  ;;  %5143 = vmatprep.subr.bf16.mxu1 %v4807_v4  ;;  %v17565_v2 = vsel %vm4404_vm8, %v4276_v8, %v4532_v12  ;;  %vm4405_vm10 = vcmp.gt.f32.partialorder %v4277_v42, 0.0  ;;  %v4533_v46 = vmul.f32 0.01, %v4277_v42  ;;  %v4282_v11 = vadd.f32 %v17361_v47, %v17522_v61 }
 0x3ea   : > { %4935 = vmatpush1.bf16.msra.mxu0 %v4806_v23  ;;  %5144 = vmatpush1.bf16.msra.mxu1 %v4806_v23  ;;  %v17569_v14 = vsel %vm4406_vm9, %v4278_v63, %v4534_v20  ;;  %vm4407_vm11 = vcmp.gt.f32.partialorder %v4279_v39, 0.0  ;;  %v4535_v34 = vmul.f32 0.01, %v4279_v39  ;;  %vm4408_vm12 = vcmp.gt.f32.partialorder %v4280_v13, 0.0 }
 0x3eb   : > { %v4760_v59 = vmax.f32 %v17565_v2, %v17569_v14  ;;  %v17573_v15 = vsel %vm4405_vm10, %v4277_v42, %v4533_v46  ;;  %v4536_v5 = vmul.f32 0.01, %v4280_v13  ;;  %vm4410_vm13 = vcmp.gt.f32.partialorder %v4282_v11, 0.0  ;;  %v17575_v10 = vpop.f32.mrb[36].mxu0  ;;  %v17577_v36 = vpop.f32.mrb[36].mxu1 }
 0x3ec   : > { %v17579_v18 = vsel %vm4407_vm11, %v4279_v39, %v4535_v34  ;;  %v4538_v61 = vmul.f32 0.01, %v4282_v11  ;;  %v4281_v62 = vadd.f32 %v17364_v50, %v17525_v6  ;;  %v4283_v22 = vadd.f32 %v17367_v51, %v17527_v24  ;;  %v17585_v7 = vpop.f32.mrb[37].mxu0  ;;  %v17587_v25 = vpop.f32.mrb[37].mxu1 }
 0x3ed   : > { %v17589_v19 = vsel %vm4408_vm12, %v4280_v13, %v4536_v5  ;;  %v4757_v60 = vmax.f32 %v17533_v27, %v17539_v30  ;;  %v4759_v54 = vmax.f32 %v4657_v52, %v4659_v55  ;;  %v4808_v31 = vpack.c.bf16 %v4758_v48, %v4756_v29  ;;  %v17596_v32 = vpop.f32.mrb[38].mxu0  ;;  %v17598_v6 = vpop.f32.mrb[38].mxu1 }
 0x3ee   : > { %v4666_v37 = vsel %vm4410_vm13, %v4282_v11, %v4538_v61  ;;  %vm4409_vm14 = vcmp.gt.f32.partialorder %v4281_v62, 0.0  ;;  %v4537_v24 = vmul.f32 0.01, %v4281_v62  ;;  %vm4411_vm15 = vcmp.gt.f32.partialorder %v4283_v22, 0.0  ;;  %v17600_v3 = vpop.f32.mrb[39].mxu0  ;;  %v17602_v17 = vpop.f32.mrb[39].mxu1 }
 0x3ef   : > { %v4762_v33 = vmax.f32 %v17589_v19, %v4666_v37  ;;  %v4539_v27 = vmul.f32 0.01, %v4283_v22  ;;  %v4809_v30 = vpack.c.bf16 %v4759_v54, %v4757_v60  ;;  %v4284_v9 = vadd.f32 %v17358_v45, %v17546_v28 }
 0x3f0   : > { %v4665_v26 = vsel %vm4409_vm14, %v4281_v62, %v4537_v24  ;;  %v4286_v29 = vadd.f32 %v17361_v47, %v17548_v35  ;;  %v4285_v38 = vadd.f32 %v17364_v50, %v3800_v57  ;;  %v4287_v53 = vadd.f32 %v17367_v51, %v3993_v58 }
 0x3f1   : > { %v4667_v56 = vsel %vm4411_vm15, %v4283_v22, %v4539_v27  ;;  %4936 = vmatprep.subr.bf16.mxu0 %v4809_v30  ;;  %5145 = vmatprep.subr.bf16.mxu1 %v4809_v30  ;;  %vm4412_vm0 = vcmp.gt.f32.partialorder %v4284_v9, 0.0  ;;  %v4540_v23 = vmul.f32 0.01, %v4284_v9  ;;  %v4288_v8 = vadd.f32 %v17358_v45, %v3802_v1 }
 0x3f2   : > { %4937 = vmatpush1.bf16.msra.mxu0 %v4808_v31  ;;  %5146 = vmatpush1.bf16.msra.mxu1 %v4808_v31  ;;  %vm4414_vm1 = vcmp.gt.f32.partialorder %v4286_v29, 0.0  ;;  %v4542_v48 = vmul.f32 0.01, %v4286_v29  ;;  %vm4413_vm2 = vcmp.gt.f32.partialorder %v4285_v38, 0.0  ;;  %v4541_v28 = vmul.f32 0.01, %v4285_v38 }
 0x3f3   : > { %v17612_v52 = vsel %vm4412_vm0, %v4284_v9, %v4540_v23  ;;  %vm4415_vm3 = vcmp.gt.f32.partialorder %v4287_v53, 0.0  ;;  %v4543_v35 = vmul.f32 0.01, %v4287_v53  ;;  %vm4416_vm4 = vcmp.gt.f32.partialorder %v4288_v8, 0.0  ;;  %v17614_v57 = vpop.f32.mrb[40].mxu0  ;;  %v17616_v58 = vpop.f32.mrb[40].mxu1 }
 0x3f4   : > { %v17618_v55 = vsel %vm4414_vm1, %v4286_v29, %v4542_v48  ;;  %v17620_v63 = vsel %vm4413_vm2, %v4285_v38, %v4541_v28  ;;  %v4544_v1 = vmul.f32 0.01, %v4288_v8  ;;  %v4290_v4 = vadd.f32 %v17361_v47, %v17555_v16  ;;  %v17624_v12 = vpop.f32.mrb[41].mxu0  ;;  %v17626_v42 = vpop.f32.mrb[41].mxu1 }
 0x3f5   : > { %v4764_v20 = vmax.f32 %v17612_v52, %v17618_v55  ;;  %v17630_v39 = vsel %vm4415_vm3, %v4287_v53, %v4543_v35  ;;  %v4289_v13 = vadd.f32 %v17364_v50, %v17558_v49  ;;  %v4291_v46 = vadd.f32 %v17367_v51, %v17560_v21  ;;  %v17636_v11 = vpop.f32.mrb[42].mxu0  ;;  %v17638_v34 = vpop.f32.mrb[42].mxu1 }
 0x3f6   : > { %v4672_v16 = vsel %vm4416_vm4, %v4288_v8, %v4544_v1  ;;  %vm4418_vm5 = vcmp.gt.f32.partialorder %v4290_v4, 0.0  ;;  %v4546_v5 = vmul.f32 0.01, %v4290_v4  ;;  %v4761_v61 = vmax.f32 %v17573_v15, %v17579_v18  ;;  %v17642_v62 = vpop.f32.mrb[43].mxu0  ;;  %v17644_v22 = vpop.f32.mrb[43].mxu1 }
 0x3f7   : > { %vm4417_vm6 = vcmp.gt.f32.partialorder %v4289_v13, 0.0  ;;  %v4545_v19 = vmul.f32 0.01, %v4289_v13  ;;  %vm4419_vm7 = vcmp.gt.f32.partialorder %v4291_v46, 0.0  ;;  %v4547_v49 = vmul.f32 0.01, %v4291_v46 }
 0x3f8   : > { %v4674_v60 = vsel %vm4418_vm5, %v4290_v4, %v4546_v5  ;;  %v4763_v21 = vmax.f32 %v4665_v26, %v4667_v56  ;;  %v4810_v54 = vpack.c.bf16 %v4762_v33, %v4760_v59  ;;  %v4292_v31 = vadd.f32 %v17358_v45, %v17575_v10 }
 0x3f9   : > { %v4766_v37 = vmax.f32 %v4672_v16, %v4674_v60  ;;  %v4673_v24 = vsel %vm4417_vm6, %v4289_v13, %v4545_v19  ;;  %v4675_v15 = vsel %vm4419_vm7, %v4291_v46, %v4547_v49  ;;  %v4294_v18 = vadd.f32 %v17361_v47, %v17577_v36 }
 0x3fa   : > { %v4811_v27 = vpack.c.bf16 %v4763_v21, %v4761_v61  ;;  %vm4420_vm8 = vcmp.gt.f32.partialorder %v4292_v31, 0.0  ;;  %v4548_v30 = vmul.f32 0.01, %v4292_v31  ;;  %v4293_v9 = vadd.f32 %v17364_v50, %v17585_v7 }
 0x3fb   : > { %vm4422_vm9 = vcmp.gt.f32.partialorder %v4294_v18, 0.0  ;;  %v4550_v26 = vmul.f32 0.01, %v4294_v18  ;;  %v4295_v2 = vadd.f32 %v17367_v51, %v17587_v25  ;;  %v4296_v14 = vadd.f32 %v17358_v45, %v17596_v32  ;;  %v17659_v59 = vpop.f32.mrb[44].mxu0  ;;  %v17661_v10 = vpop.f32.mrb[44].mxu1 }
 0x3fc   : > { %4938 = vmatprep.subr.bf16.mxu0 %v4811_v27  ;;  %5147 = vmatprep.subr.bf16.mxu1 %v4811_v27  ;;  %v17663_v36 = vsel %vm4420_vm8, %v4292_v31, %v4548_v30  ;;  %vm4421_vm10 = vcmp.gt.f32.partialorder %v4293_v9, 0.0  ;;  %v4549_v33 = vmul.f32 0.01, %v4293_v9  ;;  %v4298_v7 = vadd.f32 %v17361_v47, %v17598_v6  ;;  %v17667_v29 = vpop.f32.mrb[45].mxu0  ;;  %v17669_v38 = vpop.f32.mrb[45].mxu1 }
 0x3fd   : > { %4939 = vmatpush1.bf16.msra.mxu0 %v4810_v54  ;;  %5148 = vmatpush1.bf16.msra.mxu1 %v4810_v54  ;;  %v17672_v25 = vsel %vm4422_vm9, %v4294_v18, %v4550_v26  ;;  %vm4423_vm11 = vcmp.gt.f32.partialorder %v4295_v2, 0.0  ;;  %v4551_v32 = vmul.f32 0.01, %v4295_v2  ;;  %vm4424_vm12 = vcmp.gt.f32.partialorder %v4296_v14, 0.0  ;;  %v17674_v53 = vpop.f32.mrb[46].mxu0  ;;  %v17676_v56 = vpop.f32.mrb[46].mxu1 }
 0x3fe   : > { %v4768_v23 = vmax.f32 %v17663_v36, %v17672_v25  ;;  %v17680_v6 = vsel %vm4421_vm10, %v4293_v9, %v4549_v33  ;;  %v4552_v8 = vmul.f32 0.01, %v4296_v14  ;;  %vm4426_vm13 = vcmp.gt.f32.partialorder %v4298_v7, 0.0  ;;  %v17682_v48 = vpop.f32.mrb[47].mxu0  ;;  %v17684_v28 = vpop.f32.mrb[47].mxu1 }
 0x3ff   : > { %v17686_v35 = vsel %vm4423_vm11, %v4295_v2, %v4551_v32  ;;  %v4554_v1 = vmul.f32 0.01, %v4298_v7  ;;  %v4297_v4 = vadd.f32 %v17364_v50, %v17600_v3  ;;  %v4299_v13 = vadd.f32 %v17367_v51, %v17602_v17 }
 0x400   : > { %v4680_v46 = vsel %vm4424_vm12, %v4296_v14, %v4552_v8  ;;  %v4765_v16 = vmax.f32 %v17620_v63, %v17630_v39  ;;  %v4767_v5 = vmax.f32 %v4673_v24, %v4675_v15  ;;  %v4812_v61 = vpack.c.bf16 %v4766_v37, %v4764_v20 }
 0x401   : > { %v4682_v19 = vsel %vm4426_vm13, %v4298_v7, %v4554_v1  ;;  %vm4425_vm14 = vcmp.gt.f32.partialorder %v4297_v4, 0.0  ;;  %v4553_v49 = vmul.f32 0.01, %v4297_v4  ;;  %vm4427_vm15 = vcmp.gt.f32.partialorder %v4299_v13, 0.0 }
 0x402   : > { %v4770_v60 = vmax.f32 %v4680_v46, %v4682_v19  ;;  %v4555_v21 = vmul.f32 0.01, %v4299_v13  ;;  %v4813_v54 = vpack.c.bf16 %v4767_v5, %v4765_v16  ;;  %v4300_v3 = vadd.f32 %v17358_v45, %v17614_v57 }
 0x403   : > { %v4681_v17 = vsel %vm4425_vm14, %v4297_v4, %v4553_v49  ;;  %v4302_v31 = vadd.f32 %v17361_v47, %v17616_v58  ;;  %v4301_v63 = vadd.f32 %v17364_v50, %v17624_v12  ;;  %v4303_v52 = vadd.f32 %v17367_v51, %v17626_v42  ;;  %v17705_v55 = vpop.f32.mrb[48].mxu0  ;;  %v17707_v20 = vpop.f32.mrb[48].mxu1 }
 0x404   : > { %v4683_v39 = vsel %vm4427_vm15, %v4299_v13, %v4555_v21  ;;  %4940 = vmatprep.subr.bf16.mxu0 %v4813_v54  ;;  %5149 = vmatprep.subr.bf16.mxu1 %v4813_v54  ;;  %vm4428_vm0 = vcmp.gt.f32.partialorder %v4300_v3, 0.0  ;;  %v4556_v37 = vmul.f32 0.01, %v4300_v3  ;;  %v4304_v57 = vadd.f32 %v17358_v45, %v17636_v11  ;;  %v17711_v24 = vpop.f32.mrb[49].mxu0  ;;  %v17713_v58 = vpop.f32.mrb[49].mxu1 }
 0x405   : > { %4941 = vmatpush1.bf16.msra.mxu0 %v4812_v61  ;;  %5150 = vmatpush1.bf16.msra.mxu1 %v4812_v61  ;;  %vm4430_vm1 = vcmp.gt.f32.partialorder %v4302_v31, 0.0  ;;  %v4558_v12 = vmul.f32 0.01, %v4302_v31  ;;  %vm4429_vm2 = vcmp.gt.f32.partialorder %v4301_v63, 0.0  ;;  %v4557_v42 = vmul.f32 0.01, %v4301_v63 }
 0x406   : > { %v17715_v15 = vsel %vm4428_vm0, %v4300_v3, %v4556_v37  ;;  %vm4431_vm3 = vcmp.gt.f32.partialorder %v4303_v52, 0.0  ;;  %v4559_v18 = vmul.f32 0.01, %v4303_v52  ;;  %vm4432_vm4 = vcmp.gt.f32.partialorder %v4304_v57, 0.0  ;;  %v17717_v27 = vpop.f32.mrb[50].mxu0  ;;  %v17719_v30 = vpop.f32.mrb[50].mxu1 }
 0x407   : > { %v17721_v11 = vsel %vm4430_vm1, %v4302_v31, %v4558_v12  ;;  %v17723_v9 = vsel %vm4429_vm2, %v4301_v63, %v4557_v42  ;;  %v4560_v26 = vmul.f32 0.01, %v4304_v57  ;;  %v4306_v2 = vadd.f32 %v17361_v47, %v17638_v34  ;;  %v17727_v14 = vpop.f32.mrb[51].mxu0  ;;  %v17729_v33 = vpop.f32.mrb[51].mxu1 }
 0x408   : > { %v4772_v7 = vmax.f32 %v17715_v15, %v17721_v11  ;;  %v17733_v32 = vsel %vm4431_vm3, %v4303_v52, %v4559_v18  ;;  %v4305_v8 = vadd.f32 %v17364_v50, %v17642_v62  ;;  %v4307_v1 = vadd.f32 %v17367_v51, %v17644_v22 }
 0x409   : > { %v4688_v4 = vsel %vm4432_vm4, %v4304_v57, %v4560_v26  ;;  %vm4434_vm5 = vcmp.gt.f32.partialorder %v4306_v2, 0.0  ;;  %v4562_v13 = vmul.f32 0.01, %v4306_v2  ;;  %v4769_v34 = vmax.f32 %v17680_v6, %v17686_v35 }
 0x40a   : > { %vm4433_vm6 = vcmp.gt.f32.partialorder %v4305_v8, 0.0  ;;  %v4561_v46 = vmul.f32 0.01, %v4305_v8  ;;  %vm4435_vm7 = vcmp.gt.f32.partialorder %v4307_v1, 0.0  ;;  %v4563_v16 = vmul.f32 0.01, %v4307_v1 }
 0x40b   : > { %v4690_v5 = vsel %vm4434_vm5, %v4306_v2, %v4562_v13  ;;  %v4771_v61 = vmax.f32 %v4681_v17, %v4683_v39  ;;  %v4814_v19 = vpack.c.bf16 %v4770_v60, %v4768_v23  ;;  %v4308_v62 = vadd.f32 %v17358_v45, %v17659_v59  ;;  %v17746_v22 = vpop.f32.mrb[52].mxu0  ;;  %v17748_v49 = vpop.f32.mrb[52].mxu1 }
 0x40c   : > { %v4774_v21 = vmax.f32 %v4688_v4, %v4690_v5  ;;  %v4689_v54 = vsel %vm4433_vm6, %v4305_v8, %v4561_v46  ;;  %v4691_v6 = vsel %vm4435_vm7, %v4307_v1, %v4563_v16  ;;  %v4310_v35 = vadd.f32 %v17361_v47, %v17661_v10  ;;  %v17752_v3 = vpop.f32.mrb[53].mxu0  ;;  %v17754_v17 = vpop.f32.mrb[53].mxu1 }
 0x40d   : > { %v4815_v31 = vpack.c.bf16 %v4771_v61, %v4769_v34  ;;  %vm4436_vm8 = vcmp.gt.f32.partialorder %v4308_v62, 0.0  ;;  %v4564_v36 = vmul.f32 0.01, %v4308_v62  ;;  %v4309_v59 = vadd.f32 %v17364_v50, %v17667_v29  ;;  %v17758_v25 = vpop.f32.mrb[54].mxu0  ;;  %v17760_v23 = vpop.f32.mrb[54].mxu1 }
 0x40e   : > { %vm4438_vm9 = vcmp.gt.f32.partialorder %v4310_v35, 0.0  ;;  %v4566_v60 = vmul.f32 0.01, %v4310_v35  ;;  %v4311_v63 = vadd.f32 %v17367_v51, %v17669_v38  ;;  %v4312_v10 = vadd.f32 %v17358_v45, %v17674_v53  ;;  %v17766_v52 = vpop.f32.mrb[55].mxu0  ;;  %v17768_v39 = vpop.f32.mrb[55].mxu1 }
 0x40f   : > { %4942 = vmatprep.subr.bf16.mxu0 %v4815_v31  ;;  %5151 = vmatprep.subr.bf16.mxu1 %v4815_v31  ;;  %v17770_v37 = vsel %vm4436_vm8, %v4308_v62, %v4564_v36  ;;  %vm4437_vm10 = vcmp.gt.f32.partialorder %v4309_v59, 0.0  ;;  %v4565_v29 = vmul.f32 0.01, %v4309_v59  ;;  %v4314_v57 = vadd.f32 %v17361_v47, %v17676_v56 }
 0x410   : > { %4943 = vmatpush1.bf16.msra.mxu0 %v4814_v19  ;;  %5152 = vmatpush1.bf16.msra.mxu1 %v4814_v19  ;;  %v17774_v12 = vsel %vm4438_vm9, %v4310_v35, %v4566_v60  ;;  %vm4439_vm11 = vcmp.gt.f32.partialorder %v4311_v63, 0.0  ;;  %v4567_v38 = vmul.f32 0.01, %v4311_v63  ;;  %vm4440_vm12 = vcmp.gt.f32.partialorder %v4312_v10, 0.0 }
 0x411   : > { %v4776_v53 = vmax.f32 %v17770_v37, %v17774_v12  ;;  %v17778_v42 = vsel %vm4437_vm10, %v4309_v59, %v4565_v29  ;;  %v4568_v15 = vmul.f32 0.01, %v4312_v10  ;;  %vm4442_vm13 = vcmp.gt.f32.partialorder %v4314_v57, 0.0 }
 0x412   : > { %v17780_v18 = vsel %vm4439_vm11, %v4311_v63, %v4567_v38  ;;  %v4570_v11 = vmul.f32 0.01, %v4314_v57  ;;  %v4313_v56 = vadd.f32 %v17364_v50, %v17682_v48  ;;  %v4315_v26 = vadd.f32 %v17367_v51, %v17684_v28 }
 0x413   : > { %v17786_v2 = vsel %vm4440_vm12, %v4312_v10, %v4568_v15  ;;  %v4773_v8 = vmax.f32 %v17723_v9, %v17733_v32  ;;  %v4775_v1 = vmax.f32 %v4689_v54, %v4691_v6  ;;  %v4816_v4 = vpack.c.bf16 %v4774_v21, %v4772_v7  ;;  %v17790_v13 = vpop.f32.mrb[56].mxu0  ;;  %v17792_v34 = vpop.f32.mrb[56].mxu1 }
 0x414   : > { %v4698_v46 = vsel %vm4442_vm13, %v4314_v57, %v4570_v11  ;;  %vm4441_vm14 = vcmp.gt.f32.partialorder %v4313_v56, 0.0  ;;  %v4569_v16 = vmul.f32 0.01, %v4313_v56  ;;  %vm4443_vm15 = vcmp.gt.f32.partialorder %v4315_v26, 0.0  ;;  %v17794_v5 = vpop.f32.mrb[57].mxu0  ;;  %v17796_v48 = vpop.f32.mrb[57].mxu1 }
 0x415   : > { %v4778_v28 = vmax.f32 %v17786_v2, %v4698_v46  ;;  %v4571_v61 = vmul.f32 0.01, %v4315_v26  ;;  %v4817_v19 = vpack.c.bf16 %v4775_v1, %v4773_v8  ;;  %v4316_v9 = vadd.f32 %v17358_v45, %v17705_v55  ;;  %v17801_v7 = vpop.f32.mrb[58].mxu0  ;;  %v17803_v32 = vpop.f32.mrb[58].mxu1 }
 0x416   : > { %v4697_v62 = vsel %vm4441_vm14, %v4313_v56, %v4569_v16  ;;  %v4318_v21 = vadd.f32 %v17361_v47, %v17707_v20  ;;  %v4317_v54 = vadd.f32 %v17364_v50, %v17711_v24  ;;  %v4319_v6 = vadd.f32 %v17367_v51, %v17713_v58  ;;  %v17811_v35 = vpop.f32.mrb[59].mxu0  ;;  %v17813_v31 = vpop.f32.mrb[59].mxu1 }
 0x417   : > { %v4699_v36 = vsel %vm4443_vm15, %v4315_v26, %v4571_v61  ;;  %4944 = vmatprep.subr.bf16.mxu0 %v4817_v19  ;;  %5153 = vmatprep.subr.bf16.mxu1 %v4817_v19  ;;  %vm4444_vm0 = vcmp.gt.f32.partialorder %v4316_v9, 0.0  ;;  %v4572_v55 = vmul.f32 0.01, %v4316_v9  ;;  %v4320_v59 = vadd.f32 %v17358_v45, %v17717_v27 }
 0x418   : > { %4945 = vmatpush1.bf16.msra.mxu0 %v4816_v4  ;;  %5154 = vmatpush1.bf16.msra.mxu1 %v4816_v4  ;;  %vm4446_vm1 = vcmp.gt.f32.partialorder %v4318_v21, 0.0  ;;  %v4574_v20 = vmul.f32 0.01, %v4318_v21  ;;  %vm4445_vm2 = vcmp.gt.f32.partialorder %v4317_v54, 0.0  ;;  %v4573_v24 = vmul.f32 0.01, %v4317_v54 }
 0x419   : > { %v17817_v60 = vsel %vm4444_vm0, %v4316_v9, %v4572_v55  ;;  %vm4447_vm3 = vcmp.gt.f32.partialorder %v4319_v6, 0.0  ;;  %v4575_v58 = vmul.f32 0.01, %v4319_v6  ;;  %vm4448_vm4 = vcmp.gt.f32.partialorder %v4320_v59, 0.0 }
 0x41a   : > { %v17819_v63 = vsel %vm4446_vm1, %v4318_v21, %v4574_v20  ;;  %v17821_v10 = vsel %vm4445_vm2, %v4317_v54, %v4573_v24  ;;  %v4576_v29 = vmul.f32 0.01, %v4320_v59  ;;  %v4322_v57 = vadd.f32 %v17361_v47, %v17719_v30 }
 0x41b   : > { %v4780_v27 = vmax.f32 %v17817_v60, %v17819_v63  ;;  %v17827_v38 = vsel %vm4447_vm3, %v4319_v6, %v4575_v58  ;;  %v4321_v15 = vadd.f32 %v17364_v50, %v17727_v14  ;;  %v4323_v11 = vadd.f32 %v17367_v51, %v17729_v33  ;;  %v17833_v56 = vpop.f32.mrb[60].mxu0  ;;  %v17835_v26 = vpop.f32.mrb[60].mxu1 }
 0x41c   : > { %v4704_v2 = vsel %vm4448_vm4, %v4320_v59, %v4576_v29  ;;  %vm4450_vm5 = vcmp.gt.f32.partialorder %v4322_v57, 0.0  ;;  %v4578_v8 = vmul.f32 0.01, %v4322_v57  ;;  %v4777_v30 = vmax.f32 %v17778_v42, %v17780_v18  ;;  %v17839_v1 = vpop.f32.mrb[61].mxu0  ;;  %v17841_v4 = vpop.f32.mrb[61].mxu1 }
 0x41d   : > { %vm4449_vm6 = vcmp.gt.f32.partialorder %v4321_v15, 0.0  ;;  %v4577_v46 = vmul.f32 0.01, %v4321_v15  ;;  %vm4451_vm7 = vcmp.gt.f32.partialorder %v4323_v11, 0.0  ;;  %v4579_v14 = vmul.f32 0.01, %v4323_v11 }
 0x41e   : > { %v4706_v16 = vsel %vm4450_vm5, %v4322_v57, %v4578_v8  ;;  %v4779_v33 = vmax.f32 %v4697_v62, %v4699_v36  ;;  %v4818_v61 = vpack.c.bf16 %v4778_v28, %v4776_v53  ;;  %v4324_v19 = vadd.f32 %v17358_v45, %v17746_v22  ;;  %v17848_v9 = vpop.f32.mrb[62].mxu0  ;;  %v17850_v42 = vpop.f32.mrb[62].mxu1 }
 0x41f   : > { %v4782_v18 = vmax.f32 %v4704_v2, %v4706_v16  ;;  %v4705_v21 = vsel %vm4449_vm6, %v4321_v15, %v4577_v46  ;;  %v4707_v54 = vsel %vm4451_vm7, %v4323_v11, %v4579_v14  ;;  %v4326_v6 = vadd.f32 %v17361_v47, %v17748_v49  ;;  %v17854_v55 = vpop.f32.mrb[63].mxu0  ;;  %v17856_v62 = vpop.f32.mrb[63].mxu1 }
 0x420   : > { %v4819_v36 = vpack.c.bf16 %v4779_v33, %v4777_v30  ;;  %vm4452_vm8 = vcmp.gt.f32.partialorder %v4324_v19, 0.0  ;;  %v4580_v37 = vmul.f32 0.01, %v4324_v19  ;;  %v4325_v22 = vadd.f32 %v17364_v50, %v17752_v3 }
 0x421   : > { %vm4454_vm9 = vcmp.gt.f32.partialorder %v4326_v6, 0.0  ;;  %v4582_v12 = vmul.f32 0.01, %v4326_v6  ;;  %v4327_v53 = vadd.f32 %v17367_v51, %v17754_v17  ;;  %v4328_v28 = vadd.f32 %v17358_v45, %v17758_v25 }
 0x422   : > { %4946 = vmatprep.subr.bf16.mxu0 %v4819_v36  ;;  %5155 = vmatprep.subr.bf16.mxu1 %v4819_v36  ;;  %v17864_v49 = vsel %vm4452_vm8, %v4324_v19, %v4580_v37  ;;  %vm4453_vm10 = vcmp.gt.f32.partialorder %v4325_v22, 0.0  ;;  %v4581_v59 = vmul.f32 0.01, %v4325_v22  ;;  %v4330_v20 = vadd.f32 %v17361_v47, %v17760_v23 }
 0x423   : > { %4947 = vmatpush1.bf16.msra.mxu0 %v4818_v61  ;;  %5156 = vmatpush1.bf16.msra.mxu1 %v4818_v61  ;;  %v17868_v3 = vsel %vm4454_vm9, %v4326_v6, %v4582_v12  ;;  %vm4455_vm11 = vcmp.gt.f32.partialorder %v4327_v53, 0.0  ;;  %v4583_v24 = vmul.f32 0.01, %v4327_v53  ;;  %vm4456_vm12 = vcmp.gt.f32.partialorder %v4328_v28, 0.0 }
 0x424   : > { %v4784_v17 = vmax.f32 %v17864_v49, %v17868_v3  ;;  %v17872_v25 = vsel %vm4453_vm10, %v4325_v22, %v4581_v59  ;;  %v4584_v60 = vmul.f32 0.01, %v4328_v28  ;;  %vm4458_vm13 = vcmp.gt.f32.partialorder %v4330_v20, 0.0 }
 0x425   : > { %v4711_v58 = vsel %vm4455_vm11, %v4327_v53, %v4583_v24  ;;  %v4586_v63 = vmul.f32 0.01, %v4330_v20  ;;  %v4329_v29 = vadd.f32 %v17364_v50, %v17766_v52  ;;  %v4331_v23 = vadd.f32 %v17367_v51, %v17768_v39 }
 0x426   : > { %v4712_v57 = vsel %vm4456_vm12, %v4328_v28, %v4584_v60  ;;  %v4781_v15 = vmax.f32 %v17821_v10, %v17827_v38  ;;  %v4783_v11 = vmax.f32 %v4705_v21, %v4707_v54  ;;  %v4820_v2 = vpack.c.bf16 %v4782_v18, %v4780_v27 }
 0x427   : > { %v4714_v8 = vsel %vm4458_vm13, %v4330_v20, %v4586_v63  ;;  %vm4457_vm14 = vcmp.gt.f32.partialorder %v4329_v29, 0.0  ;;  %v4585_v30 = vmul.f32 0.01, %v4329_v29  ;;  %vm4459_vm15 = vcmp.gt.f32.partialorder %v4331_v23, 0.0 }
 0x428   : > { %v4786_v46 = vmax.f32 %v4712_v57, %v4714_v8  ;;  %v4587_v14 = vmul.f32 0.01, %v4331_v23  ;;  %v4821_v16 = vpack.c.bf16 %v4783_v11, %v4781_v15  ;;  %v4332_v33 = vadd.f32 %v17358_v45, %v17790_v13 }
 0x429   : > { %v4713_v52 = vsel %vm4457_vm14, %v4329_v29, %v4585_v30  ;;  %v4334_v39 = vadd.f32 %v17361_v47, %v17792_v34  ;;  %v4333_v61 = vadd.f32 %v17364_v50, %v17794_v5  ;;  %v4335_v10 = vadd.f32 %v17367_v51, %v17796_v48 }
 0x42a   : > { %v4715_v27 = vsel %vm4459_vm15, %v4331_v23, %v4587_v14  ;;  %4948 = vmatprep.subr.bf16.mxu0 %v4821_v16  ;;  %5157 = vmatprep.subr.bf16.mxu1 %v4821_v16  ;;  %vm4460_vm0 = vcmp.gt.f32.partialorder %v4332_v33, 0.0  ;;  %v4588_v38 = vmul.f32 0.01, %v4332_v33  ;;  %v4336_v19 = vadd.f32 %v17358_v45, %v17801_v7 }
 0x42b   : > { %4949 = vmatpush1.bf16.msra.mxu0 %v4820_v2  ;;  %5158 = vmatpush1.bf16.msra.mxu1 %v4820_v2  ;;  %vm4462_vm1 = vcmp.gt.f32.partialorder %v4334_v39, 0.0  ;;  %v4590_v13 = vmul.f32 0.01, %v4334_v39  ;;  %vm4461_vm2 = vcmp.gt.f32.partialorder %v4333_v61, 0.0  ;;  %v4589_v34 = vmul.f32 0.01, %v4333_v61 }
 0x42c   : > { %v4716_v18 = vsel %vm4460_vm0, %v4332_v33, %v4588_v38  ;;  %vm4463_vm3 = vcmp.gt.f32.partialorder %v4335_v10, 0.0  ;;  %v4591_v5 = vmul.f32 0.01, %v4335_v10  ;;  %vm4464_vm4 = vcmp.gt.f32.partialorder %v4336_v19, 0.0 }
 0x42d   : > { %v4718_v21 = vsel %vm4462_vm1, %v4334_v39, %v4590_v13  ;;  %v4717_v48 = vsel %vm4461_vm2, %v4333_v61, %v4589_v34  ;;  %v4592_v54 = vmul.f32 0.01, %v4336_v19  ;;  %v4338_v6 = vadd.f32 %v17361_v47, %v17803_v32  ;;  %v15203_v13 = vld [vmem:[%s20610_s3 + $0x20c] ss:$16 sps:$4 sm:$0xff]   ;;  %v15150_v34 = vld [vmem:[%s20614_s7] ss:$8 sps:$4 sm:$0xff]  }
 0x42e   : > { %v4788_v36 = vmax.f32 %v4716_v18, %v4718_v21  ;;  %v4719_v37 = vsel %vm4463_vm3, %v4335_v10, %v4591_v5  ;;  %v4337_v7 = vadd.f32 %v17364_v50, %v17811_v35  ;;  %v4339_v22 = vadd.f32 %v17367_v51, %v17813_v31  ;;  %v15153_v18 = vld [vmem:[%s20615_s8] ss:$8 sps:$4 sm:$0xff]   ;;  %v15156_v5 = vld [vmem:[%s20614_s7 + $0x14] ss:$8 sps:$4 sm:$0xff]  }
 0x42f   : > { %v4720_v12 = vsel %vm4464_vm4, %v4336_v19, %v4592_v54  ;;  %vm4466_vm5 = vcmp.gt.f32.partialorder %v4338_v6, 0.0  ;;  %v4594_v53 = vmul.f32 0.01, %v4338_v6  ;;  %v4785_v28 = vmax.f32 %v17872_v25, %v4711_v58  ;;  %v15158_v21 = vld [vmem:[%s20615_s8 + $0x14] ss:$8 sps:$4 sm:$0xff]  }
 0x430   : > { %vm4465_vm6 = vcmp.gt.f32.partialorder %v4337_v7, 0.0  ;;  %v4593_v49 = vmul.f32 0.01, %v4337_v7  ;;  %vm4467_vm7 = vcmp.gt.f32.partialorder %v4339_v22, 0.0  ;;  %v4595_v59 = vmul.f32 0.01, %v4339_v22 }
 0x431   : > { %v4722_v20 = vsel %vm4466_vm5, %v4338_v6, %v4594_v53  ;;  %v4787_v3 = vmax.f32 %v4713_v52, %v4715_v27  ;;  %v4822_v32 = vpack.c.bf16 %v4786_v46, %v4784_v17  ;;  %v4340_v24 = vadd.f32 %v17358_v45, %v17833_v56  ;;  %v15201_v54 = vld [vmem:[%s20610_s3 + $0x208] ss:$16 sps:$4 sm:$0xff]   ;;  %v15206_v6 = vld [vmem:[%s20610_s3 + $0x224] ss:$16 sps:$4 sm:$0xff]  }
 0x432   : > { %v4790_v60 = vmax.f32 %v4720_v12, %v4722_v20  ;;  %v4721_v35 = vsel %vm4465_vm6, %v4337_v7, %v4593_v49  ;;  %v4723_v63 = vsel %vm4467_vm7, %v4339_v22, %v4595_v59  ;;  %v4342_v31 = vadd.f32 %v17361_v47, %v17835_v26  ;;  %v15207_v7 = vld [vmem:[%s20610_s3 + $0x228] ss:$16 sps:$4 sm:$0xff]   ;;  %v15212_v22 = vld [vmem:[%s20610_s3 + $0x244] ss:$16 sps:$4 sm:$0xff]   ;;  %v15215_v12 = vld [vmem:[%s20610_s3 + $0x24c] ss:$16 sps:$4 sm:$0xff]  }
 0x433   : > { %v4823_v29 = vpack.c.bf16 %v4787_v3, %v4785_v28  ;;  %vm4468_vm8 = vcmp.gt.f32.partialorder %v4340_v24, 0.0  ;;  %v4596_v23 = vmul.f32 0.01, %v4340_v24  ;;  %v4341_v25 = vadd.f32 %v17364_v50, %v17839_v1  ;;  %v15160_v53 = vld [vmem:[%s20614_s7 + $0x10] ss:$8 sps:$4 sm:$0xff]  }
 0x434   : > { %vm4470_vm9 = vcmp.gt.f32.partialorder %v4342_v31, 0.0  ;;  %v4598_v58 = vmul.f32 0.01, %v4342_v31  ;;  %v4343_v17 = vadd.f32 %v17367_v51, %v17841_v4  ;;  %v4344_v56 = vadd.f32 %v17358_v45, %v17848_v9  ;;  %v15161_v28 = vld [vmem:[%s20615_s8 + $0x10] ss:$8 sps:$4 sm:$0xff]  }
 0x435   : > { %4950 = vmatprep.subr.bf16.mxu0 %v4823_v29  ;;  %5159 = vmatprep.subr.bf16.mxu1 %v4823_v29  ;;  %v4724_v57 = vsel %vm4468_vm8, %v4340_v24, %v4596_v23  ;;  %vm4469_vm10 = vcmp.gt.f32.partialorder %v4341_v25, 0.0  ;;  %v4597_v15 = vmul.f32 0.01, %v4341_v25  ;;  %v4346_v26 = vadd.f32 %v17361_v47, %v17850_v42  ;;  %v15162_v49 = vld [vmem:[%s20614_s7 + $0x24] ss:$8 sps:$4 sm:$0xff]  }
 0x436   : > { %4951 = vmatpush1.bf16.msra.mxu0 %v4822_v32  ;;  %5160 = vmatpush1.bf16.msra.mxu1 %v4822_v32  ;;  %v4726_v11 = vsel %vm4470_vm9, %v4342_v31, %v4598_v58  ;;  %vm4471_vm11 = vcmp.gt.f32.partialorder %v4343_v17, 0.0  ;;  %v4599_v1 = vmul.f32 0.01, %v4343_v17  ;;  %vm4472_vm12 = vcmp.gt.f32.partialorder %v4344_v56, 0.0  ;;  %v15164_v59 = vld [vmem:[%s20615_s8 + $0x24] ss:$8 sps:$4 sm:$0xff]  }
 0x437   : > { %v4792_v2 = vmax.f32 %v4724_v57, %v4726_v11  ;;  %v4725_v8 = vsel %vm4469_vm10, %v4341_v25, %v4597_v15  ;;  %v4600_v4 = vmul.f32 0.01, %v4344_v56  ;;  %vm4474_vm13 = vcmp.gt.f32.partialorder %v4346_v26, 0.0  ;;  %v15210_v20 = vld [vmem:[%s20610_s3 + $0x240] ss:$16 sps:$4 sm:$0xff]  }
 0x438   : > { %v4727_v30 = vsel %vm4471_vm11, %v4343_v17, %v4599_v1  ;;  %v4602_v45 = vmul.f32 0.01, %v4346_v26  ;;  %v4345_v9 = vadd.f32 %v17364_v50, %v17854_v55  ;;  %v4347_v46 = vadd.f32 %v17367_v51, %v17856_v62  ;;  %v15200_v62 = vld [vmem:[%s20610_s3 + $0x204] ss:$16 sps:$4 sm:$0xff]   ;;  %v15213_v3 = vld [vmem:[%s20610_s3 + $0x248] ss:$16 sps:$4 sm:$0xff]  }
 0x439   : > { %v4728_v14 = vsel %vm4472_vm12, %v4344_v56, %v4600_v4  ;;  %v4789_v47 = vmax.f32 %v4717_v48, %v4719_v37  ;;  %v4791_v42 = vmax.f32 %v4721_v35, %v4723_v63  ;;  %v4824_v16 = vpack.c.bf16 %v4790_v60, %v4788_v36  ;;  %v15198_v48 = vld [vmem:[%s20610_s3 + $0x200] ss:$16 sps:$4 sm:$0xff]   ;;  %v15209_v36 = vld [vmem:[%s20610_s3 + $0x22c] ss:$16 sps:$4 sm:$0xff]   ;;  %v15218_v32 = vld [vmem:[%s20610_s3 + $0x264] ss:$16 sps:$4 sm:$0xff]  }
 0x43a   : > { %v4730_v33 = vsel %vm4474_vm13, %v4346_v26, %v4602_v45  ;;  %vm4473_vm14 = vcmp.gt.f32.partialorder %v4345_v9, 0.0  ;;  %v4601_v52 = vmul.f32 0.01, %v4345_v9  ;;  %vm4475_vm15 = vcmp.gt.f32.partialorder %v4347_v46, 0.0  ;;  %v15204_v37 = vld [vmem:[%s20610_s3 + $0x220] ss:$16 sps:$4 sm:$0xff]  }
 0x43b   : > { %v4794_v39 = vmax.f32 %v4728_v14, %v4730_v33  ;;  %v4603_v61 = vmul.f32 0.01, %v4347_v46  ;;  %v4825_v10 = vpack.c.bf16 %v4791_v42, %v4789_v47  ;;  %v4793_v27 = vmax.f32 %v4725_v8, %v4727_v30  ;;  %v15221_v24 = vld [vmem:[%s20610_s3 + $0x26c] ss:$16 sps:$4 sm:$0xff]   ;;  %v15216_v60 = vld [vmem:[%s20610_s3 + $0x260] ss:$16 sps:$4 sm:$0xff]  }
 0x43c   : > { %v4729_v38 = vsel %vm4473_vm14, %v4345_v9, %v4601_v52  ;;  %v15219_v35 = vld [vmem:[%s20610_s3 + $0x268] ss:$16 sps:$4 sm:$0xff]   ;;  %v15224_v63 = vld [vmem:[%s20610_s3 + $0x284] ss:$16 sps:$4 sm:$0xff]   ;;  %v15227_v31 = vld [vmem:[%s20610_s3 + $0x28c] ss:$16 sps:$4 sm:$0xff]  }
 0x43d   : > { %v4731_v19 = vsel %vm4475_vm15, %v4347_v46, %v4603_v61  ;;  %4952 = vmatprep.subr.bf16.mxu0 %v4825_v10  ;;  %5161 = vmatprep.subr.bf16.mxu1 %v4825_v10  ;;  %v4826_v50 = vpack.c.bf16 %v4794_v39, %v4792_v2  ;;  %v15166_v29 = vld [vmem:[%s20614_s7 + $0x20] ss:$8 sps:$4 sm:$0xff]   ;;  %v15168_v25 = vld [vmem:[%s20614_s7 + $0x34] ss:$8 sps:$4 sm:$0xff]   ;;  %v15172_v8 = vld [vmem:[%s20614_s7 + $0x30] ss:$8 sps:$4 sm:$0xff]  }
 0x43e   : > { %4953 = vmatpush1.bf16.msra.mxu0 %v4824_v16  ;;  %5162 = vmatpush1.bf16.msra.mxu1 %v4824_v16  ;;  %v4795_v51 = vmax.f32 %v4729_v38, %v4731_v19  ;;  %v15167_v23 = vld [vmem:[%s20615_s8 + $0x20] ss:$8 sps:$4 sm:$0xff]   ;;  %v15170_v58 = vld [vmem:[%s20615_s8 + $0x34] ss:$8 sps:$4 sm:$0xff]   ;;  %v15173_v4 = vld [vmem:[%s20615_s8 + $0x30] ss:$8 sps:$4 sm:$0xff]  }
 0x43f   : > { %v15222_v17 = vld [vmem:[%s20610_s3 + $0x280] ss:$16 sps:$4 sm:$0xff]   ;;  %v15225_v56 = vld [vmem:[%s20610_s3 + $0x288] ss:$16 sps:$4 sm:$0xff]   ;;  %v15230_v57 = vld [vmem:[%s20610_s3 + $0x2a4] ss:$16 sps:$4 sm:$0xff]  }
 0x440   : > { %v4827_v55 = vpack.c.bf16 %v4795_v51, %v4793_v27  ;;  %v15233_v15 = vld [vmem:[%s20610_s3 + $0x2ac] ss:$16 sps:$4 sm:$0xff]   ;;  %v15228_v26 = vld [vmem:[%s20610_s3 + $0x2a0] ss:$16 sps:$4 sm:$0xff]   ;;  %v15231_v11 = vld [vmem:[%s20610_s3 + $0x2a8] ss:$16 sps:$4 sm:$0xff]  }
 0x441   : > { %v15236_v1 = vld [vmem:[%s20610_s3 + $0x2c4] ss:$16 sps:$4 sm:$0xff]   ;;  %v15239_v2 = vld [vmem:[%s20610_s3 + $0x2cc] ss:$16 sps:$4 sm:$0xff]   ;;  %v15234_v9 = vld [vmem:[%s20610_s3 + $0x2c0] ss:$16 sps:$4 sm:$0xff]  }
 0x442   : > { %4954 = vmatprep.subr.bf16.mxu0 %v4827_v55  ;;  %5163 = vmatprep.subr.bf16.mxu1 %v4827_v55  ;;  %v15174_v30 = vld [vmem:[%s20614_s7 + $0x44] ss:$8 sps:$4 sm:$0xff]   ;;  %v15237_v46 = vld [vmem:[%s20610_s3 + $0x2c8] ss:$16 sps:$4 sm:$0xff]   ;;  %v15240_v42 = vld [vmem:[%s20610_s3 + $0x2e0] ss:$16 sps:$4 sm:$0xff]  }
 0x443   : > { %4955 = vmatpush1.bf16.msra.mxu0 %v4826_v50  ;;  %5164 = vmatpush1.bf16.msra.mxu1 %v4826_v50  ;;  %v15176_v45 = vld [vmem:[%s20615_s8 + $0x44] ss:$8 sps:$4 sm:$0xff]   ;;  %v15243_v16 = vld [vmem:[%s20610_s3 + $0x2e8] ss:$16 sps:$4 sm:$0xff]   ;;  %v15180_v10 = vld [vmem:[%s20614_s7 + $0x54] ss:$8 sps:$4 sm:$0xff]  }
 0x444   : > { %6014 = vmatprep.subr.bf16.mxu0 %v15200_v62  ;;  %6127 = vmatprep.subr.bf16.mxu1 %v15203_v13  ;;  %v15242_v14 = vld [vmem:[%s20610_s3 + $0x2e4] ss:$16 sps:$4 sm:$0xff]   ;;  %v15245_v47 = vld [vmem:[%s20610_s3 + $0x2ec] ss:$16 sps:$4 sm:$0xff]   ;;  %v15178_v39 = vld [vmem:[%s20614_s7 + $0x40] ss:$8 sps:$4 sm:$0xff]  }
 0x445   : > { %v15248_v33 = vld [vmem:[%s20610_s3 + $0x304] ss:$16 sps:$4 sm:$0xff]   ;;  %v15251_v52 = vld [vmem:[%s20610_s3 + $0x30c] ss:$16 sps:$4 sm:$0xff]   ;;  %v15179_v61 = vld [vmem:[%s20615_s8 + $0x40] ss:$8 sps:$4 sm:$0xff]  }
 0x446   : > { %4957 = vmatmul.mubr.bf16.vlgmr.msra.gmra.mrb[64].mxu0 %v15150_v34  ;;  %5166 = vmatmul.mubr.bf16.vlgmr.msra.gmra.mrb[64].mxu1 %v15153_v18  ;;  %v15182_v27 = vld [vmem:[%s20615_s8 + $0x54] ss:$8 sps:$4 sm:$0xff]   ;;  %v15246_v38 = vld [vmem:[%s20610_s3 + $0x300] ss:$16 sps:$4 sm:$0xff]   ;;  %v15249_v19 = vld [vmem:[%s20610_s3 + $0x308] ss:$16 sps:$4 sm:$0xff]  }
 0x447   : > { %4966 = vmatprep.mubr.bf16.mxu0 %v15156_v5  ;;  %5175 = vmatprep.mubr.bf16.mxu1 %v15158_v21  ;;  %v15184_v50 = vld [vmem:[%s20614_s7 + $0x50] ss:$8 sps:$4 sm:$0xff]   ;;  %v15186_v55 = vld [vmem:[%s20614_s7 + $0x64] ss:$8 sps:$4 sm:$0xff]   ;;  %v15190_v13 = vld [vmem:[%s20614_s7 + $0x60] ss:$8 sps:$4 sm:$0xff]  }
 0x448   : > { %6015 = vmatpush1.bf16.msra.mxu0 %v15198_v48  ;;  %6128 = vmatpush1.bf16.msra.mxu1 %v15201_v54  ;;  %v15185_v51 = vld [vmem:[%s20615_s8 + $0x50] ss:$8 sps:$4 sm:$0xff]   ;;  %v15188_v62 = vld [vmem:[%s20615_s8 + $0x64] ss:$8 sps:$4 sm:$0xff]   ;;  %v15191_v34 = vld [vmem:[%s20615_s8 + $0x60] ss:$8 sps:$4 sm:$0xff]  }
 0x449   : > { %6016 = vmatprep.subr.bf16.mxu0 %v15206_v6  ;;  %6129 = vmatprep.subr.bf16.mxu1 %v15209_v36  ;;  %v15192_v18 = vld [vmem:[%s20614_s7 + $0x74] ss:$8 sps:$4 sm:$0xff]   ;;  %v15196_v21 = vld [vmem:[%s20614_s7 + $0x70] ss:$8 sps:$4 sm:$0xff]   ;;  %vm5541_vm0 = vsmask.f32 7424 }
 0x44a   : > { %v15194_v5 = vld [vmem:[%s20615_s8 + $0x74] ss:$8 sps:$4 sm:$0xff]   ;;  %v15197_v48 = vld [vmem:[%s20615_s8 + $0x70] ss:$8 sps:$4 sm:$0xff]   ;;  %vm6877_vm1 = vcmask 1046528   ;;  %vm8405_vm3 = vcmask 1045504  }
 0x44b   : > { %v15254_v54 = vld [vmem:[%s20610_s3 + $0x324] ss:$16 sps:$4 sm:$0xff]   ;;  %v15257_v6 = vld [vmem:[%s20610_s3 + $0x32c] ss:$16 sps:$4 sm:$0xff]   ;;  %v15252_v36 = vld [vmem:[%s20610_s3 + $0x320] ss:$16 sps:$4 sm:$0xff]  }
 0x44c   : > { %6017 = vmatpush1.bf16.msra.mxu0 %v15204_v37  ;;  %6130 = vmatpush1.bf16.msra.mxu1 %v15207_v7  ;;  %v15255_v37 = vld [vmem:[%s20610_s3 + $0x328] ss:$16 sps:$4 sm:$0xff]   ;;  %v15260_v7 = vld [vmem:[%s20610_s3 + $0x344] ss:$16 sps:$4 sm:$0xff]   ;;  %vm7611_vm2 = vsmask.f32 6400 }
 0x44d   : > { %6018 = vmatprep.subr.bf16.mxu0 %v15212_v22  ;;  %6131 = vmatprep.subr.bf16.mxu1 %v15215_v12  ;;  %v15263_v22 = vld [vmem:[%s20610_s3 + $0x34c] ss:$16 sps:$4 sm:$0xff]   ;;  %v15258_v12 = vld [vmem:[%s20610_s3 + $0x340] ss:$16 sps:$4 sm:$0xff]  }
 0x44e   : > { %4967 = vmatmul.mubr.bf16.gmra.mrb[68].mxu0 %v15160_v53  ;;  %5176 = vmatmul.mubr.bf16.gmra.mrb[68].mxu1 %v15161_v28  ;;  %v15261_v53 = vld [vmem:[%s20610_s3 + $0x348] ss:$16 sps:$4 sm:$0xff]   ;;  %v15266_v28 = vld [vmem:[%s20610_s3 + $0x364] ss:$16 sps:$4 sm:$0xff]  }
 0x44f   : > { %4976 = vmatprep.mubr.bf16.mxu0 %v15162_v49  ;;  %5185 = vmatprep.mubr.bf16.mxu1 %v15164_v59  ;;  %v15269_v49 = vld [vmem:[%s20610_s3 + $0x36c] ss:$16 sps:$4 sm:$0xff]   ;;  %v15264_v59 = vld [vmem:[%s20610_s3 + $0x360] ss:$16 sps:$4 sm:$0xff]  }
 0x450   : > { %6019 = vmatpush1.bf16.msra.mxu0 %v15210_v20  ;;  %6132 = vmatpush1.bf16.msra.mxu1 %v15213_v3  ;;  %v15267_v20 = vld [vmem:[%s20610_s3 + $0x368] ss:$16 sps:$4 sm:$0xff]   ;;  %v15272_v3 = vld [vmem:[%s20610_s3 + $0x384] ss:$16 sps:$4 sm:$0xff]  }
 0x451   : > { %6020 = vmatprep.subr.bf16.mxu0 %v15218_v32  ;;  %6133 = vmatprep.subr.bf16.mxu1 %v15221_v24  ;;  %v15275_v32 = vld [vmem:[%s20610_s3 + $0x38c] ss:$16 sps:$4 sm:$0xff]   ;;  %v15270_v24 = vld [vmem:[%s20610_s3 + $0x380] ss:$16 sps:$4 sm:$0xff]  }
 0x454   : > { %6021 = vmatpush1.bf16.msra.mxu0 %v15216_v60  ;;  %6134 = vmatpush1.bf16.msra.mxu1 %v15219_v35  ;;  %v15273_v60 = vld [vmem:[%s20610_s3 + $0x388] ss:$16 sps:$4 sm:$0xff]   ;;  %v15278_v35 = vld [vmem:[%s20610_s3 + $0x3a4] ss:$16 sps:$4 sm:$0xff]  }
 0x455   : > { %6022 = vmatprep.subr.bf16.mxu0 %v15224_v63  ;;  %6135 = vmatprep.subr.bf16.mxu1 %v15227_v31  ;;  %v15281_v63 = vld [vmem:[%s20610_s3 + $0x3ac] ss:$16 sps:$4 sm:$0xff]   ;;  %v15276_v31 = vld [vmem:[%s20610_s3 + $0x3a0] ss:$16 sps:$4 sm:$0xff]  }
 0x456   : > { %4977 = vmatmul.mubr.bf16.gmra.mrb[72].mxu0 %v15166_v29  ;;  %5186 = vmatmul.mubr.bf16.gmra.mrb[72].mxu1 %v15167_v23  ;;  %v15279_v29 = vld [vmem:[%s20610_s3 + $0x3a8] ss:$16 sps:$4 sm:$0xff]   ;;  %v15284_v23 = vld [vmem:[%s20610_s3 + $0x3c4] ss:$16 sps:$4 sm:$0xff]  }
 0x457   : > { %4986 = vmatprep.mubr.bf16.mxu0 %v15168_v25  ;;  %5195 = vmatprep.mubr.bf16.mxu1 %v15170_v58  ;;  %v15287_v25 = vld [vmem:[%s20610_s3 + $0x3cc] ss:$16 sps:$4 sm:$0xff]   ;;  %v15282_v58 = vld [vmem:[%s20610_s3 + $0x3c0] ss:$16 sps:$4 sm:$0xff]  }
 0x458   : > { %6023 = vmatpush1.bf16.msra.mxu0 %v15222_v17  ;;  %6136 = vmatpush1.bf16.msra.mxu1 %v15225_v56  ;;  %v15285_v17 = vld [vmem:[%s20610_s3 + $0x3c8] ss:$16 sps:$4 sm:$0xff]   ;;  %v15290_v56 = vld [vmem:[%s20610_s3 + $0x3e4] ss:$16 sps:$4 sm:$0xff]  }
 0x459   : > { %6024 = vmatprep.subr.bf16.mxu0 %v15230_v57  ;;  %6137 = vmatprep.subr.bf16.mxu1 %v15233_v15  ;;  %v15293_v57 = vld [vmem:[%s20610_s3 + $0x3ec] ss:$16 sps:$4 sm:$0xff]   ;;  %v15288_v15 = vld [vmem:[%s20610_s3 + $0x3e0] ss:$16 sps:$4 sm:$0xff]  }
 0x45c   : > { %6025 = vmatpush1.bf16.msra.mxu0 %v15228_v26  ;;  %6138 = vmatpush1.bf16.msra.mxu1 %v15231_v11  ;;  %v15291_v26 = vld [vmem:[%s20610_s3 + $0x3e8] ss:$16 sps:$4 sm:$0xff]   ;;  %v15296_v11 = vld [vmem:[%s20610_s3 + $0x4] ss:$16 sps:$4 sm:$0xff]  }
 0x45d   : > { %6026 = vmatprep.subr.bf16.mxu0 %v15236_v1  ;;  %6139 = vmatprep.subr.bf16.mxu1 %v15239_v2  ;;  %v15299_v1 = vld [vmem:[%s20610_s3 + $0xc] ss:$16 sps:$4 sm:$0xff]  }
 0x45e   : > { %4987 = vmatmul.mubr.bf16.gmra.mrb[76].mxu0 %v15172_v8  ;;  %5196 = vmatmul.mubr.bf16.gmra.mrb[76].mxu1 %v15173_v4 }
 0x45f   : > { %4996 = vmatprep.mubr.bf16.mxu0 %v15174_v30  ;;  %5205 = vmatprep.mubr.bf16.mxu1 %v15176_v45 }
 0x460   : > { %6027 = vmatpush1.bf16.msra.mxu0 %v15234_v9  ;;  %6140 = vmatpush1.bf16.msra.mxu1 %v15237_v46 }
 0x461   : > { %6028 = vmatprep.subr.bf16.mxu0 %v15242_v14  ;;  %6141 = vmatprep.subr.bf16.mxu1 %v15245_v47 }
 0x464   : > { %6029 = vmatpush1.bf16.msra.mxu0 %v15240_v42  ;;  %6142 = vmatpush1.bf16.msra.mxu1 %v15243_v16 }
 0x465   : > { %6030 = vmatprep.subr.bf16.mxu0 %v15248_v33  ;;  %6143 = vmatprep.subr.bf16.mxu1 %v15251_v52 }
 0x466   : > { %4997 = vmatmul.mubr.bf16.gmra.mrb[80].mxu0 %v15178_v39  ;;  %5206 = vmatmul.mubr.bf16.gmra.mrb[80].mxu1 %v15179_v61 }
 0x467   : > { %5006 = vmatprep.mubr.bf16.mxu0 %v15180_v10  ;;  %5215 = vmatprep.mubr.bf16.mxu1 %v15182_v27 }
 0x468   : > { %6031 = vmatpush1.bf16.msra.mxu0 %v15246_v38  ;;  %6144 = vmatpush1.bf16.msra.mxu1 %v15249_v19 }
 0x469   : > { %6032 = vmatprep.subr.bf16.mxu0 %v15254_v54  ;;  %6145 = vmatprep.subr.bf16.mxu1 %v15257_v6 }
 0x46c   : > { %6033 = vmatpush1.bf16.msra.mxu0 %v15252_v36  ;;  %6146 = vmatpush1.bf16.msra.mxu1 %v15255_v37 }
 0x46d   : > { %6034 = vmatprep.subr.bf16.mxu0 %v15260_v7  ;;  %6147 = vmatprep.subr.bf16.mxu1 %v15263_v22 }
 0x46e   : > { %5007 = vmatmul.mubr.bf16.gmra.mrb[84].mxu0 %v15184_v50  ;;  %5216 = vmatmul.mubr.bf16.gmra.mrb[84].mxu1 %v15185_v51 }
 0x46f   : > { %5016 = vmatprep.mubr.bf16.mxu0 %v15186_v55  ;;  %5225 = vmatprep.mubr.bf16.mxu1 %v15188_v62 }
 0x470   : > { %6035 = vmatpush1.bf16.msra.mxu0 %v15258_v12  ;;  %6148 = vmatpush1.bf16.msra.mxu1 %v15261_v53 }
 0x471   : > { %6036 = vmatprep.subr.bf16.mxu0 %v15266_v28  ;;  %6149 = vmatprep.subr.bf16.mxu1 %v15269_v49 }
 0x474   : > { %6037 = vmatpush1.bf16.msra.mxu0 %v15264_v59  ;;  %6150 = vmatpush1.bf16.msra.mxu1 %v15267_v20 }
 0x475   : > { %6038 = vmatprep.subr.bf16.mxu0 %v15272_v3  ;;  %6151 = vmatprep.subr.bf16.mxu1 %v15275_v32 }
 0x476   : > { %5017 = vmatmul.mubr.bf16.gmra.mrb[88].mxu0 %v15190_v13  ;;  %5226 = vmatmul.mubr.bf16.gmra.mrb[88].mxu1 %v15191_v34 }
 0x477   : > { %5026 = vmatprep.mubr.bf16.mxu0 %v15192_v18  ;;  %5235 = vmatprep.mubr.bf16.mxu1 %v15194_v5 }
 0x478   : > { %6039 = vmatpush1.bf16.msra.mxu0 %v15270_v24  ;;  %6152 = vmatpush1.bf16.msra.mxu1 %v15273_v60 }
 0x479   : > { %6040 = vmatprep.subr.bf16.mxu0 %v15278_v35  ;;  %6153 = vmatprep.subr.bf16.mxu1 %v15281_v63 }
 0x47c   : > { %6041 = vmatpush1.bf16.msra.mxu0 %v15276_v31  ;;  %6154 = vmatpush1.bf16.msra.mxu1 %v15279_v29 }
 0x47d   : > { %6042 = vmatprep.subr.bf16.mxu0 %v15284_v23  ;;  %6155 = vmatprep.subr.bf16.mxu1 %v15287_v25 }
 0x47e   : > { %5027 = vmatmul.mubr.bf16.gmra.mrb[92].mxu0 %v15196_v21  ;;  %5236 = vmatmul.mubr.bf16.gmra.mrb[92].mxu1 %v15197_v48 }
 0x480   : > { %6043 = vmatpush1.bf16.msra.mxu0 %v15282_v58  ;;  %6156 = vmatpush1.bf16.msra.mxu1 %v15285_v17 }
 0x481   : > { %6044 = vmatprep.subr.bf16.mxu0 %v15290_v56  ;;  %6157 = vmatprep.subr.bf16.mxu1 %v15293_v57  ;;  %v15294_v57 = vld [vmem:[%s20610_s3] ss:$16 sps:$4 sm:$0xff]  }
 0x484   : > { %6045 = vmatpush1.bf16.msra.mxu0 %v15288_v15  ;;  %6158 = vmatpush1.bf16.msra.mxu1 %v15291_v26 }
 0x485   : > { %6560 = vmatprep.subr.bf16.mxu0 %v15296_v11  ;;  %6673 = vmatprep.subr.bf16.mxu1 %v15299_v1 }
 0x519   : > { %v4958_v2 = vpop.f32.mrb[64].mxu0  ;;  %v5167_v8 = vpop.f32.mrb[64].mxu1 }
 0x51a   : > { %v5246_v4 = vmax.f32 %v4958_v2, %v5167_v8  ;;  %v4960_v30 = vpop.f32.mrb[65].mxu0  ;;  %v5169_v45 = vpop.f32.mrb[65].mxu1  ;;  %v15297_v8 = vld [vmem:[%s20610_s3 + $0x8] ss:$16 sps:$4 sm:$0xff]  }
 0x51b   : > { %v5247_v9 = vmax.f32 %v4960_v30, %v5169_v45  ;;  %v4962_v46 = vpop.f32.mrb[66].mxu0  ;;  %v5171_v14 = vpop.f32.mrb[66].mxu1 }
 0x51c   : > { %5278 = vst [vmem:[#allocation3] sm:$0xff] %v5246_v4  ;;  %v18201_v47 = vmax.f32 %v4962_v46, %v5171_v14  ;;  %v4964_v42 = vpop.f32.mrb[67].mxu0  ;;  %v5173_v16 = vpop.f32.mrb[67].mxu1  ;;  %v15305_v46 = vld [vmem:[%s20610_s3 + $0x2c] ss:$16 sps:$4 sm:$0xff]  }
 0x51d   : > { %5279 = vst [vmem:[#allocation3 + $0x8] sm:$0xff] %v5247_v9  ;;  %v18203_v33 = vmax.f32 %v4964_v42, %v5173_v16  ;;  %v15302_v9 = vld [vmem:[%s20610_s3 + $0x24] ss:$16 sps:$4 sm:$0xff]  }
 0x51e   : > { %5280 = vst [vmem:[#allocation3 + $0x10] sm:$0xff] %v18201_v47 }
 0x51f   : > { %5281 = vst [vmem:[#allocation3 + $0x18] sm:$0xff] %v18203_v33 }
 0x521   : > { %v4968_v52 = vpop.f32.mrb[68].mxu0  ;;  %v5177_v39 = vpop.f32.mrb[68].mxu1 }
 0x522   : > { %v5250_v61 = vmax.f32 %v4968_v52, %v5177_v39  ;;  %v4970_v10 = vpop.f32.mrb[69].mxu0  ;;  %v5179_v27 = vpop.f32.mrb[69].mxu1 }
 0x523   : > { %v5251_v38 = vmax.f32 %v4970_v10, %v5179_v27  ;;  %v4972_v19 = vpop.f32.mrb[70].mxu0  ;;  %v5181_v50 = vpop.f32.mrb[70].mxu1  ;;  %v5424_v51 = vld [vmem:[#allocation3] sm:$0xfe] }
 0x524   : > { %5282 = vst [vmem:[#allocation3 + $0x20] sm:$0xff] %v5250_v61  ;;  %v5252_v55 = vmax.f32 %v4972_v19, %v5181_v50  ;;  %v4974_v62 = vpop.f32.mrb[71].mxu0  ;;  %v5183_v13 = vpop.f32.mrb[71].mxu1  ;;  %v5425_v34 = vld [vmem:[#allocation3 + $0x8] sm:$0xfe]  ;;  %v5458_v18 = vpack.c.bf16 %v18201_v47, %v5424_v51 }
 0x525   : > { %5283 = vst [vmem:[#allocation3 + $0x28] sm:$0xff] %v5251_v38  ;;  %v5253_v5 = vmax.f32 %v4974_v62, %v5183_v13  ;;  %v5459_v21 = vpack.c.bf16 %v18203_v33, %v5425_v34  ;;  %v6787_v6 = vld [vmem:[#allocation3 + $0x8] sm:$0xfc]  ;;  %v6786_v28 = vld [vmem:[#allocation3] sm:$0xfc] }
 0x526   : > { %5284 = vst [vmem:[#allocation3 + $0x30] sm:$0xff] %v5252_v55  ;;  %v18209_v48 = vpack.c.bf16 %v5252_v55, %v5250_v61  ;;  %v5545_v54 = vshll.u32 %v5458_v18, 16  ;;  %v5543_v7 = vshrl.u32 %v5458_v18, 16  ;;  %v6791_v53 = vpack.c.bf16 %v18203_v33, %v6787_v6  ;;  %v7539_v14 = vld [vmem:[#allocation3 + $0x8] sm:$0xf8] }
 0x527   : > { %5285 = vst [vmem:[#allocation3 + $0x38] sm:$0xff] %v5253_v5  ;;  %v18211_v36 = vpack.c.bf16 %v5253_v5, %v5251_v38  ;;  %v5557_v37 = vshll.u32 %v5459_v21, 16  ;;  %v5555_v20 = vshrl.u32 %v5459_v21, 16  ;;  %v6790_v15 = vpack.c.bf16 %v18201_v47, %v6786_v28  ;;  %v15300_v61 = vld [vmem:[%s20610_s3 + $0x20] ss:$16 sps:$4 sm:$0xff]  }
 0x528   : > { %v5547_v22 = vrot.slane %v5545_v54, 1  ;;  %v5550_v12 = vshll.u32 %v18209_v48, 16  ;;  %v6881_v4 = vrot.slane %v6791_v53, 1  ;;  %v6879_v39 = vrot.slane %v18209_v48, 1  ;;  %v15303_v19 = vld [vmem:[%s20610_s3 + $0x28] ss:$16 sps:$4 sm:$0xff]  }
 0x529   : > { %v4978_v49 = vpop.f32.mrb[72].mxu0  ;;  %v5187_v59 = vpop.f32.mrb[72].mxu1  ;;  %v5559_v3 = vrot.slane %v5557_v37, 1  ;;  %v5562_v32 = vshll.u32 %v18211_v36, 16  ;;  %v6882_v29 = vrot.slane %v18211_v36, 1  ;;  %v6878_v52 = vrot.slane %v6790_v15, 1 }
 0x52a   : > { %v5254_v24 = vmax.f32 %v4978_v49, %v5187_v59  ;;  %v4980_v60 = vpop.f32.mrb[73].mxu0  ;;  %v5189_v35 = vpop.f32.mrb[73].mxu1  ;;  %v5548_v63 = vor.u32 %v5547_v22, %v5543_v7  ;;  %v5552_v31 = vrot.slane %v5550_v12, 1  ;;  %v5574_v27 = vshrl.u32 %v18211_v36, 16  ;;  %v15308_v51 = vld [vmem:[%s20610_s3 + $0x44] ss:$16 sps:$4 sm:$0xff]  }
 0x52b   : > { %v5255_v23 = vmax.f32 %v4980_v60, %v5189_v35  ;;  %v4982_v25 = vpop.f32.mrb[74].mxu0  ;;  %v5191_v58 = vpop.f32.mrb[74].mxu1  ;;  %v5560_v17 = vor.u32 %v5559_v3, %v5555_v20  ;;  %v5564_v56 = vrot.slane %v5562_v32, 1  ;;  %v18241_v16 = vsel %vm6877_vm1, %v6881_v4, %v6882_v29  ;;  %v15311_v54 = vld [vmem:[%s20610_s3 + $0x4c] ss:$16 sps:$4 sm:$0xff]  }
 0x52c   : > { %5286 = vst [vmem:[#allocation3 + $0x40] sm:$0xff] %v5254_v24  ;;  %v5256_v26 = vmax.f32 %v4982_v25, %v5191_v58  ;;  %v4984_v11 = vpop.f32.mrb[75].mxu0  ;;  %v5193_v1 = vpop.f32.mrb[75].mxu1  ;;  %v5553_v2 = vsel %vm5541_vm0, %v5548_v63, %v5552_v31  ;;  %v5566_v38 = vshrl.u32 %v18209_v48, 16  ;;  %v18259_v55 = vsel %vm6877_vm1, %v6878_v52, %v6879_v39  ;;  %v7538_v49 = vld [vmem:[#allocation3] sm:$0xf8] }
 0x52d   : > { %5287 = vst [vmem:[#allocation3 + $0x48] sm:$0xff] %v5255_v23  ;;  %v5257_v30 = vmax.f32 %v4984_v11, %v5193_v1  ;;  %v5565_v45 = vsel %vm5541_vm0, %v5560_v17, %v5564_v56  ;;  %v7543_v13 = vpack.c.bf16 %v18203_v33, %v7539_v14  ;;  %v15306_v35 = vld [vmem:[%s20610_s3 + $0x40] ss:$16 sps:$4 sm:$0xff]   ;;  %v15309_v58 = vld [vmem:[%s20610_s3 + $0x48] ss:$16 sps:$4 sm:$0xff]  }
 0x52e   : > { %5288 = vst [vmem:[#allocation3 + $0x50] sm:$0xff] %v5256_v26  ;;  %6046 = vmatprep.mubr.bf16.mxu0 %v5565_v45  ;;  %6159 = vmatprep.mubr.bf16.mxu1 %v5565_v45  ;;  %v18236_v42 = vpack.c.bf16 %v5256_v26, %v5254_v24  ;;  %v5568_v21 = vor.u32 %v5566_v38, %v5552_v31  ;;  %v15314_v26 = vld [vmem:[%s20610_s3 + $0x64] ss:$16 sps:$4 sm:$0xff]   ;;  %v15317_v11 = vld [vmem:[%s20610_s3 + $0x6c] ss:$16 sps:$4 sm:$0xff]  }
 0x52f   : > { %5289 = vst [vmem:[#allocation3 + $0x58] sm:$0xff] %v5257_v30  ;;  %6047 = vmatmul.mubr.bf16.vlgmr.msra.gmra.mrb[96].mxu0 %v5553_v2  ;;  %6160 = vmatmul.mubr.bf16.vlgmr.msra.gmra.mrb[96].mxu1 %v5553_v2  ;;  %v18247_v10 = vpack.c.bf16 %v5257_v30, %v5255_v23  ;;  %v5576_v24 = vor.u32 %v5574_v27, %v5564_v56  ;;  %v7625_v17 = vshrl.u32 %v7543_v13, 16  ;;  %v7632_v56 = vrot.slane %v5574_v27, 1 }
 0x530   : > { %6561 = vmatpush1.bf16.msra.mxu0 %v15294_v57  ;;  %6674 = vmatpush1.bf16.msra.mxu1 %v15297_v8  ;;  %v5570_v50 = vshll.u32 %v18236_v42, 16  ;;  %v6884_v62 = vrot.slane %v18236_v42, 1  ;;  %v7628_v1 = vshll.u32 %v7543_v13, 16  ;;  %v18294_v2 = vpack.c.bf16 %v18201_v47, %v7538_v49 }
 0x531   : > { %v4988_v34 = vpop.f32.mrb[76].mxu0  ;;  %v5197_v18 = vpop.f32.mrb[76].mxu1  ;;  %6562 = vmatprep.subr.bf16.mxu0 %v15302_v9  ;;  %6675 = vmatprep.subr.bf16.mxu1 %v15305_v46  ;;  %v5578_v5 = vshll.u32 %v18247_v10, 16  ;;  %v6886_v53 = vrot.slane %v18247_v10, 1  ;;  %v5582_v4 = vshrl.u32 %v18236_v42, 16  ;;  %v7627_v45 = vrot.slane %v7625_v17, 1 }
 0x532   : > { %v5258_v6 = vmax.f32 %v4988_v34, %v5197_v18  ;;  %v4990_v37 = vpop.f32.mrb[77].mxu0  ;;  %v5199_v7 = vpop.f32.mrb[77].mxu1  ;;  %v5572_v22 = vrot.slane %v5570_v50, 1  ;;  %v18275_v28 = vsel %vm6877_vm1, %v6879_v39, %v6884_v62  ;;  %v15312_v9 = vld [vmem:[%s20610_s3 + $0x60] ss:$16 sps:$4 sm:$0xff]   ;;  %v7630_v52 = vrot.slane %v7628_v1, 2 }
 0x533   : > { %v5259_v59 = vmax.f32 %v4990_v37, %v5199_v7  ;;  %v4992_v20 = vpop.f32.mrb[78].mxu0  ;;  %v5201_v3 = vpop.f32.mrb[78].mxu1  ;;  %v5580_v60 = vrot.slane %v5578_v5, 1  ;;  %v18304_v30 = vsel %vm6877_vm1, %v6882_v29, %v6886_v53  ;;  %v15315_v46 = vld [vmem:[%s20610_s3 + $0x68] ss:$16 sps:$4 sm:$0xff]   ;;  %v7633_v39 = vrot.slane %v5562_v32, 2 }
 0x534   : > { %5290 = vst [vmem:[#allocation3 + $0x60] sm:$0xff] %v5258_v6  ;;  %v5260_v63 = vmax.f32 %v4992_v20, %v5201_v3  ;;  %v4994_v31 = vpop.f32.mrb[79].mxu0  ;;  %v5203_v23 = vpop.f32.mrb[79].mxu1  ;;  %6563 = vmatpush1.bf16.msra.mxu0 %v15300_v61  ;;  %6676 = vmatpush1.bf16.msra.mxu1 %v15303_v19  ;;  %v5573_v25 = vsel %vm5541_vm0, %v5568_v21, %v5572_v22  ;;  %v5590_v29 = vshrl.u32 %v18247_v10, 16  ;;  %v15320_v19 = vld [vmem:[%s20610_s3 + $0x84] ss:$16 sps:$4 sm:$0xff]  }
 0x535   : > { %5291 = vst [vmem:[#allocation3 + $0x68] sm:$0xff] %v5259_v59  ;;  %v5261_v57 = vmax.f32 %v4994_v31, %v5203_v23  ;;  %v5581_v15 = vsel %vm5541_vm0, %v5576_v24, %v5580_v60  ;;  %6564 = vmatprep.subr.bf16.mxu0 %v15308_v51  ;;  %6677 = vmatprep.subr.bf16.mxu1 %v15311_v54  ;;  %v15323_v18 = vld [vmem:[%s20610_s3 + $0x8c] ss:$16 sps:$4 sm:$0xff]   ;;  %v15318_v23 = vld [vmem:[%s20610_s3 + $0x80] ss:$16 sps:$4 sm:$0xff]  }
 0x536   : > { %5292 = vst [vmem:[#allocation3 + $0x70] sm:$0xff] %v5260_v63  ;;  %6056 = vmatprep.mubr.bf16.mxu0 %v5581_v15  ;;  %6169 = vmatprep.mubr.bf16.mxu1 %v5581_v15  ;;  %v18296_v8 = vpack.c.bf16 %v5260_v63, %v5258_v6  ;;  %v5584_v61 = vor.u32 %v5582_v4, %v5572_v22  ;;  %v7613_v6 = vshrl.u32 %v18294_v2, 16 }
 0x537   : > { %5293 = vst [vmem:[#allocation3 + $0x78] sm:$0xff] %v5261_v57  ;;  %6057 = vmatmul.mubr.bf16.gmra.mrb[100].mxu0 %v5573_v25  ;;  %6170 = vmatmul.mubr.bf16.gmra.mrb[100].mxu1 %v5573_v25  ;;  %v18312_v14 = vpack.c.bf16 %v5261_v57, %v5259_v59  ;;  %v7631_v21 = vor.u32 %v7630_v52, %v7627_v45  ;;  %v15321_v57 = vld [vmem:[%s20610_s3 + $0x88] ss:$16 sps:$4 sm:$0xff]   ;;  %v7616_v45 = vshll.u32 %v18294_v2, 16  ;;  %v7621_v52 = vrot.slane %v5550_v12, 2 }
 0x538   : > { %6565 = vmatpush1.bf16.msra.mxu0 %v15306_v35  ;;  %6678 = vmatpush1.bf16.msra.mxu1 %v15309_v58  ;;  %v5586_v27 = vshll.u32 %v18296_v8, 16  ;;  %v6888_v51 = vrot.slane %v18296_v8, 1  ;;  %v18328_v54 = vor.u32 %v7633_v39, %v7632_v56  ;;  %v5592_v63 = vor.u32 %v5590_v29, %v5580_v60  ;;  %v15324_v2 = vld [vmem:[%s20610_s3 + $0xa0] ss:$16 sps:$4 sm:$0xff]   ;;  %v15327_v39 = vld [vmem:[%s20610_s3 + $0xa8] ss:$16 sps:$4 sm:$0xff]  }
 0x539   : > { %v4998_v13 = vpop.f32.mrb[80].mxu0  ;;  %v5207_v34 = vpop.f32.mrb[80].mxu1  ;;  %6566 = vmatprep.subr.bf16.mxu0 %v15314_v26  ;;  %6679 = vmatprep.subr.bf16.mxu1 %v15317_v11  ;;  %v5594_v32 = vshll.u32 %v18312_v14, 16  ;;  %v20642_v59 = vrot.slane %v18312_v14, 1  ;;  %v7620_v56 = vrot.slane %v5566_v38, 1  ;;  %v7615_v1 = vrot.slane %v7613_v6, 1 }
 0x53a   : > { %v5262_v37 = vmax.f32 %v4998_v13, %v5207_v34  ;;  %v5000_v7 = vpop.f32.mrb[81].mxu0  ;;  %v5209_v22 = vpop.f32.mrb[81].mxu1  ;;  %v5588_v49 = vrot.slane %v5586_v27, 1  ;;  %v18339_v20 = vsel %vm6877_vm1, %v6884_v62, %v6888_v51  ;;  %v18350_v25 = vsel %vm7611_vm2, %v7631_v21, %v18328_v54  ;;  %v15326_v11 = vld [vmem:[%s20610_s3 + $0xa4] ss:$16 sps:$4 sm:$0xff]  }
 0x53b   : > { %v5263_v3 = vmax.f32 %v5000_v7, %v5209_v22  ;;  %v5002_v24 = vpop.f32.mrb[82].mxu0  ;;  %v5211_v35 = vpop.f32.mrb[82].mxu1  ;;  %v5596_v31 = vrot.slane %v5594_v32, 1  ;;  %v15329_v38 = vld [vmem:[%s20610_s3 + $0xac] ss:$16 sps:$4 sm:$0xff]   ;;  %v7618_v13 = vrot.slane %v7616_v45, 2  ;;  %v18392_v21 = vor.u32 %v7621_v52, %v7620_v56 }
 0x53c   : > { %5294 = vst [vmem:[#allocation3 + $0x80] sm:$0xff] %v5262_v37  ;;  %v5264_v62 = vmax.f32 %v5002_v24, %v5211_v35  ;;  %v5004_v58 = vpop.f32.mrb[83].mxu0  ;;  %v5213_v17 = vpop.f32.mrb[83].mxu1  ;;  %6567 = vmatpush1.bf16.msra.mxu0 %v15312_v9  ;;  %6680 = vmatpush1.bf16.msra.mxu1 %v15315_v46  ;;  %v5589_v60 = vsel %vm5541_vm0, %v5584_v61, %v5588_v49  ;;  %v15332_v34 = vld [vmem:[%s20610_s3 + $0xc4] ss:$16 sps:$4 sm:$0xff]  }
 0x53d   : > { %v5265_v15 = vmax.f32 %v5004_v58, %v5213_v17  ;;  %v5597_v26 = vsel %vm5541_vm0, %v5592_v63, %v5596_v31  ;;  %6568 = vmatprep.subr.bf16.mxu0 %v15320_v19  ;;  %6681 = vmatprep.subr.bf16.mxu1 %v15323_v18  ;;  %v18373_v46 = vsel %vm6877_vm1, %v6886_v53, %v20642_v59  ;;  %v5598_v19 = vshrl.u32 %v18296_v8, 16  ;;  %v15333_v45 = vld [vmem:[%s20610_s3 + $0xc8] ss:$16 sps:$4 sm:$0xff]  }
 0x53e   : > { %5296 = vst [vmem:[#allocation3 + $0x90] sm:$0xff] %v5264_v62  ;;  %6066 = vmatprep.mubr.bf16.mxu0 %v5597_v26  ;;  %6179 = vmatprep.mubr.bf16.mxu1 %v5597_v26  ;;  %v18366_v9 = vpack.c.bf16 %v5264_v62, %v5262_v37  ;;  %v5606_v53 = vshrl.u32 %v18312_v14, 16  ;;  %v7619_v24 = vor.u32 %v7618_v13, %v7615_v1  ;;  %v15330_v1 = vld [vmem:[%s20610_s3 + $0xc0] ss:$16 sps:$4 sm:$0xff]  }
 0x53f   : > { %6067 = vmatmul.mubr.bf16.gmra.mrb[104].mxu0 %v5589_v60  ;;  %6180 = vmatmul.mubr.bf16.gmra.mrb[104].mxu1 %v5589_v60  ;;  %v18383_v61 = vpack.c.bf16 %v5265_v15, %v5263_v3  ;;  %v5600_v22 = vor.u32 %v5598_v19, %v5588_v49  ;;  %v15335_v3 = vld [vmem:[%s20610_s3 + $0xcc] ss:$16 sps:$4 sm:$0xff]   ;;  %v7640_v15 = vrot.slane %v5590_v29, 1  ;;  %v15338_v29 = vld [vmem:[%s20610_s3 + $0xe4] ss:$16 sps:$4 sm:$0xff]  }
 0x540   : > { %6569 = vmatpush1.bf16.msra.mxu0 %v15318_v23  ;;  %6682 = vmatpush1.bf16.msra.mxu1 %v15321_v57  ;;  %v5602_v12 = vshll.u32 %v18366_v9, 16  ;;  %v20641_v18 = vrot.slane %v18366_v9, 1  ;;  %v5608_v62 = vor.u32 %v5606_v53, %v5596_v31  ;;  %v18415_v31 = vsel %vm7611_vm2, %v7619_v24, %v18392_v21  ;;  %v15344_v24 = vld [vmem:[%s20610_s3 + $0x104] ss:$16 sps:$4 sm:$0xff]  }
 0x541   : > { %v5008_v6 = vpop.f32.mrb[84].mxu0  ;;  %v5217_v37 = vpop.f32.mrb[84].mxu1  ;;  %6570 = vmatprep.subr.bf16.mxu0 %v15326_v11  ;;  %6683 = vmatprep.subr.bf16.mxu1 %v15329_v38  ;;  %v5610_v7 = vshll.u32 %v18383_v61, 16 }
 0x542   : > { %v5266_v35 = vmax.f32 %v5008_v6, %v5217_v37  ;;  %v5010_v63 = vpop.f32.mrb[85].mxu0  ;;  %v5219_v23 = vpop.f32.mrb[85].mxu1  ;;  %v18402_v58 = vrot.slane %v5602_v12, 1  ;;  %v18409_v17 = vsel %vm6877_vm1, %v6888_v51, %v20641_v18  ;;  %v15336_v6 = vld [vmem:[%s20610_s3 + $0xe0] ss:$16 sps:$4 sm:$0xff]  }
 0x543   : > { %v5267_v49 = vmax.f32 %v5010_v63, %v5219_v23  ;;  %v5012_v56 = vpop.f32.mrb[86].mxu0  ;;  %v5221_v60 = vpop.f32.mrb[86].mxu1  ;;  %v5612_v57 = vrot.slane %v5610_v7, 1  ;;  %v7648_v23 = vrot.slane %v5606_v53, 1  ;;  %v5457_v53 = vld [vmem:[#allocation3 + $0x108] sm:$0x1] }
 0x544   : > { %v5268_v26 = vmax.f32 %v5012_v56, %v5221_v60  ;;  %v5014_v11 = vpop.f32.mrb[87].mxu0  ;;  %v5223_v38 = vpop.f32.mrb[87].mxu1  ;;  %6571 = vmatpush1.bf16.msra.mxu0 %v15324_v2  ;;  %6684 = vmatpush1.bf16.msra.mxu1 %v15327_v39  ;;  %v5605_v51 = vsel %vm5541_vm0, %v5600_v22, %v18402_v58  ;;  %v15341_v2 = vld [vmem:[%s20610_s3 + $0xec] ss:$16 sps:$4 sm:$0xff]   ;;  %v7641_v39 = vrot.slane %v5578_v5, 2  ;;  %v7636_v22 = vrot.slane %v5582_v4, 1 }
 0x545   : > { %v5269_v52 = vmax.f32 %v5014_v11, %v5223_v38  ;;  %v5613_v13 = vsel %vm5541_vm0, %v5608_v62, %v5612_v57  ;;  %6572 = vmatprep.subr.bf16.mxu0 %v15332_v34  ;;  %6685 = vmatprep.subr.bf16.mxu1 %v15335_v3  ;;  %v18441_v34 = vld [vmem:[#allocation3 + $0x100] sm:$0x1]  ;;  %v5622_v4 = vshrl.u32 %v18383_v61, 16  ;;  %v7649_v56 = vrot.slane %v5594_v32, 2 }
 0x546   : > { %6076 = vmatprep.mubr.bf16.mxu0 %v5613_v13  ;;  %6189 = vmatprep.mubr.bf16.mxu1 %v5613_v13  ;;  %v18439_v37 = vpack.c.bf16 %v5268_v26, %v5266_v35  ;;  %v15339_v3 = vld [vmem:[%s20610_s3 + $0xe8] ss:$16 sps:$4 sm:$0xff]   ;;  %v7642_v63 = vor.u32 %v7641_v39, %v7640_v15  ;;  %v7637_v35 = vrot.slane %v5570_v50, 2  ;;  %v5474_v15 = vpack.c.bf16 %v18441_v34, %v18441_v34 }
 0x547   : > { %6077 = vmatmul.mubr.bf16.gmra.mrb[108].mxu0 %v5605_v51  ;;  %6190 = vmatmul.mubr.bf16.gmra.mrb[108].mxu1 %v5605_v51  ;;  %v18448_v5 = vpack.c.bf16 %v5269_v52, %v5267_v49  ;;  %v15347_v49 = vld [vmem:[%s20610_s3 + $0x10c] ss:$16 sps:$4 sm:$0xff]   ;;  %v5624_v32 = vor.u32 %v5622_v4, %v5612_v57  ;;  %v5614_v52 = vshrl.u32 %v18366_v9, 16 }
 0x548   : > { %6573 = vmatpush1.bf16.msra.mxu0 %v15330_v1  ;;  %6686 = vmatpush1.bf16.msra.mxu1 %v15333_v45  ;;  %v20643_v62 = vshll.u32 %v18439_v37, 16  ;;  %v18467_v11 = vsel %vm7611_vm2, %v18328_v54, %v7642_v63  ;;  %v18469_v38 = vor.u32 %v7637_v35, %v7636_v22  ;;  %v7650_v35 = vor.u32 %v7649_v56, %v7648_v23 }
 0x549   : > { %v5018_v60 = vpop.f32.mrb[88].mxu0  ;;  %v5227_v26 = vpop.f32.mrb[88].mxu1  ;;  %6574 = vmatprep.subr.bf16.mxu0 %v15338_v29  ;;  %6687 = vmatprep.subr.bf16.mxu1 %v15341_v2  ;;  %v20644_v50 = vshll.u32 %v18448_v5, 16  ;;  %v7540_v29 = vld [vmem:[#allocation3 + $0x100] sm:$0x7]  ;;  %v5630_v59 = vshrl.u32 %v18439_v37, 16 }
 0x54a   : > { %v5270_v51 = vmax.f32 %v5018_v60, %v5227_v26  ;;  %v5020_v1 = vpop.f32.mrb[89].mxu0  ;;  %v5229_v45 = vpop.f32.mrb[89].mxu1  ;;  %v18474_v13 = vrot.slane %v20643_v62, 1  ;;  %v18481_v22 = vsel %vm7611_vm2, %v18392_v21, %v18469_v38  ;;  %v5475_v21 = vpack.c.bf16 %v5457_v53, %v5457_v53 }
 0x54b   : > { %v5271_v2 = vmax.f32 %v5020_v1, %v5229_v45  ;;  %v5022_v39 = vpop.f32.mrb[90].mxu0  ;;  %v5231_v34 = vpop.f32.mrb[90].mxu1  ;;  %v5628_v54 = vrot.slane %v20644_v50, 1  ;;  %v5616_v1 = vor.u32 %v5614_v52, %v18402_v58  ;;  %v15342_v45 = vld [vmem:[%s20610_s3 + $0x100] ss:$16 sps:$4 sm:$0xff]   ;;  %v18509_v53 = vsel %vm7611_vm2, %v7642_v63, %v7650_v35 }
 0x54c   : > { %v5272_v57 = vmax.f32 %v5022_v39, %v5231_v34  ;;  %v5024_v60 = vpop.f32.mrb[91].mxu0  ;;  %v5233_v26 = vpop.f32.mrb[91].mxu1  ;;  %6575 = vmatpush1.bf16.msra.mxu0 %v15336_v6  ;;  %6688 = vmatpush1.bf16.msra.mxu1 %v15339_v3  ;;  %v15350_v6 = vld [vmem:[%s20610_s3 + $0x124] ss:$16 sps:$4 sm:$0xff]   ;;  %v15353_v58 = vld [vmem:[%s20610_s3 + $0x12c] ss:$16 sps:$4 sm:$0xff]   ;;  %v18499_v3 = vpack.c.bf16 %v7540_v29, %v7540_v29 }
 0x54d   : > { %v5273_v18 = vmax.f32 %v5024_v60, %v5233_v26  ;;  %v5629_v23 = vsel %vm5541_vm0, %v5624_v32, %v5628_v54  ;;  %6576 = vmatprep.subr.bf16.mxu0 %v15344_v24  ;;  %6689 = vmatprep.subr.bf16.mxu1 %v15347_v49  ;;  %v5621_v56 = vsel %vm5541_vm0, %v5616_v1, %v18474_v13  ;;  %v15348_v24 = vld [vmem:[%s20610_s3 + $0x120] ss:$16 sps:$4 sm:$0xff]   ;;  %v7644_v32 = vrot.slane %v5598_v19, 1  ;;  %v15351_v29 = vld [vmem:[%s20610_s3 + $0x128] ss:$16 sps:$4 sm:$0xff]  }
 0x54e   : > { %6086 = vmatprep.mubr.bf16.mxu0 %v5629_v23  ;;  %6199 = vmatprep.mubr.bf16.mxu1 %v5629_v23  ;;  %v18506_v49 = vpack.c.bf16 %v5272_v57, %v5270_v51  ;;  %v7645_v34 = vrot.slane %v5586_v27, 2  ;;  %v7656_v60 = vrot.slane %v5622_v4, 1  ;;  %v7657_v51 = vrot.slane %v5610_v7, 2  ;;  %v15356_v57 = vld [vmem:[%s20610_s3 + $0x144] ss:$16 sps:$4 sm:$0xff]  }
 0x54f   : > { %6087 = vmatmul.mubr.bf16.gmra.mrb[112].mxu0 %v5621_v56  ;;  %6200 = vmatmul.mubr.bf16.gmra.mrb[112].mxu1 %v5621_v56  ;;  %v18516_v39 = vpack.c.bf16 %v5273_v18, %v5271_v2  ;;  %v5638_v63 = vshrl.u32 %v18448_v5, 16  ;;  %v18527_v26 = vshll.u32 %v5475_v21, 16  ;;  %v18529_v18 = vshll.u32 %v5474_v15, 16 }
 0x550   : > { %6577 = vmatpush1.bf16.msra.mxu0 %v15342_v45  ;;  %6690 = vmatpush1.bf16.msra.mxu1 %v15345_v0  ;;  %v20645_v19 = vshll.u32 %v18506_v49, 16  ;;  %v15359_v0 = vld [vmem:[%s20610_s3 + $0x14c] ss:$16 sps:$4 sm:$0xff]   ;;  %v18535_v4 = vor.u32 %v7645_v34, %v7644_v32  ;;  %v18537_v1 = vor.u32 %v7657_v51, %v7656_v60  ;;  %v7685_v45 = vshrl.u32 %v18499_v3, 16  ;;  %v15354_v34 = vld [vmem:[%s20610_s3 + $0x140] ss:$16 sps:$4 sm:$0xff]  }
 0x551   : > { %v5028_v2 = vpop.f32.mrb[92].mxu0  ;;  %v5237_v27 = vpop.f32.mrb[92].mxu1  ;;  %6578 = vmatprep.subr.bf16.mxu0 %v15350_v6  ;;  %6691 = vmatprep.subr.bf16.mxu1 %v15353_v58  ;;  %v20646_v7 = vshll.u32 %v18516_v39, 16  ;;  %v5640_v56 = vor.u32 %v5638_v63, %v5628_v54 }
 0x552   : > { %v5274_v21 = vmax.f32 %v5028_v2, %v5237_v27  ;;  %v5030_v23 = vpop.f32.mrb[93].mxu0  ;;  %v5239_v15 = vpop.f32.mrb[93].mxu1  ;;  %v18543_v6 = vrot.slane %v20645_v19, 1  ;;  %v18553_v54 = vsel %vm7611_vm2, %v18469_v38, %v18535_v4  ;;  %v18557_v60 = vsel %vm7611_vm2, %v7650_v35, %v18537_v1 }
 0x553   : > { %v5275_v58 = vmax.f32 %v5030_v23, %v5239_v15  ;;  %v5032_v62 = vpop.f32.mrb[94].mxu0  ;;  %v5241_v50 = vpop.f32.mrb[94].mxu1  ;;  %v5644_v32 = vrot.slane %v20646_v7, 1  ;;  %v5632_v23 = vor.u32 %v5630_v59, %v18474_v13  ;;  %v15357_v15 = vld [vmem:[%s20610_s3 + $0x148] ss:$16 sps:$4 sm:$0xff]   ;;  %v7652_v19 = vrot.slane %v5614_v52, 1 }
 0x554   : > { %v5276_v51 = vmax.f32 %v5032_v62, %v5241_v50  ;;  %v5034_v2 = vpop.f32.mrb[95].mxu0  ;;  %v5243_v27 = vpop.f32.mrb[95].mxu1  ;;  %6579 = vmatpush1.bf16.msra.mxu0 %v15348_v24  ;;  %6692 = vmatpush1.bf16.msra.mxu1 %v15351_v29  ;;  %v7688_v38 = vshll.u32 %v18499_v3, 16  ;;  %v15362_v62 = vld [vmem:[%s20610_s3 + $0x164] ss:$16 sps:$4 sm:$0xff]   ;;  %v18574_v24 = vrot.slane %v7685_v45, 1 }
 0x555   : > { %v5277_v7 = vmax.f32 %v5034_v2, %v5243_v27  ;;  %v5645_v35 = vsel %vm5541_vm0, %v5640_v56, %v5644_v32  ;;  %6580 = vmatprep.subr.bf16.mxu0 %v15356_v57  ;;  %6693 = vmatprep.subr.bf16.mxu1 %v15359_v0  ;;  %v15365_v50 = vld [vmem:[%s20610_s3 + $0x16c] ss:$16 sps:$4 sm:$0xff]   ;;  %v5637_v52 = vsel %vm5541_vm0, %v5632_v23, %v18543_v6  ;;  %v15360_v3 = vld [vmem:[%s20610_s3 + $0x160] ss:$16 sps:$4 sm:$0xff]   ;;  %v7653_v57 = vrot.slane %v5602_v12, 2 }
 0x556   : > { %6096 = vmatprep.mubr.bf16.mxu0 %v5645_v35  ;;  %6209 = vmatprep.mubr.bf16.mxu1 %v5645_v35  ;;  %v18581_v29 = vpack.c.bf16 %v5276_v51, %v5274_v21  ;;  %v7664_v0 = vrot.slane %v5638_v63, 1  ;;  %v15363_v45 = vld [vmem:[%s20610_s3 + $0x168] ss:$16 sps:$4 sm:$0xff]   ;;  %v20688_v2 = vshll.u32 %v18448_v5, 16  ;;  %v7660_v23 = vrot.slane %v5630_v59, 1 }
 0x557   : > { %6097 = vmatmul.mubr.bf16.gmra.mrb[116].mxu0 %v5637_v52  ;;  %6210 = vmatmul.mubr.bf16.gmra.mrb[116].mxu1 %v5637_v52  ;;  %v18588_v56 = vpack.c.bf16 %v5277_v7, %v5275_v58  ;;  %v20689_v35 = vshll.u32 %v18439_v37, 16  ;;  %v5654_v12 = vshrl.u32 %v18516_v39, 16  ;;  %v15368_v51 = vld [vmem:[%s20610_s3 + $0x184] ss:$16 sps:$4 sm:$0xff]   ;;  %v7654_v7 = vor.u32 %v7653_v57, %v7652_v19 }
 0x558   : > { %v7665_v27 = vrot.slane %v20688_v2, 2  ;;  %6581 = vmatpush1.bf16.msra.mxu0 %v15354_v34  ;;  %6694 = vmatpush1.bf16.msra.mxu1 %v15357_v15  ;;  %v5650_v63 = vshll.u32 %v18581_v29, 16  ;;  %v18599_v58 = vrot.slane %v7688_v38, 2  ;;  %v5646_v52 = vshrl.u32 %v18506_v49, 16  ;;  %v15371_v34 = vld [vmem:[%s20610_s3 + $0x18c] ss:$16 sps:$4 sm:$0xff]  }
 0x559   : > { %v7661_v21 = vrot.slane %v20689_v35, 2  ;;  %6582 = vmatprep.subr.bf16.mxu0 %v15362_v62  ;;  %6695 = vmatprep.subr.bf16.mxu1 %v15365_v50  ;;  %v5658_v59 = vshll.u32 %v18588_v56, 16  ;;  %v8329_v35 = vld [vmem:[#allocation3 + $0x8] sm:$0xf0]  ;;  %v5656_v13 = vor.u32 %v5654_v12, %v5644_v32  ;;  %v5670_v44 = vshrl.u32 %v18588_v56, 16 }
 0x55a   : > { %v7666_v15 = vor.u32 %v7665_v27, %v7664_v0  ;;  %v5652_v43 = vrot.slane %v5650_v63, 1  ;;  %v5662_v19 = vshrl.u32 %v18581_v29, 16  ;;  %v8328_v38 = vld [vmem:[#allocation3] sm:$0xf0]  ;;  %v18610_v50 = vsel %vm7611_vm2, %v18535_v4, %v7654_v7  ;;  %v15366_v27 = vld [vmem:[%s20610_s3 + $0x180] ss:$16 sps:$4 sm:$0xff]  }
 0x55b   : > { %v7662_v2 = vor.u32 %v7661_v21, %v7660_v23  ;;  %v5660_v62 = vrot.slane %v5658_v59, 1  ;;  %v5648_v32 = vor.u32 %v5646_v52, %v18543_v6  ;;  %v7672_v23 = vrot.slane %v5654_v12, 1  ;;  %v15374_v6 = vld [vmem:[%s20610_s3 + $0x1a4] ss:$16 sps:$4 sm:$0xff]  }
 0x55c   : > { %v18614_v57 = vsel %vm7611_vm2, %v18537_v1, %v7666_v15  ;;  %6583 = vmatpush1.bf16.msra.mxu0 %v15360_v3  ;;  %6696 = vmatpush1.bf16.msra.mxu1 %v15363_v45  ;;  %v7691_v4 = vor.u32 %v18599_v58, %v18574_v24  ;;  %v8333_v21 = vpack.c.bf16 %v18203_v33, %v8329_v35  ;;  %v15369_v3 = vld [vmem:[%s20610_s3 + $0x188] ss:$16 sps:$4 sm:$0xff]   ;;  %v20690_v12 = vshll.u32 %v18516_v39, 16 }
 0x55d   : > { %v18617_v0 = vsel %vm7611_vm2, %v7654_v7, %v7662_v2  ;;  %v5661_v1 = vsel %vm5541_vm0, %v5656_v13, %v5660_v62  ;;  %6584 = vmatprep.subr.bf16.mxu0 %v15368_v51  ;;  %6697 = vmatprep.subr.bf16.mxu1 %v15371_v34  ;;  %v5672_v45 = vor.u32 %v5670_v44, %v5660_v62  ;;  %v15377_v13 = vld [vmem:[%s20610_s3 + $0x1ac] ss:$16 sps:$4 sm:$0xff]   ;;  %v7668_v51 = vrot.slane %v5646_v52, 1 }
 0x55e   : > { %v7673_v7 = vrot.slane %v20690_v12, 2  ;;  %v8332_v24 = vpack.c.bf16 %v18201_v47, %v8328_v38  ;;  %6106 = vmatprep.mubr.bf16.mxu0 %v5661_v1  ;;  %6219 = vmatprep.mubr.bf16.mxu1 %v5661_v1  ;;  %v5653_v33 = vsel %vm5541_vm0, %v5648_v32, %v5652_v43  ;;  %v20691_v58 = vshll.u32 %v18506_v49, 16 }
 0x55f   : > { %v7680_v35 = vrot.slane %v5670_v44, 1  ;;  %6107 = vmatmul.mubr.bf16.gmra.mrb[120].mxu0 %v5653_v33  ;;  %6220 = vmatmul.mubr.bf16.gmra.mrb[120].mxu1 %v5653_v33  ;;  %v20692_v62 = vrot.slane %v18527_v26, 1  ;;  %v7681_v38 = vrot.slane %v5658_v59, 2  ;;  %v7676_v1 = vrot.slane %v5662_v19, 1  ;;  %v15372_v44 = vld [vmem:[%s20610_s3 + $0x1a0] ss:$16 sps:$4 sm:$0xff]  }
 0x560   : > { %v7669_v34 = vrot.slane %v20691_v58, 2  ;;  %v7674_v47 = vor.u32 %v7673_v7, %v7672_v23  ;;  %v7677_v41 = vrot.slane %v5650_v63, 2  ;;  %v8409_v40 = vrot.slane %v8333_v21, 2  ;;  %6585 = vmatpush1.bf16.msra.mxu0 %v15366_v27  ;;  %6698 = vmatpush1.bf16.msra.mxu1 %v15369_v3  ;;  %v15375_v26 = vld [vmem:[%s20610_s3 + $0x1a8] ss:$16 sps:$4 sm:$0xff]   ;;  %v5315_v21 = vld [vmem:[#allocation3 + $0x18] sm:$0xff] }
 0x561   : > { %v5677_v12 = vsel %vm5541_vm0, %v5672_v45, %v20692_v62  ;;  %v8410_v52 = vrot.slane %v18211_v36, 2  ;;  %v5664_v23 = vor.u32 %v5662_v19, %v5652_v43  ;;  %v18655_v45 = vor.u32 %v7681_v38, %v7680_v35  ;;  %6586 = vmatprep.subr.bf16.mxu0 %v15374_v6  ;;  %6699 = vmatprep.subr.bf16.mxu1 %v15377_v13  ;;  %v15380_v63 = vld [vmem:[%s20610_s3 + $0x1c4] ss:$16 sps:$4 sm:$0xff]   ;;  %v15383_v27 = vld [vmem:[%s20610_s3 + $0x1cc] ss:$16 sps:$4 sm:$0xff]  }
 0x562   : > { %6116 = vmatprep.mubr.bf16.mxu0 %v5677_v12  ;;  %6229 = vmatprep.mubr.bf16.mxu1 %v5677_v12  ;;  %v7670_v32 = vor.u32 %v7669_v34, %v7668_v51  ;;  %v18653_v59 = vsel %vm7611_vm2, %v7666_v15, %v7674_v47  ;;  %v5668_v36 = vrot.slane %v18529_v18, 1  ;;  %v7678_v15 = vor.u32 %v7677_v41, %v7676_v1  ;;  %v5313_v33 = vld [vmem:[#allocation3 + $0x8] sm:$0xff]  ;;  %v15389_v35 = vld [vmem:[%s20610_s3 + $0x1ec] ss:$16 sps:$4 sm:$0xff]  }
 0x563   : > { %v18668_v19 = vsel %vm8405_vm3, %v8409_v40, %v8410_v52  ;;  %v18672_v3 = vsel %vm7611_vm2, %v7674_v47, %v18655_v45  ;;  %v8406_v18 = vrot.slane %v8332_v24, 2  ;;  %v8407_v6 = vrot.slane %v18209_v48, 2  ;;  %v15378_v24 = vld [vmem:[%s20610_s3 + $0x1c0] ss:$16 sps:$4 sm:$0xff]   ;;  %v15381_v48 = vld [vmem:[%s20610_s3 + $0x1c8] ss:$16 sps:$4 sm:$0xff]  }
 0x564   : > { %v18665_v43 = vsel %vm7611_vm2, %v7662_v2, %v7670_v32  ;;  %v8414_v7 = vrot.slane %v18247_v10, 2  ;;  %v18677_v13 = vsel %vm7611_vm2, %v7670_v32, %v7678_v15  ;;  %v18680_v2 = vsel %vm7611_vm2, %v7678_v15, %v7691_v4  ;;  %6587 = vmatpush1.bf16.msra.mxu0 %v15372_v44  ;;  %6700 = vmatpush1.bf16.msra.mxu1 %v15375_v26  ;;  %v15386_v34 = vld [vmem:[%s20610_s3 + $0x1e4] ss:$16 sps:$4 sm:$0xff]   ;;  %v15384_v1 = vld [vmem:[%s20610_s3 + $0x1e0] ss:$16 sps:$4 sm:$0xff]   ;;  %v5314_v26 = vld [vmem:[#allocation3 + $0x10] sm:$0xff] }
 0x565   : > { %v8412_v41 = vrot.slane %v18236_v42, 2  ;;  %v8418_v40 = vrot.slane %v18312_v14, 2  ;;  %v5345_v10 = vpack.c.bf16 %v5315_v21, %v5313_v33  ;;  %v18691_v51 = vsel %vm8405_vm3, %v8406_v18, %v8407_v6  ;;  %6588 = vmatprep.subr.bf16.mxu0 %v15380_v63  ;;  %6701 = vmatprep.subr.bf16.mxu1 %v15383_v27  ;;  %v15387_v32 = vld [vmem:[%s20610_s3 + $0x1e8] ss:$16 sps:$4 sm:$0xff]   ;;  %v15395_v44 = vld [vmem:[%s20610_s3 + $0x40c] ss:$16 sps:$4 sm:$0xff]  }
 0x566   : > { %v18694_v4 = vsel %vm8405_vm3, %v8410_v52, %v8414_v7  ;;  %v8416_v42 = vrot.slane %v18296_v8, 2  ;;  %v5669_v58 = vsel %vm5541_vm0, %v5664_v23, %v5668_v36  ;;  %v8420_v8 = vrot.slane %v18366_v9, 2  ;;  %v15392_v52 = vld [vmem:[%s20610_s3 + $0x404] ss:$16 sps:$4 sm:$0xff]   ;;  %v5312_v36 = vld [vmem:[#allocation3] sm:$0xff] }
 0x567   : > { %v18705_v62 = vsel %vm8405_vm3, %v8407_v6, %v8412_v41  ;;  %v18710_v12 = vsel %vm8405_vm3, %v8414_v7, %v8418_v40  ;;  %6117 = vmatmul.mubr.bf16.gmra.mrb[124].mxu0 %v5669_v58  ;;  %6230 = vmatmul.mubr.bf16.gmra.mrb[124].mxu1 %v5669_v58  ;;  %v5319_v23 = vld [vmem:[#allocation3 + $0x38] sm:$0xff]  ;;  %v5344_v63 = vpack.c.bf16 %v5314_v26, %v5312_v36  ;;  %v15393_v21 = vld [vmem:[%s20610_s3 + $0x408] ss:$16 sps:$4 sm:$0xff]   ;;  %v5317_v15 = vld [vmem:[#allocation3 + $0x28] sm:$0xff] }
 0x568   : > { %v18714_v47 = vsel %vm8405_vm3, %v8412_v41, %v8416_v42  ;;  %6592 = vmatprep.mubr.bf16.mxu0 %v5345_v10  ;;  %6705 = vmatprep.mubr.bf16.mxu1 %v5345_v10  ;;  %v18719_v38 = vsel %vm8405_vm3, %v8416_v42, %v8420_v8  ;;  %v15390_v27 = vld [vmem:[%s20610_s3 + $0x400] ss:$16 sps:$4 sm:$0xff]   ;;  %v5347_v18 = vpack.c.bf16 %v5319_v23, %v5317_v15  ;;  %v15398_v6 = vld [vmem:[%s20610_s3 + $0x424] ss:$16 sps:$4 sm:$0xff]   ;;  %v15401_v7 = vld [vmem:[%s20610_s3 + $0x42c] ss:$16 sps:$4 sm:$0xff]  }
 0x569   : > { %6589 = vmatpush1.bf16.msra.mxu0 %v15378_v24  ;;  %6702 = vmatpush1.bf16.msra.mxu1 %v15381_v48  ;;  %v15396_v33 = vld [vmem:[%s20610_s3 + $0x420] ss:$16 sps:$4 sm:$0xff]   ;;  %v15399_v41 = vld [vmem:[%s20610_s3 + $0x428] ss:$16 sps:$4 sm:$0xff]   ;;  %v15404_v48 = vld [vmem:[%s20610_s3 + $0x444] ss:$16 sps:$4 sm:$0xff]  }
 0x56a   : > { %6590 = vmatprep.subr.bf16.mxu0 %v15386_v34  ;;  %6703 = vmatprep.subr.bf16.mxu1 %v15389_v35  ;;  %v5318_v24 = vld [vmem:[#allocation3 + $0x30] sm:$0xff]  ;;  %v5323_v42 = vld [vmem:[#allocation3 + $0x58] sm:$0xff]  ;;  %v5316_v58 = vld [vmem:[#allocation3 + $0x20] sm:$0xff] }
 0x56b   : > { %v15407_v10 = vld [vmem:[%s20610_s3 + $0x44c] ss:$16 sps:$4 sm:$0xff]   ;;  %v5346_v34 = vpack.c.bf16 %v5318_v24, %v5316_v58  ;;  %v15402_v35 = vld [vmem:[%s20610_s3 + $0x440] ss:$16 sps:$4 sm:$0xff]   ;;  %v15411_v36 = vld [vmem:[%s20610_s3 + $0x468] ss:$16 sps:$4 sm:$0xff]  }
 0x56c   : > { %v15413_v26 = vld [vmem:[%s20610_s3 + $0x46c] ss:$16 sps:$4 sm:$0xff]   ;;  %v15408_v23 = vld [vmem:[%s20610_s3 + $0x460] ss:$16 sps:$4 sm:$0xff]   ;;  %v15423_v58 = vld [vmem:[%s20610_s3 + $0x4a8] ss:$16 sps:$4 sm:$0xff]  }
 0x56d   : > { %6591 = vmatpush1.bf16.msra.mxu0 %v15384_v1  ;;  %6704 = vmatpush1.bf16.msra.mxu1 %v15387_v32  ;;  %v15405_v1 = vld [vmem:[%s20610_s3 + $0x448] ss:$16 sps:$4 sm:$0xff]   ;;  %v5321_v32 = vld [vmem:[#allocation3 + $0x48] sm:$0xff]  ;;  %v5327_v15 = vld [vmem:[#allocation3 + $0x78] sm:$0xff] }
 0x56e   : > { %7248 = vmatprep.subr.bf16.mxu0 %v15392_v52  ;;  %7361 = vmatprep.subr.bf16.mxu1 %v15395_v44  ;;  %v5349_v52 = vpack.c.bf16 %v5323_v42, %v5321_v32  ;;  %v15410_v44 = vld [vmem:[%s20610_s3 + $0x464] ss:$16 sps:$4 sm:$0xff]   ;;  %v15420_v42 = vld [vmem:[%s20610_s3 + $0x4a0] ss:$16 sps:$4 sm:$0xff]   ;;  %v5324_v32 = vld [vmem:[#allocation3 + $0x60] sm:$0xff] }
 0x570   : > { %6593 = vmatmul.mubr.bf16.vlgmr.msra.gmra.mrb[96].mxu0 %v5344_v63  ;;  %6706 = vmatmul.mubr.bf16.vlgmr.msra.gmra.mrb[96].mxu1 %v5344_v63  ;;  %v5322_v63 = vld [vmem:[#allocation3 + $0x50] sm:$0xff] }
 0x571   : > { %6602 = vmatprep.mubr.bf16.mxu0 %v5347_v18  ;;  %6715 = vmatprep.mubr.bf16.mxu1 %v5347_v18  ;;  %v5320_v18 = vld [vmem:[#allocation3 + $0x40] sm:$0xff] }
 0x572   : > { %7249 = vmatpush1.bf16.msra.mxu0 %v15390_v27  ;;  %7362 = vmatpush1.bf16.msra.mxu1 %v15393_v21  ;;  %v15416_v27 = vld [vmem:[%s20610_s3 + $0x484] ss:$16 sps:$4 sm:$0xff]   ;;  %v15419_v21 = vld [vmem:[%s20610_s3 + $0x48c] ss:$16 sps:$4 sm:$0xff]  }
 0x573   : > { %7250 = vmatprep.subr.bf16.mxu0 %v15398_v6  ;;  %7363 = vmatprep.subr.bf16.mxu1 %v15401_v7  ;;  %v5348_v6 = vpack.c.bf16 %v5322_v63, %v5320_v18  ;;  %v15414_v7 = vld [vmem:[%s20610_s3 + $0x480] ss:$16 sps:$4 sm:$0xff]   ;;  %v15443_v18 = vld [vmem:[%s20610_s3 + $0x50c] ss:$16 sps:$4 sm:$0xff]  }
 0x574   : > { %v15432_v63 = vld [vmem:[%s20610_s3 + $0x4e0] ss:$16 sps:$4 sm:$0xff]  }
 0x576   : > { %7251 = vmatpush1.bf16.msra.mxu0 %v15396_v33  ;;  %7364 = vmatpush1.bf16.msra.mxu1 %v15399_v41  ;;  %v15417_v33 = vld [vmem:[%s20610_s3 + $0x488] ss:$16 sps:$4 sm:$0xff]   ;;  %v5325_v41 = vld [vmem:[#allocation3 + $0x68] sm:$0xff] }
 0x577   : > { %7252 = vmatprep.subr.bf16.mxu0 %v15404_v48  ;;  %7365 = vmatprep.subr.bf16.mxu1 %v15407_v10  ;;  %v5351_v24 = vpack.c.bf16 %v5327_v15, %v5325_v41  ;;  %v15422_v48 = vld [vmem:[%s20610_s3 + $0x4a4] ss:$16 sps:$4 sm:$0xff]   ;;  %v15425_v10 = vld [vmem:[%s20610_s3 + $0x4ac] ss:$16 sps:$4 sm:$0xff]   ;;  %v15441_v41 = vld [vmem:[%s20610_s3 + $0x508] ss:$16 sps:$4 sm:$0xff]  }
 0x578   : > { %6603 = vmatmul.mubr.bf16.gmra.mrb[100].mxu0 %v5346_v34  ;;  %6716 = vmatmul.mubr.bf16.gmra.mrb[100].mxu1 %v5346_v34  ;;  %v5326_v34 = vld [vmem:[#allocation3 + $0x70] sm:$0xff]  ;;  %v15440_v15 = vld [vmem:[%s20610_s3 + $0x504] ss:$16 sps:$4 sm:$0xff]  }
 0x579   : > { %6612 = vmatprep.mubr.bf16.mxu0 %v5349_v52  ;;  %6725 = vmatprep.mubr.bf16.mxu1 %v5349_v52  ;;  %v5350_v52 = vpack.c.bf16 %v5326_v34, %v5324_v32  ;;  %v15455_v34 = vld [vmem:[%s20610_s3 + $0x54c] ss:$16 sps:$4 sm:$0xff]   ;;  %v15458_v32 = vld [vmem:[%s20610_s3 + $0x564] ss:$16 sps:$4 sm:$0xff]  }
 0x57a   : > { %7253 = vmatpush1.bf16.msra.mxu0 %v15402_v35  ;;  %7366 = vmatpush1.bf16.msra.mxu1 %v15405_v1  ;;  %v15428_v35 = vld [vmem:[%s20610_s3 + $0x4c4] ss:$16 sps:$4 sm:$0xff]   ;;  %v15431_v1 = vld [vmem:[%s20610_s3 + $0x4cc] ss:$16 sps:$4 sm:$0xff]  }
 0x57b   : > { %7254 = vmatprep.subr.bf16.mxu0 %v15410_v44  ;;  %7367 = vmatprep.subr.bf16.mxu1 %v15413_v26  ;;  %v15426_v44 = vld [vmem:[%s20610_s3 + $0x4c0] ss:$16 sps:$4 sm:$0xff]   ;;  %v15429_v26 = vld [vmem:[%s20610_s3 + $0x4c8] ss:$16 sps:$4 sm:$0xff]  }
 0x57e   : > { %7255 = vmatpush1.bf16.msra.mxu0 %v15408_v23  ;;  %7368 = vmatpush1.bf16.msra.mxu1 %v15411_v36  ;;  %v15434_v23 = vld [vmem:[%s20610_s3 + $0x4e4] ss:$16 sps:$4 sm:$0xff]   ;;  %v15437_v36 = vld [vmem:[%s20610_s3 + $0x4ec] ss:$16 sps:$4 sm:$0xff]  }
 0x57f   : > { %7256 = vmatprep.subr.bf16.mxu0 %v15416_v27  ;;  %7369 = vmatprep.subr.bf16.mxu1 %v15419_v21  ;;  %v15435_v27 = vld [vmem:[%s20610_s3 + $0x4e8] ss:$16 sps:$4 sm:$0xff]  }
 0x580   : > { %6613 = vmatmul.mubr.bf16.gmra.mrb[104].mxu0 %v5348_v6  ;;  %6726 = vmatmul.mubr.bf16.gmra.mrb[104].mxu1 %v5348_v6  ;;  %v5330_v21 = vld [vmem:[#allocation3 + $0x90] sm:$0xff]  ;;  %v5328_v6 = vld [vmem:[#allocation3 + $0x80] sm:$0xff] }
 0x581   : > { %6622 = vmatprep.mubr.bf16.mxu0 %v5351_v24  ;;  %6735 = vmatprep.mubr.bf16.mxu1 %v5351_v24  ;;  %v15446_v24 = vld [vmem:[%s20610_s3 + $0x524] ss:$16 sps:$4 sm:$0xff]  }
 0x582   : > { %7257 = vmatpush1.bf16.msra.mxu0 %v15414_v7  ;;  %7370 = vmatpush1.bf16.msra.mxu1 %v15417_v33  ;;  %v5352_v7 = vpack.c.bf16 %v5330_v21, %v5328_v6  ;;  %v15438_v33 = vld [vmem:[%s20610_s3 + $0x500] ss:$16 sps:$4 sm:$0xff]   ;;  %v15470_v21 = vld [vmem:[%s20610_s3 + $0x5a4] ss:$16 sps:$4 sm:$0xff]   ;;  %v15471_v6 = vld [vmem:[%s20610_s3 + $0x5a8] ss:$16 sps:$4 sm:$0xff]  }
 0x583   : > { %7258 = vmatprep.subr.bf16.mxu0 %v15422_v48  ;;  %7371 = vmatprep.subr.bf16.mxu1 %v15425_v10  ;;  %v15449_v48 = vld [vmem:[%s20610_s3 + $0x52c] ss:$16 sps:$4 sm:$0xff]   ;;  %v15444_v10 = vld [vmem:[%s20610_s3 + $0x520] ss:$16 sps:$4 sm:$0xff]  }
 0x586   : > { %7259 = vmatpush1.bf16.msra.mxu0 %v15420_v42  ;;  %7372 = vmatpush1.bf16.msra.mxu1 %v15423_v58  ;;  %v15447_v42 = vld [vmem:[%s20610_s3 + $0x528] ss:$16 sps:$4 sm:$0xff]   ;;  %v15452_v58 = vld [vmem:[%s20610_s3 + $0x544] ss:$16 sps:$4 sm:$0xff]  }
 0x587   : > { %7260 = vmatprep.subr.bf16.mxu0 %v15428_v35  ;;  %7373 = vmatprep.subr.bf16.mxu1 %v15431_v1  ;;  %v15450_v35 = vld [vmem:[%s20610_s3 + $0x540] ss:$16 sps:$4 sm:$0xff]   ;;  %v15453_v1 = vld [vmem:[%s20610_s3 + $0x548] ss:$16 sps:$4 sm:$0xff]  }
 0x588   : > { %6623 = vmatmul.mubr.bf16.gmra.mrb[108].mxu0 %v5350_v52  ;;  %6736 = vmatmul.mubr.bf16.gmra.mrb[108].mxu1 %v5350_v52  ;;  %v15461_v52 = vld [vmem:[%s20610_s3 + $0x56c] ss:$16 sps:$4 sm:$0xff]  }
 0x589   : > { %6632 = vmatprep.mubr.bf16.mxu0 %v18383_v61  ;;  %6745 = vmatprep.mubr.bf16.mxu1 %v18383_v61 }
 0x58a   : > { %7261 = vmatpush1.bf16.msra.mxu0 %v15426_v44  ;;  %7374 = vmatpush1.bf16.msra.mxu1 %v15429_v26  ;;  %v15456_v44 = vld [vmem:[%s20610_s3 + $0x560] ss:$16 sps:$4 sm:$0xff]   ;;  %v15459_v26 = vld [vmem:[%s20610_s3 + $0x568] ss:$16 sps:$4 sm:$0xff]  }
 0x58b   : > { %7262 = vmatprep.subr.bf16.mxu0 %v15434_v23  ;;  %7375 = vmatprep.subr.bf16.mxu1 %v15437_v36  ;;  %v15464_v23 = vld [vmem:[%s20610_s3 + $0x584] ss:$16 sps:$4 sm:$0xff]   ;;  %v15467_v36 = vld [vmem:[%s20610_s3 + $0x58c] ss:$16 sps:$4 sm:$0xff]  }
 0x58e   : > { %7263 = vmatpush1.bf16.msra.mxu0 %v15432_v63  ;;  %7376 = vmatpush1.bf16.msra.mxu1 %v15435_v27  ;;  %v15462_v63 = vld [vmem:[%s20610_s3 + $0x580] ss:$16 sps:$4 sm:$0xff]   ;;  %v15465_v27 = vld [vmem:[%s20610_s3 + $0x588] ss:$16 sps:$4 sm:$0xff]  }
 0x58f   : > { %7264 = vmatprep.subr.bf16.mxu0 %v15440_v15  ;;  %7377 = vmatprep.subr.bf16.mxu1 %v15443_v18  ;;  %v15473_v15 = vld [vmem:[%s20610_s3 + $0x5ac] ss:$16 sps:$4 sm:$0xff]   ;;  %v15468_v18 = vld [vmem:[%s20610_s3 + $0x5a0] ss:$16 sps:$4 sm:$0xff]  }
 0x590   : > { %6633 = vmatmul.mubr.bf16.gmra.mrb[112].mxu0 %v5352_v7  ;;  %6746 = vmatmul.mubr.bf16.gmra.mrb[112].mxu1 %v5352_v7  ;;  %v15476_v7 = vld [vmem:[%s20610_s3 + $0x5c4] ss:$16 sps:$4 sm:$0xff]  }
 0x591   : > { %6642 = vmatprep.mubr.bf16.mxu0 %v18448_v5  ;;  %6755 = vmatprep.mubr.bf16.mxu1 %v18448_v5 }
 0x592   : > { %7265 = vmatpush1.bf16.msra.mxu0 %v15438_v33  ;;  %7378 = vmatpush1.bf16.msra.mxu1 %v15441_v41  ;;  %v15479_v33 = vld [vmem:[%s20610_s3 + $0x5cc] ss:$16 sps:$4 sm:$0xff]   ;;  %v15474_v41 = vld [vmem:[%s20610_s3 + $0x5c0] ss:$16 sps:$4 sm:$0xff]  }
 0x593   : > { %7266 = vmatprep.subr.bf16.mxu0 %v15446_v24  ;;  %7379 = vmatprep.subr.bf16.mxu1 %v15449_v48  ;;  %v15477_v24 = vld [vmem:[%s20610_s3 + $0x5c8] ss:$16 sps:$4 sm:$0xff]   ;;  %v15482_v48 = vld [vmem:[%s20610_s3 + $0x5e4] ss:$16 sps:$4 sm:$0xff]  }
 0x596   : > { %7267 = vmatpush1.bf16.msra.mxu0 %v15444_v10  ;;  %7380 = vmatpush1.bf16.msra.mxu1 %v15447_v42  ;;  %v15485_v10 = vld [vmem:[%s20610_s3 + $0x5ec] ss:$16 sps:$4 sm:$0xff]   ;;  %v15480_v42 = vld [vmem:[%s20610_s3 + $0x5e0] ss:$16 sps:$4 sm:$0xff]  }
 0x597   : > { %7268 = vmatprep.subr.bf16.mxu0 %v15452_v58  ;;  %7381 = vmatprep.subr.bf16.mxu1 %v15455_v34  ;;  %v15483_v58 = vld [vmem:[%s20610_s3 + $0x5e8] ss:$16 sps:$4 sm:$0xff]   ;;  %v15488_v34 = vld [vmem:[%s20610_s3 + $0x604] ss:$16 sps:$4 sm:$0xff]  }
 0x598   : > { %6643 = vmatmul.mubr.bf16.gmra.mrb[116].mxu0 %v18439_v37  ;;  %6756 = vmatmul.mubr.bf16.gmra.mrb[116].mxu1 %v18439_v37 }
 0x599   : > { %6652 = vmatprep.mubr.bf16.mxu0 %v18516_v39  ;;  %6765 = vmatprep.mubr.bf16.mxu1 %v18516_v39 }
 0x59a   : > { %7269 = vmatpush1.bf16.msra.mxu0 %v15450_v35  ;;  %7382 = vmatpush1.bf16.msra.mxu1 %v15453_v1  ;;  %v15486_v35 = vld [vmem:[%s20610_s3 + $0x600] ss:$16 sps:$4 sm:$0xff]   ;;  %v15489_v1 = vld [vmem:[%s20610_s3 + $0x608] ss:$16 sps:$4 sm:$0xff]  }
 0x59b   : > { %7270 = vmatprep.subr.bf16.mxu0 %v15458_v32  ;;  %7383 = vmatprep.subr.bf16.mxu1 %v15461_v52  ;;  %v15494_v32 = vld [vmem:[%s20610_s3 + $0x624] ss:$16 sps:$4 sm:$0xff]   ;;  %v15497_v52 = vld [vmem:[%s20610_s3 + $0x62c] ss:$16 sps:$4 sm:$0xff]  }
 0x59e   : > { %7271 = vmatpush1.bf16.msra.mxu0 %v15456_v44  ;;  %7384 = vmatpush1.bf16.msra.mxu1 %v15459_v26  ;;  %v15492_v44 = vld [vmem:[%s20610_s3 + $0x620] ss:$16 sps:$4 sm:$0xff]   ;;  %v15495_v26 = vld [vmem:[%s20610_s3 + $0x628] ss:$16 sps:$4 sm:$0xff]  }
 0x59f   : > { %7272 = vmatprep.subr.bf16.mxu0 %v15464_v23  ;;  %7385 = vmatprep.subr.bf16.mxu1 %v15467_v36  ;;  %v15498_v23 = vld [vmem:[%s20610_s3 + $0x640] ss:$16 sps:$4 sm:$0xff]   ;;  %v15501_v36 = vld [vmem:[%s20610_s3 + $0x648] ss:$16 sps:$4 sm:$0xff]  }
 0x5a0   : > { %6653 = vmatmul.mubr.bf16.gmra.mrb[120].mxu0 %v18506_v49  ;;  %6766 = vmatmul.mubr.bf16.gmra.mrb[120].mxu1 %v18506_v49 }
 0x5a1   : > { %6662 = vmatprep.mubr.bf16.mxu0 %v18588_v56  ;;  %6775 = vmatprep.mubr.bf16.mxu1 %v18588_v56 }
 0x5a2   : > { %7273 = vmatpush1.bf16.msra.mxu0 %v15462_v63  ;;  %7386 = vmatpush1.bf16.msra.mxu1 %v15465_v27  ;;  %v15506_v63 = vld [vmem:[%s20610_s3 + $0x664] ss:$16 sps:$4 sm:$0xff]   ;;  %v15509_v27 = vld [vmem:[%s20610_s3 + $0x66c] ss:$16 sps:$4 sm:$0xff]  }
 0x5a3   : > { %7274 = vmatprep.subr.bf16.mxu0 %v15470_v21  ;;  %7387 = vmatprep.subr.bf16.mxu1 %v15473_v15  ;;  %v15504_v21 = vld [vmem:[%s20610_s3 + $0x660] ss:$16 sps:$4 sm:$0xff]   ;;  %v15507_v15 = vld [vmem:[%s20610_s3 + $0x668] ss:$16 sps:$4 sm:$0xff]  }
 0x5a6   : > { %7275 = vmatpush1.bf16.msra.mxu0 %v15468_v18  ;;  %7388 = vmatpush1.bf16.msra.mxu1 %v15471_v6  ;;  %v6894_v18 = vrot.slane %v18383_v61, 1  ;;  %v15510_v6 = vld [vmem:[%s20610_s3 + $0x680] ss:$16 sps:$4 sm:$0xff]  }
 0x5a7   : > { %7276 = vmatprep.subr.bf16.mxu0 %v15476_v7  ;;  %7389 = vmatprep.subr.bf16.mxu1 %v15479_v33  ;;  %v15513_v7 = vld [vmem:[%s20610_s3 + $0x688] ss:$16 sps:$4 sm:$0xff]   ;;  %v15518_v33 = vld [vmem:[%s20610_s3 + $0x6a4] ss:$16 sps:$4 sm:$0xff]  }
 0x5a8   : > { %6663 = vmatmul.mubr.bf16.gmra.mrb[124].mxu0 %v18581_v29  ;;  %6776 = vmatmul.mubr.bf16.gmra.mrb[124].mxu1 %v18581_v29 }
 0x5a9   : > { %7280 = vmatprep.mubr.bf16.mxu0 %v18241_v16  ;;  %7393 = vmatprep.mubr.bf16.mxu1 %v18241_v16  ;;  %v15491_v16 = vld [vmem:[%s20610_s3 + $0x60c] ss:$16 sps:$4 sm:$0xff]  }
 0x5aa   : > { %7277 = vmatpush1.bf16.msra.mxu0 %v15474_v41  ;;  %7390 = vmatpush1.bf16.msra.mxu1 %v15477_v24  ;;  %v15521_v41 = vld [vmem:[%s20610_s3 + $0x6ac] ss:$16 sps:$4 sm:$0xff]   ;;  %v20693_v24 = vrot.slane %v18312_v14, 1 }
 0x5ab   : > { %7278 = vmatprep.subr.bf16.mxu0 %v15482_v48  ;;  %7391 = vmatprep.subr.bf16.mxu1 %v15485_v10  ;;  %v15516_v10 = vld [vmem:[%s20610_s3 + $0x6a0] ss:$16 sps:$4 sm:$0xff]  }
 0x5ac   : > { %v6895_v48 = vsel %vm6877_vm1, %v20693_v24, %v6894_v18  ;;  %v6906_v24 = vrot.slane %v18588_v56, 1 }
 0x5ae   : > { %7279 = vmatpush1.bf16.msra.mxu0 %v15480_v42  ;;  %7392 = vmatpush1.bf16.msra.mxu1 %v15483_v58  ;;  %v15519_v42 = vld [vmem:[%s20610_s3 + $0x6a8] ss:$16 sps:$4 sm:$0xff]   ;;  %v15527_v58 = vld [vmem:[%s20610_s3 + $0x6cc] ss:$16 sps:$4 sm:$0xff]  }
 0x5af   : > { %8038 = vmatprep.subr.bf16.mxu0 %v15488_v34  ;;  %8151 = vmatprep.subr.bf16.mxu1 %v15491_v16  ;;  %v6898_v34 = vrot.slane %v18448_v5, 1  ;;  %v15522_v16 = vld [vmem:[%s20610_s3 + $0x6c0] ss:$16 sps:$4 sm:$0xff]  }
 0x5b1   : > { %7281 = vmatmul.mubr.bf16.vlgmr.msra.gmra.mrb[96].mxu0 %v18259_v55  ;;  %7394 = vmatmul.mubr.bf16.vlgmr.msra.gmra.mrb[96].mxu1 %v18259_v55  ;;  %v15500_v55 = vld [vmem:[%s20610_s3 + $0x644] ss:$16 sps:$4 sm:$0xff]  }
 0x5b2   : > { %7290 = vmatprep.mubr.bf16.mxu0 %v18304_v30  ;;  %7403 = vmatprep.mubr.bf16.mxu1 %v18304_v30  ;;  %v15503_v30 = vld [vmem:[%s20610_s3 + $0x64c] ss:$16 sps:$4 sm:$0xff]  }
 0x5b3   : > { %8039 = vmatpush1.bf16.msra.mxu0 %v15486_v35  ;;  %8152 = vmatpush1.bf16.msra.mxu1 %v15489_v1  ;;  %v15525_v35 = vld [vmem:[%s20610_s3 + $0x6c8] ss:$16 sps:$4 sm:$0xff]   ;;  %v15530_v1 = vld [vmem:[%s20610_s3 + $0x6e4] ss:$16 sps:$4 sm:$0xff]  }
 0x5b4   : > { %8040 = vmatprep.subr.bf16.mxu0 %v15494_v32  ;;  %8153 = vmatprep.subr.bf16.mxu1 %v15497_v52  ;;  %v15533_v32 = vld [vmem:[%s20610_s3 + $0x6ec] ss:$16 sps:$4 sm:$0xff]   ;;  %v6899_v52 = vsel %vm6877_vm1, %v6894_v18, %v6898_v34  ;;  %v15540_v18 = vld [vmem:[%s20610_s3 + $0x720] ss:$16 sps:$4 sm:$0xff]  }
 0x5b7   : > { %8041 = vmatpush1.bf16.msra.mxu0 %v15492_v44  ;;  %8154 = vmatpush1.bf16.msra.mxu1 %v15495_v26  ;;  %v15528_v44 = vld [vmem:[%s20610_s3 + $0x6e0] ss:$16 sps:$4 sm:$0xff]   ;;  %v15531_v26 = vld [vmem:[%s20610_s3 + $0x6e8] ss:$16 sps:$4 sm:$0xff]  }
 0x5b8   : > { %8042 = vmatprep.subr.bf16.mxu0 %v15500_v55  ;;  %8155 = vmatprep.subr.bf16.mxu1 %v15503_v30  ;;  %v6896_v55 = vrot.slane %v18439_v37, 1  ;;  %v15539_v30 = vld [vmem:[%s20610_s3 + $0x70c] ss:$16 sps:$4 sm:$0xff]  }
 0x5b9   : > { %7291 = vmatmul.mubr.bf16.gmra.mrb[100].mxu0 %v18275_v28  ;;  %7404 = vmatmul.mubr.bf16.gmra.mrb[100].mxu1 %v18275_v28  ;;  %v15512_v28 = vld [vmem:[%s20610_s3 + $0x684] ss:$16 sps:$4 sm:$0xff]  }
 0x5ba   : > { %7300 = vmatprep.mubr.bf16.mxu0 %v18373_v46  ;;  %7413 = vmatprep.mubr.bf16.mxu1 %v18373_v46  ;;  %v15515_v46 = vld [vmem:[%s20610_s3 + $0x68c] ss:$16 sps:$4 sm:$0xff]  }
 0x5bb   : > { %8043 = vmatpush1.bf16.msra.mxu0 %v15498_v23  ;;  %8156 = vmatpush1.bf16.msra.mxu1 %v15501_v36  ;;  %v6902_v23 = vrot.slane %v18516_v39, 1  ;;  %v15534_v36 = vld [vmem:[%s20610_s3 + $0x700] ss:$16 sps:$4 sm:$0xff]  }
 0x5bc   : > { %8044 = vmatprep.subr.bf16.mxu0 %v15506_v63  ;;  %8157 = vmatprep.subr.bf16.mxu1 %v15509_v27  ;;  %v15537_v63 = vld [vmem:[%s20610_s3 + $0x708] ss:$16 sps:$4 sm:$0xff]   ;;  %v20694_v27 = vrot.slane %v18366_v9, 1 }
 0x5bf   : > { %8045 = vmatpush1.bf16.msra.mxu0 %v15504_v21  ;;  %8158 = vmatpush1.bf16.msra.mxu1 %v15507_v15  ;;  %v6897_v21 = vsel %vm6877_vm1, %v20694_v27, %v6896_v55  ;;  %v15542_v15 = vld [vmem:[%s20610_s3 + $0x724] ss:$16 sps:$4 sm:$0xff]   ;;  %v15569_v27 = vld [vmem:[%s20610_s3 + $0x7ac] ss:$16 sps:$4 sm:$0xff]  }
 0x5c0   : > { %8046 = vmatprep.subr.bf16.mxu0 %v15512_v28  ;;  %8159 = vmatprep.subr.bf16.mxu1 %v15515_v46  ;;  %v15545_v28 = vld [vmem:[%s20610_s3 + $0x72c] ss:$16 sps:$4 sm:$0xff]   ;;  %v6903_v46 = vsel %vm6877_vm1, %v6898_v34, %v6902_v23 }
 0x5c1   : > { %7301 = vmatmul.mubr.bf16.gmra.mrb[104].mxu0 %v18339_v20  ;;  %7414 = vmatmul.mubr.bf16.gmra.mrb[104].mxu1 %v18339_v20  ;;  %v15524_v20 = vld [vmem:[%s20610_s3 + $0x6c4] ss:$16 sps:$4 sm:$0xff]   ;;  %v15557_v34 = vld [vmem:[%s20610_s3 + $0x76c] ss:$16 sps:$4 sm:$0xff]  }
 0x5c2   : > { %7310 = vmatprep.mubr.bf16.mxu0 %v6895_v48  ;;  %7423 = vmatprep.mubr.bf16.mxu1 %v6895_v48  ;;  %v6789_v48 = vld [vmem:[#allocation3 + $0x108] sm:$0x3] }
 0x5c3   : > { %8047 = vmatpush1.bf16.msra.mxu0 %v15510_v6  ;;  %8160 = vmatpush1.bf16.msra.mxu1 %v15513_v7  ;;  %v15543_v6 = vld [vmem:[%s20610_s3 + $0x728] ss:$16 sps:$4 sm:$0xff]   ;;  %v6900_v7 = vrot.slane %v18506_v49, 1 }
 0x5c4   : > { %8048 = vmatprep.subr.bf16.mxu0 %v15518_v33  ;;  %8161 = vmatprep.subr.bf16.mxu1 %v15521_v41  ;;  %v15548_v33 = vld [vmem:[%s20610_s3 + $0x744] ss:$16 sps:$4 sm:$0xff]   ;;  %v15551_v41 = vld [vmem:[%s20610_s3 + $0x74c] ss:$16 sps:$4 sm:$0xff]  }
 0x5c7   : > { %8049 = vmatpush1.bf16.msra.mxu0 %v15516_v10  ;;  %8162 = vmatpush1.bf16.msra.mxu1 %v15519_v42  ;;  %v15546_v10 = vld [vmem:[%s20610_s3 + $0x740] ss:$16 sps:$4 sm:$0xff]   ;;  %v15549_v42 = vld [vmem:[%s20610_s3 + $0x748] ss:$16 sps:$4 sm:$0xff]  }
 0x5c8   : > { %8050 = vmatprep.subr.bf16.mxu0 %v15524_v20  ;;  %8163 = vmatprep.subr.bf16.mxu1 %v15527_v58  ;;  %v6901_v20 = vsel %vm6877_vm1, %v6896_v55, %v6900_v7  ;;  %v15554_v58 = vld [vmem:[%s20610_s3 + $0x764] ss:$16 sps:$4 sm:$0xff]  }
 0x5c9   : > { %7311 = vmatmul.mubr.bf16.gmra.mrb[108].mxu0 %v18409_v17  ;;  %7424 = vmatmul.mubr.bf16.gmra.mrb[108].mxu1 %v18409_v17  ;;  %v15536_v17 = vld [vmem:[%s20610_s3 + $0x704] ss:$16 sps:$4 sm:$0xff]  }
 0x5ca   : > { %7320 = vmatprep.mubr.bf16.mxu0 %v6899_v52  ;;  %7433 = vmatprep.mubr.bf16.mxu1 %v6899_v52  ;;  %v6904_v52 = vrot.slane %v18581_v29, 1 }
 0x5cb   : > { %8051 = vmatpush1.bf16.msra.mxu0 %v15522_v16  ;;  %8164 = vmatpush1.bf16.msra.mxu1 %v15525_v35  ;;  %v6907_v16 = vsel %vm6877_vm1, %v6902_v23, %v6906_v24  ;;  %v6793_v35 = vpack.c.bf16 %v6789_v48, %v6789_v48  ;;  %v15561_v23 = vld [vmem:[%s20610_s3 + $0x788] ss:$16 sps:$4 sm:$0xff]   ;;  %v15578_v48 = vld [vmem:[%s20610_s3 + $0x7e4] ss:$16 sps:$4 sm:$0xff]  }
 0x5cc   : > { %8052 = vmatprep.subr.bf16.mxu0 %v15530_v1  ;;  %8165 = vmatprep.subr.bf16.mxu1 %v15533_v32  ;;  %v15552_v1 = vld [vmem:[%s20610_s3 + $0x760] ss:$16 sps:$4 sm:$0xff]   ;;  %v15555_v32 = vld [vmem:[%s20610_s3 + $0x768] ss:$16 sps:$4 sm:$0xff]  }
 0x5cd   : > { %v6910_v55 = vrot.slane %v6793_v35, 1  ;;  %v15590_v35 = vld [vmem:[%s20610_s3 + $0x824] ss:$16 sps:$4 sm:$0xff]  }
 0x5cf   : > { %8053 = vmatpush1.bf16.msra.mxu0 %v15528_v44  ;;  %8166 = vmatpush1.bf16.msra.mxu1 %v15531_v26  ;;  %v15560_v44 = vld [vmem:[%s20610_s3 + $0x784] ss:$16 sps:$4 sm:$0xff]   ;;  %v15563_v26 = vld [vmem:[%s20610_s3 + $0x78c] ss:$16 sps:$4 sm:$0xff]  }
 0x5d0   : > { %8054 = vmatprep.subr.bf16.mxu0 %v15536_v17  ;;  %8167 = vmatprep.subr.bf16.mxu1 %v15539_v30  ;;  %v6788_v17 = vld [vmem:[#allocation3 + $0x100] sm:$0x3]  ;;  %v15558_v30 = vld [vmem:[%s20610_s3 + $0x780] ss:$16 sps:$4 sm:$0xff]  }
 0x5d1   : > { %7321 = vmatmul.mubr.bf16.gmra.mrb[112].mxu0 %v6897_v21  ;;  %7434 = vmatmul.mubr.bf16.gmra.mrb[112].mxu1 %v6897_v21  ;;  %v6792_v21 = vpack.c.bf16 %v6788_v17, %v6788_v17  ;;  %v15605_v17 = vld [vmem:[%s20610_s3 + $0x86c] ss:$16 sps:$4 sm:$0xff]  }
 0x5d2   : > { %7330 = vmatprep.mubr.bf16.mxu0 %v6903_v46  ;;  %7443 = vmatprep.mubr.bf16.mxu1 %v6903_v46  ;;  %v15567_v46 = vld [vmem:[%s20610_s3 + $0x7a8] ss:$16 sps:$4 sm:$0xff]  }
 0x5d3   : > { %8055 = vmatpush1.bf16.msra.mxu0 %v15534_v36  ;;  %8168 = vmatpush1.bf16.msra.mxu1 %v15537_v63  ;;  %v6905_v36 = vsel %vm6877_vm1, %v6900_v7, %v6904_v52  ;;  %v15566_v63 = vld [vmem:[%s20610_s3 + $0x7a4] ss:$16 sps:$4 sm:$0xff]   ;;  %v15575_v7 = vld [vmem:[%s20610_s3 + $0x7cc] ss:$16 sps:$4 sm:$0xff]  }
 0x5d4   : > { %8056 = vmatprep.subr.bf16.mxu0 %v15542_v15  ;;  %8169 = vmatprep.subr.bf16.mxu1 %v15545_v28  ;;  %v6911_v15 = vsel %vm6877_vm1, %v6906_v24, %v6910_v55  ;;  %v15564_v28 = vld [vmem:[%s20610_s3 + $0x7a0] ss:$16 sps:$4 sm:$0xff]   ;;  %v15602_v55 = vld [vmem:[%s20610_s3 + $0x864] ss:$16 sps:$4 sm:$0xff]  }
 0x5d7   : > { %8057 = vmatpush1.bf16.msra.mxu0 %v15540_v18  ;;  %8170 = vmatpush1.bf16.msra.mxu1 %v15543_v6  ;;  %v6908_v18 = vrot.slane %v6792_v21, 1  ;;  %v15572_v6 = vld [vmem:[%s20610_s3 + $0x7c4] ss:$16 sps:$4 sm:$0xff]   ;;  %v15617_v21 = vld [vmem:[%s20610_s3 + $0x8ac] ss:$16 sps:$4 sm:$0xff]  }
 0x5d8   : > { %8058 = vmatprep.subr.bf16.mxu0 %v15548_v33  ;;  %8171 = vmatprep.subr.bf16.mxu1 %v15551_v41  ;;  %v15570_v33 = vld [vmem:[%s20610_s3 + $0x7c0] ss:$16 sps:$4 sm:$0xff]   ;;  %v15573_v41 = vld [vmem:[%s20610_s3 + $0x7c8] ss:$16 sps:$4 sm:$0xff]  }
 0x5d9   : > { %7331 = vmatmul.mubr.bf16.gmra.mrb[116].mxu0 %v6901_v20  ;;  %7444 = vmatmul.mubr.bf16.gmra.mrb[116].mxu1 %v6901_v20  ;;  %v6909_v24 = vsel %vm6877_vm1, %v6904_v52, %v6908_v18  ;;  %v15579_v20 = vld [vmem:[%s20610_s3 + $0x7e8] ss:$16 sps:$4 sm:$0xff]  }
 0x5da   : > { %7340 = vmatprep.mubr.bf16.mxu0 %v6907_v16  ;;  %7453 = vmatprep.mubr.bf16.mxu1 %v6907_v16  ;;  %v15585_v16 = vld [vmem:[%s20610_s3 + $0x808] ss:$16 sps:$4 sm:$0xff]  }
 0x5db   : > { %8059 = vmatpush1.bf16.msra.mxu0 %v15546_v10  ;;  %8172 = vmatpush1.bf16.msra.mxu1 %v15549_v42  ;;  %v15581_v10 = vld [vmem:[%s20610_s3 + $0x7ec] ss:$16 sps:$4 sm:$0xff]   ;;  %v15576_v42 = vld [vmem:[%s20610_s3 + $0x7e0] ss:$16 sps:$4 sm:$0xff]   ;;  %v15591_v52 = vld [vmem:[%s20610_s3 + $0x828] ss:$16 sps:$4 sm:$0xff]  }
 0x5dc   : > { %8060 = vmatprep.subr.bf16.mxu0 %v15554_v58  ;;  %8173 = vmatprep.subr.bf16.mxu1 %v15557_v34  ;;  %v15584_v58 = vld [vmem:[%s20610_s3 + $0x804] ss:$16 sps:$4 sm:$0xff]   ;;  %v15582_v34 = vld [vmem:[%s20610_s3 + $0x800] ss:$16 sps:$4 sm:$0xff]   ;;  %v15621_v18 = vld [vmem:[%s20610_s3 + $0x8c8] ss:$16 sps:$4 sm:$0xff]  }
 0x5df   : > { %8061 = vmatpush1.bf16.msra.mxu0 %v15552_v1  ;;  %8174 = vmatpush1.bf16.msra.mxu1 %v15555_v32  ;;  %v15593_v1 = vld [vmem:[%s20610_s3 + $0x82c] ss:$16 sps:$4 sm:$0xff]   ;;  %v15588_v32 = vld [vmem:[%s20610_s3 + $0x820] ss:$16 sps:$4 sm:$0xff]  }
 0x5e0   : > { %8062 = vmatprep.subr.bf16.mxu0 %v15560_v44  ;;  %8175 = vmatprep.subr.bf16.mxu1 %v15563_v26  ;;  %v15594_v44 = vld [vmem:[%s20610_s3 + $0x840] ss:$16 sps:$4 sm:$0xff]   ;;  %v15597_v26 = vld [vmem:[%s20610_s3 + $0x848] ss:$16 sps:$4 sm:$0xff]  }
 0x5e1   : > { %7341 = vmatmul.mubr.bf16.gmra.mrb[120].mxu0 %v6905_v36  ;;  %7454 = vmatmul.mubr.bf16.gmra.mrb[120].mxu1 %v6905_v36  ;;  %v15606_v36 = vld [vmem:[%s20610_s3 + $0x880] ss:$16 sps:$4 sm:$0xff]  }
 0x5e2   : > { %7350 = vmatprep.mubr.bf16.mxu0 %v6911_v15  ;;  %7463 = vmatprep.mubr.bf16.mxu1 %v6911_v15  ;;  %v15612_v15 = vld [vmem:[%s20610_s3 + $0x8a0] ss:$16 sps:$4 sm:$0xff]  }
 0x5e3   : > { %8063 = vmatpush1.bf16.msra.mxu0 %v15558_v30  ;;  %8176 = vmatpush1.bf16.msra.mxu1 %v15561_v23  ;;  %v15600_v30 = vld [vmem:[%s20610_s3 + $0x860] ss:$16 sps:$4 sm:$0xff]   ;;  %v15603_v23 = vld [vmem:[%s20610_s3 + $0x868] ss:$16 sps:$4 sm:$0xff]  }
 0x5e4   : > { %8064 = vmatprep.subr.bf16.mxu0 %v15566_v63  ;;  %8177 = vmatprep.subr.bf16.mxu1 %v15569_v27  ;;  %v15609_v63 = vld [vmem:[%s20610_s3 + $0x888] ss:$16 sps:$4 sm:$0xff]   ;;  %v15614_v27 = vld [vmem:[%s20610_s3 + $0x8a4] ss:$16 sps:$4 sm:$0xff]  }
 0x5e7   : > { %8065 = vmatpush1.bf16.msra.mxu0 %v15564_v28  ;;  %8178 = vmatpush1.bf16.msra.mxu1 %v15567_v46  ;;  %v15615_v28 = vld [vmem:[%s20610_s3 + $0x8a8] ss:$16 sps:$4 sm:$0xff]   ;;  %v15618_v46 = vld [vmem:[%s20610_s3 + $0x8c0] ss:$16 sps:$4 sm:$0xff]  }
 0x5e8   : > { %8066 = vmatprep.subr.bf16.mxu0 %v15572_v6  ;;  %8179 = vmatprep.subr.bf16.mxu1 %v15575_v7  ;;  %v15626_v6 = vld [vmem:[%s20610_s3 + $0x8e4] ss:$16 sps:$4 sm:$0xff]   ;;  %v15629_v7 = vld [vmem:[%s20610_s3 + $0x8ec] ss:$16 sps:$4 sm:$0xff]  }
 0x5e9   : > { %7351 = vmatmul.mubr.bf16.gmra.mrb[124].mxu0 %v6909_v24  ;;  %7464 = vmatmul.mubr.bf16.gmra.mrb[124].mxu1 %v6909_v24  ;;  %v7541_v24 = vld [vmem:[#allocation3 + $0x108] sm:$0x7] }
 0x5ea   : > { %8070 = vmatprep.mubr.bf16.mxu0 %v18350_v25  ;;  %8183 = vmatprep.mubr.bf16.mxu1 %v18350_v25  ;;  %v15587_v25 = vld [vmem:[%s20610_s3 + $0x80c] ss:$16 sps:$4 sm:$0xff]  }
 0x5eb   : > { %8067 = vmatpush1.bf16.msra.mxu0 %v15570_v33  ;;  %8180 = vmatpush1.bf16.msra.mxu1 %v15573_v41  ;;  %v15624_v33 = vld [vmem:[%s20610_s3 + $0x8e0] ss:$16 sps:$4 sm:$0xff]   ;;  %v15627_v41 = vld [vmem:[%s20610_s3 + $0x8e8] ss:$16 sps:$4 sm:$0xff]  }
 0x5ec   : > { %8068 = vmatprep.subr.bf16.mxu0 %v15578_v48  ;;  %8181 = vmatprep.subr.bf16.mxu1 %v15581_v10  ;;  %v15630_v48 = vld [vmem:[%s20610_s3 + $0x900] ss:$16 sps:$4 sm:$0xff]   ;;  %v15633_v10 = vld [vmem:[%s20610_s3 + $0x908] ss:$16 sps:$4 sm:$0xff]  }
 0x5ef   : > { %8069 = vmatpush1.bf16.msra.mxu0 %v15576_v42  ;;  %8182 = vmatpush1.bf16.msra.mxu1 %v15579_v20  ;;  %v15638_v42 = vld [vmem:[%s20610_s3 + $0x924] ss:$16 sps:$4 sm:$0xff]   ;;  %v15641_v20 = vld [vmem:[%s20610_s3 + $0x92c] ss:$16 sps:$4 sm:$0xff]  }
 0x5f0   : > { %8776 = vmatprep.subr.bf16.mxu0 %v15584_v58  ;;  %8889 = vmatprep.subr.bf16.mxu1 %v15587_v25  ;;  %v7545_v58 = vpack.c.bf16 %v7541_v24, %v7541_v24  ;;  %v15636_v25 = vld [vmem:[%s20610_s3 + $0x920] ss:$16 sps:$4 sm:$0xff]   ;;  %v20697_v24 = vld [vmem:[#allocation28_spill] sm:$0xff] }
 0x5f2   : > { %8071 = vmatmul.mubr.bf16.vlgmr.msra.gmra.mrb[96].mxu0 %v18415_v31  ;;  %8184 = vmatmul.mubr.bf16.vlgmr.msra.gmra.mrb[96].mxu1 %v18415_v31  ;;  %v15596_v31 = vld [vmem:[%s20610_s3 + $0x844] ss:$16 sps:$4 sm:$0xff]  }
 0x5f3   : > { %8080 = vmatprep.mubr.bf16.mxu0 %v18467_v11  ;;  %8193 = vmatprep.mubr.bf16.mxu1 %v18467_v11  ;;  %v15599_v11 = vld [vmem:[%s20610_s3 + $0x84c] ss:$16 sps:$4 sm:$0xff]  }
 0x5f4   : > { %8777 = vmatpush1.bf16.msra.mxu0 %v15582_v34  ;;  %8890 = vmatpush1.bf16.msra.mxu1 %v15585_v16  ;;  %v15639_v34 = vld [vmem:[%s20610_s3 + $0x928] ss:$16 sps:$4 sm:$0xff]   ;;  %v7694_v16 = vshrl.u32 %v7545_v58, 16 }
 0x5f5   : > { %8778 = vmatprep.subr.bf16.mxu0 %v15590_v35  ;;  %8891 = vmatprep.subr.bf16.mxu1 %v15593_v1  ;;  %v7697_v35 = vshll.u32 %v7545_v58, 16  ;;  %v15642_v1 = vld [vmem:[%s20610_s3 + $0x940] ss:$16 sps:$4 sm:$0xff]  }
 0x5f8   : > { %8779 = vmatpush1.bf16.msra.mxu0 %v15588_v32  ;;  %8892 = vmatpush1.bf16.msra.mxu1 %v15591_v52  ;;  %v15645_v32 = vld [vmem:[%s20610_s3 + $0x948] ss:$16 sps:$4 sm:$0xff]   ;;  %v15650_v52 = vld [vmem:[%s20610_s3 + $0x964] ss:$16 sps:$4 sm:$0xff]  }
 0x5f9   : > { %8780 = vmatprep.subr.bf16.mxu0 %v15596_v31  ;;  %8893 = vmatprep.subr.bf16.mxu1 %v15599_v11  ;;  %v15653_v31 = vld [vmem:[%s20610_s3 + $0x96c] ss:$16 sps:$4 sm:$0xff]   ;;  %v7696_v11 = vrot.slane %v7694_v16, 1 }
 0x5fa   : > { %8081 = vmatmul.mubr.bf16.gmra.mrb[100].mxu0 %v18481_v22  ;;  %8194 = vmatmul.mubr.bf16.gmra.mrb[100].mxu1 %v18481_v22  ;;  %v15608_v22 = vld [vmem:[%s20610_s3 + $0x884] ss:$16 sps:$4 sm:$0xff]  }
 0x5fb   : > { %8090 = vmatprep.mubr.bf16.mxu0 %v18509_v53  ;;  %8203 = vmatprep.mubr.bf16.mxu1 %v18509_v53  ;;  %v15611_v53 = vld [vmem:[%s20610_s3 + $0x88c] ss:$16 sps:$4 sm:$0xff]  }
 0x5fc   : > { %8781 = vmatpush1.bf16.msra.mxu0 %v15594_v44  ;;  %8894 = vmatpush1.bf16.msra.mxu1 %v15597_v26  ;;  %v7699_v44 = vrot.slane %v7697_v35, 2  ;;  %v15648_v26 = vld [vmem:[%s20610_s3 + $0x960] ss:$16 sps:$4 sm:$0xff]  }
 0x5fd   : > { %8782 = vmatprep.subr.bf16.mxu0 %v15602_v55  ;;  %8895 = vmatprep.subr.bf16.mxu1 %v15605_v17  ;;  %v15651_v55 = vld [vmem:[%s20610_s3 + $0x968] ss:$16 sps:$4 sm:$0xff]  }
 0x5fe   : > { %v7700_v17 = vor.u32 %v7699_v44, %v7696_v11 }
 0x600   : > { %8783 = vmatpush1.bf16.msra.mxu0 %v15600_v30  ;;  %8896 = vmatpush1.bf16.msra.mxu1 %v15603_v23  ;;  %v15654_v30 = vld [vmem:[%s20610_s3 + $0x980] ss:$16 sps:$4 sm:$0xff]   ;;  %v15657_v23 = vld [vmem:[%s20610_s3 + $0x988] ss:$16 sps:$4 sm:$0xff]  }
 0x601   : > { %8784 = vmatprep.subr.bf16.mxu0 %v15608_v22  ;;  %8897 = vmatprep.subr.bf16.mxu1 %v15611_v53  ;;  %v15662_v22 = vld [vmem:[%s20610_s3 + $0x9a4] ss:$16 sps:$4 sm:$0xff]   ;;  %v15665_v53 = vld [vmem:[%s20610_s3 + $0x9ac] ss:$16 sps:$4 sm:$0xff]  }
 0x602   : > { %8091 = vmatmul.mubr.bf16.gmra.mrb[104].mxu0 %v18553_v54  ;;  %8204 = vmatmul.mubr.bf16.gmra.mrb[104].mxu1 %v18553_v54  ;;  %v15620_v54 = vld [vmem:[%s20610_s3 + $0x8c4] ss:$16 sps:$4 sm:$0xff]  }
 0x603   : > { %8100 = vmatprep.mubr.bf16.mxu0 %v18557_v60  ;;  %8213 = vmatprep.mubr.bf16.mxu1 %v18557_v60  ;;  %v15623_v60 = vld [vmem:[%s20610_s3 + $0x8cc] ss:$16 sps:$4 sm:$0xff]  }
 0x604   : > { %8785 = vmatpush1.bf16.msra.mxu0 %v15606_v36  ;;  %8898 = vmatpush1.bf16.msra.mxu1 %v15609_v63  ;;  %v7701_v36 = vsel %vm7611_vm2, %v18655_v45, %v7700_v17  ;;  %v15660_v63 = vld [vmem:[%s20610_s3 + $0x9a0] ss:$16 sps:$4 sm:$0xff]   ;;  %v15671_v45 = vld [vmem:[%s20610_s3 + $0x9cc] ss:$16 sps:$4 sm:$0xff]  }
 0x605   : > { %8786 = vmatprep.subr.bf16.mxu0 %v15614_v27  ;;  %8899 = vmatprep.subr.bf16.mxu1 %v15617_v21  ;;  %v15663_v27 = vld [vmem:[%s20610_s3 + $0x9a8] ss:$16 sps:$4 sm:$0xff]   ;;  %v15666_v21 = vld [vmem:[%s20610_s3 + $0x9c0] ss:$16 sps:$4 sm:$0xff]  }
 0x608   : > { %8787 = vmatpush1.bf16.msra.mxu0 %v15612_v15  ;;  %8900 = vmatpush1.bf16.msra.mxu1 %v15615_v28  ;;  %v15669_v15 = vld [vmem:[%s20610_s3 + $0x9c8] ss:$16 sps:$4 sm:$0xff]   ;;  %v15674_v28 = vld [vmem:[%s20610_s3 + $0x9e4] ss:$16 sps:$4 sm:$0xff]  }
 0x609   : > { %8788 = vmatprep.subr.bf16.mxu0 %v15620_v54  ;;  %8901 = vmatprep.subr.bf16.mxu1 %v15623_v60  ;;  %v15677_v54 = vld [vmem:[%s20610_s3 + $0x9ec] ss:$16 sps:$4 sm:$0xff]   ;;  %v15672_v60 = vld [vmem:[%s20610_s3 + $0x9e0] ss:$16 sps:$4 sm:$0xff]  }
 0x60a   : > { %8101 = vmatmul.mubr.bf16.gmra.mrb[108].mxu0 %v18610_v50  ;;  %8214 = vmatmul.mubr.bf16.gmra.mrb[108].mxu1 %v18610_v50  ;;  %v15632_v50 = vld [vmem:[%s20610_s3 + $0x904] ss:$16 sps:$4 sm:$0xff]  }
 0x60b   : > { %8110 = vmatprep.mubr.bf16.mxu0 %v18614_v57  ;;  %8223 = vmatprep.mubr.bf16.mxu1 %v18614_v57  ;;  %v15635_v57 = vld [vmem:[%s20610_s3 + $0x90c] ss:$16 sps:$4 sm:$0xff]  }
 0x60c   : > { %8789 = vmatpush1.bf16.msra.mxu0 %v15618_v46  ;;  %8902 = vmatpush1.bf16.msra.mxu1 %v15621_v18  ;;  %v15675_v46 = vld [vmem:[%s20610_s3 + $0x9e8] ss:$16 sps:$4 sm:$0xff]  }
 0x60d   : > { %8790 = vmatprep.subr.bf16.mxu0 %v15626_v6  ;;  %8903 = vmatprep.subr.bf16.mxu1 %v15629_v7  ;;  %v8330_v18 = vld [vmem:[#allocation3 + $0x100] sm:$0xf] }
 0x60e   : > { %v8334_v7 = vpack.c.bf16 %v8330_v18, %v8330_v18 }
 0x610   : > { %8791 = vmatpush1.bf16.msra.mxu0 %v15624_v33  ;;  %8904 = vmatpush1.bf16.msra.mxu1 %v15627_v41  ;;  %v20695_v41 = vmov 0  }
 0x611   : > { %8792 = vmatprep.subr.bf16.mxu0 %v15632_v50  ;;  %8905 = vmatprep.subr.bf16.mxu1 %v15635_v57  ;;  %v20696_v50 = vld [vmem:[#allocation27_spill] sm:$0xff] }
 0x612   : > { %8111 = vmatmul.mubr.bf16.gmra.mrb[112].mxu0 %v18617_v0  ;;  %8224 = vmatmul.mubr.bf16.gmra.mrb[112].mxu1 %v18617_v0  ;;  %v15644_v0 = vld [vmem:[%s20610_s3 + $0x944] ss:$16 sps:$4 sm:$0xff]  }
 0x613   : > { %8120 = vmatprep.mubr.bf16.mxu0 %v18653_v59  ;;  %8233 = vmatprep.mubr.bf16.mxu1 %v18653_v59  ;;  %v15647_v59 = vld [vmem:[%s20610_s3 + $0x94c] ss:$16 sps:$4 sm:$0xff]  }
 0x614   : > { %8793 = vmatpush1.bf16.msra.mxu0 %v15630_v48  ;;  %8906 = vmatpush1.bf16.msra.mxu1 %v15633_v10  ;;  %v20698_v10 = vld [vmem:[#allocation29_spill] sm:$0xff] }
 0x615   : > { %8794 = vmatprep.subr.bf16.mxu0 %v15638_v42  ;;  %8907 = vmatprep.subr.bf16.mxu1 %v15641_v20  ;;  %v20699_v20 = vld [vmem:[#allocation30_spill] sm:$0xff] }
 0x618   : > { %8795 = vmatpush1.bf16.msra.mxu0 %v15636_v25  ;;  %8908 = vmatpush1.bf16.msra.mxu1 %v15639_v34 }
 0x619   : > { %8796 = vmatprep.subr.bf16.mxu0 %v15644_v0  ;;  %8909 = vmatprep.subr.bf16.mxu1 %v15647_v59 }
 0x61a   : > { %8121 = vmatmul.mubr.bf16.gmra.mrb[116].mxu0 %v18665_v43  ;;  %8234 = vmatmul.mubr.bf16.gmra.mrb[116].mxu1 %v18665_v43  ;;  %v15656_v43 = vld [vmem:[%s20610_s3 + $0x984] ss:$16 sps:$4 sm:$0xff]  }
 0x61b   : > { %8130 = vmatprep.mubr.bf16.mxu0 %v18672_v3  ;;  %8243 = vmatprep.mubr.bf16.mxu1 %v18672_v3  ;;  %v15659_v3 = vld [vmem:[%s20610_s3 + $0x98c] ss:$16 sps:$4 sm:$0xff]  }
 0x61c   : > { %8797 = vmatpush1.bf16.msra.mxu0 %v15642_v1  ;;  %8910 = vmatpush1.bf16.msra.mxu1 %v15645_v32 }
 0x61d   : > { %8798 = vmatprep.subr.bf16.mxu0 %v15650_v52  ;;  %8911 = vmatprep.subr.bf16.mxu1 %v15653_v31 }
 0x620   : > { %8799 = vmatpush1.bf16.msra.mxu0 %v15648_v26  ;;  %8912 = vmatpush1.bf16.msra.mxu1 %v15651_v55 }
 0x621   : > { %8800 = vmatprep.subr.bf16.mxu0 %v15656_v43  ;;  %8913 = vmatprep.subr.bf16.mxu1 %v15659_v3 }
 0x622   : > { %8131 = vmatmul.mubr.bf16.gmra.mrb[120].mxu0 %v18677_v13  ;;  %8244 = vmatmul.mubr.bf16.gmra.mrb[120].mxu1 %v18677_v13  ;;  %v15668_v13 = vld [vmem:[%s20610_s3 + $0x9c4] ss:$16 sps:$4 sm:$0xff]  }
 0x623   : > { %8140 = vmatprep.mubr.bf16.mxu0 %v7701_v36  ;;  %8253 = vmatprep.mubr.bf16.mxu1 %v7701_v36 }
 0x624   : > { %8801 = vmatpush1.bf16.msra.mxu0 %v15654_v30  ;;  %8914 = vmatpush1.bf16.msra.mxu1 %v15657_v23 }
 0x625   : > { %8802 = vmatprep.subr.bf16.mxu0 %v15662_v22  ;;  %8915 = vmatprep.subr.bf16.mxu1 %v15665_v53 }
 0x628   : > { %8803 = vmatpush1.bf16.msra.mxu0 %v15660_v63  ;;  %8916 = vmatpush1.bf16.msra.mxu1 %v15663_v27 }
 0x629   : > { %8804 = vmatprep.subr.bf16.mxu0 %v15668_v13  ;;  %8917 = vmatprep.subr.bf16.mxu1 %v15671_v45 }
 0x62a   : > { %8141 = vmatmul.mubr.bf16.gmra.mrb[124].mxu0 %v18680_v2  ;;  %8254 = vmatmul.mubr.bf16.gmra.mrb[124].mxu1 %v18680_v2 }
 0x62b   : > { %8808 = vmatprep.mubr.bf16.mxu0 %v18668_v19  ;;  %8921 = vmatprep.mubr.bf16.mxu1 %v18668_v19  ;;  %v8422_v19 = vrot.slane %v18383_v61, 2  ;;  %v8424_v61 = vrot.slane %v18439_v37, 2 }
 0x62c   : > { %8805 = vmatpush1.bf16.msra.mxu0 %v15666_v21  ;;  %8918 = vmatpush1.bf16.msra.mxu1 %v15669_v15 }
 0x62d   : > { %8806 = vmatprep.subr.bf16.mxu0 %v15674_v28  ;;  %8919 = vmatprep.subr.bf16.mxu1 %v15677_v54  ;;  %v8423_v2 = vsel %vm8405_vm3, %v8418_v40, %v8422_v19  ;;  %v8425_v14 = vsel %vm8405_vm3, %v8420_v8, %v8424_v61  ;;  %v8428_v40 = vrot.slane %v18506_v49, 2 }
 0x630   : > { %8807 = vmatpush1.bf16.msra.mxu0 %v15672_v60  ;;  %8920 = vmatpush1.bf16.msra.mxu1 %v15675_v46 }
 0x633   : > { %8809 = vmatmul.mubr.bf16.vlgmr.msra.gmra.mrb[96].mxu0 %v18691_v51  ;;  %8922 = vmatmul.mubr.bf16.vlgmr.msra.gmra.mrb[96].mxu1 %v18691_v51  ;;  %v8426_v51 = vrot.slane %v18448_v5, 2 }
 0x634   : > { %8818 = vmatprep.mubr.bf16.mxu0 %v18694_v4  ;;  %8931 = vmatprep.mubr.bf16.mxu1 %v18694_v4 }
 0x635   : > { %v8427_v4 = vsel %vm8405_vm3, %v8422_v19, %v8426_v51 }
 0x63b   : > { %8819 = vmatmul.mubr.bf16.gmra.mrb[100].mxu0 %v18705_v62  ;;  %8932 = vmatmul.mubr.bf16.gmra.mrb[100].mxu1 %v18705_v62  ;;  %v8430_v62 = vrot.slane %v18516_v39, 2  ;;  %v8432_v39 = vrot.slane %v18581_v29, 2  ;;  %v9066_v29 = vld [vmem:[#allocation5] sm:$0xf] }
 0x63c   : > { %8828 = vmatprep.mubr.bf16.mxu0 %v18710_v12  ;;  %8941 = vmatprep.mubr.bf16.mxu1 %v18710_v12  ;;  %v8434_v12 = vrot.slane %v18588_v56, 2  ;;  %v8436_v56 = vrot.slane %v8334_v7, 2  ;;  %v19420_v57 = vrot.slane %v9066_v29, %v20696_v50  ;;  %v19423_v48 = vrot.slane %v9066_v29, %v20697_v24 }
 0x63d   : > { %v8431_v5 = vsel %vm8405_vm3, %v8426_v51, %v8430_v62  ;;  %v8433_v6 = vsel %vm8405_vm3, %v8428_v40, %v8432_v39  ;;  %v19426_v42 = vrot.slane %v9066_v29, %v20698_v10  ;;  %v19429_v58 = vrot.slane %v9066_v29, %v20699_v20 }
 0x63e   : > { %v8435_v37 = vsel %vm8405_vm3, %v8430_v62, %v8434_v12  ;;  %v8437_v33 = vsel %vm8405_vm3, %v8432_v39, %v8436_v56 }
 0x643   : > { %8829 = vmatmul.mubr.bf16.gmra.mrb[104].mxu0 %v18714_v47  ;;  %8942 = vmatmul.mubr.bf16.gmra.mrb[104].mxu1 %v18714_v47  ;;  %v8331_v47 = vld [vmem:[#allocation3 + $0x108] sm:$0xf] }
 0x644   : > { %8838 = vmatprep.mubr.bf16.mxu0 %v8423_v2  ;;  %8951 = vmatprep.mubr.bf16.mxu1 %v8423_v2  ;;  %v8335_v9 = vpack.c.bf16 %v8331_v47, %v8331_v47 }
 0x646   : > { %v8438_v8 = vrot.slane %v8335_v9, 2 }
 0x648   : > { %v8439_v49 = vsel %vm8405_vm3, %v8434_v12, %v8438_v8 }
 0x64b   : > { %8839 = vmatmul.mubr.bf16.gmra.mrb[108].mxu0 %v18719_v38  ;;  %8952 = vmatmul.mubr.bf16.gmra.mrb[108].mxu1 %v18719_v38  ;;  %v8429_v38 = vsel %vm8405_vm3, %v8424_v61, %v8428_v40 }
 0x64c   : > { %8848 = vmatprep.mubr.bf16.mxu0 %v8427_v4  ;;  %8961 = vmatprep.mubr.bf16.mxu1 %v8427_v4 }
 0x653   : > { %8849 = vmatmul.mubr.bf16.gmra.mrb[112].mxu0 %v8425_v14  ;;  %8962 = vmatmul.mubr.bf16.gmra.mrb[112].mxu1 %v8425_v14 }
 0x654   : > { %8858 = vmatprep.mubr.bf16.mxu0 %v8431_v5  ;;  %8971 = vmatprep.mubr.bf16.mxu1 %v8431_v5 }
 0x65b   : > { %8859 = vmatmul.mubr.bf16.gmra.mrb[116].mxu0 %v8429_v38  ;;  %8972 = vmatmul.mubr.bf16.gmra.mrb[116].mxu1 %v8429_v38 }
 0x65c   : > { %8868 = vmatprep.mubr.bf16.mxu0 %v8435_v37  ;;  %8981 = vmatprep.mubr.bf16.mxu1 %v8435_v37 }
 0x663   : > { %8869 = vmatmul.mubr.bf16.gmra.mrb[120].mxu0 %v8433_v6  ;;  %8982 = vmatmul.mubr.bf16.gmra.mrb[120].mxu1 %v8433_v6 }
 0x664   : > { %8878 = vmatprep.mubr.bf16.mxu0 %v8439_v49  ;;  %8991 = vmatprep.mubr.bf16.mxu1 %v8439_v49 }
 0x66b   : > { %8879 = vmatmul.mubr.bf16.gmra.mrb[124].mxu0 %v8437_v33  ;;  %8992 = vmatmul.mubr.bf16.gmra.mrb[124].mxu1 %v8437_v33 }
 0x66c   : > { %9456 = vmatprep.mubr.bf16.mxu0 %v20695_v41  ;;  %9561 = vmatprep.mubr.bf16.mxu1 %v20695_v41 }
 0x706   : > { %v8810_v25 = vpop.f32.mrb[96].mxu0  ;;  %v8923_v34 = vpop.f32.mrb[96].mxu1 }
 0x707   : > { %v9088_v0 = vadd.f32 %v19420_v57, %v8810_v25  ;;  %v9090_v59 = vadd.f32 %v19423_v48, %v8923_v34  ;;  %v8812_v16 = vpop.f32.mrb[97].mxu0  ;;  %v8925_v35 = vpop.f32.mrb[97].mxu1 }
 0x708   : > { %v9089_v1 = vadd.f32 %v19426_v42, %v8812_v16  ;;  %v9091_v32 = vadd.f32 %v19429_v58, %v8925_v35  ;;  %v8814_v52 = vpop.f32.mrb[98].mxu0  ;;  %v8927_v31 = vpop.f32.mrb[98].mxu1 }
 0x709   : > { %vm9152_vm4 = vcmp.gt.f32.partialorder %v9088_v0, 0.0  ;;  %v9216_v11 = vmul.f32 0.01, %v9088_v0  ;;  %vm9154_vm5 = vcmp.gt.f32.partialorder %v9090_v59, 0.0  ;;  %v9218_v44 = vmul.f32 0.01, %v9090_v59 }
 0x70a   : > { %vm9153_vm6 = vcmp.gt.f32.partialorder %v9089_v1, 0.0  ;;  %v9217_v26 = vmul.f32 0.01, %v9089_v1  ;;  %vm9155_vm7 = vcmp.gt.f32.partialorder %v9091_v32, 0.0  ;;  %v9219_v55 = vmul.f32 0.01, %v9091_v32 }
 0x70b   : > { %v19435_v43 = vsel %vm9152_vm4, %v9088_v0, %v9216_v11  ;;  %v19437_v3 = vsel %vm9154_vm5, %v9090_v59, %v9218_v44  ;;  %v9092_v17 = vadd.f32 %v19420_v57, %v8814_v52  ;;  %v9094_v30 = vadd.f32 %v19423_v48, %v8927_v31  ;;  %v8816_v23 = vpop.f32.mrb[99].mxu0  ;;  %v8929_v22 = vpop.f32.mrb[99].mxu1 }
 0x70c   : > { %v9344_v53 = vmax.f32 %v19435_v43, %v19437_v3  ;;  %v19443_v36 = vsel %vm9153_vm6, %v9089_v1, %v9217_v26  ;;  %v19445_v63 = vsel %vm9155_vm7, %v9091_v32, %v9219_v55  ;;  %v9093_v27 = vadd.f32 %v19426_v42, %v8816_v23 }
 0x70d   : > { %vm9156_vm8 = vcmp.gt.f32.partialorder %v9092_v17, 0.0  ;;  %v9220_v13 = vmul.f32 0.01, %v9092_v17  ;;  %vm9158_vm9 = vcmp.gt.f32.partialorder %v9094_v30, 0.0  ;;  %v9222_v45 = vmul.f32 0.01, %v9094_v30 }
 0x70e   : > { %vm9157_vm10 = vcmp.gt.f32.partialorder %v9093_v27, 0.0  ;;  %v9221_v21 = vmul.f32 0.01, %v9093_v27  ;;  %v9095_v15 = vadd.f32 %v19429_v58, %v8929_v22  ;;  %v8820_v28 = vpop.f32.mrb[100].mxu0  ;;  %v8933_v54 = vpop.f32.mrb[100].mxu1  ;;  %v9345_v60 = vmax.f32 %v19443_v36, %v19445_v63 }
 0x70f   : > { %v9284_v46 = vsel %vm9156_vm8, %v9092_v17, %v9220_v13  ;;  %v9286_v19 = vsel %vm9158_vm9, %v9094_v30, %v9222_v45  ;;  %v9096_v2 = vadd.f32 %v19420_v57, %v8820_v28  ;;  %v9098_v51 = vadd.f32 %v19423_v48, %v8933_v54  ;;  %v8822_v4 = vpop.f32.mrb[101].mxu0  ;;  %v8935_v61 = vpop.f32.mrb[101].mxu1 }
 0x710   : > { %v9346_v62 = vmax.f32 %v9284_v46, %v9286_v19  ;;  %v9285_v14 = vsel %vm9157_vm10, %v9093_v27, %v9221_v21  ;;  %vm9159_vm11 = vcmp.gt.f32.partialorder %v9095_v15, 0.0  ;;  %v9223_v5 = vmul.f32 0.01, %v9095_v15  ;;  %v8824_v40 = vpop.f32.mrb[102].mxu0  ;;  %v8937_v12 = vpop.f32.mrb[102].mxu1 }
 0x711   : > { %vm9160_vm12 = vcmp.gt.f32.partialorder %v9096_v2, 0.0  ;;  %v9224_v47 = vmul.f32 0.01, %v9096_v2  ;;  %vm9162_vm13 = vcmp.gt.f32.partialorder %v9098_v51, 0.0  ;;  %v9226_v38 = vmul.f32 0.01, %v9098_v51 }
 0x712   : > { %v9287_v37 = vsel %vm9159_vm11, %v9095_v15, %v9223_v5  ;;  %v9097_v9 = vadd.f32 %v19426_v42, %v8822_v4  ;;  %v9099_v39 = vadd.f32 %v19429_v58, %v8935_v61  ;;  %v9100_v8 = vadd.f32 %v19420_v57, %v8824_v40  ;;  %v8826_v18 = vpop.f32.mrb[103].mxu0  ;;  %v8939_v6 = vpop.f32.mrb[103].mxu1 }
 0x713   : > { %v19456_v7 = vsel %vm9160_vm12, %v9096_v2, %v9224_v47  ;;  %v19458_v49 = vsel %vm9162_vm13, %v9098_v51, %v9226_v38  ;;  %v9102_v56 = vadd.f32 %v19423_v48, %v8937_v12  ;;  %v9101_v33 = vadd.f32 %v19426_v42, %v8826_v18 }
 0x714   : > { %v9348_v29 = vmax.f32 %v19456_v7, %v19458_v49  ;;  %vm9161_vm14 = vcmp.gt.f32.partialorder %v9097_v9, 0.0  ;;  %v9225_v25 = vmul.f32 0.01, %v9097_v9  ;;  %vm9163_vm15 = vcmp.gt.f32.partialorder %v9099_v39, 0.0 }
 0x715   : > { %v9227_v34 = vmul.f32 0.01, %v9099_v39  ;;  %vm9164_vm2 = vcmp.gt.f32.partialorder %v9100_v8, 0.0  ;;  %v9228_v0 = vmul.f32 0.01, %v9100_v8  ;;  %vm9166_vm3 = vcmp.gt.f32.partialorder %v9102_v56, 0.0 }
 0x716   : > { %v19464_v59 = vsel %vm9161_vm14, %v9097_v9, %v9225_v25  ;;  %v9230_v16 = vmul.f32 0.01, %v9102_v56  ;;  %vm9165_vm4 = vcmp.gt.f32.partialorder %v9101_v33, 0.0  ;;  %v9229_v35 = vmul.f32 0.01, %v9101_v33  ;;  %v8830_v1 = vpop.f32.mrb[104].mxu0 }
 0x717   : > { %v19466_v32 = vsel %vm9163_vm15, %v9099_v39, %v9227_v34  ;;  %v19468_v52 = vsel %vm9164_vm2, %v9100_v8, %v9228_v0  ;;  %v9103_v31 = vadd.f32 %v19429_v58, %v8939_v6  ;;  %v9347_v11 = vmax.f32 %v9285_v14, %v9287_v37  ;;  %v8943_v44 = vpop.f32.mrb[104].mxu1  ;;  %v8832_v26 = vpop.f32.mrb[105].mxu0 }
 0x718   : > { %v9294_v55 = vsel %vm9166_vm3, %v9102_v56, %v9230_v16  ;;  %v19471_v43 = vsel %vm9165_vm4, %v9101_v33, %v9229_v35  ;;  %v9376_v3 = vpack.c.bf16 %v9346_v62, %v9344_v53  ;;  %v9104_v17 = vadd.f32 %v19420_v57, %v8830_v1  ;;  %v8945_v30 = vpop.f32.mrb[105].mxu1  ;;  %v8834_v23 = vpop.f32.mrb[106].mxu0 }
 0x719   : > { %v9350_v22 = vmax.f32 %v19468_v52, %v9294_v55  ;;  %vm9167_vm5 = vcmp.gt.f32.partialorder %v9103_v31, 0.0  ;;  %v9231_v36 = vmul.f32 0.01, %v9103_v31  ;;  %v9377_v63 = vpack.c.bf16 %v9347_v11, %v9345_v60  ;;  %v8947_v27 = vpop.f32.mrb[106].mxu1  ;;  %v8836_v13 = vpop.f32.mrb[107].mxu0 }
 0x71a   : > { %vm9168_vm6 = vcmp.gt.f32.partialorder %v9104_v17, 0.0  ;;  %v9232_v45 = vmul.f32 0.01, %v9104_v17  ;;  %v9106_v21 = vadd.f32 %v19423_v48, %v8943_v44  ;;  %v9105_v15 = vadd.f32 %v19426_v42, %v8832_v26  ;;  %v8949_v28 = vpop.f32.mrb[107].mxu1 }
 0x71b   : > { %v9295_v54 = vsel %vm9167_vm5, %v9103_v31, %v9231_v36  ;;  %9424 = vmatprep.subr.bf16.mxu0 %v9377_v63  ;;  %9529 = vmatprep.subr.bf16.mxu1 %v9377_v63  ;;  %v9107_v53 = vadd.f32 %v19429_v58, %v8945_v30  ;;  %v9108_v46 = vadd.f32 %v19420_v57, %v8834_v23 }
 0x71c   : > { %9425 = vmatpush1.bf16.msra.mxu0 %v9376_v3  ;;  %9530 = vmatpush1.bf16.msra.mxu1 %v9376_v3  ;;  %v19479_v19 = vsel %vm9168_vm6, %v9104_v17, %v9232_v45  ;;  %vm9170_vm7 = vcmp.gt.f32.partialorder %v9106_v21, 0.0  ;;  %v9234_v60 = vmul.f32 0.01, %v9106_v21  ;;  %vm9169_vm8 = vcmp.gt.f32.partialorder %v9105_v15, 0.0 }
 0x71d   : > { %v9233_v2 = vmul.f32 0.01, %v9105_v15  ;;  %vm9171_vm9 = vcmp.gt.f32.partialorder %v9107_v53, 0.0  ;;  %v9235_v51 = vmul.f32 0.01, %v9107_v53  ;;  %vm9172_vm10 = vcmp.gt.f32.partialorder %v9108_v46, 0.0 }
 0x71e   : > { %v19481_v4 = vsel %vm9170_vm7, %v9106_v21, %v9234_v60  ;;  %v9236_v61 = vmul.f32 0.01, %v9108_v46  ;;  %v9110_v62 = vadd.f32 %v19423_v48, %v8947_v27  ;;  %v9109_v14 = vadd.f32 %v19426_v42, %v8836_v13  ;;  %v8840_v5 = vpop.f32.mrb[108].mxu0  ;;  %v8953_v40 = vpop.f32.mrb[108].mxu1 }
 0x71f   : > { %v9352_v12 = vmax.f32 %v19479_v19, %v19481_v4  ;;  %v19487_v47 = vsel %vm9169_vm8, %v9105_v15, %v9233_v2  ;;  %v19489_v38 = vsel %vm9171_vm9, %v9107_v53, %v9235_v51  ;;  %v9111_v37 = vadd.f32 %v19429_v58, %v8949_v28  ;;  %v8842_v9 = vpop.f32.mrb[109].mxu0  ;;  %v8955_v39 = vpop.f32.mrb[109].mxu1 }
 0x720   : > { %v9300_v8 = vsel %vm9172_vm10, %v9108_v46, %v9236_v61  ;;  %vm9174_vm11 = vcmp.gt.f32.partialorder %v9110_v62, 0.0  ;;  %v9238_v18 = vmul.f32 0.01, %v9110_v62  ;;  %vm9173_vm12 = vcmp.gt.f32.partialorder %v9109_v14, 0.0  ;;  %v8844_v6 = vpop.f32.mrb[110].mxu0  ;;  %v8957_v56 = vpop.f32.mrb[110].mxu1 }
 0x721   : > { %v9237_v33 = vmul.f32 0.01, %v9109_v14  ;;  %vm9175_vm13 = vcmp.gt.f32.partialorder %v9111_v37, 0.0  ;;  %v9239_v25 = vmul.f32 0.01, %v9111_v37  ;;  %v9349_v34 = vmax.f32 %v19464_v59, %v19466_v32  ;;  %v8846_v0 = vpop.f32.mrb[111].mxu0 }
 0x722   : > { %v9302_v16 = vsel %vm9174_vm11, %v9110_v62, %v9238_v18  ;;  %v9351_v35 = vmax.f32 %v19471_v43, %v9295_v54  ;;  %v9378_v1 = vpack.c.bf16 %v9350_v22, %v9348_v29  ;;  %v9112_v52 = vadd.f32 %v19420_v57, %v8840_v5  ;;  %v8959_v31 = vpop.f32.mrb[111].mxu1 }
 0x723   : > { %v9354_v11 = vmax.f32 %v9300_v8, %v9302_v16  ;;  %v9301_v44 = vsel %vm9173_vm12, %v9109_v14, %v9237_v33  ;;  %v9303_v26 = vsel %vm9175_vm13, %v9111_v37, %v9239_v25  ;;  %v9114_v55 = vadd.f32 %v19423_v48, %v8953_v40 }
 0x724   : > { %v9379_v3 = vpack.c.bf16 %v9351_v35, %v9349_v34  ;;  %vm9176_vm14 = vcmp.gt.f32.partialorder %v9112_v52, 0.0  ;;  %v9240_v17 = vmul.f32 0.01, %v9112_v52  ;;  %v9113_v59 = vadd.f32 %v19426_v42, %v8842_v9 }
 0x725   : > { %vm9178_vm15 = vcmp.gt.f32.partialorder %v9114_v55, 0.0  ;;  %v9242_v32 = vmul.f32 0.01, %v9114_v55  ;;  %v9115_v43 = vadd.f32 %v19429_v58, %v8955_v39  ;;  %v9116_v7 = vadd.f32 %v19420_v57, %v8844_v6 }
 0x726   : > { %9426 = vmatprep.subr.bf16.mxu0 %v9379_v3  ;;  %9531 = vmatprep.subr.bf16.mxu1 %v9379_v3  ;;  %v19503_v49 = vsel %vm9176_vm14, %v9112_v52, %v9240_v17  ;;  %vm9177_vm2 = vcmp.gt.f32.partialorder %v9113_v59, 0.0  ;;  %v9241_v29 = vmul.f32 0.01, %v9113_v59  ;;  %v9118_v30 = vadd.f32 %v19423_v48, %v8957_v56  ;;  %v8850_v23 = vpop.f32.mrb[112].mxu0  ;;  %v8963_v22 = vpop.f32.mrb[112].mxu1 }
 0x727   : > { %9427 = vmatpush1.bf16.msra.mxu0 %v9378_v1  ;;  %9532 = vmatpush1.bf16.msra.mxu1 %v9378_v1  ;;  %v19506_v36 = vsel %vm9178_vm15, %v9114_v55, %v9242_v32  ;;  %vm9179_vm3 = vcmp.gt.f32.partialorder %v9115_v43, 0.0  ;;  %v9243_v63 = vmul.f32 0.01, %v9115_v43  ;;  %vm9180_vm4 = vcmp.gt.f32.partialorder %v9116_v7, 0.0  ;;  %v8852_v27 = vpop.f32.mrb[113].mxu0  ;;  %v8965_v13 = vpop.f32.mrb[113].mxu1 }
 0x728   : > { %v9356_v45 = vmax.f32 %v19503_v49, %v19506_v36  ;;  %v19510_v21 = vsel %vm9177_vm2, %v9113_v59, %v9241_v29  ;;  %v9244_v15 = vmul.f32 0.01, %v9116_v7  ;;  %vm9182_vm5 = vcmp.gt.f32.partialorder %v9118_v30, 0.0  ;;  %v8854_v28 = vpop.f32.mrb[114].mxu0  ;;  %v8967_v54 = vpop.f32.mrb[114].mxu1 }
 0x729   : > { %v19512_v53 = vsel %vm9179_vm3, %v9115_v43, %v9243_v63  ;;  %v9246_v46 = vmul.f32 0.01, %v9118_v30  ;;  %v9117_v60 = vadd.f32 %v19426_v42, %v8846_v0  ;;  %v9119_v2 = vadd.f32 %v19429_v58, %v8959_v31  ;;  %v8856_v51 = vpop.f32.mrb[115].mxu0  ;;  %v8969_v61 = vpop.f32.mrb[115].mxu1 }
 0x72a   : > { %v9308_v62 = vsel %vm9180_vm4, %v9116_v7, %v9244_v15  ;;  %v9353_v14 = vmax.f32 %v19487_v47, %v19489_v38  ;;  %v9355_v5 = vmax.f32 %v9301_v44, %v9303_v26  ;;  %v9380_v40 = vpack.c.bf16 %v9354_v11, %v9352_v12 }
 0x72b   : > { %v9310_v37 = vsel %vm9182_vm5, %v9118_v30, %v9246_v46  ;;  %vm9181_vm6 = vcmp.gt.f32.partialorder %v9117_v60, 0.0  ;;  %v9245_v9 = vmul.f32 0.01, %v9117_v60  ;;  %vm9183_vm7 = vcmp.gt.f32.partialorder %v9119_v2, 0.0 }
 0x72c   : > { %v9358_v39 = vmax.f32 %v9308_v62, %v9310_v37  ;;  %v9247_v8 = vmul.f32 0.01, %v9119_v2  ;;  %v9381_v18 = vpack.c.bf16 %v9355_v5, %v9353_v14  ;;  %v9120_v6 = vadd.f32 %v19420_v57, %v8850_v23 }
 0x72d   : > { %v9309_v56 = vsel %vm9181_vm6, %v9117_v60, %v9245_v9  ;;  %v9122_v33 = vadd.f32 %v19423_v48, %v8963_v22  ;;  %v9121_v25 = vadd.f32 %v19426_v42, %v8852_v27  ;;  %v9123_v47 = vadd.f32 %v19429_v58, %v8965_v13 }
 0x72e   : > { %v9311_v38 = vsel %vm9183_vm7, %v9119_v2, %v9247_v8  ;;  %9428 = vmatprep.subr.bf16.mxu0 %v9381_v18  ;;  %9533 = vmatprep.subr.bf16.mxu1 %v9381_v18  ;;  %vm9184_vm8 = vcmp.gt.f32.partialorder %v9120_v6, 0.0  ;;  %v9248_v19 = vmul.f32 0.01, %v9120_v6  ;;  %v9124_v4 = vadd.f32 %v19420_v57, %v8854_v28  ;;  %v8860_v12 = vpop.f32.mrb[116].mxu0  ;;  %v8973_v34 = vpop.f32.mrb[116].mxu1 }
 0x72f   : > { %9429 = vmatpush1.bf16.msra.mxu0 %v9380_v40  ;;  %9534 = vmatpush1.bf16.msra.mxu1 %v9380_v40  ;;  %vm9186_vm9 = vcmp.gt.f32.partialorder %v9122_v33, 0.0  ;;  %v9250_v0 = vmul.f32 0.01, %v9122_v33  ;;  %vm9185_vm10 = vcmp.gt.f32.partialorder %v9121_v25, 0.0  ;;  %v9249_v16 = vmul.f32 0.01, %v9121_v25 }
 0x730   : > { %v19526_v35 = vsel %vm9184_vm8, %v9120_v6, %v9248_v19  ;;  %vm9187_vm11 = vcmp.gt.f32.partialorder %v9123_v47, 0.0  ;;  %v9251_v1 = vmul.f32 0.01, %v9123_v47  ;;  %vm9188_vm12 = vcmp.gt.f32.partialorder %v9124_v4, 0.0  ;;  %v8862_v52 = vpop.f32.mrb[117].mxu0  ;;  %v8975_v31 = vpop.f32.mrb[117].mxu1 }
 0x731   : > { %v19528_v11 = vsel %vm9186_vm9, %v9122_v33, %v9250_v0  ;;  %v19530_v44 = vsel %vm9185_vm10, %v9121_v25, %v9249_v16  ;;  %v9252_v26 = vmul.f32 0.01, %v9124_v4  ;;  %v9126_v55 = vadd.f32 %v19423_v48, %v8967_v54  ;;  %v8864_v3 = vpop.f32.mrb[118].mxu0  ;;  %v8977_v17 = vpop.f32.mrb[118].mxu1 }
 0x732   : > { %v9360_v59 = vmax.f32 %v19526_v35, %v19528_v11  ;;  %v19535_v32 = vsel %vm9187_vm11, %v9123_v47, %v9251_v1  ;;  %v9125_v43 = vadd.f32 %v19426_v42, %v8856_v51  ;;  %v9127_v7 = vadd.f32 %v19429_v58, %v8969_v61  ;;  %v8866_v29 = vpop.f32.mrb[119].mxu0  ;;  %v8979_v30 = vpop.f32.mrb[119].mxu1 }
 0x733   : > { %v9316_v23 = vsel %vm9188_vm12, %v9124_v4, %v9252_v26  ;;  %vm9190_vm13 = vcmp.gt.f32.partialorder %v9126_v55, 0.0  ;;  %v9254_v22 = vmul.f32 0.01, %v9126_v55  ;;  %v9357_v63 = vmax.f32 %v19510_v21, %v19512_v53 }
 0x734   : > { %vm9189_vm14 = vcmp.gt.f32.partialorder %v9125_v43, 0.0  ;;  %v9253_v27 = vmul.f32 0.01, %v9125_v43  ;;  %vm9191_vm15 = vcmp.gt.f32.partialorder %v9127_v7, 0.0  ;;  %v9255_v13 = vmul.f32 0.01, %v9127_v7 }
 0x735   : > { %v9318_v15 = vsel %vm9190_vm13, %v9126_v55, %v9254_v22  ;;  %v9359_v28 = vmax.f32 %v9309_v56, %v9311_v38  ;;  %v9382_v54 = vpack.c.bf16 %v9358_v39, %v9356_v45  ;;  %v9128_v46 = vadd.f32 %v19420_v57, %v8860_v12 }
 0x736   : > { %v9362_v60 = vmax.f32 %v9316_v23, %v9318_v15  ;;  %v9317_v2 = vsel %vm9189_vm14, %v9125_v43, %v9253_v27  ;;  %v9319_v51 = vsel %vm9191_vm15, %v9127_v7, %v9255_v13  ;;  %v9130_v61 = vadd.f32 %v19423_v48, %v8973_v34  ;;  %v8870_v62 = vpop.f32.mrb[120].mxu0  ;;  %v8983_v14 = vpop.f32.mrb[120].mxu1 }
 0x737   : > { %v9383_v21 = vpack.c.bf16 %v9359_v28, %v9357_v63  ;;  %vm9192_vm2 = vcmp.gt.f32.partialorder %v9128_v46, 0.0  ;;  %v9256_v53 = vmul.f32 0.01, %v9128_v46  ;;  %v9129_v5 = vadd.f32 %v19426_v42, %v8862_v52  ;;  %v8872_v40 = vpop.f32.mrb[121].mxu0  ;;  %v8985_v37 = vpop.f32.mrb[121].mxu1 }
 0x738   : > { %vm9194_vm3 = vcmp.gt.f32.partialorder %v9130_v61, 0.0  ;;  %v9258_v9 = vmul.f32 0.01, %v9130_v61  ;;  %v9131_v49 = vadd.f32 %v19429_v58, %v8975_v31  ;;  %v9132_v36 = vadd.f32 %v19420_v57, %v8864_v3  ;;  %v8874_v45 = vpop.f32.mrb[122].mxu0  ;;  %v19549_v39 = vpop.f32.mrb[122].mxu1 }
 0x739   : > { %9430 = vmatprep.subr.bf16.mxu0 %v9383_v21  ;;  %9535 = vmatprep.subr.bf16.mxu1 %v9383_v21  ;;  %v19551_v8 = vsel %vm9192_vm2, %v9128_v46, %v9256_v53  ;;  %vm9193_vm4 = vcmp.gt.f32.partialorder %v9129_v5, 0.0  ;;  %v9257_v18 = vmul.f32 0.01, %v9129_v5  ;;  %v9134_v6 = vadd.f32 %v19423_v48, %v8977_v17  ;;  %v19554_v56 = vpop.f32.mrb[123].mxu0  ;;  %v8989_v33 = vpop.f32.mrb[123].mxu1 }
 0x73a   : > { %9431 = vmatpush1.bf16.msra.mxu0 %v9382_v54  ;;  %9536 = vmatpush1.bf16.msra.mxu1 %v9382_v54  ;;  %v19557_v25 = vsel %vm9194_vm3, %v9130_v61, %v9258_v9  ;;  %vm9195_vm5 = vcmp.gt.f32.partialorder %v9131_v49, 0.0  ;;  %v9259_v47 = vmul.f32 0.01, %v9131_v49  ;;  %vm9196_vm6 = vcmp.gt.f32.partialorder %v9132_v36, 0.0 }
 0x73b   : > { %v9364_v38 = vmax.f32 %v19551_v8, %v19557_v25  ;;  %v19561_v19 = vsel %vm9193_vm4, %v9129_v5, %v9257_v18  ;;  %v9260_v4 = vmul.f32 0.01, %v9132_v36  ;;  %vm9198_vm7 = vcmp.gt.f32.partialorder %v9134_v6, 0.0 }
 0x73c   : > { %v19563_v12 = vsel %vm9195_vm5, %v9131_v49, %v9259_v47  ;;  %v9262_v34 = vmul.f32 0.01, %v9134_v6  ;;  %v9133_v0 = vadd.f32 %v19426_v42, %v8866_v29  ;;  %v9135_v16 = vadd.f32 %v19429_v58, %v8979_v30 }
 0x73d   : > { %v9324_v35 = vsel %vm9196_vm6, %v9132_v36, %v9260_v4  ;;  %v9361_v1 = vmax.f32 %v19530_v44, %v19535_v32  ;;  %v9363_v52 = vmax.f32 %v9317_v2, %v9319_v51  ;;  %v9384_v31 = vpack.c.bf16 %v9362_v60, %v9360_v59 }
 0x73e   : > { %v9326_v11 = vsel %vm9198_vm7, %v9134_v6, %v9262_v34  ;;  %vm9197_vm8 = vcmp.gt.f32.partialorder %v9133_v0, 0.0  ;;  %v9261_v26 = vmul.f32 0.01, %v9133_v0  ;;  %vm9199_vm9 = vcmp.gt.f32.partialorder %v9135_v16, 0.0  ;;  %v8880_v55 = vpop.f32.mrb[124].mxu0  ;;  %v8993_v3 = vpop.f32.mrb[124].mxu1 }
 0x73f   : > { %v9366_v17 = vmax.f32 %v9324_v35, %v9326_v11  ;;  %v9263_v43 = vmul.f32 0.01, %v9135_v16  ;;  %v9385_v7 = vpack.c.bf16 %v9363_v52, %v9361_v1  ;;  %v9136_v23 = vadd.f32 %v19420_v57, %v8870_v62  ;;  %v8882_v29 = vpop.f32.mrb[125].mxu0  ;;  %v8995_v22 = vpop.f32.mrb[125].mxu1 }
 0x740   : > { %v9325_v30 = vsel %vm9197_vm8, %v9133_v0, %v9261_v26  ;;  %v9138_v63 = vadd.f32 %v19423_v48, %v8983_v14  ;;  %v9137_v44 = vadd.f32 %v19426_v42, %v8872_v40  ;;  %v9139_v59 = vadd.f32 %v19429_v58, %v8985_v37  ;;  %v8884_v32 = vpop.f32.mrb[126].mxu0  ;;  %v8997_v27 = vpop.f32.mrb[126].mxu1 }
 0x741   : > { %v9327_v13 = vsel %vm9199_vm9, %v9135_v16, %v9263_v43  ;;  %9432 = vmatprep.subr.bf16.mxu0 %v9385_v7  ;;  %9537 = vmatprep.subr.bf16.mxu1 %v9385_v7  ;;  %vm9200_vm10 = vcmp.gt.f32.partialorder %v9136_v23, 0.0  ;;  %v9264_v15 = vmul.f32 0.01, %v9136_v23  ;;  %v9140_v28 = vadd.f32 %v19420_v57, %v8874_v45  ;;  %v8886_v54 = vpop.f32.mrb[127].mxu0  ;;  %v8999_v46 = vpop.f32.mrb[127].mxu1 }
 0x742   : > { %9433 = vmatpush1.bf16.msra.mxu0 %v9384_v31  ;;  %9538 = vmatpush1.bf16.msra.mxu1 %v9384_v31  ;;  %vm9202_vm11 = vcmp.gt.f32.partialorder %v9138_v63, 0.0  ;;  %v9266_v60 = vmul.f32 0.01, %v9138_v63  ;;  %vm9201_vm12 = vcmp.gt.f32.partialorder %v9137_v44, 0.0  ;;  %v9265_v2 = vmul.f32 0.01, %v9137_v44 }
 0x743   : > { %v9328_v51 = vsel %vm9200_vm10, %v9136_v23, %v9264_v15  ;;  %vm9203_vm13 = vcmp.gt.f32.partialorder %v9139_v59, 0.0  ;;  %v9267_v61 = vmul.f32 0.01, %v9139_v59  ;;  %vm9204_vm14 = vcmp.gt.f32.partialorder %v9140_v28, 0.0 }
 0x744   : > { %v9330_v62 = vsel %vm9202_vm11, %v9138_v63, %v9266_v60  ;;  %v9329_v14 = vsel %vm9201_vm12, %v9137_v44, %v9265_v2  ;;  %v9268_v21 = vmul.f32 0.01, %v9140_v28  ;;  %v9142_v53 = vadd.f32 %v19423_v48, %v19549_v39  ;;  %v15678_v2 = vld [vmem:[%s20616_s9] sm:$0xff]  }
 0x745   : > { %v9368_v5 = vmax.f32 %v9328_v51, %v9330_v62  ;;  %v9331_v40 = vsel %vm9203_vm13, %v9139_v59, %v9267_v61  ;;  %v9141_v37 = vadd.f32 %v19426_v42, %v19554_v56  ;;  %v9143_v9 = vadd.f32 %v19429_v58, %v8989_v33  ;;  %v15679_v51 = vld [vmem:[%s20617_s10] sm:$0xff]   ;;  %v15689_v62 = vld [vmem:[%s20612_s5 + $0x208] ss:$16 sps:$4 sm:$0xff]  }
 0x746   : > { %v9332_v49 = vsel %vm9204_vm14, %v9140_v28, %v9268_v21  ;;  %vm9206_vm15 = vcmp.gt.f32.partialorder %v9142_v53, 0.0  ;;  %v9270_v36 = vmul.f32 0.01, %v9142_v53  ;;  %v9365_v45 = vmax.f32 %v19561_v19, %v19563_v12  ;;  %v15686_v61 = vld [vmem:[%s20612_s5 + $0x200] ss:$16 sps:$4 sm:$0xff]  }
 0x747   : > { %vm9205_vm2 = vcmp.gt.f32.partialorder %v9141_v37, 0.0  ;;  %v9269_v18 = vmul.f32 0.01, %v9141_v37  ;;  %vm9207_vm3 = vcmp.gt.f32.partialorder %v9143_v9, 0.0  ;;  %v9271_v6 = vmul.f32 0.01, %v9143_v9 }
 0x748   : > { %v9334_v47 = vsel %vm9206_vm15, %v9142_v53, %v9270_v36  ;;  %v9367_v4 = vmax.f32 %v9325_v30, %v9327_v13  ;;  %v9386_v39 = vpack.c.bf16 %v9366_v17, %v9364_v38  ;;  %v9144_v56 = vadd.f32 %v19420_v57, %v8880_v55  ;;  %v15697_v21 = vld [vmem:[%s20612_s5 + $0x22c] ss:$16 sps:$4 sm:$0xff]   ;;  %v15692_v53 = vld [vmem:[%s20612_s5 + $0x220] ss:$16 sps:$4 sm:$0xff]  }
 0x749   : > { %v9370_v34 = vmax.f32 %v9332_v49, %v9334_v47  ;;  %v9333_v33 = vsel %vm9205_vm2, %v9141_v37, %v9269_v18  ;;  %v9335_v0 = vsel %vm9207_vm3, %v9143_v9, %v9271_v6  ;;  %v9146_v16 = vadd.f32 %v19423_v48, %v8993_v3  ;;  %v15703_v37 = vld [vmem:[%s20612_s5 + $0x24c] ss:$16 sps:$4 sm:$0xff]   ;;  %v15698_v36 = vld [vmem:[%s20612_s5 + $0x240] ss:$16 sps:$4 sm:$0xff]   ;;  %v15706_v18 = vld [vmem:[%s20612_s5 + $0x264] ss:$16 sps:$4 sm:$0xff]  }
 0x74a   : > { %v9387_v35 = vpack.c.bf16 %v9367_v4, %v9365_v45  ;;  %vm9208_vm4 = vcmp.gt.f32.partialorder %v9144_v56, 0.0  ;;  %v9272_v19 = vmul.f32 0.01, %v9144_v56  ;;  %v9145_v12 = vadd.f32 %v19426_v42, %v8882_v29  ;;  %v15680_v9 = vld [vmem:[%s20616_s9 + $0x8] sm:$0xff]   ;;  %v15704_v47 = vld [vmem:[%s20612_s5 + $0x260] ss:$16 sps:$4 sm:$0xff]  }
 0x74b   : > { %vm9210_vm5 = vcmp.gt.f32.partialorder %v9146_v16, 0.0  ;;  %v9274_v1 = vmul.f32 0.01, %v9146_v16  ;;  %v9147_v52 = vadd.f32 %v19429_v58, %v8995_v22  ;;  %v9148_v31 = vadd.f32 %v19420_v57, %v8884_v32  ;;  %v15681_v49 = vld [vmem:[%s20617_s10 + $0x8] sm:$0xff]  }
 0x74c   : > { %9434 = vmatprep.subr.bf16.mxu0 %v9387_v35  ;;  %9539 = vmatprep.subr.bf16.mxu1 %v9387_v35  ;;  %v9336_v8 = vsel %vm9208_vm4, %v9144_v56, %v9272_v19  ;;  %vm9209_vm6 = vcmp.gt.f32.partialorder %v9145_v12, 0.0  ;;  %v9273_v25 = vmul.f32 0.01, %v9145_v12  ;;  %v9150_v38 = vadd.f32 %v19423_v48, %v8997_v27  ;;  %v15701_v45 = vld [vmem:[%s20612_s5 + $0x248] ss:$16 sps:$4 sm:$0xff]  }
 0x74d   : > { %9435 = vmatpush1.bf16.msra.mxu0 %v9386_v39  ;;  %9540 = vmatpush1.bf16.msra.mxu1 %v9386_v39  ;;  %v9338_v11 = vsel %vm9210_vm5, %v9146_v16, %v9274_v1  ;;  %vm9211_vm7 = vcmp.gt.f32.partialorder %v9147_v52, 0.0  ;;  %v9275_v26 = vmul.f32 0.01, %v9147_v52  ;;  %vm9212_vm8 = vcmp.gt.f32.partialorder %v9148_v31, 0.0  ;;  %v15709_v6 = vld [vmem:[%s20612_s5 + $0x26c] ss:$16 sps:$4 sm:$0xff]  }
 0x74e   : > { %v9372_v55 = vmax.f32 %v9336_v8, %v9338_v11  ;;  %v9337_v3 = vsel %vm9209_vm6, %v9145_v12, %v9273_v25  ;;  %v9276_v17 = vmul.f32 0.01, %v9148_v31  ;;  %vm9214_vm9 = vcmp.gt.f32.partialorder %v9150_v38, 0.0  ;;  %v15707_v4 = vld [vmem:[%s20612_s5 + $0x268] ss:$16 sps:$4 sm:$0xff]  }
 0x74f   : > { %v9339_v43 = vsel %vm9211_vm7, %v9147_v52, %v9275_v26  ;;  %v9278_v7 = vmul.f32 0.01, %v9150_v38  ;;  %v9149_v57 = vadd.f32 %v19426_v42, %v8886_v54  ;;  %v9151_v23 = vadd.f32 %v19429_v58, %v8999_v46  ;;  %v15688_v54 = vld [vmem:[%s20612_s5 + $0x204] ss:$16 sps:$4 sm:$0xff]   ;;  %v15691_v46 = vld [vmem:[%s20612_s5 + $0x20c] ss:$16 sps:$4 sm:$0xff]  }
 0x750   : > { %v9340_v29 = vsel %vm9212_vm8, %v9148_v31, %v9276_v17  ;;  %v9369_v22 = vmax.f32 %v9329_v14, %v9331_v40  ;;  %v9371_v30 = vmax.f32 %v9333_v33, %v9335_v0  ;;  %v9388_v48 = vpack.c.bf16 %v9370_v34, %v9368_v5  ;;  %v15694_v14 = vld [vmem:[%s20612_s5 + $0x224] ss:$16 sps:$4 sm:$0xff]   ;;  %v15695_v5 = vld [vmem:[%s20612_s5 + $0x228] ss:$16 sps:$4 sm:$0xff]   ;;  %v15715_v56 = vld [vmem:[%s20612_s5 + $0x28c] ss:$16 sps:$4 sm:$0xff]  }
 0x751   : > { %v9342_v63 = vsel %vm9214_vm9, %v9150_v38, %v9278_v7  ;;  %vm9213_vm10 = vcmp.gt.f32.partialorder %v9149_v57, 0.0  ;;  %v9277_v44 = vmul.f32 0.01, %v9149_v57  ;;  %vm9215_vm11 = vcmp.gt.f32.partialorder %v9151_v23, 0.0  ;;  %v15700_v40 = vld [vmem:[%s20612_s5 + $0x244] ss:$16 sps:$4 sm:$0xff]  }
 0x752   : > { %v9374_v59 = vmax.f32 %v9340_v29, %v9342_v63  ;;  %v9279_v32 = vmul.f32 0.01, %v9151_v23  ;;  %v9389_v27 = vpack.c.bf16 %v9371_v30, %v9369_v22  ;;  %v9373_v13 = vmax.f32 %v9337_v3, %v9339_v43  ;;  %v15712_v39 = vld [vmem:[%s20612_s5 + $0x284] ss:$16 sps:$4 sm:$0xff]   ;;  %v15710_v0 = vld [vmem:[%s20612_s5 + $0x280] ss:$16 sps:$4 sm:$0xff]  }
 0x753   : > { %v9341_v15 = vsel %vm9213_vm10, %v9149_v57, %v9277_v44  ;;  %v15682_v34 = vld [vmem:[%s20616_s9 + $0x10] sm:$0xff]   ;;  %v15713_v16 = vld [vmem:[%s20612_s5 + $0x288] ss:$16 sps:$4 sm:$0xff]   ;;  %v15721_v19 = vld [vmem:[%s20612_s5 + $0x2ac] ss:$16 sps:$4 sm:$0xff]  }
 0x754   : > { %v9343_v28 = vsel %vm9215_vm11, %v9151_v23, %v9279_v32  ;;  %9436 = vmatprep.subr.bf16.mxu0 %v9389_v27  ;;  %9541 = vmatprep.subr.bf16.mxu1 %v9389_v27  ;;  %v9390_v60 = vpack.c.bf16 %v9374_v59, %v9372_v55  ;;  %v15683_v33 = vld [vmem:[%s20617_s10 + $0x10] sm:$0xff]   ;;  %v15719_v1 = vld [vmem:[%s20612_s5 + $0x2a8] ss:$16 sps:$4 sm:$0xff]   ;;  %v15727_v31 = vld [vmem:[%s20612_s5 + $0x2cc] ss:$16 sps:$4 sm:$0xff]  }
 0x755   : > { %9437 = vmatpush1.bf16.msra.mxu0 %v9388_v48  ;;  %9542 = vmatpush1.bf16.msra.mxu1 %v9388_v48  ;;  %v9375_v42 = vmax.f32 %v9341_v15, %v9343_v28  ;;  %v15718_v35 = vld [vmem:[%s20612_s5 + $0x2a4] ss:$16 sps:$4 sm:$0xff]   ;;  %v15716_v12 = vld [vmem:[%s20612_s5 + $0x2a0] ss:$16 sps:$4 sm:$0xff]   ;;  %v15684_v8 = vld [vmem:[%s20616_s9 + $0x18] sm:$0xff]  }
 0x756   : > { %v15724_v52 = vld [vmem:[%s20612_s5 + $0x2c4] ss:$16 sps:$4 sm:$0xff]   ;;  %v15685_v25 = vld [vmem:[%s20617_s10 + $0x18] sm:$0xff]   ;;  %v15722_v38 = vld [vmem:[%s20612_s5 + $0x2c0] ss:$16 sps:$4 sm:$0xff]  }
 0x757   : > { %v9391_v58 = vpack.c.bf16 %v9375_v42, %v9373_v13  ;;  %v15725_v11 = vld [vmem:[%s20612_s5 + $0x2c8] ss:$16 sps:$4 sm:$0xff]   ;;  %v15730_v26 = vld [vmem:[%s20612_s5 + $0x2e4] ss:$16 sps:$4 sm:$0xff]   ;;  %v15733_v55 = vld [vmem:[%s20612_s5 + $0x2ec] ss:$16 sps:$4 sm:$0xff]  }
 0x758   : > { %v15728_v3 = vld [vmem:[%s20612_s5 + $0x2e0] ss:$16 sps:$4 sm:$0xff]   ;;  %v15731_v17 = vld [vmem:[%s20612_s5 + $0x2e8] ss:$16 sps:$4 sm:$0xff]   ;;  %v15736_v43 = vld [vmem:[%s20612_s5 + $0x304] ss:$16 sps:$4 sm:$0xff]  }
 0x759   : > { %9438 = vmatprep.subr.bf16.mxu0 %v9391_v58  ;;  %9543 = vmatprep.subr.bf16.mxu1 %v9391_v58  ;;  %v15739_v7 = vld [vmem:[%s20612_s5 + $0x30c] ss:$16 sps:$4 sm:$0xff]   ;;  %v15734_v57 = vld [vmem:[%s20612_s5 + $0x300] ss:$16 sps:$4 sm:$0xff]   ;;  %v15737_v23 = vld [vmem:[%s20612_s5 + $0x308] ss:$16 sps:$4 sm:$0xff]  }
 0x75a   : > { %9439 = vmatpush1.bf16.msra.mxu0 %v9390_v60  ;;  %9544 = vmatpush1.bf16.msra.mxu1 %v9390_v60  ;;  %v15740_v29 = vld [vmem:[%s20612_s5 + $0x320] ss:$16 sps:$4 sm:$0xff]   ;;  %v15742_v22 = vld [vmem:[%s20612_s5 + $0x324] ss:$16 sps:$4 sm:$0xff]   ;;  %v15743_v30 = vld [vmem:[%s20612_s5 + $0x328] ss:$16 sps:$4 sm:$0xff]  }
 0x75b   : > { %10217 = vmatprep.subr.bf16.mxu0 %v15688_v54  ;;  %10290 = vmatprep.subr.bf16.mxu1 %v15691_v46  ;;  %v15745_v48 = vld [vmem:[%s20612_s5 + $0x32c] ss:$16 sps:$4 sm:$0xff]   ;;  %v15748_v63 = vld [vmem:[%s20612_s5 + $0x344] ss:$16 sps:$4 sm:$0xff]   ;;  %v15746_v44 = vld [vmem:[%s20612_s5 + $0x340] ss:$16 sps:$4 sm:$0xff]  }
 0x75c   : > { %v15751_v59 = vld [vmem:[%s20612_s5 + $0x34c] ss:$16 sps:$4 sm:$0xff]   ;;  %v15749_v32 = vld [vmem:[%s20612_s5 + $0x348] ss:$16 sps:$4 sm:$0xff]   ;;  %v15752_v27 = vld [vmem:[%s20612_s5 + $0x360] ss:$16 sps:$4 sm:$0xff]  }
 0x75d   : > { %9457 = vmatmul.mubr.bf16.vlgmr.msra.gmra.mrb[128].mxu0 %v15678_v2  ;;  %9562 = vmatmul.mubr.bf16.vlgmr.msra.gmra.mrb[128].mxu1 %v15679_v51  ;;  %v15754_v13 = vld [vmem:[%s20612_s5 + $0x364] ss:$16 sps:$4 sm:$0xff]   ;;  %v15755_v15 = vld [vmem:[%s20612_s5 + $0x368] ss:$16 sps:$4 sm:$0xff]   ;;  %v15757_v28 = vld [vmem:[%s20612_s5 + $0x36c] ss:$16 sps:$4 sm:$0xff]  }
 0x75e   : > { %9466 = vmatprep.mubr.bf16.mxu0 %v20695_v41  ;;  %9571 = vmatprep.mubr.bf16.mxu1 %v20695_v41  ;;  %v15760_v60 = vld [vmem:[%s20612_s5 + $0x384] ss:$16 sps:$4 sm:$0xff]   ;;  %v15758_v42 = vld [vmem:[%s20612_s5 + $0x380] ss:$16 sps:$4 sm:$0xff]   ;;  %v15763_v58 = vld [vmem:[%s20612_s5 + $0x38c] ss:$16 sps:$4 sm:$0xff]  }
 0x75f   : > { %10218 = vmatpush1.bf16.msra.mxu0 %v15686_v61  ;;  %10291 = vmatpush1.bf16.msra.mxu1 %v15689_v62  ;;  %v15761_v54 = vld [vmem:[%s20612_s5 + $0x388] ss:$16 sps:$4 sm:$0xff]   ;;  %v15764_v46 = vld [vmem:[%s20612_s5 + $0x3a0] ss:$16 sps:$4 sm:$0xff]   ;;  %v15766_v2 = vld [vmem:[%s20612_s5 + $0x3a4] ss:$16 sps:$4 sm:$0xff]  }
 0x760   : > { %10219 = vmatprep.subr.bf16.mxu0 %v15694_v14  ;;  %10292 = vmatprep.subr.bf16.mxu1 %v15697_v21  ;;  %v15767_v51 = vld [vmem:[%s20612_s5 + $0x3a8] ss:$16 sps:$4 sm:$0xff]   ;;  %v15769_v61 = vld [vmem:[%s20612_s5 + $0x3ac] ss:$16 sps:$4 sm:$0xff]   ;;  %v15772_v62 = vld [vmem:[%s20612_s5 + $0x3c4] ss:$16 sps:$4 sm:$0xff]  }
 0x761   : > { %v15770_v14 = vld [vmem:[%s20612_s5 + $0x3c0] ss:$16 sps:$4 sm:$0xff]   ;;  %v15775_v21 = vld [vmem:[%s20612_s5 + $0x3cc] ss:$16 sps:$4 sm:$0xff]  }
 0x763   : > { %10220 = vmatpush1.bf16.msra.mxu0 %v15692_v53  ;;  %10293 = vmatpush1.bf16.msra.mxu1 %v15695_v5  ;;  %v15773_v53 = vld [vmem:[%s20612_s5 + $0x3c8] ss:$16 sps:$4 sm:$0xff]   ;;  %v15776_v5 = vld [vmem:[%s20612_s5 + $0x3e0] ss:$16 sps:$4 sm:$0xff]  }
 0x764   : > { %10221 = vmatprep.subr.bf16.mxu0 %v15700_v40  ;;  %10294 = vmatprep.subr.bf16.mxu1 %v15703_v37  ;;  %v15778_v40 = vld [vmem:[%s20612_s5 + $0x3e4] ss:$16 sps:$4 sm:$0xff]   ;;  %v15779_v37 = vld [vmem:[%s20612_s5 + $0x3e8] ss:$16 sps:$4 sm:$0xff]  }
 0x765   : > { %9467 = vmatmul.mubr.bf16.gmra.mrb[132].mxu0 %v15680_v9  ;;  %9572 = vmatmul.mubr.bf16.gmra.mrb[132].mxu1 %v15681_v49  ;;  %v15781_v9 = vld [vmem:[%s20612_s5 + $0x3ec] ss:$16 sps:$4 sm:$0xff]   ;;  %v15784_v49 = vld [vmem:[%s20612_s5 + $0x4] ss:$16 sps:$4 sm:$0xff]  }
 0x766   : > { %9476 = vmatprep.mubr.bf16.mxu0 %v20695_v41  ;;  %9581 = vmatprep.mubr.bf16.mxu1 %v20695_v41 }
 0x767   : > { %10222 = vmatpush1.bf16.msra.mxu0 %v15698_v36  ;;  %10295 = vmatpush1.bf16.msra.mxu1 %v15701_v45  ;;  %v15787_v36 = vld [vmem:[%s20612_s5 + $0xc] ss:$16 sps:$4 sm:$0xff]  }
 0x768   : > { %10223 = vmatprep.subr.bf16.mxu0 %v15706_v18  ;;  %10296 = vmatprep.subr.bf16.mxu1 %v15709_v6 }
 0x76b   : > { %10224 = vmatpush1.bf16.msra.mxu0 %v15704_v47  ;;  %10297 = vmatpush1.bf16.msra.mxu1 %v15707_v4 }
 0x76c   : > { %10225 = vmatprep.subr.bf16.mxu0 %v15712_v39  ;;  %10298 = vmatprep.subr.bf16.mxu1 %v15715_v56 }
 0x76d   : > { %9477 = vmatmul.mubr.bf16.gmra.mrb[136].mxu0 %v15682_v34  ;;  %9582 = vmatmul.mubr.bf16.gmra.mrb[136].mxu1 %v15683_v33 }
 0x76e   : > { %9486 = vmatprep.mubr.bf16.mxu0 %v20695_v41  ;;  %9591 = vmatprep.mubr.bf16.mxu1 %v20695_v41 }
 0x76f   : > { %10226 = vmatpush1.bf16.msra.mxu0 %v15710_v0  ;;  %10299 = vmatpush1.bf16.msra.mxu1 %v15713_v16 }
 0x770   : > { %10227 = vmatprep.subr.bf16.mxu0 %v15718_v35  ;;  %10300 = vmatprep.subr.bf16.mxu1 %v15721_v19 }
 0x773   : > { %10228 = vmatpush1.bf16.msra.mxu0 %v15716_v12  ;;  %10301 = vmatpush1.bf16.msra.mxu1 %v15719_v1 }
 0x774   : > { %10229 = vmatprep.subr.bf16.mxu0 %v15724_v52  ;;  %10302 = vmatprep.subr.bf16.mxu1 %v15727_v31 }
 0x775   : > { %9487 = vmatmul.mubr.bf16.gmra.mrb[140].mxu0 %v15684_v8  ;;  %9592 = vmatmul.mubr.bf16.gmra.mrb[140].mxu1 %v15685_v25 }
 0x777   : > { %10230 = vmatpush1.bf16.msra.mxu0 %v15722_v38  ;;  %10303 = vmatpush1.bf16.msra.mxu1 %v15725_v11 }
 0x778   : > { %10231 = vmatprep.subr.bf16.mxu0 %v15730_v26  ;;  %10304 = vmatprep.subr.bf16.mxu1 %v15733_v55 }
 0x77b   : > { %10232 = vmatpush1.bf16.msra.mxu0 %v15728_v3  ;;  %10305 = vmatpush1.bf16.msra.mxu1 %v15731_v17 }
 0x77c   : > { %10233 = vmatprep.subr.bf16.mxu0 %v15736_v43  ;;  %10306 = vmatprep.subr.bf16.mxu1 %v15739_v7 }
 0x77f   : > { %10234 = vmatpush1.bf16.msra.mxu0 %v15734_v57  ;;  %10307 = vmatpush1.bf16.msra.mxu1 %v15737_v23 }
 0x780   : > { %10235 = vmatprep.subr.bf16.mxu0 %v15742_v22  ;;  %10308 = vmatprep.subr.bf16.mxu1 %v15745_v48 }
 0x783   : > { %10236 = vmatpush1.bf16.msra.mxu0 %v15740_v29  ;;  %10309 = vmatpush1.bf16.msra.mxu1 %v15743_v30 }
 0x784   : > { %10237 = vmatprep.subr.bf16.mxu0 %v15748_v63  ;;  %10310 = vmatprep.subr.bf16.mxu1 %v15751_v59 }
 0x787   : > { %10238 = vmatpush1.bf16.msra.mxu0 %v15746_v44  ;;  %10311 = vmatpush1.bf16.msra.mxu1 %v15749_v32 }
 0x788   : > { %10239 = vmatprep.subr.bf16.mxu0 %v15754_v13  ;;  %10312 = vmatprep.subr.bf16.mxu1 %v15757_v28 }
 0x78b   : > { %10240 = vmatpush1.bf16.msra.mxu0 %v15752_v27  ;;  %10313 = vmatpush1.bf16.msra.mxu1 %v15755_v15 }
 0x78c   : > { %10241 = vmatprep.subr.bf16.mxu0 %v15760_v60  ;;  %10314 = vmatprep.subr.bf16.mxu1 %v15763_v58 }
 0x78f   : > { %10242 = vmatpush1.bf16.msra.mxu0 %v15758_v42  ;;  %10315 = vmatpush1.bf16.msra.mxu1 %v15761_v54 }
 0x790   : > { %10243 = vmatprep.subr.bf16.mxu0 %v15766_v2  ;;  %10316 = vmatprep.subr.bf16.mxu1 %v15769_v61 }
 0x793   : > { %10244 = vmatpush1.bf16.msra.mxu0 %v15764_v46  ;;  %10317 = vmatpush1.bf16.msra.mxu1 %v15767_v51 }
 0x794   : > { %10245 = vmatprep.subr.bf16.mxu0 %v15772_v62  ;;  %10318 = vmatprep.subr.bf16.mxu1 %v15775_v21 }
 0x797   : > { %10246 = vmatpush1.bf16.msra.mxu0 %v15770_v14  ;;  %10319 = vmatpush1.bf16.msra.mxu1 %v15773_v53 }
 0x798   : > { %10247 = vmatprep.subr.bf16.mxu0 %v15778_v40  ;;  %10320 = vmatprep.subr.bf16.mxu1 %v15781_v9  ;;  %v15785_v9 = vld [vmem:[%s20612_s5 + $0x8] ss:$16 sps:$4 sm:$0xff]  }
 0x79b   : > { %10248 = vmatpush1.bf16.msra.mxu0 %v15776_v5  ;;  %10321 = vmatpush1.bf16.msra.mxu1 %v15779_v37  ;;  %v15782_v37 = vld [vmem:[%s20612_s5] ss:$16 sps:$4 sm:$0xff]  }
 0x79c   : > { %10683 = vmatprep.subr.bf16.mxu0 %v15784_v49  ;;  %10756 = vmatprep.subr.bf16.mxu1 %v15787_v36 }
 0x830   : > { %v9458_v45 = vpop.f32.mrb[128].mxu0  ;;  %v9563_v18 = vpop.f32.mrb[128].mxu1 }
 0x831   : > { %v9602_v6 = vmax.f32 %v9458_v45, %v9563_v18  ;;  %v9460_v47 = vpop.f32.mrb[129].mxu0  ;;  %v9565_v4 = vpop.f32.mrb[129].mxu1  ;;  %v15790_v45 = vld [vmem:[%s20612_s5 + $0x24] ss:$16 sps:$4 sm:$0xff]   ;;  %v15793_v18 = vld [vmem:[%s20612_s5 + $0x2c] ss:$16 sps:$4 sm:$0xff]  }
 0x832   : > { %v9603_v39 = vmax.f32 %v9460_v47, %v9565_v4  ;;  %v9462_v56 = vpop.f32.mrb[130].mxu0  ;;  %v9567_v34 = vpop.f32.mrb[130].mxu1  ;;  %v15788_v4 = vld [vmem:[%s20612_s5 + $0x20] ss:$16 sps:$4 sm:$0xff]  }
 0x833   : > { %9618 = vst [vmem:[#allocation4] sm:$0xff] %v9602_v6  ;;  %v19820_v33 = vmax.f32 %v9462_v56, %v9567_v34  ;;  %v9464_v0 = vpop.f32.mrb[131].mxu0  ;;  %v9569_v16 = vpop.f32.mrb[131].mxu1  ;;  %v15796_v34 = vld [vmem:[%s20612_s5 + $0x44] ss:$16 sps:$4 sm:$0xff]  }
 0x834   : > { %9619 = vst [vmem:[#allocation4 + $0x8] sm:$0xff] %v9603_v39  ;;  %v19822_v35 = vmax.f32 %v9464_v0, %v9569_v16  ;;  %v9741_v16 = vld [vmem:[#allocation4 + $0x88] sm:$0x1] }
 0x835   : > { %v19825_v19 = vpack.c.bf16 %v19820_v33, %v9602_v6 }
 0x836   : > { %v19828_v12 = vpack.c.bf16 %v19822_v35, %v9603_v39  ;;  %v15791_v39 = vld [vmem:[%s20612_s5 + $0x28] ss:$16 sps:$4 sm:$0xff]  }
 0x838   : > { %v9468_v1 = vpop.f32.mrb[132].mxu0  ;;  %v9573_v52 = vpop.f32.mrb[132].mxu1 }
 0x839   : > { %v9606_v31 = vmax.f32 %v9468_v1, %v9573_v52  ;;  %v9470_v8 = vpop.f32.mrb[133].mxu0  ;;  %v9575_v25 = vpop.f32.mrb[133].mxu1 }
 0x83a   : > { %v9607_v38 = vmax.f32 %v9470_v8, %v9575_v25  ;;  %v9472_v11 = vpop.f32.mrb[134].mxu0  ;;  %v9577_v26 = vpop.f32.mrb[134].mxu1  ;;  %v9724_v55 = vld [vmem:[#allocation4] sm:$0xfe] }
 0x83b   : > { %v9608_v3 = vmax.f32 %v9472_v11, %v9577_v26  ;;  %v9474_v17 = vpop.f32.mrb[135].mxu0  ;;  %v9579_v43 = vpop.f32.mrb[135].mxu1  ;;  %v9725_v7 = vld [vmem:[#allocation4 + $0x8] sm:$0xfe]  ;;  %v9742_v57 = vpack.c.bf16 %v19820_v33, %v9724_v55  ;;  %v15799_v25 = vld [vmem:[%s20612_s5 + $0x4c] ss:$16 sps:$4 sm:$0xff]  }
 0x83c   : > { %v9609_v23 = vmax.f32 %v9474_v17, %v9579_v43  ;;  %v9743_v29 = vpack.c.bf16 %v19822_v35, %v9725_v7  ;;  %v15794_v55 = vld [vmem:[%s20612_s5 + $0x40] ss:$16 sps:$4 sm:$0xff]  }
 0x83d   : > { %v19832_v22 = vpack.c.bf16 %v9608_v3, %v9606_v31  ;;  %v9820_v30 = vshll.u32 %v9742_v57, 16  ;;  %v9818_v44 = vshrl.u32 %v9742_v57, 16 }
 0x83e   : > { %v19834_v48 = vpack.c.bf16 %v9609_v23, %v9607_v38  ;;  %v9832_v63 = vshll.u32 %v9743_v29, 16  ;;  %v9830_v15 = vshrl.u32 %v9743_v29, 16 }
 0x83f   : > { %v9822_v59 = vrot.slane %v9820_v30, 1  ;;  %v9825_v32 = vshll.u32 %v19832_v22, 16  ;;  %v9841_v3 = vshrl.u32 %v19832_v22, 16  ;;  %v15797_v30 = vld [vmem:[%s20612_s5 + $0x48] ss:$16 sps:$4 sm:$0xff]  }
 0x840   : > { %v9478_v27 = vpop.f32.mrb[136].mxu0  ;;  %v9583_v13 = vpop.f32.mrb[136].mxu1  ;;  %v9834_v28 = vrot.slane %v9832_v63, 1  ;;  %v9837_v60 = vshll.u32 %v19834_v48, 16  ;;  %v9849_v31 = vshrl.u32 %v19834_v48, 16  ;;  %v9751_v63 = vpack.c.bf16 %v9741_v16, %v9741_v16 }
 0x841   : > { %v9610_v42 = vmax.f32 %v9478_v27, %v9583_v13  ;;  %v9480_v58 = vpop.f32.mrb[137].mxu0  ;;  %v9585_v54 = vpop.f32.mrb[137].mxu1  ;;  %v9823_v46 = vor.u32 %v9822_v59, %v9818_v44  ;;  %v9827_v2 = vrot.slane %v9825_v32, 1  ;;  %v15802_v13 = vld [vmem:[%s20612_s5 + $0x64] ss:$16 sps:$4 sm:$0xff]  }
 0x842   : > { %v9611_v51 = vmax.f32 %v9480_v58, %v9585_v54  ;;  %v9482_v61 = vpop.f32.mrb[138].mxu0  ;;  %v9587_v62 = vpop.f32.mrb[138].mxu1  ;;  %v9835_v14 = vor.u32 %v9834_v28, %v9830_v15  ;;  %v9839_v21 = vrot.slane %v9837_v60, 1  ;;  %v9740_v54 = vld [vmem:[#allocation4 + $0x80] sm:$0x1] }
 0x843   : > { %v9612_v53 = vmax.f32 %v9482_v61, %v9587_v62  ;;  %v9484_v5 = vpop.f32.mrb[139].mxu0  ;;  %v9589_v40 = vpop.f32.mrb[139].mxu1  ;;  %v9828_v6 = vsel %vm5541_vm0, %v9823_v46, %v9827_v2  ;;  %v9843_v27 = vor.u32 %v9841_v3, %v9827_v2  ;;  %v9885_v61 = vshll.u32 %v9751_v63, 16  ;;  %v15800_v62 = vld [vmem:[%s20612_s5 + $0x60] ss:$16 sps:$4 sm:$0xff]  }
 0x844   : > { %v9613_v49 = vmax.f32 %v9484_v5, %v9589_v40  ;;  %v9840_v36 = vsel %vm5541_vm0, %v9835_v14, %v9839_v21  ;;  %v9851_v23 = vor.u32 %v9849_v31, %v9839_v21  ;;  %v15803_v14 = vld [vmem:[%s20612_s5 + $0x68] ss:$16 sps:$4 sm:$0xff]   ;;  %v9750_v5 = vpack.c.bf16 %v9740_v54, %v9740_v54  ;;  %v15817_v31 = vld [vmem:[%s20612_s5 + $0xac] ss:$16 sps:$4 sm:$0xff]   ;;  %v15820_v3 = vld [vmem:[%s20612_s5 + $0xc4] ss:$16 sps:$4 sm:$0xff]  }
 0x845   : > { %10249 = vmatprep.mubr.bf16.mxu0 %v9840_v36  ;;  %10322 = vmatprep.mubr.bf16.mxu1 %v9840_v36  ;;  %v19852_v47 = vpack.c.bf16 %v9612_v53, %v9610_v42  ;;  %v15805_v42 = vld [vmem:[%s20612_s5 + $0x6c] ss:$16 sps:$4 sm:$0xff]   ;;  %v15827_v63 = vld [vmem:[%s20612_s5 + $0xe8] ss:$16 sps:$4 sm:$0xff]  }
 0x846   : > { %10250 = vmatmul.mubr.bf16.vlgmr.msra.gmra.mrb[144].mxu0 %v9828_v6  ;;  %10323 = vmatmul.mubr.bf16.vlgmr.msra.gmra.mrb[144].mxu1 %v9828_v6  ;;  %v19860_v56 = vpack.c.bf16 %v9613_v49, %v9611_v51  ;;  %v15811_v49 = vld [vmem:[%s20612_s5 + $0x8c] ss:$16 sps:$4 sm:$0xff]   ;;  %v9887_v6 = vrot.slane %v9885_v61, 1  ;;  %v9877_v16 = vshll.u32 %v9750_v5, 16  ;;  %v15845_v54 = vld [vmem:[%s20612_s5 + $0x148] ss:$16 sps:$4 sm:$0xff]  }
 0x847   : > { %10684 = vmatpush1.bf16.msra.mxu0 %v15782_v37  ;;  %10757 = vmatpush1.bf16.msra.mxu1 %v15785_v9  ;;  %v9845_v0 = vshll.u32 %v19852_v47, 16  ;;  %v9857_v15 = vshrl.u32 %v19852_v47, 16  ;;  %v15808_v9 = vld [vmem:[%s20612_s5 + $0x84] ss:$16 sps:$4 sm:$0xff]   ;;  %v15853_v61 = vld [vmem:[%s20612_s5 + $0x16c] ss:$16 sps:$4 sm:$0xff]  }
 0x848   : > { %v9488_v1 = vpop.f32.mrb[140].mxu0  ;;  %v9593_v52 = vpop.f32.mrb[140].mxu1  ;;  %10685 = vmatprep.subr.bf16.mxu0 %v15790_v45  ;;  %10758 = vmatprep.subr.bf16.mxu1 %v15793_v18  ;;  %v9853_v8 = vshll.u32 %v19860_v56, 16  ;;  %v9865_v58 = vshrl.u32 %v19860_v56, 16  ;;  %v15854_v5 = vld [vmem:[%s20612_s5 + $0x180] ss:$16 sps:$4 sm:$0xff]  }
 0x849   : > { %v9614_v38 = vmax.f32 %v9488_v1, %v9593_v52  ;;  %v9490_v11 = vpop.f32.mrb[141].mxu0  ;;  %v9595_v26 = vpop.f32.mrb[141].mxu1  ;;  %v9847_v17 = vrot.slane %v9845_v0, 1  ;;  %v15814_v52 = vld [vmem:[%s20612_s5 + $0xa4] ss:$16 sps:$4 sm:$0xff]  }
 0x84a   : > { %v9615_v43 = vmax.f32 %v9490_v11, %v9595_v26  ;;  %v9492_v7 = vpop.f32.mrb[142].mxu0  ;;  %v9597_v57 = vpop.f32.mrb[142].mxu1  ;;  %v9855_v29 = vrot.slane %v9853_v8, 1  ;;  %v15815_v11 = vld [vmem:[%s20612_s5 + $0xa8] ss:$16 sps:$4 sm:$0xff]  }
 0x84b   : > { %v9616_v44 = vmax.f32 %v9492_v7, %v9597_v57  ;;  %v9494_v59 = vpop.f32.mrb[143].mxu0  ;;  %v9599_v32 = vpop.f32.mrb[143].mxu1  ;;  %10686 = vmatpush1.bf16.msra.mxu0 %v15788_v4  ;;  %10759 = vmatpush1.bf16.msra.mxu1 %v15791_v39  ;;  %v9848_v46 = vsel %vm5541_vm0, %v9843_v27, %v9847_v17  ;;  %v9859_v21 = vor.u32 %v9857_v15, %v9847_v17  ;;  %v15806_v4 = vld [vmem:[%s20612_s5 + $0x80] ss:$16 sps:$4 sm:$0xff]   ;;  %v15809_v39 = vld [vmem:[%s20612_s5 + $0x88] ss:$16 sps:$4 sm:$0xff]  }
 0x84c   : > { %v9617_v28 = vmax.f32 %v9494_v59, %v9599_v32  ;;  %v9856_v60 = vsel %vm5541_vm0, %v9851_v23, %v9855_v29  ;;  %10687 = vmatprep.subr.bf16.mxu0 %v15796_v34  ;;  %10760 = vmatprep.subr.bf16.mxu1 %v15799_v25  ;;  %v9867_v40 = vor.u32 %v9865_v58, %v9855_v29  ;;  %v15823_v17 = vld [vmem:[%s20612_s5 + $0xcc] ss:$16 sps:$4 sm:$0xff]   ;;  %v15821_v7 = vld [vmem:[%s20612_s5 + $0xc8] ss:$16 sps:$4 sm:$0xff]   ;;  %v15826_v23 = vld [vmem:[%s20612_s5 + $0xe4] ss:$16 sps:$4 sm:$0xff]  }
 0x84d   : > { %10259 = vmatprep.mubr.bf16.mxu0 %v9856_v60  ;;  %10332 = vmatprep.mubr.bf16.mxu1 %v9856_v60  ;;  %v19888_v2 = vpack.c.bf16 %v9616_v44, %v9614_v38  ;;  %v15812_v38 = vld [vmem:[%s20612_s5 + $0xa0] ss:$16 sps:$4 sm:$0xff]   ;;  %v15829_v29 = vld [vmem:[%s20612_s5 + $0xec] ss:$16 sps:$4 sm:$0xff]   ;;  %v15832_v44 = vld [vmem:[%s20612_s5 + $0x104] ss:$16 sps:$4 sm:$0xff]  }
 0x84e   : > { %10260 = vmatmul.mubr.bf16.gmra.mrb[148].mxu0 %v9848_v46  ;;  %10333 = vmatmul.mubr.bf16.gmra.mrb[148].mxu1 %v9848_v46  ;;  %v19890_v51 = vpack.c.bf16 %v9617_v28, %v9615_v43  ;;  %v15818_v43 = vld [vmem:[%s20612_s5 + $0xc0] ss:$16 sps:$4 sm:$0xff]   ;;  %v15835_v59 = vld [vmem:[%s20612_s5 + $0x10c] ss:$16 sps:$4 sm:$0xff]   ;;  %v15838_v27 = vld [vmem:[%s20612_s5 + $0x124] ss:$16 sps:$4 sm:$0xff]  }
 0x84f   : > { %10688 = vmatpush1.bf16.msra.mxu0 %v15794_v55  ;;  %10761 = vmatpush1.bf16.msra.mxu1 %v15797_v30  ;;  %v9861_v53 = vshll.u32 %v19888_v2, 16  ;;  %v9873_v0 = vshrl.u32 %v19888_v2, 16  ;;  %v9879_v55 = vrot.slane %v9877_v16, 1  ;;  %v15824_v30 = vld [vmem:[%s20612_s5 + $0xe0] ss:$16 sps:$4 sm:$0xff]  }
 0x850   : > { %10689 = vmatprep.subr.bf16.mxu0 %v15802_v13  ;;  %10762 = vmatprep.subr.bf16.mxu1 %v15805_v42  ;;  %v9869_v37 = vshll.u32 %v19890_v51, 16  ;;  %v9881_v36 = vshrl.u32 %v19890_v51, 16  ;;  %v15830_v32 = vld [vmem:[%s20612_s5 + $0x100] ss:$16 sps:$4 sm:$0xff]   ;;  %v15841_v13 = vld [vmem:[%s20612_s5 + $0x12c] ss:$16 sps:$4 sm:$0xff]  }
 0x851   : > { %v9863_v45 = vrot.slane %v9861_v53, 1  ;;  %v15836_v15 = vld [vmem:[%s20612_s5 + $0x120] ss:$16 sps:$4 sm:$0xff]   ;;  %v15839_v28 = vld [vmem:[%s20612_s5 + $0x128] ss:$16 sps:$4 sm:$0xff]  }
 0x852   : > { %v9871_v18 = vrot.slane %v9869_v37, 1  ;;  %v15844_v60 = vld [vmem:[%s20612_s5 + $0x144] ss:$16 sps:$4 sm:$0xff]   ;;  %v15847_v42 = vld [vmem:[%s20612_s5 + $0x14c] ss:$16 sps:$4 sm:$0xff]  }
 0x853   : > { %10690 = vmatpush1.bf16.msra.mxu0 %v15800_v62  ;;  %10763 = vmatpush1.bf16.msra.mxu1 %v15803_v14  ;;  %v9864_v34 = vsel %vm5541_vm0, %v9859_v21, %v9863_v45  ;;  %v9875_v26 = vor.u32 %v9873_v0, %v9863_v45  ;;  %v15842_v58 = vld [vmem:[%s20612_s5 + $0x140] ss:$16 sps:$4 sm:$0xff]   ;;  %v15850_v46 = vld [vmem:[%s20612_s5 + $0x164] ss:$16 sps:$4 sm:$0xff]   ;;  %v15851_v14 = vld [vmem:[%s20612_s5 + $0x168] ss:$16 sps:$4 sm:$0xff]  }
 0x854   : > { %v9872_v1 = vsel %vm5541_vm0, %v9867_v40, %v9871_v18  ;;  %10691 = vmatprep.subr.bf16.mxu0 %v15808_v9  ;;  %10764 = vmatprep.subr.bf16.mxu1 %v15811_v49  ;;  %v9883_v8 = vor.u32 %v9881_v36, %v9871_v18  ;;  %v15848_v62 = vld [vmem:[%s20612_s5 + $0x160] ss:$16 sps:$4 sm:$0xff]   ;;  %v15856_v21 = vld [vmem:[%s20612_s5 + $0x184] ss:$16 sps:$4 sm:$0xff]   ;;  %v15859_v53 = vld [vmem:[%s20612_s5 + $0x18c] ss:$16 sps:$4 sm:$0xff]  }
 0x855   : > { %10269 = vmatprep.mubr.bf16.mxu0 %v9872_v1  ;;  %10342 = vmatprep.mubr.bf16.mxu1 %v9872_v1  ;;  %v9880_v57 = vsel %vm5541_vm0, %v9875_v26, %v9879_v55  ;;  %v15857_v40 = vld [vmem:[%s20612_s5 + $0x188] ss:$16 sps:$4 sm:$0xff]   ;;  %v15862_v37 = vld [vmem:[%s20612_s5 + $0x1a4] ss:$16 sps:$4 sm:$0xff]   ;;  %v15865_v9 = vld [vmem:[%s20612_s5 + $0x1ac] ss:$16 sps:$4 sm:$0xff]  }
 0x856   : > { %10270 = vmatmul.mubr.bf16.gmra.mrb[152].mxu0 %v9864_v34  ;;  %10343 = vmatmul.mubr.bf16.gmra.mrb[152].mxu1 %v9864_v34  ;;  %v9888_v25 = vsel %vm5541_vm0, %v9883_v8, %v9887_v6  ;;  %v15860_v49 = vld [vmem:[%s20612_s5 + $0x1a0] ss:$16 sps:$4 sm:$0xff]   ;;  %v15863_v36 = vld [vmem:[%s20612_s5 + $0x1a8] ss:$16 sps:$4 sm:$0xff]   ;;  %v15868_v45 = vld [vmem:[%s20612_s5 + $0x1c4] ss:$16 sps:$4 sm:$0xff]  }
 0x857   : > { %10692 = vmatpush1.bf16.msra.mxu0 %v15806_v4  ;;  %10765 = vmatpush1.bf16.msra.mxu1 %v15809_v39  ;;  %v15871_v18 = vld [vmem:[%s20612_s5 + $0x1cc] ss:$16 sps:$4 sm:$0xff]   ;;  %v15866_v6 = vld [vmem:[%s20612_s5 + $0x1c0] ss:$16 sps:$4 sm:$0xff]   ;;  %v15869_v4 = vld [vmem:[%s20612_s5 + $0x1c8] ss:$16 sps:$4 sm:$0xff]  }
 0x858   : > { %10693 = vmatprep.subr.bf16.mxu0 %v15814_v52  ;;  %10766 = vmatprep.subr.bf16.mxu1 %v15817_v31  ;;  %v15874_v39 = vld [vmem:[%s20612_s5 + $0x1e4] ss:$16 sps:$4 sm:$0xff]   ;;  %v15877_v34 = vld [vmem:[%s20612_s5 + $0x1ec] ss:$16 sps:$4 sm:$0xff]   ;;  %v15872_v0 = vld [vmem:[%s20612_s5 + $0x1e0] ss:$16 sps:$4 sm:$0xff]  }
 0x859   : > { %10279 = vmatprep.mubr.bf16.mxu0 %v9888_v25  ;;  %10352 = vmatprep.mubr.bf16.mxu1 %v9888_v25  ;;  %v15875_v16 = vld [vmem:[%s20612_s5 + $0x1e8] ss:$16 sps:$4 sm:$0xff]   ;;  %v15880_v1 = vld [vmem:[%s20612_s5 + $0x404] ss:$16 sps:$4 sm:$0xff]   ;;  %v15883_v52 = vld [vmem:[%s20612_s5 + $0x40c] ss:$16 sps:$4 sm:$0xff]  }
 0x85a   : > { %v15878_v31 = vld [vmem:[%s20612_s5 + $0x400] ss:$16 sps:$4 sm:$0xff]   ;;  %v15881_v8 = vld [vmem:[%s20612_s5 + $0x408] ss:$16 sps:$4 sm:$0xff]   ;;  %v15886_v25 = vld [vmem:[%s20612_s5 + $0x424] ss:$16 sps:$4 sm:$0xff]  }
 0x85b   : > { %10694 = vmatpush1.bf16.msra.mxu0 %v15812_v38  ;;  %10767 = vmatpush1.bf16.msra.mxu1 %v15815_v11  ;;  %v15889_v38 = vld [vmem:[%s20612_s5 + $0x42c] ss:$16 sps:$4 sm:$0xff]   ;;  %v15884_v11 = vld [vmem:[%s20612_s5 + $0x420] ss:$16 sps:$4 sm:$0xff]   ;;  %v15887_v26 = vld [vmem:[%s20612_s5 + $0x428] ss:$16 sps:$4 sm:$0xff]  }
 0x85c   : > { %10695 = vmatprep.subr.bf16.mxu0 %v15820_v3  ;;  %10768 = vmatprep.subr.bf16.mxu1 %v15823_v17  ;;  %v15895_v55 = vld [vmem:[%s20612_s5 + $0x44c] ss:$16 sps:$4 sm:$0xff]   ;;  %v15890_v3 = vld [vmem:[%s20612_s5 + $0x440] ss:$16 sps:$4 sm:$0xff]   ;;  %v15893_v17 = vld [vmem:[%s20612_s5 + $0x448] ss:$16 sps:$4 sm:$0xff]  }
 0x85e   : > { %10280 = vmatmul.mubr.bf16.gmra.mrb[156].mxu0 %v9880_v57  ;;  %10353 = vmatmul.mubr.bf16.gmra.mrb[156].mxu1 %v9880_v57  ;;  %v15896_v57 = vld [vmem:[%s20612_s5 + $0x460] ss:$16 sps:$4 sm:$0xff]  }
 0x85f   : > { %10696 = vmatpush1.bf16.msra.mxu0 %v15818_v43  ;;  %10769 = vmatpush1.bf16.msra.mxu1 %v15821_v7  ;;  %v15898_v43 = vld [vmem:[%s20612_s5 + $0x464] ss:$16 sps:$4 sm:$0xff]   ;;  %v15901_v7 = vld [vmem:[%s20612_s5 + $0x46c] ss:$16 sps:$4 sm:$0xff]  }
 0x860   : > { %10715 = vmatprep.mubr.bf16.mxu0 %v19828_v12  ;;  %10788 = vmatprep.mubr.bf16.mxu1 %v19828_v12  ;;  %v15833_v12 = vld [vmem:[%s20612_s5 + $0x108] ss:$16 sps:$4 sm:$0xff]  }
 0x861   : > { %10697 = vmatprep.subr.bf16.mxu0 %v15826_v23  ;;  %10770 = vmatprep.subr.bf16.mxu1 %v15829_v29  ;;  %v15899_v23 = vld [vmem:[%s20612_s5 + $0x468] ss:$16 sps:$4 sm:$0xff]   ;;  %v15904_v29 = vld [vmem:[%s20612_s5 + $0x484] ss:$16 sps:$4 sm:$0xff]  }
 0x863   : > { %10698 = vmatpush1.bf16.msra.mxu0 %v15824_v30  ;;  %10771 = vmatpush1.bf16.msra.mxu1 %v15827_v63  ;;  %v15907_v30 = vld [vmem:[%s20612_s5 + $0x48c] ss:$16 sps:$4 sm:$0xff]   ;;  %v15902_v63 = vld [vmem:[%s20612_s5 + $0x480] ss:$16 sps:$4 sm:$0xff]  }
 0x864   : > { %10699 = vmatprep.subr.bf16.mxu0 %v15832_v44  ;;  %10772 = vmatprep.subr.bf16.mxu1 %v15835_v59  ;;  %v15905_v44 = vld [vmem:[%s20612_s5 + $0x488] ss:$16 sps:$4 sm:$0xff]   ;;  %v15910_v59 = vld [vmem:[%s20612_s5 + $0x4a4] ss:$16 sps:$4 sm:$0xff]  }
 0x867   : > { %10700 = vmatpush1.bf16.msra.mxu0 %v15830_v32  ;;  %10773 = vmatpush1.bf16.msra.mxu1 %v15833_v12  ;;  %v15913_v32 = vld [vmem:[%s20612_s5 + $0x4ac] ss:$16 sps:$4 sm:$0xff]   ;;  %v10830_v12 = vld [vmem:[#allocation4 + $0x8] sm:$0xfc] }
 0x868   : > { %10701 = vmatprep.subr.bf16.mxu0 %v15838_v27  ;;  %10774 = vmatprep.subr.bf16.mxu1 %v15841_v13  ;;  %v15908_v27 = vld [vmem:[%s20612_s5 + $0x4a0] ss:$16 sps:$4 sm:$0xff]   ;;  %v15911_v13 = vld [vmem:[%s20612_s5 + $0x4a8] ss:$16 sps:$4 sm:$0xff]  }
 0x86b   : > { %10702 = vmatpush1.bf16.msra.mxu0 %v15836_v15  ;;  %10775 = vmatpush1.bf16.msra.mxu1 %v15839_v28  ;;  %v10834_v15 = vpack.c.bf16 %v19822_v35, %v10830_v12  ;;  %v15916_v28 = vld [vmem:[%s20612_s5 + $0x4c4] ss:$16 sps:$4 sm:$0xff]   ;;  %v15917_v35 = vld [vmem:[%s20612_s5 + $0x4c8] ss:$16 sps:$4 sm:$0xff]  }
 0x86c   : > { %10703 = vmatprep.subr.bf16.mxu0 %v15844_v60  ;;  %10776 = vmatprep.subr.bf16.mxu1 %v15847_v42  ;;  %v15919_v60 = vld [vmem:[%s20612_s5 + $0x4cc] ss:$16 sps:$4 sm:$0xff]   ;;  %v10916_v42 = vrot.slane %v19834_v48, 1 }
 0x86f   : > { %10704 = vmatpush1.bf16.msra.mxu0 %v15842_v58  ;;  %10777 = vmatpush1.bf16.msra.mxu1 %v15845_v54  ;;  %v15914_v58 = vld [vmem:[%s20612_s5 + $0x4c0] ss:$16 sps:$4 sm:$0xff]   ;;  %v10915_v54 = vrot.slane %v10834_v15, 1 }
 0x870   : > { %10705 = vmatprep.subr.bf16.mxu0 %v15850_v46  ;;  %10778 = vmatprep.subr.bf16.mxu1 %v15853_v61  ;;  %v15922_v46 = vld [vmem:[%s20612_s5 + $0x4e4] ss:$16 sps:$4 sm:$0xff]   ;;  %v15925_v61 = vld [vmem:[%s20612_s5 + $0x4ec] ss:$16 sps:$4 sm:$0xff]  }
 0x873   : > { %10706 = vmatpush1.bf16.msra.mxu0 %v15848_v62  ;;  %10779 = vmatpush1.bf16.msra.mxu1 %v15851_v14  ;;  %v10917_v62 = vsel %vm6877_vm1, %v10915_v54, %v10916_v42  ;;  %v15920_v14 = vld [vmem:[%s20612_s5 + $0x4e0] ss:$16 sps:$4 sm:$0xff]  }
 0x874   : > { %10707 = vmatprep.subr.bf16.mxu0 %v15856_v21  ;;  %10780 = vmatprep.subr.bf16.mxu1 %v15859_v53  ;;  %v15923_v21 = vld [vmem:[%s20612_s5 + $0x4e8] ss:$16 sps:$4 sm:$0xff]   ;;  %v15928_v53 = vld [vmem:[%s20612_s5 + $0x504] ss:$16 sps:$4 sm:$0xff]  }
 0x877   : > { %10708 = vmatpush1.bf16.msra.mxu0 %v15854_v5  ;;  %10781 = vmatpush1.bf16.msra.mxu1 %v15857_v40  ;;  %v15931_v5 = vld [vmem:[%s20612_s5 + $0x50c] ss:$16 sps:$4 sm:$0xff]   ;;  %v15926_v40 = vld [vmem:[%s20612_s5 + $0x500] ss:$16 sps:$4 sm:$0xff]  }
 0x878   : > { %10709 = vmatprep.subr.bf16.mxu0 %v15862_v37  ;;  %10782 = vmatprep.subr.bf16.mxu1 %v15865_v9  ;;  %v15929_v37 = vld [vmem:[%s20612_s5 + $0x508] ss:$16 sps:$4 sm:$0xff]   ;;  %v15934_v9 = vld [vmem:[%s20612_s5 + $0x524] ss:$16 sps:$4 sm:$0xff]  }
 0x87b   : > { %10710 = vmatpush1.bf16.msra.mxu0 %v15860_v49  ;;  %10783 = vmatpush1.bf16.msra.mxu1 %v15863_v36  ;;  %v15937_v49 = vld [vmem:[%s20612_s5 + $0x52c] ss:$16 sps:$4 sm:$0xff]   ;;  %v15932_v36 = vld [vmem:[%s20612_s5 + $0x520] ss:$16 sps:$4 sm:$0xff]  }
 0x87c   : > { %10711 = vmatprep.subr.bf16.mxu0 %v15868_v45  ;;  %10784 = vmatprep.subr.bf16.mxu1 %v15871_v18  ;;  %v15935_v45 = vld [vmem:[%s20612_s5 + $0x528] ss:$16 sps:$4 sm:$0xff]   ;;  %v15940_v18 = vld [vmem:[%s20612_s5 + $0x544] ss:$16 sps:$4 sm:$0xff]  }
 0x87f   : > { %10712 = vmatpush1.bf16.msra.mxu0 %v15866_v6  ;;  %10785 = vmatpush1.bf16.msra.mxu1 %v15869_v4  ;;  %v15943_v6 = vld [vmem:[%s20612_s5 + $0x54c] ss:$16 sps:$4 sm:$0xff]   ;;  %v15938_v4 = vld [vmem:[%s20612_s5 + $0x540] ss:$16 sps:$4 sm:$0xff]  }
 0x880   : > { %10713 = vmatprep.subr.bf16.mxu0 %v15874_v39  ;;  %10786 = vmatprep.subr.bf16.mxu1 %v15877_v34  ;;  %v15941_v39 = vld [vmem:[%s20612_s5 + $0x548] ss:$16 sps:$4 sm:$0xff]   ;;  %v15946_v34 = vld [vmem:[%s20612_s5 + $0x564] ss:$16 sps:$4 sm:$0xff]  }
 0x883   : > { %10714 = vmatpush1.bf16.msra.mxu0 %v15872_v0  ;;  %10787 = vmatpush1.bf16.msra.mxu1 %v15875_v16  ;;  %v15949_v0 = vld [vmem:[%s20612_s5 + $0x56c] ss:$16 sps:$4 sm:$0xff]   ;;  %v15944_v16 = vld [vmem:[%s20612_s5 + $0x560] ss:$16 sps:$4 sm:$0xff]  }
 0x884   : > { %11258 = vmatprep.subr.bf16.mxu0 %v15880_v1  ;;  %11331 = vmatprep.subr.bf16.mxu1 %v15883_v52  ;;  %v15947_v1 = vld [vmem:[%s20612_s5 + $0x568] ss:$16 sps:$4 sm:$0xff]   ;;  %v15952_v52 = vld [vmem:[%s20612_s5 + $0x584] ss:$16 sps:$4 sm:$0xff]  }
 0x886   : > { %10716 = vmatmul.mubr.bf16.vlgmr.msra.gmra.mrb[144].mxu0 %v19825_v19  ;;  %10789 = vmatmul.mubr.bf16.vlgmr.msra.gmra.mrb[144].mxu1 %v19825_v19  ;;  %v15892_v19 = vld [vmem:[%s20612_s5 + $0x444] ss:$16 sps:$4 sm:$0xff]  }
 0x887   : > { %10725 = vmatprep.mubr.bf16.mxu0 %v19834_v48  ;;  %10798 = vmatprep.mubr.bf16.mxu1 %v19834_v48  ;;  %v10922_v48 = vrot.slane %v19888_v2, 1 }
 0x888   : > { %11259 = vmatpush1.bf16.msra.mxu0 %v15878_v31  ;;  %11332 = vmatpush1.bf16.msra.mxu1 %v15881_v8  ;;  %v15955_v31 = vld [vmem:[%s20612_s5 + $0x58c] ss:$16 sps:$4 sm:$0xff]   ;;  %v15950_v8 = vld [vmem:[%s20612_s5 + $0x580] ss:$16 sps:$4 sm:$0xff]  }
 0x889   : > { %11260 = vmatprep.subr.bf16.mxu0 %v15886_v25  ;;  %11333 = vmatprep.subr.bf16.mxu1 %v15889_v38  ;;  %v15953_v25 = vld [vmem:[%s20612_s5 + $0x588] ss:$16 sps:$4 sm:$0xff]   ;;  %v15958_v38 = vld [vmem:[%s20612_s5 + $0x5a4] ss:$16 sps:$4 sm:$0xff]  }
 0x88c   : > { %11261 = vmatpush1.bf16.msra.mxu0 %v15884_v11  ;;  %11334 = vmatpush1.bf16.msra.mxu1 %v15887_v26  ;;  %v15961_v11 = vld [vmem:[%s20612_s5 + $0x5ac] ss:$16 sps:$4 sm:$0xff]   ;;  %v15956_v26 = vld [vmem:[%s20612_s5 + $0x5a0] ss:$16 sps:$4 sm:$0xff]  }
 0x88d   : > { %11262 = vmatprep.subr.bf16.mxu0 %v15892_v19  ;;  %11335 = vmatprep.subr.bf16.mxu1 %v15895_v55  ;;  %v15959_v19 = vld [vmem:[%s20612_s5 + $0x5a8] ss:$16 sps:$4 sm:$0xff]   ;;  %v15964_v55 = vld [vmem:[%s20612_s5 + $0x5c4] ss:$16 sps:$4 sm:$0xff]  }
 0x88e   : > { %10726 = vmatmul.mubr.bf16.gmra.mrb[148].mxu0 %v19832_v22  ;;  %10799 = vmatmul.mubr.bf16.gmra.mrb[148].mxu1 %v19832_v22 }
 0x88f   : > { %10735 = vmatprep.mubr.bf16.mxu0 %v19860_v56  ;;  %10808 = vmatprep.mubr.bf16.mxu1 %v19860_v56 }
 0x890   : > { %11263 = vmatpush1.bf16.msra.mxu0 %v15890_v3  ;;  %11336 = vmatpush1.bf16.msra.mxu1 %v15893_v17  ;;  %v15967_v3 = vld [vmem:[%s20612_s5 + $0x5cc] ss:$16 sps:$4 sm:$0xff]   ;;  %v15962_v17 = vld [vmem:[%s20612_s5 + $0x5c0] ss:$16 sps:$4 sm:$0xff]  }
 0x891   : > { %11264 = vmatprep.subr.bf16.mxu0 %v15898_v43  ;;  %11337 = vmatprep.subr.bf16.mxu1 %v15901_v7  ;;  %v15965_v43 = vld [vmem:[%s20612_s5 + $0x5c8] ss:$16 sps:$4 sm:$0xff]   ;;  %v15970_v7 = vld [vmem:[%s20612_s5 + $0x5e4] ss:$16 sps:$4 sm:$0xff]  }
 0x894   : > { %11265 = vmatpush1.bf16.msra.mxu0 %v15896_v57  ;;  %11338 = vmatpush1.bf16.msra.mxu1 %v15899_v23  ;;  %v15973_v57 = vld [vmem:[%s20612_s5 + $0x5ec] ss:$16 sps:$4 sm:$0xff]  }
 0x895   : > { %11266 = vmatprep.subr.bf16.mxu0 %v15904_v29  ;;  %11339 = vmatprep.subr.bf16.mxu1 %v15907_v30  ;;  %v10829_v23 = vld [vmem:[#allocation4] sm:$0xfc]  ;;  %v15968_v29 = vld [vmem:[%s20612_s5 + $0x5e0] ss:$16 sps:$4 sm:$0xff]  }
 0x896   : > { %10736 = vmatmul.mubr.bf16.gmra.mrb[152].mxu0 %v19852_v47  ;;  %10809 = vmatmul.mubr.bf16.gmra.mrb[152].mxu1 %v19852_v47  ;;  %v15971_v30 = vld [vmem:[%s20612_s5 + $0x5e8] ss:$16 sps:$4 sm:$0xff]  }
 0x897   : > { %10745 = vmatprep.mubr.bf16.mxu0 %v19890_v51  ;;  %10818 = vmatprep.mubr.bf16.mxu1 %v19890_v51 }
 0x898   : > { %11267 = vmatpush1.bf16.msra.mxu0 %v15902_v63  ;;  %11340 = vmatpush1.bf16.msra.mxu1 %v15905_v44  ;;  %v10833_v63 = vpack.c.bf16 %v19820_v33, %v10829_v23  ;;  %v10913_v44 = vrot.slane %v19832_v22, 1  ;;  %v10918_v33 = vrot.slane %v19852_v47, 1  ;;  %v10832_v22 = vld [vmem:[#allocation4 + $0x88] sm:$0x3] }
 0x899   : > { %11268 = vmatprep.subr.bf16.mxu0 %v15910_v59  ;;  %11341 = vmatprep.subr.bf16.mxu1 %v15913_v32  ;;  %v10920_v59 = vrot.slane %v19860_v56, 1 }
 0x89a   : > { %v10912_v32 = vrot.slane %v10833_v63, 1  ;;  %v10919_v56 = vsel %vm6877_vm1, %v10913_v44, %v10918_v33 }
 0x89c   : > { %11269 = vmatpush1.bf16.msra.mxu0 %v15908_v27  ;;  %11342 = vmatpush1.bf16.msra.mxu1 %v15911_v13  ;;  %v10914_v12 = vsel %vm6877_vm1, %v10912_v32, %v10913_v44  ;;  %v10921_v27 = vsel %vm6877_vm1, %v10916_v42, %v10920_v59  ;;  %v10924_v13 = vrot.slane %v19890_v51, 1  ;;  %v10831_v42 = vld [vmem:[#allocation4 + $0x80] sm:$0x3] }
 0x89d   : > { %11270 = vmatprep.subr.bf16.mxu0 %v15916_v28  ;;  %11343 = vmatprep.subr.bf16.mxu1 %v15919_v60  ;;  %v10836_v28 = vpack.c.bf16 %v10832_v22, %v10832_v22 }
 0x89e   : > { %10746 = vmatmul.mubr.bf16.gmra.mrb[156].mxu0 %v19888_v2  ;;  %10819 = vmatmul.mubr.bf16.gmra.mrb[156].mxu1 %v19888_v2  ;;  %v10925_v15 = vsel %vm6877_vm1, %v10920_v59, %v10924_v13  ;;  %v11436_v2 = vld [vmem:[#allocation8] sm:$0xf] }
 0x89f   : > { %11290 = vmatprep.mubr.bf16.mxu0 %v10917_v62  ;;  %11363 = vmatprep.mubr.bf16.mxu1 %v10917_v62  ;;  %v10928_v60 = vrot.slane %v10836_v28, 1  ;;  %v20287_v62 = vrot.slane %v11436_v2, %v20698_v10 }
 0x8a0   : > { %11271 = vmatpush1.bf16.msra.mxu0 %v15914_v58  ;;  %11344 = vmatpush1.bf16.msra.mxu1 %v15917_v35  ;;  %v10923_v58 = vsel %vm6877_vm1, %v10918_v33, %v10922_v48  ;;  %v10835_v35 = vpack.c.bf16 %v10831_v42, %v10831_v42 }
 0x8a1   : > { %11272 = vmatprep.subr.bf16.mxu0 %v15922_v46  ;;  %11345 = vmatprep.subr.bf16.mxu1 %v15925_v61  ;;  %v10929_v47 = vsel %vm6877_vm1, %v10924_v13, %v10928_v60  ;;  %v20281_v46 = vrot.slane %v11436_v2, %v20696_v50  ;;  %v20284_v61 = vrot.slane %v11436_v2, %v20697_v24 }
 0x8a2   : > { %v10926_v51 = vrot.slane %v10835_v35, 1 }
 0x8a4   : > { %11273 = vmatpush1.bf16.msra.mxu0 %v15920_v14  ;;  %11346 = vmatpush1.bf16.msra.mxu1 %v15923_v21  ;;  %v10927_v54 = vsel %vm6877_vm1, %v10922_v48, %v10926_v51  ;;  %v20290_v14 = vrot.slane %v11436_v2, %v20699_v20 }
 0x8a5   : > { %11274 = vmatprep.subr.bf16.mxu0 %v15928_v53  ;;  %11347 = vmatprep.subr.bf16.mxu1 %v15931_v5 }
 0x8a8   : > { %11275 = vmatpush1.bf16.msra.mxu0 %v15926_v40  ;;  %11348 = vmatpush1.bf16.msra.mxu1 %v15929_v37 }
 0x8a9   : > { %11276 = vmatprep.subr.bf16.mxu0 %v15934_v9  ;;  %11349 = vmatprep.subr.bf16.mxu1 %v15937_v49 }
 0x8ac   : > { %11277 = vmatpush1.bf16.msra.mxu0 %v15932_v36  ;;  %11350 = vmatpush1.bf16.msra.mxu1 %v15935_v45 }
 0x8ad   : > { %11278 = vmatprep.subr.bf16.mxu0 %v15940_v18  ;;  %11351 = vmatprep.subr.bf16.mxu1 %v15943_v6 }
 0x8b0   : > { %11279 = vmatpush1.bf16.msra.mxu0 %v15938_v4  ;;  %11352 = vmatpush1.bf16.msra.mxu1 %v15941_v39 }
 0x8b1   : > { %11280 = vmatprep.subr.bf16.mxu0 %v15946_v34  ;;  %11353 = vmatprep.subr.bf16.mxu1 %v15949_v0 }
 0x8b4   : > { %11281 = vmatpush1.bf16.msra.mxu0 %v15944_v16  ;;  %11354 = vmatpush1.bf16.msra.mxu1 %v15947_v1 }
 0x8b5   : > { %11282 = vmatprep.subr.bf16.mxu0 %v15952_v52  ;;  %11355 = vmatprep.subr.bf16.mxu1 %v15955_v31 }
 0x8b8   : > { %11283 = vmatpush1.bf16.msra.mxu0 %v15950_v8  ;;  %11356 = vmatpush1.bf16.msra.mxu1 %v15953_v25 }
 0x8b9   : > { %11284 = vmatprep.subr.bf16.mxu0 %v15958_v38  ;;  %11357 = vmatprep.subr.bf16.mxu1 %v15961_v11 }
 0x8bc   : > { %11285 = vmatpush1.bf16.msra.mxu0 %v15956_v26  ;;  %11358 = vmatpush1.bf16.msra.mxu1 %v15959_v19 }
 0x8bd   : > { %11286 = vmatprep.subr.bf16.mxu0 %v15964_v55  ;;  %11359 = vmatprep.subr.bf16.mxu1 %v15967_v3 }
 0x8c0   : > { %11287 = vmatpush1.bf16.msra.mxu0 %v15962_v17  ;;  %11360 = vmatpush1.bf16.msra.mxu1 %v15965_v43 }
 0x8c1   : > { %11288 = vmatprep.subr.bf16.mxu0 %v15970_v7  ;;  %11361 = vmatprep.subr.bf16.mxu1 %v15973_v57 }
 0x8c4   : > { %11289 = vmatpush1.bf16.msra.mxu0 %v15968_v29  ;;  %11362 = vmatpush1.bf16.msra.mxu1 %v15971_v30 }
 0x8c7   : > { %11291 = vmatmul.mubr.bf16.vlgmr.msra.gmra.mrb[144].mxu0 %v10914_v12  ;;  %11364 = vmatmul.mubr.bf16.vlgmr.msra.gmra.mrb[144].mxu1 %v10914_v12 }
 0x8c8   : > { %11300 = vmatprep.mubr.bf16.mxu0 %v10921_v27  ;;  %11373 = vmatprep.mubr.bf16.mxu1 %v10921_v27 }
 0x8cf   : > { %11301 = vmatmul.mubr.bf16.gmra.mrb[148].mxu0 %v10919_v56  ;;  %11374 = vmatmul.mubr.bf16.gmra.mrb[148].mxu1 %v10919_v56 }
 0x8d0   : > { %11310 = vmatprep.mubr.bf16.mxu0 %v10925_v15  ;;  %11383 = vmatprep.mubr.bf16.mxu1 %v10925_v15 }
 0x8d7   : > { %11311 = vmatmul.mubr.bf16.gmra.mrb[152].mxu0 %v10923_v58  ;;  %11384 = vmatmul.mubr.bf16.gmra.mrb[152].mxu1 %v10923_v58 }
 0x8d8   : > { %11320 = vmatprep.mubr.bf16.mxu0 %v10929_v47  ;;  %11393 = vmatprep.mubr.bf16.mxu1 %v10929_v47 }
 0x8df   : > { %11321 = vmatmul.mubr.bf16.gmra.mrb[156].mxu0 %v10927_v54  ;;  %11394 = vmatmul.mubr.bf16.gmra.mrb[156].mxu1 %v10927_v54 }
 0x8e0   : > { %11660 = vmatprep.mubr.bf16.mxu0 %v20695_v41  ;;  %11728 = vmatprep.mubr.bf16.mxu1 %v20695_v41 }
 0x99a   : > { %v11292_v21 = vpop.f32.mrb[144].mxu0  ;;  %v11365_v53 = vpop.f32.mrb[144].mxu1 }
 0x99b   : > { %v11458_v5 = vadd.f32 %v20281_v46, %v11292_v21  ;;  %v11460_v40 = vadd.f32 %v20284_v61, %v11365_v53  ;;  %v11294_v37 = vpop.f32.mrb[145].mxu0  ;;  %v11367_v9 = vpop.f32.mrb[145].mxu1 }
 0x99c   : > { %v11459_v50 = vadd.f32 %v20287_v62, %v11294_v37  ;;  %v11461_v49 = vadd.f32 %v20290_v14, %v11367_v9  ;;  %v11296_v24 = vpop.f32.mrb[146].mxu0  ;;  %v11369_v36 = vpop.f32.mrb[146].mxu1 }
 0x99d   : > { %vm11490_vm0 = vcmp.gt.f32.partialorder %v11458_v5, 0.0  ;;  %v11522_v10 = vmul.f32 0.01, %v11458_v5  ;;  %vm11492_vm1 = vcmp.gt.f32.partialorder %v11460_v40, 0.0  ;;  %v11524_v45 = vmul.f32 0.01, %v11460_v40 }
 0x99e   : > { %vm11491_vm12 = vcmp.gt.f32.partialorder %v11459_v50, 0.0  ;;  %v11523_v20 = vmul.f32 0.01, %v11459_v50  ;;  %vm11493_vm13 = vcmp.gt.f32.partialorder %v11461_v49, 0.0  ;;  %v11525_v18 = vmul.f32 0.01, %v11461_v49 }
 0x99f   : > { %v20296_v6 = vsel %vm11490_vm0, %v11458_v5, %v11522_v10  ;;  %v20298_v4 = vsel %vm11492_vm1, %v11460_v40, %v11524_v45  ;;  %v11462_v39 = vadd.f32 %v20281_v46, %v11296_v24  ;;  %v11464_v34 = vadd.f32 %v20284_v61, %v11369_v36  ;;  %v11298_v0 = vpop.f32.mrb[147].mxu0  ;;  %v11371_v16 = vpop.f32.mrb[147].mxu1 }
 0x9a0   : > { %v11586_v1 = vmax.f32 %v20296_v6, %v20298_v4  ;;  %v20304_v52 = vsel %vm11491_vm12, %v11459_v50, %v11523_v20  ;;  %v20306_v31 = vsel %vm11493_vm13, %v11461_v49, %v11525_v18  ;;  %v11463_v8 = vadd.f32 %v20287_v62, %v11298_v0 }
 0x9a1   : > { %vm11494_vm14 = vcmp.gt.f32.partialorder %v11462_v39, 0.0  ;;  %v11526_v25 = vmul.f32 0.01, %v11462_v39  ;;  %vm11496_vm15 = vcmp.gt.f32.partialorder %v11464_v34, 0.0  ;;  %v11528_v38 = vmul.f32 0.01, %v11464_v34 }
 0x9a2   : > { %vm11495_vm2 = vcmp.gt.f32.partialorder %v11463_v8, 0.0  ;;  %v11527_v11 = vmul.f32 0.01, %v11463_v8  ;;  %v11465_v26 = vadd.f32 %v20290_v14, %v11371_v16  ;;  %v11302_v19 = vpop.f32.mrb[148].mxu0  ;;  %v11375_v55 = vpop.f32.mrb[148].mxu1  ;;  %v11587_v3 = vmax.f32 %v20304_v52, %v20306_v31 }
 0x9a3   : > { %v11558_v17 = vsel %vm11494_vm14, %v11462_v39, %v11526_v25  ;;  %v11560_v43 = vsel %vm11496_vm15, %v11464_v34, %v11528_v38  ;;  %v11466_v7 = vadd.f32 %v20281_v46, %v11302_v19  ;;  %v11468_v57 = vadd.f32 %v20284_v61, %v11375_v55  ;;  %v11304_v23 = vpop.f32.mrb[149].mxu0  ;;  %v11377_v29 = vpop.f32.mrb[149].mxu1 }
 0x9a4   : > { %v11588_v30 = vmax.f32 %v11558_v17, %v11560_v43  ;;  %v11559_v63 = vsel %vm11495_vm2, %v11463_v8, %v11527_v11  ;;  %vm11497_vm3 = vcmp.gt.f32.partialorder %v11465_v26, 0.0  ;;  %v11529_v44 = vmul.f32 0.01, %v11465_v26  ;;  %v11306_v59 = vpop.f32.mrb[150].mxu0  ;;  %v11379_v32 = vpop.f32.mrb[150].mxu1 }
 0x9a5   : > { %vm11498_vm4 = vcmp.gt.f32.partialorder %v11466_v7, 0.0  ;;  %v11530_v12 = vmul.f32 0.01, %v11466_v7  ;;  %vm11500_vm5 = vcmp.gt.f32.partialorder %v11468_v57, 0.0  ;;  %v11532_v27 = vmul.f32 0.01, %v11468_v57 }
 0x9a6   : > { %v11561_v33 = vsel %vm11497_vm3, %v11465_v26, %v11529_v44  ;;  %v11467_v13 = vadd.f32 %v20287_v62, %v11304_v23  ;;  %v11469_v22 = vadd.f32 %v20290_v14, %v11377_v29  ;;  %v11470_v56 = vadd.f32 %v20281_v46, %v11306_v59  ;;  %v11308_v15 = vpop.f32.mrb[151].mxu0  ;;  %v11381_v28 = vpop.f32.mrb[151].mxu1 }
 0x9a7   : > { %v20317_v48 = vsel %vm11498_vm4, %v11466_v7, %v11530_v12  ;;  %v20319_v60 = vsel %vm11500_vm5, %v11468_v57, %v11532_v27  ;;  %v11472_v42 = vadd.f32 %v20284_v61, %v11379_v32  ;;  %v11471_v58 = vadd.f32 %v20287_v62, %v11308_v15 }
 0x9a8   : > { %v11590_v35 = vmax.f32 %v20317_v48, %v20319_v60  ;;  %vm11499_vm6 = vcmp.gt.f32.partialorder %v11467_v13, 0.0  ;;  %v11531_v47 = vmul.f32 0.01, %v11467_v13  ;;  %vm11501_vm7 = vcmp.gt.f32.partialorder %v11469_v22, 0.0 }
 0x9a9   : > { %v11533_v51 = vmul.f32 0.01, %v11469_v22  ;;  %vm11502_vm8 = vcmp.gt.f32.partialorder %v11470_v56, 0.0  ;;  %v11534_v54 = vmul.f32 0.01, %v11470_v56  ;;  %vm11504_vm9 = vcmp.gt.f32.partialorder %v11472_v42, 0.0 }
 0x9aa   : > { %v20325_v2 = vsel %vm11499_vm6, %v11467_v13, %v11531_v47  ;;  %v11536_v21 = vmul.f32 0.01, %v11472_v42  ;;  %vm11503_vm10 = vcmp.gt.f32.partialorder %v11471_v58, 0.0  ;;  %v11535_v53 = vmul.f32 0.01, %v11471_v58  ;;  %v11312_v5 = vpop.f32.mrb[152].mxu0 }
 0x9ab   : > { %v20327_v40 = vsel %vm11501_vm7, %v11469_v22, %v11533_v51  ;;  %v20329_v37 = vsel %vm11502_vm8, %v11470_v56, %v11534_v54  ;;  %v11473_v9 = vadd.f32 %v20290_v14, %v11381_v28  ;;  %v11589_v50 = vmax.f32 %v11559_v63, %v11561_v33  ;;  %v11385_v49 = vpop.f32.mrb[152].mxu1  ;;  %v11314_v24 = vpop.f32.mrb[153].mxu0 }
 0x9ac   : > { %v11568_v36 = vsel %vm11504_vm9, %v11472_v42, %v11536_v21  ;;  %v20332_v10 = vsel %vm11503_vm10, %v11471_v58, %v11535_v53  ;;  %v11602_v45 = vpack.c.bf16 %v11588_v30, %v11586_v1  ;;  %v11474_v20 = vadd.f32 %v20281_v46, %v11312_v5  ;;  %v11387_v18 = vpop.f32.mrb[153].mxu1  ;;  %v11316_v6 = vpop.f32.mrb[154].mxu0 }
 0x9ad   : > { %v11592_v4 = vmax.f32 %v20329_v37, %v11568_v36  ;;  %vm11505_vm11 = vcmp.gt.f32.partialorder %v11473_v9, 0.0  ;;  %v11537_v39 = vmul.f32 0.01, %v11473_v9  ;;  %v11603_v34 = vpack.c.bf16 %v11589_v50, %v11587_v3  ;;  %v11389_v0 = vpop.f32.mrb[154].mxu1  ;;  %v11318_v16 = vpop.f32.mrb[155].mxu0 }
 0x9ae   : > { %vm11506_vm0 = vcmp.gt.f32.partialorder %v11474_v20, 0.0  ;;  %v11538_v52 = vmul.f32 0.01, %v11474_v20  ;;  %v11476_v31 = vadd.f32 %v20284_v61, %v11385_v49  ;;  %v11475_v8 = vadd.f32 %v20287_v62, %v11314_v24  ;;  %v11391_v25 = vpop.f32.mrb[155].mxu1 }
 0x9af   : > { %v11569_v38 = vsel %vm11505_vm11, %v11473_v9, %v11537_v39  ;;  %11628 = vmatprep.subr.bf16.mxu0 %v11603_v34  ;;  %11696 = vmatprep.subr.bf16.mxu1 %v11603_v34  ;;  %v11477_v1 = vadd.f32 %v20290_v14, %v11387_v18  ;;  %v11478_v11 = vadd.f32 %v20281_v46, %v11316_v6 }
 0x9b0   : > { %11629 = vmatpush1.bf16.msra.mxu0 %v11602_v45  ;;  %11697 = vmatpush1.bf16.msra.mxu1 %v11602_v45  ;;  %v20340_v26 = vsel %vm11506_vm0, %v11474_v20, %v11538_v52  ;;  %vm11508_vm1 = vcmp.gt.f32.partialorder %v11476_v31, 0.0  ;;  %v11540_v19 = vmul.f32 0.01, %v11476_v31  ;;  %vm11507_vm12 = vcmp.gt.f32.partialorder %v11475_v8, 0.0 }
 0x9b1   : > { %v11539_v55 = vmul.f32 0.01, %v11475_v8  ;;  %vm11509_vm13 = vcmp.gt.f32.partialorder %v11477_v1, 0.0  ;;  %v11541_v3 = vmul.f32 0.01, %v11477_v1  ;;  %vm11510_vm14 = vcmp.gt.f32.partialorder %v11478_v11, 0.0 }
 0x9b2   : > { %v20342_v17 = vsel %vm11508_vm1, %v11476_v31, %v11540_v19  ;;  %v11542_v43 = vmul.f32 0.01, %v11478_v11  ;;  %v11480_v7 = vadd.f32 %v20284_v61, %v11389_v0  ;;  %v11479_v57 = vadd.f32 %v20287_v62, %v11318_v16  ;;  %v11322_v23 = vpop.f32.mrb[156].mxu0  ;;  %v11395_v29 = vpop.f32.mrb[156].mxu1 }
 0x9b3   : > { %v11594_v30 = vmax.f32 %v20340_v26, %v20342_v17  ;;  %v20348_v63 = vsel %vm11507_vm12, %v11475_v8, %v11539_v55  ;;  %v20350_v44 = vsel %vm11509_vm13, %v11477_v1, %v11541_v3  ;;  %v11481_v59 = vadd.f32 %v20290_v14, %v11391_v25  ;;  %v11324_v32 = vpop.f32.mrb[157].mxu0  ;;  %v11397_v12 = vpop.f32.mrb[157].mxu1  ;;  %v15978_v3 = vld [vmem:[%s20620_s13 + $0x40] sm:$0xff]  }
 0x9b4   : > { %v11574_v27 = vsel %vm11510_vm14, %v11478_v11, %v11542_v43  ;;  %vm11512_vm15 = vcmp.gt.f32.partialorder %v11480_v7, 0.0  ;;  %v11544_v33 = vmul.f32 0.01, %v11480_v7  ;;  %vm11511_vm2 = vcmp.gt.f32.partialorder %v11479_v57, 0.0  ;;  %v11326_v13 = vpop.f32.mrb[158].mxu0  ;;  %v11399_v22 = vpop.f32.mrb[158].mxu1 }
 0x9b5   : > { %v11543_v56 = vmul.f32 0.01, %v11479_v57  ;;  %vm11513_vm3 = vcmp.gt.f32.partialorder %v11481_v59, 0.0  ;;  %v11545_v15 = vmul.f32 0.01, %v11481_v59  ;;  %v11591_v28 = vmax.f32 %v20325_v2, %v20327_v40  ;;  %v11328_v42 = vpop.f32.mrb[159].mxu0 }
 0x9b6   : > { %v11576_v58 = vsel %vm11512_vm15, %v11480_v7, %v11544_v33  ;;  %v11593_v47 = vmax.f32 %v20332_v10, %v11569_v38  ;;  %v11604_v51 = vpack.c.bf16 %v11592_v4, %v11590_v35  ;;  %v11482_v54 = vadd.f32 %v20281_v46, %v11322_v23  ;;  %v11401_v21 = vpop.f32.mrb[159].mxu1  ;;  %v15979_v17 = vld [vmem:[%s20620_s13 + $0xc0] sm:$0xff]   ;;  %v15975_v7 = vld [vmem:[#allocation10] sm:$0xff]  }
 0x9b7   : > { %v11596_v53 = vmax.f32 %v11574_v27, %v11576_v58  ;;  %v11575_v5 = vsel %vm11511_vm2, %v11479_v57, %v11543_v56  ;;  %v11577_v37 = vsel %vm11513_vm3, %v11481_v59, %v11545_v15  ;;  %v11484_v9 = vadd.f32 %v20284_v61, %v11395_v29  ;;  %v15974_v43 = vld [vmem:[%s20618_s11] sm:$0xff]   ;;  %v15982_v29 = vld [vmem:[%s20620_s13 + $0x48] sm:$0xff]   ;;  %v15986_v59 = vld [vmem:[%s20620_s13 + $0x50] sm:$0xff]  }
 0x9b8   : > { %v11605_v50 = vpack.c.bf16 %v11593_v47, %v11591_v28  ;;  %vm11514_vm4 = vcmp.gt.f32.partialorder %v11482_v54, 0.0  ;;  %v11546_v49 = vmul.f32 0.01, %v11482_v54  ;;  %v11483_v2 = vadd.f32 %v20287_v62, %v11324_v32  ;;  %v15980_v57 = vld [vmem:[%s20620_s13] sm:$0xff]   ;;  %v15976_v32 = vld [vmem:[%s20618_s11 + $0x8] ss:$0 sps:$4 sm:$0xff]  }
 0x9b9   : > { %vm11516_vm5 = vcmp.gt.f32.partialorder %v11484_v9, 0.0  ;;  %v11548_v40 = vmul.f32 0.01, %v11484_v9  ;;  %v11485_v24 = vadd.f32 %v20290_v14, %v11397_v12  ;;  %v11486_v48 = vadd.f32 %v20281_v46, %v11326_v13  ;;  %v15981_v23 = vld [vmem:[%s20620_s13 + $0x80] sm:$0xff]   ;;  %v15977_v12 = vld [vmem:[#allocation10 + $0x8] ss:$0 sps:$4 sm:$0xff]  }
 0x9ba   : > { %11630 = vmatprep.subr.bf16.mxu0 %v11605_v50  ;;  %11698 = vmatprep.subr.bf16.mxu1 %v11605_v50  ;;  %v11578_v60 = vsel %vm11514_vm4, %v11482_v54, %v11546_v49  ;;  %vm11515_vm6 = vcmp.gt.f32.partialorder %v11483_v2, 0.0  ;;  %v11547_v35 = vmul.f32 0.01, %v11483_v2  ;;  %v11488_v36 = vadd.f32 %v20284_v61, %v11399_v22  ;;  %v15988_v27 = vld [vmem:[%s20620_s13 + $0x10] sm:$0xff]   ;;  %v15990_v13 = vld [vmem:[%s20620_s13 + $0x58] sm:$0xff]   ;;  %v15994_v28 = vld [vmem:[%s20620_s13 + $0x60] sm:$0xff]  }
 0x9bb   : > { %11631 = vmatpush1.bf16.msra.mxu0 %v11604_v51  ;;  %11699 = vmatpush1.bf16.msra.mxu1 %v11604_v51  ;;  %v11580_v10 = vsel %vm11516_vm5, %v11484_v9, %v11548_v40  ;;  %vm11517_vm7 = vcmp.gt.f32.partialorder %v11485_v24, 0.0  ;;  %v11549_v45 = vmul.f32 0.01, %v11485_v24  ;;  %vm11518_vm8 = vcmp.gt.f32.partialorder %v11486_v48, 0.0  ;;  %v15989_v33 = vld [vmem:[%s20620_s13 + $0x90] sm:$0xff]   ;;  %v15991_v22 = vld [vmem:[%s20620_s13 + $0xd8] sm:$0xff]  }
 0x9bc   : > { %v11598_v20 = vmax.f32 %v11578_v60, %v11580_v10  ;;  %v11579_v18 = vsel %vm11515_vm6, %v11483_v2, %v11547_v35  ;;  %v11550_v6 = vmul.f32 0.01, %v11486_v48  ;;  %vm11520_vm9 = vcmp.gt.f32.partialorder %v11488_v36, 0.0  ;;  %v15992_v56 = vld [vmem:[%s20620_s13 + $0x18] sm:$0xff]   ;;  %v15996_v58 = vld [vmem:[%s20620_s13 + $0x20] sm:$0xff]   ;;  %v15998_v51 = vld [vmem:[%s20620_s13 + $0x68] sm:$0xff]  }
 0x9bd   : > { %v11581_v4 = vsel %vm11517_vm7, %v11485_v24, %v11549_v45  ;;  %v11552_v39 = vmul.f32 0.01, %v11488_v36  ;;  %v11487_v46 = vadd.f32 %v20287_v62, %v11328_v42  ;;  %v11489_v34 = vadd.f32 %v20290_v14, %v11401_v21  ;;  %v15993_v15 = vld [vmem:[%s20620_s13 + $0x98] sm:$0xff]   ;;  %v15995_v42 = vld [vmem:[%s20620_s13 + $0xe0] sm:$0xff]   ;;  %v15999_v54 = vld [vmem:[%s20620_s13 + $0xe8] sm:$0xff]  }
 0x9be   : > { %v11582_v0 = vsel %vm11518_vm8, %v11486_v48, %v11550_v6  ;;  %v11595_v61 = vmax.f32 %v20348_v63, %v20350_v44  ;;  %v11597_v16 = vmax.f32 %v11575_v5, %v11577_v37  ;;  %v11606_v52 = vpack.c.bf16 %v11596_v53, %v11594_v30  ;;  %v15983_v30 = vld [vmem:[%s20620_s13 + $0xc8] sm:$0xff]   ;;  %v15997_v47 = vld [vmem:[%s20620_s13 + $0xa0] sm:$0xff]   ;;  %v16002_v5 = vld [vmem:[%s20620_s13 + $0x70] sm:$0xff]  }
 0x9bf   : > { %v11584_v31 = vsel %vm11520_vm9, %v11488_v36, %v11552_v39  ;;  %vm11519_vm10 = vcmp.gt.f32.partialorder %v11487_v46, 0.0  ;;  %v11551_v8 = vmul.f32 0.01, %v11487_v46  ;;  %vm11521_vm11 = vcmp.gt.f32.partialorder %v11489_v34, 0.0  ;;  %v15984_v63 = vld [vmem:[%s20620_s13 + $0x8] sm:$0xff]   ;;  %v16003_v37 = vld [vmem:[%s20620_s13 + $0xf0] sm:$0xff]  }
 0x9c0   : > { %v11600_v25 = vmax.f32 %v11582_v0, %v11584_v31  ;;  %v11553_v38 = vmul.f32 0.01, %v11489_v34  ;;  %v11607_v1 = vpack.c.bf16 %v11597_v16, %v11595_v61  ;;  %v11599_v11 = vmax.f32 %v11579_v18, %v11581_v4  ;;  %v15985_v44 = vld [vmem:[%s20620_s13 + $0x88] sm:$0xff]   ;;  %v16004_v9 = vld [vmem:[%s20620_s13 + $0x30] sm:$0xff]   ;;  %v16006_v49 = vld [vmem:[%s20620_s13 + $0x78] sm:$0xff]  }
 0x9c1   : > { %v11583_v26 = vsel %vm11519_vm10, %v11487_v46, %v11551_v8  ;;  %vm11621_vm0 = vcmask 523264   ;;  %v16000_v21 = vld [vmem:[%s20620_s13 + $0x28] sm:$0xff]   ;;  %v16005_v50 = vld [vmem:[%s20620_s13 + $0xb0] sm:$0xff]   ;;  %v16007_v2 = vld [vmem:[%s20620_s13 + $0xf8] sm:$0xff]   ;;  %vm16270_vm1 = vmmov 0  }
 0x9c2   : > { %v11585_v19 = vsel %vm11521_vm11, %v11489_v34, %v11553_v38  ;;  %11632 = vmatprep.subr.bf16.mxu0 %v11607_v1  ;;  %11700 = vmatprep.subr.bf16.mxu1 %v11607_v1  ;;  %v11608_v62 = vpack.c.bf16 %v11600_v25, %v11598_v20  ;;  %v16001_v53 = vld [vmem:[%s20620_s13 + $0xa8] sm:$0xff]   ;;  %v16008_v40 = vld [vmem:[%s20620_s13 + $0x38] sm:$0xff]   ;;  %v16010_v48 = vld [vmem:[%s20620_s13 + $0x140] sm:$0xff]  }
 0x9c3   : > { %11633 = vmatpush1.bf16.msra.mxu0 %v11606_v52  ;;  %11701 = vmatpush1.bf16.msra.mxu1 %v11606_v52  ;;  %v11601_v14 = vmax.f32 %v11583_v26, %v11585_v19  ;;  %v16009_v24 = vld [vmem:[%s20620_s13 + $0xb8] sm:$0xff]   ;;  %v20480_v60 = vld [vmem:[#allocation2 + $0x100] sm:$0xff]  ;;  %v16012_v25 = vld [vmem:[%s20620_s13 + $0x148] sm:$0xff]  }
 0x9c4   : > { %v16011_v31 = vld [vmem:[%s20620_s13 + $0x100] sm:$0xff]  }
 0x9c5   : > { %v11609_v55 = vpack.c.bf16 %v11601_v14, %v11599_v11 }
 0x9c7   : > { %11634 = vmatprep.subr.bf16.mxu0 %v11609_v55  ;;  %11702 = vmatprep.subr.bf16.mxu1 %v11609_v55 }
 0x9c8   : > { %11635 = vmatpush1.bf16.msra.mxu0 %v11608_v62  ;;  %11703 = vmatpush1.bf16.msra.mxu1 %v11608_v62  ;;  %v16013_v62 = vld [vmem:[%s20620_s13 + $0x108] sm:$0xff]  }
 0x9c9   : > { %13910 = vmatprep.subr.bf16.mxu1 %v15978_v3  ;;  %13888 = vmatprep.subr.bf16.mxu0 %v15979_v17  ;;  %v16014_v17 = vld [vmem:[%s20620_s13 + $0x150] sm:$0xff]  }
 0x9cb   : > { %13756 = vmatmul.mubr.msk.bf16.vlgmr.msra.gmra.mrb[160].mxu0 %vm11621_vm0, %v15974_v43  ;;  %13760 = vmatmul.mubr.msk.bf16.vlgmr.msra.gmra.mrb[160].mxu1 %vm11621_vm0, %v15975_v7 }
 0x9cc   : > { %11670 = vmatprep.mubr.bf16.mxu0 %v20695_v41  ;;  %11738 = vmatprep.mubr.bf16.mxu1 %v20695_v41  ;;  %v15987_v41 = vld [vmem:[%s20620_s13 + $0xd0] sm:$0xff]  }
 0x9cd   : > { %13911 = vmatpush3.bf16.msra.mxu1 %v15980_v57  ;;  %13889 = vmatpush3.bf16.msra.mxu0 %v15981_v23  ;;  %v16015_v23 = vld [vmem:[%s20620_s13 + $0x110] sm:$0xff]  }
 0x9ce   : > { %13912 = vmatprep.subr.bf16.mxu1 %v15982_v29  ;;  %13890 = vmatprep.subr.bf16.mxu0 %v15983_v30  ;;  %v16016_v29 = vld [vmem:[%s20620_s13 + $0x158] sm:$0xff]  }
 0x9cf   : > { %v16017_v30 = vld [vmem:[%s20620_s13 + $0x118] sm:$0xff]  }
 0x9d1   : > { %13913 = vmatpush3.bf16.msra.mxu1 %v15984_v63  ;;  %13891 = vmatpush3.bf16.msra.mxu0 %v15985_v44  ;;  %v16018_v63 = vld [vmem:[%s20620_s13 + $0x160] sm:$0xff]  }
 0x9d2   : > { %13914 = vmatprep.subr.bf16.mxu1 %v15986_v59  ;;  %13892 = vmatprep.subr.bf16.mxu0 %v15987_v41  ;;  %v16019_v44 = vld [vmem:[%s20620_s13 + $0x120] sm:$0xff]   ;;  %v16020_v59 = vld [vmem:[%s20620_s13 + $0x168] sm:$0xff]  }
 0x9d3   : > { %13757 = vmatmul.mubr.msk.bf16.gmra.mrb[164].mxu0 %vm11621_vm0, %v15976_v32  ;;  %13761 = vmatmul.mubr.msk.bf16.gmra.mrb[164].mxu1 %vm11621_vm0, %v15977_v12  ;;  %v16021_v41 = vld [vmem:[%s20620_s13 + $0x128] sm:$0xff]   ;;  %v16022_v32 = vld [vmem:[%s20620_s13 + $0x170] sm:$0xff]  }
 0x9d4   : > { %v16023_v12 = vld [vmem:[%s20620_s13 + $0x130] sm:$0xff]  }
 0x9d5   : > { %13915 = vmatpush3.bf16.msra.mxu1 %v15988_v27  ;;  %13893 = vmatpush3.bf16.msra.mxu0 %v15989_v33  ;;  %v16024_v27 = vld [vmem:[%s20620_s13 + $0x178] sm:$0xff]  }
 0x9d6   : > { %13916 = vmatprep.subr.bf16.mxu1 %v15990_v13  ;;  %13894 = vmatprep.subr.bf16.mxu0 %v15991_v22  ;;  %v16025_v33 = vld [vmem:[%s20620_s13 + $0x138] sm:$0xff]   ;;  %v16026_v22 = vld [vmem:[%s20622_s15] sm:$0xff]  }
 0x9d9   : > { %13917 = vmatpush3.bf16.msra.mxu1 %v15992_v56  ;;  %13895 = vmatpush3.bf16.msra.mxu0 %v15993_v15  ;;  %v16027_v56 = vld [vmem:[%s20622_s15 + $0x8] sm:$0xff]   ;;  %v16028_v15 = vld [vmem:[%s20622_s15 + $0x10] sm:$0xff]  }
 0x9da   : > { %13918 = vmatprep.subr.bf16.mxu1 %v15994_v28  ;;  %13896 = vmatprep.subr.bf16.mxu0 %v15995_v42  ;;  %v16029_v28 = vld [vmem:[%s20622_s15 + $0x18] sm:$0xff]   ;;  %v16030_v42 = vld [vmem:[%s20622_s15 + $0x20] sm:$0xff]  }
 0x9dd   : > { %13919 = vmatpush3.bf16.msra.mxu1 %v15996_v58  ;;  %13897 = vmatpush3.bf16.msra.mxu0 %v15997_v47  ;;  %v16031_v58 = vld [vmem:[%s20622_s15 + $0x28] sm:$0xff]   ;;  %v16032_v47 = vld [vmem:[%s20622_s15 + $0x30] sm:$0xff]  }
 0x9de   : > { %13920 = vmatprep.subr.bf16.mxu1 %v15998_v51  ;;  %13898 = vmatprep.subr.bf16.mxu0 %v15999_v54  ;;  %v16033_v51 = vld [vmem:[%s20622_s15 + $0x38] sm:$0xff]  }
 0x9e1   : > { %13921 = vmatpush3.bf16.msra.mxu1 %v16000_v21  ;;  %13899 = vmatpush3.bf16.msra.mxu0 %v16001_v53 }
 0x9e2   : > { %13922 = vmatprep.subr.bf16.mxu1 %v16002_v5  ;;  %13900 = vmatprep.subr.bf16.mxu0 %v16003_v37 }
 0x9e5   : > { %13923 = vmatpush3.bf16.msra.mxu1 %v16004_v9  ;;  %13901 = vmatpush3.bf16.msra.mxu0 %v16005_v50 }
 0x9e6   : > { %13924 = vmatprep.subr.bf16.mxu1 %v16006_v49  ;;  %13902 = vmatprep.subr.bf16.mxu0 %v16007_v2 }
 0x9e9   : > { %13925 = vmatpush3.bf16.msra.mxu1 %v16008_v40  ;;  %13903 = vmatpush3.bf16.msra.mxu0 %v16009_v24 }
 0x9ea   : > { %13963 = vmatprep.subr.bf16.mxu1 %v20480_v60  ;;  %13932 = vmatprep.subr.bf16.mxu0 %v16010_v48 }
 0xa9e   : > { %v11662_v35 = vpop.f32.mrb[160].mxu0  ;;  %v11730_v36 = vpop.f32.mrb[160].mxu1 }
 0xa9f   : > { %v11747_v10 = vmax.f32 %v11662_v35, %v11730_v36  ;;  %v11664_v45 = vpop.f32.mrb[161].mxu0  ;;  %v11732_v20 = vpop.f32.mrb[161].mxu1 }
 0xaa0   : > { %v11748_v18 = vmax.f32 %v11664_v45, %v11732_v20  ;;  %v11666_v6 = vpop.f32.mrb[162].mxu0  ;;  %v11734_v4 = vpop.f32.mrb[162].mxu1  ;;  %v13874_v45 = vld [vmem:[#allocation11] ss:$0 sm:$0xff] }
 0xaa1   : > { %v11749_v39 = vmax.f32 %v11666_v6, %v11734_v4  ;;  %v11668_v46 = vpop.f32.mrb[163].mxu0  ;;  %v11736_v34 = vpop.f32.mrb[163].mxu1  ;;  %v11753_v16 = vpack.c.bf16 %v11747_v10, %v11747_v10 }
 0xaa2   : > { %v11754_v0 = vpack.c.bf16 %v11748_v18, %v11748_v18  ;;  %v11750_v61 = vmax.f32 %v11668_v46, %v11736_v34  ;;  %v13875_v46 = vld [vmem:[#allocation13] ss:$0 sm:$0xff] }
 0xaa3   : > { %v11787_v8 = vpack.c.bf16 %v11749_v39, %v11749_v39 }
 0xaa4   : > { %v11788_v52 = vpack.c.bf16 %v11750_v61, %v11750_v61  ;;  %12086 = vmatprep.mubr.bf16.mxu1 %v11754_v0 }
 0xaa5   : > { %12087 = vmatmul.mubr.bf16.vlgmr.msra.gmra.mrb[168].mxu1 %v11753_v16 }
 0xaa6   : > { %11950 = vmatprep.mubr.bf16.mxu0 %v11788_v52  ;;  %v11672_v38 = vpop.f32.mrb[164].mxu0  ;;  %v11740_v1 = vpop.f32.mrb[164].mxu1  ;;  %13964 = vmatpush3.bf16.msra.mxu1 %v16026_v22 }
 0xaa7   : > { %11951 = vmatmul.mubr.bf16.vlgmr.msra.gmra.mrb[168].mxu0 %v11787_v8  ;;  %v11751_v11 = vmax.f32 %v11672_v38, %v11740_v1  ;;  %v11674_v26 = vpop.f32.mrb[165].mxu0  ;;  %v11742_v19 = vpop.f32.mrb[165].mxu1  ;;  %13965 = vmatprep.subr.bf16.mxu1 %v20480_v60 }
 0xaa8   : > { %13933 = vmatpush3.bf16.msra.mxu0 %v16011_v31  ;;  %v11752_v14 = vmax.f32 %v11674_v26, %v11742_v19  ;;  %v11676_v55 = vpop.f32.mrb[166].mxu0  ;;  %v11744_v3 = vpop.f32.mrb[166].mxu1  ;;  %13979 = vmatprep.mubr.msk.bf16.mxu1 %vm16270_vm1, %v20480_v60 }
 0xaa9   : > { %13934 = vmatprep.subr.bf16.mxu0 %v16012_v25  ;;  %v11677_v43 = vpop.f32.mrb[167].mxu0  ;;  %v11745_v7 = vpop.f32.mrb[167].mxu1  ;;  %v12094_v13 = vpack.c.bf16 %v11751_v11, %v11751_v11 }
 0xaaa   : > { %v12095_v57 = vpack.c.bf16 %v11752_v14, %v11752_v14  ;;  %13966 = vmatpush3.bf16.msra.mxu1 %v16027_v56 }
 0xaab   : > { %13967 = vmatprep.subr.bf16.mxu1 %v20480_v60 }
 0xaac   : > { %13935 = vmatpush3.bf16.msra.mxu0 %v16013_v62  ;;  %12257 = vmatprep.mubr.bf16.mxu0 %v12095_v57 }
 0xaad   : > { %13936 = vmatprep.subr.bf16.mxu0 %v16014_v17 }
 0xaae   : > { %13968 = vmatpush3.bf16.msra.mxu1 %v16028_v15 }
 0xaaf   : > { %13969 = vmatprep.subr.bf16.mxu1 %v20480_v60 }
 0xab0   : > { %13937 = vmatpush3.bf16.msra.mxu0 %v16015_v23 }
 0xab1   : > { %13938 = vmatprep.subr.bf16.mxu0 %v16016_v29 }
 0xab2   : > { %13970 = vmatpush3.bf16.msra.mxu1 %v16029_v28 }
 0xab3   : > { %13971 = vmatprep.subr.bf16.mxu1 %v20480_v60 }
 0xab4   : > { %13939 = vmatpush3.bf16.msra.mxu0 %v16017_v30 }
 0xab5   : > { %13940 = vmatprep.subr.bf16.mxu0 %v16018_v63 }
 0xab6   : > { %13972 = vmatpush3.bf16.msra.mxu1 %v16030_v42 }
 0xab7   : > { %13973 = vmatprep.subr.bf16.mxu1 %v20480_v60 }
 0xab8   : > { %13941 = vmatpush3.bf16.msra.mxu0 %v16019_v44 }
 0xab9   : > { %13942 = vmatprep.subr.bf16.mxu0 %v16020_v59 }
 0xaba   : > { %13974 = vmatpush3.bf16.msra.mxu1 %v16031_v58 }
 0xabb   : > { %13975 = vmatprep.subr.bf16.mxu1 %v20480_v60 }
 0xabc   : > { %13943 = vmatpush3.bf16.msra.mxu0 %v16021_v41 }
 0xabd   : > { %13944 = vmatprep.subr.bf16.mxu0 %v16022_v32 }
 0xabe   : > { %13976 = vmatpush3.bf16.msra.mxu1 %v16032_v47 }
 0xabf   : > { %13977 = vmatprep.subr.bf16.mxu1 %v20480_v60 }
 0xac0   : > { %13945 = vmatpush3.bf16.msra.mxu0 %v16023_v12 }
 0xac1   : > { %13946 = vmatprep.subr.bf16.mxu0 %v16024_v27 }
 0xac2   : > { %13978 = vmatpush3.bf16.msra.mxu1 %v16033_v51 }
 0xac4   : > { %13947 = vmatpush3.bf16.msra.mxu0 %v16025_v33 }
 0xac7   : > { %12258 = vmatmul.mubr.bf16.vlgmr.msra.gmra.mrb[172].mxu0 %v12094_v13 }
 0xb78   : > { %v13926_v54 = vpop.f32.mrb[168].mxu1 }
 0xb79   : > { %v13927_v21 = vpop.f32.mrb[169].mxu1 }
 0xb7a   : > { %v13928_v53 = vadd.f32 %v13927_v21, %v13926_v54  ;;  %v13904_v5 = vpop.f32.mrb[168].mxu0  ;;  %v13929_v37 = vpop.f32.mrb[170].mxu1 }
 0xb7b   : > { %v13905_v9 = vpop.f32.mrb[169].mxu0  ;;  %v13930_v50 = vpop.f32.mrb[171].mxu1 }
 0xb7c   : > { %v13906_v49 = vadd.f32 %v13905_v9, %v13904_v5  ;;  %v13907_v2 = vpop.f32.mrb[170].mxu0 }
 0xb7d   : > { %v13908_v40 = vpop.f32.mrb[171].mxu0 }
 0xb7e   : > { %v12089_v24 = vadd.f32 %v13928_v53, %v13906_v49 }
 0xb9a   : > { %v13948_v48 = vpop.f32.mrb[172].mxu0 }
 0xb9b   : > { %v13949_v35 = vpop.f32.mrb[173].mxu0 }
 0xb9c   : > { %v13950_v36 = vadd.f32 %v13949_v35, %v13948_v48  ;;  %v13951_v10 = vpop.f32.mrb[174].mxu0 }
 0xb9d   : > { %v13952_v60 = vpop.f32.mrb[175].mxu0 }
 0xb9e   : > { %v12265_v20 = vadd.f32 %v13950_v36, %v12089_v24 }
 0xba0   : > { %v12273_v18 = vadd.f32 %v13874_v45, %v12265_v20 }
 0xba2   : > { %vm12274_vm12 = vcmp.gt.f32.partialorder %v12273_v18, 0.0  ;;  %v12275_v6 = vmul.f32 0.01, %v12273_v18 }
 0xba4   : > { %v12276_v4 = vsel %vm12274_vm12, %v12273_v18, %v12275_v6 }
 0xba5   : > { %v12277_v39 = vpack.c.bf16 %v12276_v4, %v12276_v4 }
 0xba7   : > { %13980 = vmatmul.mubr.bf16.vlgmr.msra.gmra.mrb[172].mxu1 %v12277_v39 }
 0xc7a   : > { %v12383_v34 = vpop.f32.mrb[172].mxu1 }
 0xc7b   : > { %v12384_v0 = vadd.f32 %v13875_v46, %v12383_v34  ;;  %v13981_v61 = vpop.f32.mrb[173].mxu1 }
 0xc7c   : > { %v12386_v16 = vpop.f32.mrb[174].mxu1 }
 0xc7d   : > { %12389 = vst [vmem:[%s607_s19] sm:$0xff] %v12384_v0  ;;  %v13982_v52 = vpop.f32.mrb[175].mxu1 }
 0xc7e   : > { %16198 = shalt.err (!%p16195_p1)
}
 0xc7f   : > { %s16199_s6 = scalar_lea.hbm %s20565_s25, 128  ;;  %s16203_s22 = scalar_lea.hbm %s20703_s1, 256 }
 0xc80   : > { %p16200_p0 = scmp.ne.s32.totalorder %s20565_s25, %s16199_s6  ;;  %p16204_p9 = scmp.lt.u32.totalorder %s20565_s25, %s20703_s1 }
 0xc81   : > { %p16205_p12 = scmp.lt.u32.totalorder %s16203_s22, %s16199_s6  ;;  %p16207_p2 = scmp.lt.u32.totalorder %s16199_s6, %s20565_s25 }
 0xc82   : > { %p16201_p6 = pnand %p16200_p0, %p20704_p3 }
 0xc83   : > { %p16206_p10 = por %p16205_p12, %p16204_p9 }
 0xc84   : > { %p16202_p5 = pneg %p16201_p6 }
 0xc85   : > { %p16208_p4 = por %p16207_p2, %p16206_p10 }
 0xc87   : > { %p16209_p7 = pnand %p16208_p4, %p16202_p5 }
 0xc89   : > { %16212 = shalt.err (!%p16209_p7)
}
 0xc8a   : > { %14835 = dma.vmem_to_hbm [thread:$0]  (%p20704_p3), %s20567_s0, 128, %s20565_s25, %s12391_s24  }
 0xc8b PF: > { %s20705_s26 = sld [smem:[#allocation22_spill]]  ;;  %s20706_s27 = sld [smem:[#allocation19_spill]] }
 0xc8c   : > { %s20707_s28 = sld [smem:[#allocation26_spill]] }
 0xc91   : > { %p14867_p8 = scmp.ge.s32.totalorder %s20705_s26, 2  ;;  %s12416_s4 = sand.u32 1, %s20706_s27  }
 0xc92   : > { %p20708_p11 = scmp.ne.s32.totalorder %s20707_s28, 0  ;;  %s12417_s18 = scalar_lea.sflag [#allocation7], %s12416_s4 }
 0xc94   : > { %p14854_p13 = pnand %p14867_p8, %p20708_p11 }
 0xc96   : > { %16242 = dma.done.wait (!%p14854_p13), %s12417_s18, 128  }
 0xc97   : > { %16244 = vsyncadd (!%p14854_p13), %s12417_s18, 4294967168  ;;  %s20709_s27 = sld [smem:[#allocation23_spill]]  ;;  %s20710_s24 = sld [smem:[#allocation20_spill]] }
 0xc98   : > { %s20711_s25 = sld [smem:[#allocation21_spill]]  ;;  %s20712_s26 = sld [smem:[#allocation24_spill]] }
 0xc9d   : > { %p30_p1 = scmp.ge.s32.totalorder %s20709_s27, 4  }
 0xc9f   :  { %32 = sbr.rel (!%p30_p1) target bundleno = 12 (0xc), region = 156 }
 0xca6   :  { %12422 = vsyncpa [#allocation6], 1 }
 0xca7   :  { %12424 = vsyncpa [#allocation6 + $0x1], 1 }
 0xca8   :  { %12425 = vsyncpa [#allocation9], 1 }
 0xca9   :  { %12426 = vsyncpa [#allocation12], 1 }
 0xcaa   :  { %12427 = vsyncpa [#allocation7], 1 }
 0xcab   :  { %12429 = vsyncpa [#allocation7 + $0x1], 1 }

</bundles_post_ra>
